<compile_context>
chip_gen: v6e
topology: v6e:2x2x1
jax: 0.10.0
libtpu: 0.0.40
codegen_flags: <defaults>
</compile_context>

<pallas_src>
import functools

import numpy as np
import jax
import jax.numpy as jnp
from jax.experimental import pallas as pl
from jax.experimental.pallas import tpu as pltpu

_BN_EPS = 1e-5


# ---------------------------------------------------------------------------
# Network plan
# ---------------------------------------------------------------------------
def _plan_network(layers, n, h, w):
    plan = []
    cur_h, cur_w = h, w
    for layer in layers:
        s = layer["stride"]
        ho = (cur_h - 1) // s + 1
        wo = (cur_w - 1) // s + 1
        plan.append(dict(kind=layer["kind"], stride=s,
                         cin=layer["inp"], cout=layer["oup"],
                         h=cur_h, w=cur_w, ho=ho, wo=wo, m=n * ho * wo,
                         is_output=layer["is_output"]))
        cur_h, cur_w = ho, wo
    return plan


# ---------------------------------------------------------------------------
# Whole-network fused pallas_call builder
# ---------------------------------------------------------------------------
def _build_fused_forward(layers, n, h, w):
    plan = _plan_network(layers, n, h, w)
    stem, blocks = plan[0], plan[1:]
    k_stem = 9 * stem["cin"]
    k_pad = ((k_stem + 31) // 32) * 32          # stem K: 27 -> 32

    # ---- inputs ----------------------------------------------------------
    in_shapes = []

    def add_in(shape):
        in_shapes.append(shape)
        return len(in_shapes) - 1

    s_ho, s_wo, s_co = stem["ho"], stem["wo"], stem["cout"]
    i_patch = add_in((n * s_ho, s_wo * k_pad))           # bf16 fused patches
    i_wstem = add_in((s_wo * k_pad, s_wo * s_co))        # bf16 block-diag W
    i_pstem = add_in((s_wo * s_co, s_wo * s_co))         # BN group projector
    i_gstem = add_in((1, s_wo * s_co))
    i_bstem = add_in((1, s_wo * s_co))

    blk = []
    for bp in blocks:
        wc_in = bp["w"] * bp["cin"]          # fused tap width (input res)
        wc_dw = bp["wo"] * bp["cin"]         # fused depthwise-output width
        wc_pw = bp["wo"] * bp["cout"]        # fused pointwise-output width
        d = dict(wdw=add_in((9, wc_in)))     # edge-masked, tiled tap weights
        if bp["stride"] == 2:
            d["sr"] = add_in((bp["ho"], bp["h"]))        # row selector
            d["sc"] = add_in((wc_in, wc_dw))             # fused-col selector
        d["p1"] = add_in((wc_dw, wc_dw))
        d["g1"] = add_in((1, wc_dw))
        d["b1"] = add_in((1, wc_dw))
        d["wpw"] = add_in((wc_dw, wc_pw))                # bf16 block-diag W
        d["p2"] = add_in((wc_pw, wc_pw))
        d["g2"] = add_in((1, wc_pw))
        d["b2"] = add_in((1, wc_pw))
        blk.append(d)

    # ---- outputs (lane-dense fused layout (n*ho, wo*cout)) ---------------
    out_shapes, out_meta = [], []
    for p in plan:
        if p["is_output"]:
            out_shapes.append((n * p["ho"], p["wo"] * p["cout"]))
            out_meta.append((p["ho"], p["wo"], p["cout"]))

    # ---- VMEM scratch: per-block padded fused activations ----------------
    scratch, act_idx = [], []
    for bp in blocks:
        act_idx.append(len(scratch))
        scratch.append(pltpu.VMEM((n, bp["h"] + 2, bp["w"] * bp["cin"]),
                                  jnp.float32))

    num_in, num_out = len(in_shapes), len(out_shapes)

    def kernel(*refs):
        in_refs = refs[:num_in]
        out_refs = refs[num_in:num_in + num_out]
        scr = refs[num_in + num_out:]

        # Zero the padded buffers once -> the top/bottom halo rows stay zero.
        for a in act_idx:
            scr[a][...] = jnp.zeros(scr[a].shape, jnp.float32)

        def bn_coeffs(sum_x, sum_x2, m, p_ref, g_ref, b_ref):
            # Train-mode BN batch stats: group-sum + re-tiling on the MXU,
            # tiny sublane reduce, rsqrt on the EUP.
            proj = p_ref[...]
            mean_t = jnp.sum(jnp.dot(sum_x, proj,
                                     preferred_element_type=jnp.float32),
                             axis=0, keepdims=True) * (1.0 / m)
            ex2_t = jnp.sum(jnp.dot(sum_x2, proj,
                                    preferred_element_type=jnp.float32),
                            axis=0, keepdims=True) * (1.0 / m)
            var_t = jnp.maximum(ex2_t - mean_t * mean_t, 0.0)
            scale_t = g_ref[...] * jax.lax.rsqrt(var_t + _BN_EPS)
            bias_t = b_ref[...] - mean_t * scale_t
            return scale_t, bias_t

        out_i = 0

        # -------- stem: 3x3/s2 conv as lane-dense block-diag matmul -------
        y = jnp.dot(in_refs[i_patch][...], in_refs[i_wstem][...],
                    preferred_element_type=jnp.float32)
        sc_t, bi_t = bn_coeffs(y, y * y, n * s_ho * s_wo,
                               in_refs[i_pstem], in_refs[i_gstem],
                               in_refs[i_bstem])
        z = jnp.maximum(y * sc_t + bi_t, 0.0)
        if stem["is_output"]:
            out_refs[out_i][...] = z
            out_i += 1
        if blocks:
            for ni in range(n):                 # one store per image
                scr[act_idx[0]][ni, pl.ds(1, s_ho), :] = (
                    z[ni * s_ho:(ni + 1) * s_ho, :])

        # -------- MobilenetV1 blocks (DW + BN + ReLU + PW + BN + ReLU) -----
        for li, bp in enumerate(blocks):
            d = blk[li]
            aref = scr[act_idx[li]]
            hh, ww, ho, wo = bp["h"], bp["w"], bp["ho"], bp["wo"]
            cin, cout, s = bp["cin"], bp["cout"], bp["stride"]
            wc_in = ww * cin
            m_blk = n * ho * wo

            wt = in_refs[d["wdw"]][...]                 # (9, ww*cin), hoisted
            wtaps = [wt[k:k + 1, :] for k in range(9)]
            if s == 2:
                srm = in_refs[d["sr"]][...]
                scm = in_refs[d["sc"]][...]

            # 3x3 depthwise conv on lane-fused rows; horizontal halo via
            # pltpu.roll + edge-masked weights (no unaligned lane access).
            dec, sum1, sum1_sq = [], None, None
            for ni in range(n):
                acc = None
                for kh in range(3):
                    row = aref[ni, pl.ds(kh, hh), :]    # (hh, ww*cin)
                    t0 = pltpu.roll(row, cin, 1) * wtaps[kh * 3 + 0]
                    t1 = row * wtaps[kh * 3 + 1]
                    t2 = pltpu.roll(row, wc_in - cin, 1) * wtaps[kh * 3 + 2]
                    part = t0 + t1 + t2
                    acc = part if acc is None else acc + part
                if s == 2:
                    # stride-2 decimation = two 0/1 selection matmuls (MXU)
                    acc = jnp.dot(srm,
                                  jnp.dot(acc, scm,
                                          preferred_element_type=jnp.float32),
                                  preferred_element_type=jnp.float32)
                dec.append(acc)
                sum1 = acc if sum1 is None else sum1 + acc
                sq = acc * acc
                sum1_sq = sq if sum1_sq is None else sum1_sq + sq
            s1_t, b1_t = bn_coeffs(sum1, sum1_sq, m_blk, in_refs[d["p1"]],
                                   in_refs[d["g1"]], in_refs[d["b1"]])

            # pointwise 1x1 conv as block-diagonal bf16 matmul + BN + ReLU
            wpw = in_refs[d["wpw"]][...]
            ys, sum2, sum2_sq = [], None, None
            for ni in range(n):
                x = jnp.maximum(dec[ni] * s1_t + b1_t, 0.0)
                yb = jnp.dot(x.astype(jnp.bfloat16), wpw,
                             preferred_element_type=jnp.float32)
                ys.append(yb)
                sum2 = yb if sum2 is None else sum2 + yb
                sq = yb * yb
                sum2_sq = sq if sum2_sq is None else sum2_sq + sq
            s2_t, b2_t = bn_coeffs(sum2, sum2_sq, m_blk, in_refs[d["p2"]],
                                   in_refs[d["g2"]], in_refs[d["b2"]])

            for ni in range(n):
                zb = jnp.maximum(ys[ni] * s2_t + b2_t, 0.0)
                if bp["is_output"]:
                    out_refs[out_i][pl.ds(ni * ho, ho), :] = zb
                if li + 1 < len(blocks):        # feed next block's interior
                    scr[act_idx[li + 1]][ni, pl.ds(1, ho), :] = zb
            if bp["is_output"]:
                out_i += 1

    def _zero_map(nd, i):
        return (0,) * nd

    def full_spec(shape):
        return pl.BlockSpec(shape, functools.partial(_zero_map, len(shape)))

    fused = pl.pallas_call(
        kernel,
        out_shape=tuple(jax.ShapeDtypeStruct(sh, jnp.float32)
                        for sh in out_shapes),
        grid=(1,),
        in_specs=[full_spec(sh) for sh in in_shapes],
        out_specs=tuple(full_spec(sh) for sh in out_shapes),
        scratch_shapes=scratch,
        compiler_params=pltpu.CompilerParams(
            dimension_semantics=("arbitrary",)),
    )
    return fused, out_meta, k_pad, plan


# ---------------------------------------------------------------------------
# Wrapper-side constant/parameter packing helpers
# ---------------------------------------------------------------------------
def _proj_mat(c, reps):
    # kron(ones, eye): per-channel group-sum + re-tiling projector for BN.
    return jnp.asarray(np.kron(np.ones((reps, reps), np.float32),
                               np.eye(c, dtype=np.float32)))


def _row_select(ho, h):
    m = np.zeros((ho, h), np.float32)
    m[np.arange(ho), 2 * np.arange(ho)] = 1.0
    return jnp.asarray(m)


def _col_select(w, wo, c):
    a = np.zeros((w, wo), np.float32)
    a[2 * np.arange(wo), np.arange(wo)] = 1.0
    return jnp.asarray(np.kron(a, np.eye(c, dtype=np.float32)))


def _tile_row(v, reps):
    return jnp.tile(v.reshape(1, -1), (1, reps))


def _extract_stem_patches(x_nhwc, stride):
    n, h, w, c = x_nhwc.shape
    xp = jnp.pad(x_nhwc, ((0, 0), (1, 1), (1, 1), (0, 0)))
    ho = (h - 1) // stride + 1
    wo = (w - 1) // stride + 1
    taps = []
    for kh in range(3):
        for kw in range(3):
            taps.append(jax.lax.slice(
                xp, (0, kh, kw, 0),
                (n, kh + (ho - 1) * stride + 1, kw + (wo - 1) * stride + 1, c),
                (1, stride, stride, 1)))
    patches = jnp.stack(taps, axis=3)          # (n, ho, wo, 9, c)
    return patches.reshape(n * ho * wo, 9 * c), ho, wo


# ---------------------------------------------------------------------------
# Deterministic parameter construction (mirrors MobilenetV1.__init__ logic)
# ---------------------------------------------------------------------------
def _conv_init(key, shape):
    fan_in = shape[1] * shape[2] * shape[3]
    return jax.random.normal(key, shape, jnp.float32) * (2.0 / max(fan_in, 1)) ** 0.5


def build_model(key, in_channels=3, stem_channels=8, out_channel_num=8,
                base_channels=8, channels=((1, 2), (2, 4)),
                output_stages=(1, 2, 3), downsample_first=False):
    channels = [[i * base_channels for i in j] for j in channels]
    out_channels = out_channel_num * base_channels
    stage_num = len(channels) + 2
    keys = iter(jax.random.split(key, 512))

    def bn_params(c):
        g = 1.0 + 0.1 * jax.random.normal(next(keys), (c,), jnp.float32)
        b = 0.1 * jax.random.normal(next(keys), (c,), jnp.float32)
        return g, b

    layers = []
    inp, oup = in_channels, stem_channels

    # layer_0_0 : Conv2d(3x3, stride 2, pad 1) + BN + ReLU
    w = _conv_init(next(keys), (oup, inp, 3, 3))
    g, b = bn_params(oup)
    layers.append(dict(kind="stem", inp=inp, oup=oup, stride=2,
                       w=w, g=g, b=b, is_output=(0 in output_stages)))
    inp = oup

    for s, stage_channels in enumerate(channels):
        stage = s + 1
        blocks = len(stage_channels)
        for i, channel in enumerate(stage_channels):
            oup = channel
            if downsample_first:
                stride = 2 if i == 0 else 1
            else:
                stride = 2 if i == blocks - 1 else 1
            is_out = (i == blocks - 1 and stage in output_stages)
            wdw = _conv_init(next(keys), (inp, 1, 3, 3))
            g1, b1 = bn_params(inp)
            wpw = _conv_init(next(keys), (oup, inp, 1, 1))
            g2, b2 = bn_params(oup)
            layers.append(dict(kind="block", inp=inp, oup=oup, stride=stride,
                               wdw=wdw, g1=g1, b1=b1, wpw=wpw, g2=g2, b2=b2,
                               is_output=is_out))
            inp = oup

    # final layer_{stage_num-1}_0 : MobilenetV1Block(inp, out_channels, 1)
    stage = stage_num - 1
    oup = out_channels
    wdw = _conv_init(next(keys), (inp, 1, 3, 3))
    g1, b1 = bn_params(inp)
    wpw = _conv_init(next(keys), (oup, inp, 1, 1))
    g2, b2 = bn_params(oup)
    layers.append(dict(kind="block", inp=inp, oup=oup, stride=1,
                       wdw=wdw, g1=g1, b1=b1, wpw=wpw, g2=g2, b2=b2,
                       is_output=(stage in output_stages)))
    return layers


# ---------------------------------------------------------------------------
# Forward pass (matches MobilenetV1.forward: returns tuple of output stages)
# ---------------------------------------------------------------------------
def mobilenet_v1_forward(layers, x_nchw):
    n, cin, h, w = x_nchw.shape
    fused, out_meta, k_pad, plan = _build_fused_forward(layers, n, h, w)
    stem_l, stem_p = layers[0], plan[0]
    s_ho, s_wo, s_co = stem_p["ho"], stem_p["wo"], stem_p["cout"]

    # Stem im2col (network input only), packed lane-dense + fused per row.
    x_nhwc = jnp.transpose(x_nchw, (0, 2, 3, 1))
    patches, _, _ = _extract_stem_patches(x_nhwc, stem_l["stride"])
    patches = jnp.pad(patches, ((0, 0), (0, k_pad - 9 * cin)))
    patches = patches.reshape(n * s_ho, s_wo * k_pad).astype(jnp.bfloat16)

    wstem = jnp.transpose(stem_l["w"], (2, 3, 1, 0)).reshape(9 * cin, s_co)
    wstem = jnp.pad(wstem, ((0, k_pad - 9 * cin), (0, 0)))
    wstem_blk = jnp.kron(jnp.eye(s_wo, dtype=jnp.float32),
                         wstem).astype(jnp.bfloat16)

    args = [patches, wstem_blk, _proj_mat(s_co, s_wo),
            _tile_row(stem_l["g"], s_wo), _tile_row(stem_l["b"], s_wo)]

    for layer, bp in zip(layers[1:], plan[1:]):
        ci, co = layer["inp"], layer["oup"]
        ww, wo = bp["w"], bp["wo"]
        # Depthwise tap weights tiled along W (lane-fused) with the left/right
        # halo groups zeroed (halo handled by pltpu.roll in-kernel).
        wdw9 = jnp.transpose(layer["wdw"].reshape(ci, 9), (1, 0))   # (9, ci)
        wdw_t = jnp.tile(wdw9, (1, ww))                             # (9, ww*ci)
        mask = np.ones((9, ww * ci), np.float32)
        for kh in range(3):
            mask[kh * 3 + 0, :ci] = 0.0
            mask[kh * 3 + 2, ww * ci - ci:] = 0.0
        args.append(wdw_t * jnp.asarray(mask))
        if bp["stride"] == 2:
            args.append(_row_select(bp["ho"], bp["h"]))
            args.append(_col_select(ww, wo, ci))
        wpw = jnp.transpose(layer["wpw"].reshape(co, ci), (1, 0))   # (ci, co)
        wpw_blk = jnp.kron(jnp.eye(wo, dtype=jnp.float32),
                           wpw).astype(jnp.bfloat16)
        args += [_proj_mat(ci, wo), _tile_row(layer["g1"], wo),
                 _tile_row(layer["b1"], wo),
                 wpw_blk, _proj_mat(co, wo), _tile_row(layer["g2"], wo),
                 _tile_row(layer["b2"], wo)]

    outs2d = fused(*args)
    if not isinstance(outs2d, (tuple, list)):
        outs2d = (outs2d,)
    outs = []
    for o2d, (oh, ow, oc) in zip(outs2d, out_meta):
        outs.append(jnp.transpose(o2d.reshape(n, oh, ow, oc), (0, 3, 1, 2)))
    return tuple(outs)


if __name__ == "__main__":
    # Small but structurally faithful MobilenetV1 configuration.
    layers = build_model(jax.random.PRNGKey(42),
                         in_channels=3, stem_channels=8, out_channel_num=8,
                         base_channels=8, channels=((1, 2), (2, 4)),
                         output_stages=(1, 2, 3), downsample_first=False)

    x = jax.random.normal(jax.random.PRNGKey(0), (2, 3, 32, 32), jnp.float32)

    fwd = jax.jit(lambda inp: mobilenet_v1_forward(layers, inp))
    outs = fwd(x)
    outs = tuple(jax.block_until_ready(o) for o in outs)

    expected = [(2, 16, 8, 8), (2, 32, 4, 4), (2, 64, 4, 4)]
    assert [tuple(o.shape) for o in outs] == expected, [o.shape for o in outs]
    assert all(bool(jnp.all(jnp.isfinite(o))) for o in outs)
    print("KERNEL_OK")
</pallas_src>

<mosaic_0001>
module attributes {stable_mosaic.version = 11 : i64} {
  func.func @kernel(%arg0: i32, %arg1: memref<32x512xbf16, #tpu.memory_space<vmem>>, %arg2: memref<512x128xbf16, #tpu.memory_space<vmem>>, %arg3: memref<128x128xf32, #tpu.memory_space<vmem>>, %arg4: memref<1x128xf32, #tpu.memory_space<vmem>>, %arg5: memref<1x128xf32, #tpu.memory_space<vmem>>, %arg6: memref<9x128xf32, #tpu.memory_space<vmem>>, %arg7: memref<128x128xf32, #tpu.memory_space<vmem>>, %arg8: memref<1x128xf32, #tpu.memory_space<vmem>>, %arg9: memref<1x128xf32, #tpu.memory_space<vmem>>, %arg10: memref<128x128xbf16, #tpu.memory_space<vmem>>, %arg11: memref<128x128xf32, #tpu.memory_space<vmem>>, %arg12: memref<1x128xf32, #tpu.memory_space<vmem>>, %arg13: memref<1x128xf32, #tpu.memory_space<vmem>>, %arg14: memref<9x128xf32, #tpu.memory_space<vmem>>, %arg15: memref<8x16xf32, #tpu.memory_space<vmem>>, %arg16: memref<128x64xf32, #tpu.memory_space<vmem>>, %arg17: memref<64x64xf32, #tpu.memory_space<vmem>>, %arg18: memref<1x64xf32, #tpu.memory_space<vmem>>, %arg19: memref<1x64xf32, #tpu.memory_space<vmem>>, %arg20: memref<64x128xbf16, #tpu.memory_space<vmem>>, %arg21: memref<128x128xf32, #tpu.memory_space<vmem>>, %arg22: memref<1x128xf32, #tpu.memory_space<vmem>>, %arg23: memref<1x128xf32, #tpu.memory_space<vmem>>, %arg24: memref<9x128xf32, #tpu.memory_space<vmem>>, %arg25: memref<128x128xf32, #tpu.memory_space<vmem>>, %arg26: memref<1x128xf32, #tpu.memory_space<vmem>>, %arg27: memref<1x128xf32, #tpu.memory_space<vmem>>, %arg28: memref<128x128xbf16, #tpu.memory_space<vmem>>, %arg29: memref<128x128xf32, #tpu.memory_space<vmem>>, %arg30: memref<1x128xf32, #tpu.memory_space<vmem>>, %arg31: memref<1x128xf32, #tpu.memory_space<vmem>>, %arg32: memref<9x128xf32, #tpu.memory_space<vmem>>, %arg33: memref<4x8xf32, #tpu.memory_space<vmem>>, %arg34: memref<128x64xf32, #tpu.memory_space<vmem>>, %arg35: memref<64x64xf32, #tpu.memory_space<vmem>>, %arg36: memref<1x64xf32, #tpu.memory_space<vmem>>, %arg37: memref<1x64xf32, #tpu.memory_space<vmem>>, %arg38: memref<64x128xbf16, #tpu.memory_space<vmem>>, %arg39: memref<128x128xf32, #tpu.memory_space<vmem>>, %arg40: memref<1x128xf32, #tpu.memory_space<vmem>>, %arg41: memref<1x128xf32, #tpu.memory_space<vmem>>, %arg42: memref<9x128xf32, #tpu.memory_space<vmem>>, %arg43: memref<128x128xf32, #tpu.memory_space<vmem>>, %arg44: memref<1x128xf32, #tpu.memory_space<vmem>>, %arg45: memref<1x128xf32, #tpu.memory_space<vmem>>, %arg46: memref<128x256xbf16, #tpu.memory_space<vmem>>, %arg47: memref<256x256xf32, #tpu.memory_space<vmem>>, %arg48: memref<1x256xf32, #tpu.memory_space<vmem>>, %arg49: memref<1x256xf32, #tpu.memory_space<vmem>>, %arg50: memref<16x128xf32, #tpu.memory_space<vmem>>, %arg51: memref<8x128xf32, #tpu.memory_space<vmem>>, %arg52: memref<8x256xf32, #tpu.memory_space<vmem>>, %arg53: memref<2x18x128xf32, #tpu.memory_space<vmem>>, %arg54: memref<2x18x128xf32, #tpu.memory_space<vmem>>, %arg55: memref<2x10x128xf32, #tpu.memory_space<vmem>>, %arg56: memref<2x10x128xf32, #tpu.memory_space<vmem>>, %arg57: memref<2x6x128xf32, #tpu.memory_space<vmem>>) attributes {dimension_semantics = [#tpu.dimension_semantics<arbitrary>], iteration_bounds = array<i64: 1>, scalar_prefetch = 0 : i64, scratch_operands = 5 : i64, tpu.core_type = #tpu.core_type<tc>, window_params = [{pipeline_mode = #tpu.pipeline_mode<synchronous>, transform_indices = @transform_0, window_bounds = array<i64: 32, 512>}, {pipeline_mode = #tpu.pipeline_mode<synchronous>, transform_indices = @transform_1, window_bounds = array<i64: 512, 128>}, {pipeline_mode = #tpu.pipeline_mode<synchronous>, transform_indices = @transform_2, window_bounds = array<i64: 128, 128>}, {pipeline_mode = #tpu.pipeline_mode<synchronous>, transform_indices = @transform_3, window_bounds = array<i64: 1, 128>}, {pipeline_mode = #tpu.pipeline_mode<synchronous>, transform_indices = @transform_4, window_bounds = array<i64: 1, 128>}, {pipeline_mode = #tpu.pipeline_mode<synchronous>, transform_indices = @transform_5, window_bounds = array<i64: 9, 128>}, {pipeline_mode = #tpu.pipeline_mode<synchronous>, transform_indices = @transform_6, window_bounds = array<i64: 128, 128>}, {pipeline_mode = #tpu.pipeline_mode<synchronous>, transform_indices = @transform_7, window_bounds = array<i64: 1, 128>}, {pipeline_mode = #tpu.pipeline_mode<synchronous>, transform_indices = @transform_8, window_bounds = array<i64: 1, 128>}, {pipeline_mode = #tpu.pipeline_mode<synchronous>, transform_indices = @transform_9, window_bounds = array<i64: 128, 128>}, {pipeline_mode = #tpu.pipeline_mode<synchronous>, transform_indices = @transform_10, window_bounds = array<i64: 128, 128>}, {pipeline_mode = #tpu.pipeline_mode<synchronous>, transform_indices = @transform_11, window_bounds = array<i64: 1, 128>}, {pipeline_mode = #tpu.pipeline_mode<synchronous>, transform_indices = @transform_12, window_bounds = array<i64: 1, 128>}, {pipeline_mode = #tpu.pipeline_mode<synchronous>, transform_indices = @transform_13, window_bounds = array<i64: 9, 128>}, {pipeline_mode = #tpu.pipeline_mode<synchronous>, transform_indices = @transform_14, window_bounds = array<i64: 8, 16>}, {pipeline_mode = #tpu.pipeline_mode<synchronous>, transform_indices = @transform_15, window_bounds = array<i64: 128, 64>}, {pipeline_mode = #tpu.pipeline_mode<synchronous>, transform_indices = @transform_16, window_bounds = array<i64: 64, 64>}, {pipeline_mode = #tpu.pipeline_mode<synchronous>, transform_indices = @transform_17, window_bounds = array<i64: 1, 64>}, {pipeline_mode = #tpu.pipeline_mode<synchronous>, transform_indices = @transform_18, window_bounds = array<i64: 1, 64>}, {pipeline_mode = #tpu.pipeline_mode<synchronous>, transform_indices = @transform_19, window_bounds = array<i64: 64, 128>}, {pipeline_mode = #tpu.pipeline_mode<synchronous>, transform_indices = @transform_20, window_bounds = array<i64: 128, 128>}, {pipeline_mode = #tpu.pipeline_mode<synchronous>, transform_indices = @transform_21, window_bounds = array<i64: 1, 128>}, {pipeline_mode = #tpu.pipeline_mode<synchronous>, transform_indices = @transform_22, window_bounds = array<i64: 1, 128>}, {pipeline_mode = #tpu.pipeline_mode<synchronous>, transform_indices = @transform_23, window_bounds = array<i64: 9, 128>}, {pipeline_mode = #tpu.pipeline_mode<synchronous>, transform_indices = @transform_24, window_bounds = array<i64: 128, 128>}, {pipeline_mode = #tpu.pipeline_mode<synchronous>, transform_indices = @transform_25, window_bounds = array<i64: 1, 128>}, {pipeline_mode = #tpu.pipeline_mode<synchronous>, transform_indices = @transform_26, window_bounds = array<i64: 1, 128>}, {pipeline_mode = #tpu.pipeline_mode<synchronous>, transform_indices = @transform_27, window_bounds = array<i64: 128, 128>}, {pipeline_mode = #tpu.pipeline_mode<synchronous>, transform_indices = @transform_28, window_bounds = array<i64: 128, 128>}, {pipeline_mode = #tpu.pipeline_mode<synchronous>, transform_indices = @transform_29, window_bounds = array<i64: 1, 128>}, {pipeline_mode = #tpu.pipeline_mode<synchronous>, transform_indices = @transform_30, window_bounds = array<i64: 1, 128>}, {pipeline_mode = #tpu.pipeline_mode<synchronous>, transform_indices = @transform_31, window_bounds = array<i64: 9, 128>}, {pipeline_mode = #tpu.pipeline_mode<synchronous>, transform_indices = @transform_32, window_bounds = array<i64: 4, 8>}, {pipeline_mode = #tpu.pipeline_mode<synchronous>, transform_indices = @transform_33, window_bounds = array<i64: 128, 64>}, {pipeline_mode = #tpu.pipeline_mode<synchronous>, transform_indices = @transform_34, window_bounds = array<i64: 64, 64>}, {pipeline_mode = #tpu.pipeline_mode<synchronous>, transform_indices = @transform_35, window_bounds = array<i64: 1, 64>}, {pipeline_mode = #tpu.pipeline_mode<synchronous>, transform_indices = @transform_36, window_bounds = array<i64: 1, 64>}, {pipeline_mode = #tpu.pipeline_mode<synchronous>, transform_indices = @transform_37, window_bounds = array<i64: 64, 128>}, {pipeline_mode = #tpu.pipeline_mode<synchronous>, transform_indices = @transform_38, window_bounds = array<i64: 128, 128>}, {pipeline_mode = #tpu.pipeline_mode<synchronous>, transform_indices = @transform_39, window_bounds = array<i64: 1, 128>}, {pipeline_mode = #tpu.pipeline_mode<synchronous>, transform_indices = @transform_40, window_bounds = array<i64: 1, 128>}, {pipeline_mode = #tpu.pipeline_mode<synchronous>, transform_indices = @transform_41, window_bounds = array<i64: 9, 128>}, {pipeline_mode = #tpu.pipeline_mode<synchronous>, transform_indices = @transform_42, window_bounds = array<i64: 128, 128>}, {pipeline_mode = #tpu.pipeline_mode<synchronous>, transform_indices = @transform_43, window_bounds = array<i64: 1, 128>}, {pipeline_mode = #tpu.pipeline_mode<synchronous>, transform_indices = @transform_44, window_bounds = array<i64: 1, 128>}, {pipeline_mode = #tpu.pipeline_mode<synchronous>, transform_indices = @transform_45, window_bounds = array<i64: 128, 256>}, {pipeline_mode = #tpu.pipeline_mode<synchronous>, transform_indices = @transform_46, window_bounds = array<i64: 256, 256>}, {pipeline_mode = #tpu.pipeline_mode<synchronous>, transform_indices = @transform_47, window_bounds = array<i64: 1, 256>}, {pipeline_mode = #tpu.pipeline_mode<synchronous>, transform_indices = @transform_48, window_bounds = array<i64: 1, 256>}, {pipeline_mode = #tpu.pipeline_mode<synchronous>, transform_indices = @transform_49, window_bounds = array<i64: 16, 128>}, {pipeline_mode = #tpu.pipeline_mode<synchronous>, transform_indices = @transform_50, window_bounds = array<i64: 8, 128>}, {pipeline_mode = #tpu.pipeline_mode<synchronous>, transform_indices = @transform_51, window_bounds = array<i64: 8, 256>}]} {
    %cst = arith.constant 0.000000e+00 : f32
    %0 = vector.broadcast %cst : f32 to vector<2x18x128xf32>
    %c0 = arith.constant 0 : index
    %c0_0 = arith.constant 0 : index
    %c0_1 = arith.constant 0 : index
    %1 = vector.load %arg53[%c0, %c0_0, %c0_1] : memref<2x18x128xf32, #tpu.memory_space<vmem>>, vector<2x18x128xf32>
    tpu.vector_store %arg53[%c0, %c0_0, %c0_1], %0 {strides = array<i32>} : memref<2x18x128xf32, #tpu.memory_space<vmem>>, vector<2x18x128xf32>,
    %cst_2 = arith.constant 0.000000e+00 : f32
    %2 = vector.broadcast %cst_2 : f32 to vector<2x18x128xf32>
    %c0_3 = arith.constant 0 : index
    %c0_4 = arith.constant 0 : index
    %c0_5 = arith.constant 0 : index
    %3 = vector.load %arg54[%c0_3, %c0_4, %c0_5] : memref<2x18x128xf32, #tpu.memory_space<vmem>>, vector<2x18x128xf32>
    tpu.vector_store %arg54[%c0_3, %c0_4, %c0_5], %2 {strides = array<i32>} : memref<2x18x128xf32, #tpu.memory_space<vmem>>, vector<2x18x128xf32>,
    %cst_6 = arith.constant 0.000000e+00 : f32
    %4 = vector.broadcast %cst_6 : f32 to vector<2x10x128xf32>
    %c0_7 = arith.constant 0 : index
    %c0_8 = arith.constant 0 : index
    %c0_9 = arith.constant 0 : index
    %5 = vector.load %arg55[%c0_7, %c0_8, %c0_9] : memref<2x10x128xf32, #tpu.memory_space<vmem>>, vector<2x10x128xf32>
    tpu.vector_store %arg55[%c0_7, %c0_8, %c0_9], %4 {strides = array<i32>} : memref<2x10x128xf32, #tpu.memory_space<vmem>>, vector<2x10x128xf32>,
    %cst_10 = arith.constant 0.000000e+00 : f32
    %6 = vector.broadcast %cst_10 : f32 to vector<2x10x128xf32>
    %c0_11 = arith.constant 0 : index
    %c0_12 = arith.constant 0 : index
    %c0_13 = arith.constant 0 : index
    %7 = vector.load %arg56[%c0_11, %c0_12, %c0_13] : memref<2x10x128xf32, #tpu.memory_space<vmem>>, vector<2x10x128xf32>
    tpu.vector_store %arg56[%c0_11, %c0_12, %c0_13], %6 {strides = array<i32>} : memref<2x10x128xf32, #tpu.memory_space<vmem>>, vector<2x10x128xf32>,
    %cst_14 = arith.constant 0.000000e+00 : f32
    %8 = vector.broadcast %cst_14 : f32 to vector<2x6x128xf32>
    %c0_15 = arith.constant 0 : index
    %c0_16 = arith.constant 0 : index
    %c0_17 = arith.constant 0 : index
    %9 = vector.load %arg57[%c0_15, %c0_16, %c0_17] : memref<2x6x128xf32, #tpu.memory_space<vmem>>, vector<2x6x128xf32>
    tpu.vector_store %arg57[%c0_15, %c0_16, %c0_17], %8 {strides = array<i32>} : memref<2x6x128xf32, #tpu.memory_space<vmem>>, vector<2x6x128xf32>,
    %c0_18 = arith.constant 0 : index
    %c0_19 = arith.constant 0 : index
    %10 = vector.load %arg1[%c0_18, %c0_19] : memref<32x512xbf16, #tpu.memory_space<vmem>>, vector<32x512xbf16>
    %c0_20 = arith.constant 0 : index
    %c0_21 = arith.constant 0 : index
    %11 = vector.load %arg2[%c0_20, %c0_21] : memref<512x128xbf16, #tpu.memory_space<vmem>>, vector<512x128xbf16>
    %cst_22 = arith.constant dense<0.000000e+00> : vector<32x128xf32>
    %12 = tpu.matmul %10, %11, %cst_22 {dimension_numbers = #tpu.dot_dimension_numbers<[1], [0], [0], [1], [0, 0, 1, 1], [], []>} : vector<32x512xbf16>, vector<512x128xbf16>, vector<32x128xf32> -> vector<32x128xf32>
    %13 = arith.mulf %12, %12 : vector<32x128xf32>
    %c0_23 = arith.constant 0 : index
    %c0_24 = arith.constant 0 : index
    %14 = vector.load %arg3[%c0_23, %c0_24] : memref<128x128xf32, #tpu.memory_space<vmem>>, vector<128x128xf32>
    %cst_25 = arith.constant dense<0.000000e+00> : vector<32x128xf32>
    %15 = tpu.matmul %12, %14, %cst_25 {dimension_numbers = #tpu.dot_dimension_numbers<[1], [0], [0], [1], [0, 0, 1, 1], [], []>} : vector<32x128xf32>, vector<128x128xf32>, vector<32x128xf32> -> vector<32x128xf32>
    %cst_26 = arith.constant dense<0.000000e+00> : vector<128xf32>
    %16 = vector.multi_reduction <add>, %15, %cst_26 [0] : vector<32x128xf32> to vector<128xf32>
    %17 = vector.shape_cast %16 : vector<128xf32> to vector<1x128xf32>
    %cst_27 = arith.constant 0.001953125 : f32
    %18 = vector.broadcast %cst_27 : f32 to vector<1x128xf32>
    %19 = arith.mulf %17, %18 : vector<1x128xf32>
    %cst_28 = arith.constant dense<0.000000e+00> : vector<32x128xf32>
    %20 = tpu.matmul %13, %14, %cst_28 {dimension_numbers = #tpu.dot_dimension_numbers<[1], [0], [0], [1], [0, 0, 1, 1], [], []>} : vector<32x128xf32>, vector<128x128xf32>, vector<32x128xf32> -> vector<32x128xf32>
    %cst_29 = arith.constant dense<0.000000e+00> : vector<128xf32>
    %21 = vector.multi_reduction <add>, %20, %cst_29 [0] : vector<32x128xf32> to vector<128xf32>
    %22 = vector.shape_cast %21 : vector<128xf32> to vector<1x128xf32>
    %cst_30 = arith.constant 0.001953125 : f32
    %23 = vector.broadcast %cst_30 : f32 to vector<1x128xf32>
    %24 = arith.mulf %22, %23 : vector<1x128xf32>
    %25 = arith.mulf %19, %19 : vector<1x128xf32>
    %26 = arith.subf %24, %25 : vector<1x128xf32>
    %cst_31 = arith.constant 0.000000e+00 : f32
    %27 = vector.broadcast %cst_31 : f32 to vector<1x128xf32>
    %28 = arith.maximumf %26, %27 : vector<1x128xf32>
    %c0_32 = arith.constant 0 : index
    %c0_33 = arith.constant 0 : index
    %29 = vector.load %arg4[%c0_32, %c0_33] : memref<1x128xf32, #tpu.memory_space<vmem>>, vector<1x128xf32>
    %cst_34 = arith.constant 9.99999974E-6 : f32
    %30 = vector.broadcast %cst_34 : f32 to vector<1x128xf32>
    %31 = arith.addf %28, %30 : vector<1x128xf32>
    %32 = math.rsqrt %31 : vector<1x128xf32>
    %33 = arith.mulf %29, %32 : vector<1x128xf32>
    %c0_35 = arith.constant 0 : index
    %c0_36 = arith.constant 0 : index
    %34 = vector.load %arg5[%c0_35, %c0_36] : memref<1x128xf32, #tpu.memory_space<vmem>>, vector<1x128xf32>
    %35 = arith.mulf %19, %33 : vector<1x128xf32>
    %36 = arith.subf %34, %35 : vector<1x128xf32>
    %37 = vector.broadcast %33 : vector<1x128xf32> to vector<32x128xf32>
    %38 = arith.mulf %12, %37 : vector<32x128xf32>
    %39 = vector.broadcast %36 : vector<1x128xf32> to vector<32x128xf32>
    %40 = arith.addf %38, %39 : vector<32x128xf32>
    %cst_37 = arith.constant 0.000000e+00 : f32
    %41 = vector.broadcast %cst_37 : f32 to vector<32x128xf32>
    %42 = arith.maximumf %40, %41 : vector<32x128xf32>
    %43 = vector.extract_strided_slice %42 {offsets = [0, 0], sizes = [16, 128], strides = [1, 1]} : vector<32x128xf32> to vector<16x128xf32>
    %c0_38 = arith.constant 0 : index
    %c1 = arith.constant 1 : index
    %c0_39 = arith.constant 0 : index
    %44 = vector.load %arg53[%c0_38, %c1, %c0_39] : memref<2x18x128xf32, #tpu.memory_space<vmem>>, vector<1x16x128xf32>
    %45 = vector.shape_cast %44 : vector<1x16x128xf32> to vector<16x128xf32>
    %46 = vector.shape_cast %43 : vector<16x128xf32> to vector<1x16x128xf32>
    tpu.vector_store %arg53[%c0_38, %c1, %c0_39], %46 {strides = array<i32>} : memref<2x18x128xf32, #tpu.memory_space<vmem>>, vector<1x16x128xf32>,
    %47 = vector.extract_strided_slice %42 {offsets = [16, 0], sizes = [16, 128], strides = [1, 1]} : vector<32x128xf32> to vector<16x128xf32>
    %c1_40 = arith.constant 1 : index
    %c1_41 = arith.constant 1 : index
    %c0_42 = arith.constant 0 : index
    %48 = vector.load %arg53[%c1_40, %c1_41, %c0_42] : memref<2x18x128xf32, #tpu.memory_space<vmem>>, vector<1x16x128xf32>
    %49 = vector.shape_cast %48 : vector<1x16x128xf32> to vector<16x128xf32>
    %50 = vector.shape_cast %47 : vector<16x128xf32> to vector<1x16x128xf32>
    tpu.vector_store %arg53[%c1_40, %c1_41, %c0_42], %50 {strides = array<i32>} : memref<2x18x128xf32, #tpu.memory_space<vmem>>, vector<1x16x128xf32>,
    %c0_43 = arith.constant 0 : index
    %c0_44 = arith.constant 0 : index
    %51 = vector.load %arg6[%c0_43, %c0_44] : memref<9x128xf32, #tpu.memory_space<vmem>>, vector<9x128xf32>
    %52 = vector.extract_strided_slice %51 {offsets = [0, 0], sizes = [1, 128], strides = [1, 1]} : vector<9x128xf32> to vector<1x128xf32>
    %53 = vector.extract_strided_slice %51 {offsets = [1, 0], sizes = [1, 128], strides = [1, 1]} : vector<9x128xf32> to vector<1x128xf32>
    %54 = vector.extract_strided_slice %51 {offsets = [2, 0], sizes = [1, 128], strides = [1, 1]} : vector<9x128xf32> to vector<1x128xf32>
    %55 = vector.extract_strided_slice %51 {offsets = [3, 0], sizes = [1, 128], strides = [1, 1]} : vector<9x128xf32> to vector<1x128xf32>
    %56 = vector.extract_strided_slice %51 {offsets = [4, 0], sizes = [1, 128], strides = [1, 1]} : vector<9x128xf32> to vector<1x128xf32>
    %57 = vector.extract_strided_slice %51 {offsets = [5, 0], sizes = [1, 128], strides = [1, 1]} : vector<9x128xf32> to vector<1x128xf32>
    %58 = vector.extract_strided_slice %51 {offsets = [6, 0], sizes = [1, 128], strides = [1, 1]} : vector<9x128xf32> to vector<1x128xf32>
    %59 = vector.extract_strided_slice %51 {offsets = [7, 0], sizes = [1, 128], strides = [1, 1]} : vector<9x128xf32> to vector<1x128xf32>
    %60 = vector.extract_strided_slice %51 {offsets = [8, 0], sizes = [1, 128], strides = [1, 1]} : vector<9x128xf32> to vector<1x128xf32>
    %c0_45 = arith.constant 0 : index
    %c0_46 = arith.constant 0 : index
    %c0_47 = arith.constant 0 : index
    %61 = vector.load %arg53[%c0_45, %c0_46, %c0_47] : memref<2x18x128xf32, #tpu.memory_space<vmem>>, vector<1x16x128xf32>
    %62 = vector.shape_cast %61 : vector<1x16x128xf32> to vector<16x128xf32>
    %c8_i32 = arith.constant 8 : i32
    %63 = tpu.dynamic_rotate %62 by %c8_i32 dim 1 : vector<16x128xf32>, i32 -> vector<16x128xf32>
    %64 = vector.broadcast %52 : vector<1x128xf32> to vector<16x128xf32>
    %65 = arith.mulf %63, %64 : vector<16x128xf32>
    %66 = vector.broadcast %53 : vector<1x128xf32> to vector<16x128xf32>
    %67 = arith.mulf %62, %66 : vector<16x128xf32>
    %c120_i32 = arith.constant 120 : i32
    %68 = tpu.dynamic_rotate %62 by %c120_i32 dim 1 : vector<16x128xf32>, i32 -> vector<16x128xf32>
    %69 = vector.broadcast %54 : vector<1x128xf32> to vector<16x128xf32>
    %70 = arith.mulf %68, %69 : vector<16x128xf32>
    %71 = arith.addf %65, %67 : vector<16x128xf32>
    %72 = arith.addf %71, %70 : vector<16x128xf32>
    %c0_48 = arith.constant 0 : index
    %c1_49 = arith.constant 1 : index
    %c0_50 = arith.constant 0 : index
    %73 = vector.load %arg53[%c0_48, %c1_49, %c0_50] : memref<2x18x128xf32, #tpu.memory_space<vmem>>, vector<1x16x128xf32>
    %74 = vector.shape_cast %73 : vector<1x16x128xf32> to vector<16x128xf32>
    %c8_i32_51 = arith.constant 8 : i32
    %75 = tpu.dynamic_rotate %74 by %c8_i32_51 dim 1 : vector<16x128xf32>, i32 -> vector<16x128xf32>
    %76 = vector.broadcast %55 : vector<1x128xf32> to vector<16x128xf32>
    %77 = arith.mulf %75, %76 : vector<16x128xf32>
    %78 = vector.broadcast %56 : vector<1x128xf32> to vector<16x128xf32>
    %79 = arith.mulf %74, %78 : vector<16x128xf32>
    %c120_i32_52 = arith.constant 120 : i32
    %80 = tpu.dynamic_rotate %74 by %c120_i32_52 dim 1 : vector<16x128xf32>, i32 -> vector<16x128xf32>
    %81 = vector.broadcast %57 : vector<1x128xf32> to vector<16x128xf32>
    %82 = arith.mulf %80, %81 : vector<16x128xf32>
    %83 = arith.addf %77, %79 : vector<16x128xf32>
    %84 = arith.addf %83, %82 : vector<16x128xf32>
    %85 = arith.addf %72, %84 : vector<16x128xf32>
    %c0_53 = arith.constant 0 : index
    %c2 = arith.constant 2 : index
    %c0_54 = arith.constant 0 : index
    %86 = vector.load %arg53[%c0_53, %c2, %c0_54] : memref<2x18x128xf32, #tpu.memory_space<vmem>>, vector<1x16x128xf32>
    %87 = vector.shape_cast %86 : vector<1x16x128xf32> to vector<16x128xf32>
    %c8_i32_55 = arith.constant 8 : i32
    %88 = tpu.dynamic_rotate %87 by %c8_i32_55 dim 1 : vector<16x128xf32>, i32 -> vector<16x128xf32>
    %89 = vector.broadcast %58 : vector<1x128xf32> to vector<16x128xf32>
    %90 = arith.mulf %88, %89 : vector<16x128xf32>
    %91 = vector.broadcast %59 : vector<1x128xf32> to vector<16x128xf32>
    %92 = arith.mulf %87, %91 : vector<16x128xf32>
    %c120_i32_56 = arith.constant 120 : i32
    %93 = tpu.dynamic_rotate %87 by %c120_i32_56 dim 1 : vector<16x128xf32>, i32 -> vector<16x128xf32>
    %94 = vector.broadcast %60 : vector<1x128xf32> to vector<16x128xf32>
    %95 = arith.mulf %93, %94 : vector<16x128xf32>
    %96 = arith.addf %90, %92 : vector<16x128xf32>
    %97 = arith.addf %96, %95 : vector<16x128xf32>
    %98 = arith.addf %85, %97 : vector<16x128xf32>
    %99 = arith.mulf %98, %98 : vector<16x128xf32>
    %c1_57 = arith.constant 1 : index
    %c0_58 = arith.constant 0 : index
    %c0_59 = arith.constant 0 : index
    %100 = vector.load %arg53[%c1_57, %c0_58, %c0_59] : memref<2x18x128xf32, #tpu.memory_space<vmem>>, vector<1x16x128xf32>
    %101 = vector.shape_cast %100 : vector<1x16x128xf32> to vector<16x128xf32>
    %c8_i32_60 = arith.constant 8 : i32
    %102 = tpu.dynamic_rotate %101 by %c8_i32_60 dim 1 : vector<16x128xf32>, i32 -> vector<16x128xf32>
    %103 = vector.broadcast %52 : vector<1x128xf32> to vector<16x128xf32>
    %104 = arith.mulf %102, %103 : vector<16x128xf32>
    %105 = vector.broadcast %53 : vector<1x128xf32> to vector<16x128xf32>
    %106 = arith.mulf %101, %105 : vector<16x128xf32>
    %c120_i32_61 = arith.constant 120 : i32
    %107 = tpu.dynamic_rotate %101 by %c120_i32_61 dim 1 : vector<16x128xf32>, i32 -> vector<16x128xf32>
    %108 = vector.broadcast %54 : vector<1x128xf32> to vector<16x128xf32>
    %109 = arith.mulf %107, %108 : vector<16x128xf32>
    %110 = arith.addf %104, %106 : vector<16x128xf32>
    %111 = arith.addf %110, %109 : vector<16x128xf32>
    %c1_62 = arith.constant 1 : index
    %c1_63 = arith.constant 1 : index
    %c0_64 = arith.constant 0 : index
    %112 = vector.load %arg53[%c1_62, %c1_63, %c0_64] : memref<2x18x128xf32, #tpu.memory_space<vmem>>, vector<1x16x128xf32>
    %113 = vector.shape_cast %112 : vector<1x16x128xf32> to vector<16x128xf32>
    %c8_i32_65 = arith.constant 8 : i32
    %114 = tpu.dynamic_rotate %113 by %c8_i32_65 dim 1 : vector<16x128xf32>, i32 -> vector<16x128xf32>
    %115 = vector.broadcast %55 : vector<1x128xf32> to vector<16x128xf32>
    %116 = arith.mulf %114, %115 : vector<16x128xf32>
    %117 = vector.broadcast %56 : vector<1x128xf32> to vector<16x128xf32>
    %118 = arith.mulf %113, %117 : vector<16x128xf32>
    %c120_i32_66 = arith.constant 120 : i32
    %119 = tpu.dynamic_rotate %113 by %c120_i32_66 dim 1 : vector<16x128xf32>, i32 -> vector<16x128xf32>
    %120 = vector.broadcast %57 : vector<1x128xf32> to vector<16x128xf32>
    %121 = arith.mulf %119, %120 : vector<16x128xf32>
    %122 = arith.addf %116, %118 : vector<16x128xf32>
    %123 = arith.addf %122, %121 : vector<16x128xf32>
    %124 = arith.addf %111, %123 : vector<16x128xf32>
    %c1_67 = arith.constant 1 : index
    %c2_68 = arith.constant 2 : index
    %c0_69 = arith.constant 0 : index
    %125 = vector.load %arg53[%c1_67, %c2_68, %c0_69] : memref<2x18x128xf32, #tpu.memory_space<vmem>>, vector<1x16x128xf32>
    %126 = vector.shape_cast %125 : vector<1x16x128xf32> to vector<16x128xf32>
    %c8_i32_70 = arith.constant 8 : i32
    %127 = tpu.dynamic_rotate %126 by %c8_i32_70 dim 1 : vector<16x128xf32>, i32 -> vector<16x128xf32>
    %128 = vector.broadcast %58 : vector<1x128xf32> to vector<16x128xf32>
    %129 = arith.mulf %127, %128 : vector<16x128xf32>
    %130 = vector.broadcast %59 : vector<1x128xf32> to vector<16x128xf32>
    %131 = arith.mulf %126, %130 : vector<16x128xf32>
    %c120_i32_71 = arith.constant 120 : i32
    %132 = tpu.dynamic_rotate %126 by %c120_i32_71 dim 1 : vector<16x128xf32>, i32 -> vector<16x128xf32>
    %133 = vector.broadcast %60 : vector<1x128xf32> to vector<16x128xf32>
    %134 = arith.mulf %132, %133 : vector<16x128xf32>
    %135 = arith.addf %129, %131 : vector<16x128xf32>
    %136 = arith.addf %135, %134 : vector<16x128xf32>
    %137 = arith.addf %124, %136 : vector<16x128xf32>
    %138 = arith.addf %98, %137 : vector<16x128xf32>
    %139 = arith.mulf %137, %137 : vector<16x128xf32>
    %140 = arith.addf %99, %139 : vector<16x128xf32>
    %c0_72 = arith.constant 0 : index
    %c0_73 = arith.constant 0 : index
    %141 = vector.load %arg7[%c0_72, %c0_73] : memref<128x128xf32, #tpu.memory_space<vmem>>, vector<128x128xf32>
    %cst_74 = arith.constant dense<0.000000e+00> : vector<16x128xf32>
    %142 = tpu.matmul %138, %141, %cst_74 {dimension_numbers = #tpu.dot_dimension_numbers<[1], [0], [0], [1], [0, 0, 1, 1], [], []>} : vector<16x128xf32>, vector<128x128xf32>, vector<16x128xf32> -> vector<16x128xf32>
    %cst_75 = arith.constant dense<0.000000e+00> : vector<128xf32>
    %143 = vector.multi_reduction <add>, %142, %cst_75 [0] : vector<16x128xf32> to vector<128xf32>
    %144 = vector.shape_cast %143 : vector<128xf32> to vector<1x128xf32>
    %cst_76 = arith.constant 0.001953125 : f32
    %145 = vector.broadcast %cst_76 : f32 to vector<1x128xf32>
    %146 = arith.mulf %144, %145 : vector<1x128xf32>
    %cst_77 = arith.constant dense<0.000000e+00> : vector<16x128xf32>
    %147 = tpu.matmul %140, %141, %cst_77 {dimension_numbers = #tpu.dot_dimension_numbers<[1], [0], [0], [1], [0, 0, 1, 1], [], []>} : vector<16x128xf32>, vector<128x128xf32>, vector<16x128xf32> -> vector<16x128xf32>
    %cst_78 = arith.constant dense<0.000000e+00> : vector<128xf32>
    %148 = vector.multi_reduction <add>, %147, %cst_78 [0] : vector<16x128xf32> to vector<128xf32>
    %149 = vector.shape_cast %148 : vector<128xf32> to vector<1x128xf32>
    %cst_79 = arith.constant 0.001953125 : f32
    %150 = vector.broadcast %cst_79 : f32 to vector<1x128xf32>
    %151 = arith.mulf %149, %150 : vector<1x128xf32>
    %152 = arith.mulf %146, %146 : vector<1x128xf32>
    %153 = arith.subf %151, %152 : vector<1x128xf32>
    %cst_80 = arith.constant 0.000000e+00 : f32
    %154 = vector.broadcast %cst_80 : f32 to vector<1x128xf32>
    %155 = arith.maximumf %153, %154 : vector<1x128xf32>
    %c0_81 = arith.constant 0 : index
    %c0_82 = arith.constant 0 : index
    %156 = vector.load %arg8[%c0_81, %c0_82] : memref<1x128xf32, #tpu.memory_space<vmem>>, vector<1x128xf32>
    %cst_83 = arith.constant 9.99999974E-6 : f32
    %157 = vector.broadcast %cst_83 : f32 to vector<1x128xf32>
    %158 = arith.addf %155, %157 : vector<1x128xf32>
    %159 = math.rsqrt %158 : vector<1x128xf32>
    %160 = arith.mulf %156, %159 : vector<1x128xf32>
    %c0_84 = arith.constant 0 : index
    %c0_85 = arith.constant 0 : index
    %161 = vector.load %arg9[%c0_84, %c0_85] : memref<1x128xf32, #tpu.memory_space<vmem>>, vector<1x128xf32>
    %162 = arith.mulf %146, %160 : vector<1x128xf32>
    %163 = arith.subf %161, %162 : vector<1x128xf32>
    %c0_86 = arith.constant 0 : index
    %c0_87 = arith.constant 0 : index
    %164 = vector.load %arg10[%c0_86, %c0_87] : memref<128x128xbf16, #tpu.memory_space<vmem>>, vector<128x128xbf16>
    %165 = vector.broadcast %160 : vector<1x128xf32> to vector<16x128xf32>
    %166 = arith.mulf %98, %165 : vector<16x128xf32>
    %167 = vector.broadcast %163 : vector<1x128xf32> to vector<16x128xf32>
    %168 = arith.addf %166, %167 : vector<16x128xf32>
    %cst_88 = arith.constant 0.000000e+00 : f32
    %169 = vector.broadcast %cst_88 : f32 to vector<16x128xf32>
    %170 = arith.maximumf %168, %169 : vector<16x128xf32>
    %171 = arith.truncf %170 : vector<16x128xf32> to vector<16x128xbf16>
    %cst_89 = arith.constant dense<0.000000e+00> : vector<16x128xf32>
    %172 = tpu.matmul %171, %164, %cst_89 {dimension_numbers = #tpu.dot_dimension_numbers<[1], [0], [0], [1], [0, 0, 1, 1], [], []>} : vector<16x128xbf16>, vector<128x128xbf16>, vector<16x128xf32> -> vector<16x128xf32>
    %173 = arith.mulf %172, %172 : vector<16x128xf32>
    %174 = vector.broadcast %160 : vector<1x128xf32> to vector<16x128xf32>
    %175 = arith.mulf %137, %174 : vector<16x128xf32>
    %176 = vector.broadcast %163 : vector<1x128xf32> to vector<16x128xf32>
    %177 = arith.addf %175, %176 : vector<16x128xf32>
    %cst_90 = arith.constant 0.000000e+00 : f32
    %178 = vector.broadcast %cst_90 : f32 to vector<16x128xf32>
    %179 = arith.maximumf %177, %178 : vector<16x128xf32>
    %180 = arith.truncf %179 : vector<16x128xf32> to vector<16x128xbf16>
    %cst_91 = arith.constant dense<0.000000e+00> : vector<16x128xf32>
    %181 = tpu.matmul %180, %164, %cst_91 {dimension_numbers = #tpu.dot_dimension_numbers<[1], [0], [0], [1], [0, 0, 1, 1], [], []>} : vector<16x128xbf16>, vector<128x128xbf16>, vector<16x128xf32> -> vector<16x128xf32>
    %182 = arith.addf %172, %181 : vector<16x128xf32>
    %183 = arith.mulf %181, %181 : vector<16x128xf32>
    %184 = arith.addf %173, %183 : vector<16x128xf32>
    %c0_92 = arith.constant 0 : index
    %c0_93 = arith.constant 0 : index
    %185 = vector.load %arg11[%c0_92, %c0_93] : memref<128x128xf32, #tpu.memory_space<vmem>>, vector<128x128xf32>
    %cst_94 = arith.constant dense<0.000000e+00> : vector<16x128xf32>
    %186 = tpu.matmul %182, %185, %cst_94 {dimension_numbers = #tpu.dot_dimension_numbers<[1], [0], [0], [1], [0, 0, 1, 1], [], []>} : vector<16x128xf32>, vector<128x128xf32>, vector<16x128xf32> -> vector<16x128xf32>
    %cst_95 = arith.constant dense<0.000000e+00> : vector<128xf32>
    %187 = vector.multi_reduction <add>, %186, %cst_95 [0] : vector<16x128xf32> to vector<128xf32>
    %188 = vector.shape_cast %187 : vector<128xf32> to vector<1x128xf32>
    %cst_96 = arith.constant 0.001953125 : f32
    %189 = vector.broadcast %cst_96 : f32 to vector<1x128xf32>
    %190 = arith.mulf %188, %189 : vector<1x128xf32>
    %cst_97 = arith.constant dense<0.000000e+00> : vector<16x128xf32>
    %191 = tpu.matmul %184, %185, %cst_97 {dimension_numbers = #tpu.dot_dimension_numbers<[1], [0], [0], [1], [0, 0, 1, 1], [], []>} : vector<16x128xf32>, vector<128x128xf32>, vector<16x128xf32> -> vector<16x128xf32>
    %cst_98 = arith.constant dense<0.000000e+00> : vector<128xf32>
    %192 = vector.multi_reduction <add>, %191, %cst_98 [0] : vector<16x128xf32> to vector<128xf32>
    %193 = vector.shape_cast %192 : vector<128xf32> to vector<1x128xf32>
    %cst_99 = arith.constant 0.001953125 : f32
    %194 = vector.broadcast %cst_99 : f32 to vector<1x128xf32>
    %195 = arith.mulf %193, %194 : vector<1x128xf32>
    %196 = arith.mulf %190, %190 : vector<1x128xf32>
    %197 = arith.subf %195, %196 : vector<1x128xf32>
    %cst_100 = arith.constant 0.000000e+00 : f32
    %198 = vector.broadcast %cst_100 : f32 to vector<1x128xf32>
    %199 = arith.maximumf %197, %198 : vector<1x128xf32>
    %c0_101 = arith.constant 0 : index
    %c0_102 = arith.constant 0 : index
    %200 = vector.load %arg12[%c0_101, %c0_102] : memref<1x128xf32, #tpu.memory_space<vmem>>, vector<1x128xf32>
    %cst_103 = arith.constant 9.99999974E-6 : f32
    %201 = vector.broadcast %cst_103 : f32 to vector<1x128xf32>
    %202 = arith.addf %199, %201 : vector<1x128xf32>
    %203 = math.rsqrt %202 : vector<1x128xf32>
    %204 = arith.mulf %200, %203 : vector<1x128xf32>
    %c0_104 = arith.constant 0 : index
    %c0_105 = arith.constant 0 : index
    %205 = vector.load %arg13[%c0_104, %c0_105] : memref<1x128xf32, #tpu.memory_space<vmem>>, vector<1x128xf32>
    %206 = arith.mulf %190, %204 : vector<1x128xf32>
    %207 = arith.subf %205, %206 : vector<1x128xf32>
    %208 = vector.broadcast %204 : vector<1x128xf32> to vector<16x128xf32>
    %209 = arith.mulf %172, %208 : vector<16x128xf32>
    %210 = vector.broadcast %207 : vector<1x128xf32> to vector<16x128xf32>
    %211 = arith.addf %209, %210 : vector<16x128xf32>
    %cst_106 = arith.constant 0.000000e+00 : f32
    %212 = vector.broadcast %cst_106 : f32 to vector<16x128xf32>
    %213 = arith.maximumf %211, %212 : vector<16x128xf32>
    %c0_107 = arith.constant 0 : index
    %c1_108 = arith.constant 1 : index
    %c0_109 = arith.constant 0 : index
    %214 = vector.load %arg54[%c0_107, %c1_108, %c0_109] : memref<2x18x128xf32, #tpu.memory_space<vmem>>, vector<1x16x128xf32>
    %215 = vector.shape_cast %214 : vector<1x16x128xf32> to vector<16x128xf32>
    %216 = vector.shape_cast %213 : vector<16x128xf32> to vector<1x16x128xf32>
    tpu.vector_store %arg54[%c0_107, %c1_108, %c0_109], %216 {strides = array<i32>} : memref<2x18x128xf32, #tpu.memory_space<vmem>>, vector<1x16x128xf32>,
    %217 = vector.broadcast %204 : vector<1x128xf32> to vector<16x128xf32>
    %218 = arith.mulf %181, %217 : vector<16x128xf32>
    %219 = vector.broadcast %207 : vector<1x128xf32> to vector<16x128xf32>
    %220 = arith.addf %218, %219 : vector<16x128xf32>
    %cst_110 = arith.constant 0.000000e+00 : f32
    %221 = vector.broadcast %cst_110 : f32 to vector<16x128xf32>
    %222 = arith.maximumf %220, %221 : vector<16x128xf32>
    %c1_111 = arith.constant 1 : index
    %c1_112 = arith.constant 1 : index
    %c0_113 = arith.constant 0 : index
    %223 = vector.load %arg54[%c1_111, %c1_112, %c0_113] : memref<2x18x128xf32, #tpu.memory_space<vmem>>, vector<1x16x128xf32>
    %224 = vector.shape_cast %223 : vector<1x16x128xf32> to vector<16x128xf32>
    %225 = vector.shape_cast %222 : vector<16x128xf32> to vector<1x16x128xf32>
    tpu.vector_store %arg54[%c1_111, %c1_112, %c0_113], %225 {strides = array<i32>} : memref<2x18x128xf32, #tpu.memory_space<vmem>>, vector<1x16x128xf32>,
    %c0_114 = arith.constant 0 : index
    %c0_115 = arith.constant 0 : index
    %226 = vector.load %arg14[%c0_114, %c0_115] : memref<9x128xf32, #tpu.memory_space<vmem>>, vector<9x128xf32>
    %227 = vector.extract_strided_slice %226 {offsets = [0, 0], sizes = [1, 128], strides = [1, 1]} : vector<9x128xf32> to vector<1x128xf32>
    %228 = vector.extract_strided_slice %226 {offsets = [1, 0], sizes = [1, 128], strides = [1, 1]} : vector<9x128xf32> to vector<1x128xf32>
    %229 = vector.extract_strided_slice %226 {offsets = [2, 0], sizes = [1, 128], strides = [1, 1]} : vector<9x128xf32> to vector<1x128xf32>
    %230 = vector.extract_strided_slice %226 {offsets = [3, 0], sizes = [1, 128], strides = [1, 1]} : vector<9x128xf32> to vector<1x128xf32>
    %231 = vector.extract_strided_slice %226 {offsets = [4, 0], sizes = [1, 128], strides = [1, 1]} : vector<9x128xf32> to vector<1x128xf32>
    %232 = vector.extract_strided_slice %226 {offsets = [5, 0], sizes = [1, 128], strides = [1, 1]} : vector<9x128xf32> to vector<1x128xf32>
    %233 = vector.extract_strided_slice %226 {offsets = [6, 0], sizes = [1, 128], strides = [1, 1]} : vector<9x128xf32> to vector<1x128xf32>
    %234 = vector.extract_strided_slice %226 {offsets = [7, 0], sizes = [1, 128], strides = [1, 1]} : vector<9x128xf32> to vector<1x128xf32>
    %235 = vector.extract_strided_slice %226 {offsets = [8, 0], sizes = [1, 128], strides = [1, 1]} : vector<9x128xf32> to vector<1x128xf32>
    %c0_116 = arith.constant 0 : index
    %c0_117 = arith.constant 0 : index
    %236 = vector.load %arg15[%c0_116, %c0_117] : memref<8x16xf32, #tpu.memory_space<vmem>>, vector<8x16xf32>
    %c0_118 = arith.constant 0 : index
    %c0_119 = arith.constant 0 : index
    %237 = vector.load %arg16[%c0_118, %c0_119] : memref<128x64xf32, #tpu.memory_space<vmem>>, vector<128x64xf32>
    %c0_120 = arith.constant 0 : index
    %c0_121 = arith.constant 0 : index
    %c0_122 = arith.constant 0 : index
    %238 = vector.load %arg54[%c0_120, %c0_121, %c0_122] : memref<2x18x128xf32, #tpu.memory_space<vmem>>, vector<1x16x128xf32>
    %239 = vector.shape_cast %238 : vector<1x16x128xf32> to vector<16x128xf32>
    %c8_i32_123 = arith.constant 8 : i32
    %240 = tpu.dynamic_rotate %239 by %c8_i32_123 dim 1 : vector<16x128xf32>, i32 -> vector<16x128xf32>
    %241 = vector.broadcast %227 : vector<1x128xf32> to vector<16x128xf32>
    %242 = arith.mulf %240, %241 : vector<16x128xf32>
    %243 = vector.broadcast %228 : vector<1x128xf32> to vector<16x128xf32>
    %244 = arith.mulf %239, %243 : vector<16x128xf32>
    %c120_i32_124 = arith.constant 120 : i32
    %245 = tpu.dynamic_rotate %239 by %c120_i32_124 dim 1 : vector<16x128xf32>, i32 -> vector<16x128xf32>
    %246 = vector.broadcast %229 : vector<1x128xf32> to vector<16x128xf32>
    %247 = arith.mulf %245, %246 : vector<16x128xf32>
    %248 = arith.addf %242, %244 : vector<16x128xf32>
    %249 = arith.addf %248, %247 : vector<16x128xf32>
    %c0_125 = arith.constant 0 : index
    %c1_126 = arith.constant 1 : index
    %c0_127 = arith.constant 0 : index
    %250 = vector.load %arg54[%c0_125, %c1_126, %c0_127] : memref<2x18x128xf32, #tpu.memory_space<vmem>>, vector<1x16x128xf32>
    %251 = vector.shape_cast %250 : vector<1x16x128xf32> to vector<16x128xf32>
    %c8_i32_128 = arith.constant 8 : i32
    %252 = tpu.dynamic_rotate %251 by %c8_i32_128 dim 1 : vector<16x128xf32>, i32 -> vector<16x128xf32>
    %253 = vector.broadcast %230 : vector<1x128xf32> to vector<16x128xf32>
    %254 = arith.mulf %252, %253 : vector<16x128xf32>
    %255 = vector.broadcast %231 : vector<1x128xf32> to vector<16x128xf32>
    %256 = arith.mulf %251, %255 : vector<16x128xf32>
    %c120_i32_129 = arith.constant 120 : i32
    %257 = tpu.dynamic_rotate %251 by %c120_i32_129 dim 1 : vector<16x128xf32>, i32 -> vector<16x128xf32>
    %258 = vector.broadcast %232 : vector<1x128xf32> to vector<16x128xf32>
    %259 = arith.mulf %257, %258 : vector<16x128xf32>
    %260 = arith.addf %254, %256 : vector<16x128xf32>
    %261 = arith.addf %260, %259 : vector<16x128xf32>
    %262 = arith.addf %249, %261 : vector<16x128xf32>
    %c0_130 = arith.constant 0 : index
    %c2_131 = arith.constant 2 : index
    %c0_132 = arith.constant 0 : index
    %263 = vector.load %arg54[%c0_130, %c2_131, %c0_132] : memref<2x18x128xf32, #tpu.memory_space<vmem>>, vector<1x16x128xf32>
    %264 = vector.shape_cast %263 : vector<1x16x128xf32> to vector<16x128xf32>
    %c8_i32_133 = arith.constant 8 : i32
    %265 = tpu.dynamic_rotate %264 by %c8_i32_133 dim 1 : vector<16x128xf32>, i32 -> vector<16x128xf32>
    %266 = vector.broadcast %233 : vector<1x128xf32> to vector<16x128xf32>
    %267 = arith.mulf %265, %266 : vector<16x128xf32>
    %268 = vector.broadcast %234 : vector<1x128xf32> to vector<16x128xf32>
    %269 = arith.mulf %264, %268 : vector<16x128xf32>
    %c120_i32_134 = arith.constant 120 : i32
    %270 = tpu.dynamic_rotate %264 by %c120_i32_134 dim 1 : vector<16x128xf32>, i32 -> vector<16x128xf32>
    %271 = vector.broadcast %235 : vector<1x128xf32> to vector<16x128xf32>
    %272 = arith.mulf %270, %271 : vector<16x128xf32>
    %273 = arith.addf %267, %269 : vector<16x128xf32>
    %274 = arith.addf %273, %272 : vector<16x128xf32>
    %275 = arith.addf %262, %274 : vector<16x128xf32>
    %cst_135 = arith.constant dense<0.000000e+00> : vector<16x64xf32>
    %276 = tpu.matmul %275, %237, %cst_135 {dimension_numbers = #tpu.dot_dimension_numbers<[1], [0], [0], [1], [0, 0, 1, 1], [], []>} : vector<16x128xf32>, vector<128x64xf32>, vector<16x64xf32> -> vector<16x64xf32>
    %cst_136 = arith.constant dense<0.000000e+00> : vector<8x64xf32>
    %277 = tpu.matmul %236, %276, %cst_136 {dimension_numbers = #tpu.dot_dimension_numbers<[1], [0], [0], [1], [0, 0, 1, 1], [], []>} : vector<8x16xf32>, vector<16x64xf32>, vector<8x64xf32> -> vector<8x64xf32>
    %278 = arith.mulf %277, %277 : vector<8x64xf32>
    %c1_137 = arith.constant 1 : index
    %c0_138 = arith.constant 0 : index
    %c0_139 = arith.constant 0 : index
    %279 = vector.load %arg54[%c1_137, %c0_138, %c0_139] : memref<2x18x128xf32, #tpu.memory_space<vmem>>, vector<1x16x128xf32>
    %280 = vector.shape_cast %279 : vector<1x16x128xf32> to vector<16x128xf32>
    %c8_i32_140 = arith.constant 8 : i32
    %281 = tpu.dynamic_rotate %280 by %c8_i32_140 dim 1 : vector<16x128xf32>, i32 -> vector<16x128xf32>
    %282 = vector.broadcast %227 : vector<1x128xf32> to vector<16x128xf32>
    %283 = arith.mulf %281, %282 : vector<16x128xf32>
    %284 = vector.broadcast %228 : vector<1x128xf32> to vector<16x128xf32>
    %285 = arith.mulf %280, %284 : vector<16x128xf32>
    %c120_i32_141 = arith.constant 120 : i32
    %286 = tpu.dynamic_rotate %280 by %c120_i32_141 dim 1 : vector<16x128xf32>, i32 -> vector<16x128xf32>
    %287 = vector.broadcast %229 : vector<1x128xf32> to vector<16x128xf32>
    %288 = arith.mulf %286, %287 : vector<16x128xf32>
    %289 = arith.addf %283, %285 : vector<16x128xf32>
    %290 = arith.addf %289, %288 : vector<16x128xf32>
    %c1_142 = arith.constant 1 : index
    %c1_143 = arith.constant 1 : index
    %c0_144 = arith.constant 0 : index
    %291 = vector.load %arg54[%c1_142, %c1_143, %c0_144] : memref<2x18x128xf32, #tpu.memory_space<vmem>>, vector<1x16x128xf32>
    %292 = vector.shape_cast %291 : vector<1x16x128xf32> to vector<16x128xf32>
    %c8_i32_145 = arith.constant 8 : i32
    %293 = tpu.dynamic_rotate %292 by %c8_i32_145 dim 1 : vector<16x128xf32>, i32 -> vector<16x128xf32>
    %294 = vector.broadcast %230 : vector<1x128xf32> to vector<16x128xf32>
    %295 = arith.mulf %293, %294 : vector<16x128xf32>
    %296 = vector.broadcast %231 : vector<1x128xf32> to vector<16x128xf32>
    %297 = arith.mulf %292, %296 : vector<16x128xf32>
    %c120_i32_146 = arith.constant 120 : i32
    %298 = tpu.dynamic_rotate %292 by %c120_i32_146 dim 1 : vector<16x128xf32>, i32 -> vector<16x128xf32>
    %299 = vector.broadcast %232 : vector<1x128xf32> to vector<16x128xf32>
    %300 = arith.mulf %298, %299 : vector<16x128xf32>
    %301 = arith.addf %295, %297 : vector<16x128xf32>
    %302 = arith.addf %301, %300 : vector<16x128xf32>
    %303 = arith.addf %290, %302 : vector<16x128xf32>
    %c1_147 = arith.constant 1 : index
    %c2_148 = arith.constant 2 : index
    %c0_149 = arith.constant 0 : index
    %304 = vector.load %arg54[%c1_147, %c2_148, %c0_149] : memref<2x18x128xf32, #tpu.memory_space<vmem>>, vector<1x16x128xf32>
    %305 = vector.shape_cast %304 : vector<1x16x128xf32> to vector<16x128xf32>
    %c8_i32_150 = arith.constant 8 : i32
    %306 = tpu.dynamic_rotate %305 by %c8_i32_150 dim 1 : vector<16x128xf32>, i32 -> vector<16x128xf32>
    %307 = vector.broadcast %233 : vector<1x128xf32> to vector<16x128xf32>
    %308 = arith.mulf %306, %307 : vector<16x128xf32>
    %309 = vector.broadcast %234 : vector<1x128xf32> to vector<16x128xf32>
    %310 = arith.mulf %305, %309 : vector<16x128xf32>
    %c120_i32_151 = arith.constant 120 : i32
    %311 = tpu.dynamic_rotate %305 by %c120_i32_151 dim 1 : vector<16x128xf32>, i32 -> vector<16x128xf32>
    %312 = vector.broadcast %235 : vector<1x128xf32> to vector<16x128xf32>
    %313 = arith.mulf %311, %312 : vector<16x128xf32>
    %314 = arith.addf %308, %310 : vector<16x128xf32>
    %315 = arith.addf %314, %313 : vector<16x128xf32>
    %316 = arith.addf %303, %315 : vector<16x128xf32>
    %cst_152 = arith.constant dense<0.000000e+00> : vector<16x64xf32>
    %317 = tpu.matmul %316, %237, %cst_152 {dimension_numbers = #tpu.dot_dimension_numbers<[1], [0], [0], [1], [0, 0, 1, 1], [], []>} : vector<16x128xf32>, vector<128x64xf32>, vector<16x64xf32> -> vector<16x64xf32>
    %cst_153 = arith.constant dense<0.000000e+00> : vector<8x64xf32>
    %318 = tpu.matmul %236, %317, %cst_153 {dimension_numbers = #tpu.dot_dimension_numbers<[1], [0], [0], [1], [0, 0, 1, 1], [], []>} : vector<8x16xf32>, vector<16x64xf32>, vector<8x64xf32> -> vector<8x64xf32>
    %319 = arith.addf %277, %318 : vector<8x64xf32>
    %320 = arith.mulf %318, %318 : vector<8x64xf32>
    %321 = arith.addf %278, %320 : vector<8x64xf32>
    %c0_154 = arith.constant 0 : index
    %c0_155 = arith.constant 0 : index
    %322 = vector.load %arg17[%c0_154, %c0_155] : memref<64x64xf32, #tpu.memory_space<vmem>>, vector<64x64xf32>
    %cst_156 = arith.constant dense<0.000000e+00> : vector<8x64xf32>
    %323 = tpu.matmul %319, %322, %cst_156 {dimension_numbers = #tpu.dot_dimension_numbers<[1], [0], [0], [1], [0, 0, 1, 1], [], []>} : vector<8x64xf32>, vector<64x64xf32>, vector<8x64xf32> -> vector<8x64xf32>
    %cst_157 = arith.constant dense<0.000000e+00> : vector<64xf32>
    %324 = vector.multi_reduction <add>, %323, %cst_157 [0] : vector<8x64xf32> to vector<64xf32>
    %325 = vector.shape_cast %324 : vector<64xf32> to vector<1x64xf32>
    %cst_158 = arith.constant 7.812500e-03 : f32
    %326 = vector.broadcast %cst_158 : f32 to vector<1x64xf32>
    %327 = arith.mulf %325, %326 : vector<1x64xf32>
    %cst_159 = arith.constant dense<0.000000e+00> : vector<8x64xf32>
    %328 = tpu.matmul %321, %322, %cst_159 {dimension_numbers = #tpu.dot_dimension_numbers<[1], [0], [0], [1], [0, 0, 1, 1], [], []>} : vector<8x64xf32>, vector<64x64xf32>, vector<8x64xf32> -> vector<8x64xf32>
    %cst_160 = arith.constant dense<0.000000e+00> : vector<64xf32>
    %329 = vector.multi_reduction <add>, %328, %cst_160 [0] : vector<8x64xf32> to vector<64xf32>
    %330 = vector.shape_cast %329 : vector<64xf32> to vector<1x64xf32>
    %cst_161 = arith.constant 7.812500e-03 : f32
    %331 = vector.broadcast %cst_161 : f32 to vector<1x64xf32>
    %332 = arith.mulf %330, %331 : vector<1x64xf32>
    %333 = arith.mulf %327, %327 : vector<1x64xf32>
    %334 = arith.subf %332, %333 : vector<1x64xf32>
    %cst_162 = arith.constant 0.000000e+00 : f32
    %335 = vector.broadcast %cst_162 : f32 to vector<1x64xf32>
    %336 = arith.maximumf %334, %335 : vector<1x64xf32>
    %c0_163 = arith.constant 0 : index
    %c0_164 = arith.constant 0 : index
    %337 = vector.load %arg18[%c0_163, %c0_164] : memref<1x64xf32, #tpu.memory_space<vmem>>, vector<1x64xf32>
    %cst_165 = arith.constant 9.99999974E-6 : f32
    %338 = vector.broadcast %cst_165 : f32 to vector<1x64xf32>
    %339 = arith.addf %336, %338 : vector<1x64xf32>
    %340 = math.rsqrt %339 : vector<1x64xf32>
    %341 = arith.mulf %337, %340 : vector<1x64xf32>
    %c0_166 = arith.constant 0 : index
    %c0_167 = arith.constant 0 : index
    %342 = vector.load %arg19[%c0_166, %c0_167] : memref<1x64xf32, #tpu.memory_space<vmem>>, vector<1x64xf32>
    %343 = arith.mulf %327, %341 : vector<1x64xf32>
    %344 = arith.subf %342, %343 : vector<1x64xf32>
    %c0_168 = arith.constant 0 : index
    %c0_169 = arith.constant 0 : index
    %345 = vector.load %arg20[%c0_168, %c0_169] : memref<64x128xbf16, #tpu.memory_space<vmem>>, vector<64x128xbf16>
    %346 = vector.broadcast %341 : vector<1x64xf32> to vector<8x64xf32>
    %347 = arith.mulf %277, %346 : vector<8x64xf32>
    %348 = vector.broadcast %344 : vector<1x64xf32> to vector<8x64xf32>
    %349 = arith.addf %347, %348 : vector<8x64xf32>
    %cst_170 = arith.constant 0.000000e+00 : f32
    %350 = vector.broadcast %cst_170 : f32 to vector<8x64xf32>
    %351 = arith.maximumf %349, %350 : vector<8x64xf32>
    %352 = arith.truncf %351 : vector<8x64xf32> to vector<8x64xbf16>
    %cst_171 = arith.constant dense<0.000000e+00> : vector<8x128xf32>
    %353 = tpu.matmul %352, %345, %cst_171 {dimension_numbers = #tpu.dot_dimension_numbers<[1], [0], [0], [1], [0, 0, 1, 1], [], []>} : vector<8x64xbf16>, vector<64x128xbf16>, vector<8x128xf32> -> vector<8x128xf32>
    %354 = arith.mulf %353, %353 : vector<8x128xf32>
    %355 = vector.broadcast %341 : vector<1x64xf32> to vector<8x64xf32>
    %356 = arith.mulf %318, %355 : vector<8x64xf32>
    %357 = vector.broadcast %344 : vector<1x64xf32> to vector<8x64xf32>
    %358 = arith.addf %356, %357 : vector<8x64xf32>
    %cst_172 = arith.constant 0.000000e+00 : f32
    %359 = vector.broadcast %cst_172 : f32 to vector<8x64xf32>
    %360 = arith.maximumf %358, %359 : vector<8x64xf32>
    %361 = arith.truncf %360 : vector<8x64xf32> to vector<8x64xbf16>
    %cst_173 = arith.constant dense<0.000000e+00> : vector<8x128xf32>
    %362 = tpu.matmul %361, %345, %cst_173 {dimension_numbers = #tpu.dot_dimension_numbers<[1], [0], [0], [1], [0, 0, 1, 1], [], []>} : vector<8x64xbf16>, vector<64x128xbf16>, vector<8x128xf32> -> vector<8x128xf32>
    %363 = arith.addf %353, %362 : vector<8x128xf32>
    %364 = arith.mulf %362, %362 : vector<8x128xf32>
    %365 = arith.addf %354, %364 : vector<8x128xf32>
    %c0_174 = arith.constant 0 : index
    %c0_175 = arith.constant 0 : index
    %366 = vector.load %arg21[%c0_174, %c0_175] : memref<128x128xf32, #tpu.memory_space<vmem>>, vector<128x128xf32>
    %cst_176 = arith.constant dense<0.000000e+00> : vector<8x128xf32>
    %367 = tpu.matmul %363, %366, %cst_176 {dimension_numbers = #tpu.dot_dimension_numbers<[1], [0], [0], [1], [0, 0, 1, 1], [], []>} : vector<8x128xf32>, vector<128x128xf32>, vector<8x128xf32> -> vector<8x128xf32>
    %cst_177 = arith.constant dense<0.000000e+00> : vector<128xf32>
    %368 = vector.multi_reduction <add>, %367, %cst_177 [0] : vector<8x128xf32> to vector<128xf32>
    %369 = vector.shape_cast %368 : vector<128xf32> to vector<1x128xf32>
    %cst_178 = arith.constant 7.812500e-03 : f32
    %370 = vector.broadcast %cst_178 : f32 to vector<1x128xf32>
    %371 = arith.mulf %369, %370 : vector<1x128xf32>
    %cst_179 = arith.constant dense<0.000000e+00> : vector<8x128xf32>
    %372 = tpu.matmul %365, %366, %cst_179 {dimension_numbers = #tpu.dot_dimension_numbers<[1], [0], [0], [1], [0, 0, 1, 1], [], []>} : vector<8x128xf32>, vector<128x128xf32>, vector<8x128xf32> -> vector<8x128xf32>
    %cst_180 = arith.constant dense<0.000000e+00> : vector<128xf32>
    %373 = vector.multi_reduction <add>, %372, %cst_180 [0] : vector<8x128xf32> to vector<128xf32>
    %374 = vector.shape_cast %373 : vector<128xf32> to vector<1x128xf32>
    %cst_181 = arith.constant 7.812500e-03 : f32
    %375 = vector.broadcast %cst_181 : f32 to vector<1x128xf32>
    %376 = arith.mulf %374, %375 : vector<1x128xf32>
    %377 = arith.mulf %371, %371 : vector<1x128xf32>
    %378 = arith.subf %376, %377 : vector<1x128xf32>
    %cst_182 = arith.constant 0.000000e+00 : f32
    %379 = vector.broadcast %cst_182 : f32 to vector<1x128xf32>
    %380 = arith.maximumf %378, %379 : vector<1x128xf32>
    %c0_183 = arith.constant 0 : index
    %c0_184 = arith.constant 0 : index
    %381 = vector.load %arg22[%c0_183, %c0_184] : memref<1x128xf32, #tpu.memory_space<vmem>>, vector<1x128xf32>
    %cst_185 = arith.constant 9.99999974E-6 : f32
    %382 = vector.broadcast %cst_185 : f32 to vector<1x128xf32>
    %383 = arith.addf %380, %382 : vector<1x128xf32>
    %384 = math.rsqrt %383 : vector<1x128xf32>
    %385 = arith.mulf %381, %384 : vector<1x128xf32>
    %c0_186 = arith.constant 0 : index
    %c0_187 = arith.constant 0 : index
    %386 = vector.load %arg23[%c0_186, %c0_187] : memref<1x128xf32, #tpu.memory_space<vmem>>, vector<1x128xf32>
    %387 = arith.mulf %371, %385 : vector<1x128xf32>
    %388 = arith.subf %386, %387 : vector<1x128xf32>
    %389 = vector.broadcast %385 : vector<1x128xf32> to vector<8x128xf32>
    %390 = arith.mulf %353, %389 : vector<8x128xf32>
    %391 = vector.broadcast %388 : vector<1x128xf32> to vector<8x128xf32>
    %392 = arith.addf %390, %391 : vector<8x128xf32>
    %cst_188 = arith.constant 0.000000e+00 : f32
    %393 = vector.broadcast %cst_188 : f32 to vector<8x128xf32>
    %394 = arith.maximumf %392, %393 : vector<8x128xf32>
    %c0_189 = arith.constant 0 : index
    %c0_190 = arith.constant 0 : index
    %395 = vector.load %arg50[%c0_189, %c0_190] : memref<16x128xf32, #tpu.memory_space<vmem>>, vector<8x128xf32>
    tpu.vector_store %arg50[%c0_189, %c0_190], %394 {strides = array<i32>} : memref<16x128xf32, #tpu.memory_space<vmem>>, vector<8x128xf32>,
    %c0_191 = arith.constant 0 : index
    %c1_192 = arith.constant 1 : index
    %c0_193 = arith.constant 0 : index
    %396 = vector.load %arg55[%c0_191, %c1_192, %c0_193] : memref<2x10x128xf32, #tpu.memory_space<vmem>>, vector<1x8x128xf32>
    %397 = vector.shape_cast %396 : vector<1x8x128xf32> to vector<8x128xf32>
    %398 = vector.shape_cast %394 : vector<8x128xf32> to vector<1x8x128xf32>
    tpu.vector_store %arg55[%c0_191, %c1_192, %c0_193], %398 {strides = array<i32>} : memref<2x10x128xf32, #tpu.memory_space<vmem>>, vector<1x8x128xf32>,
    %399 = vector.broadcast %385 : vector<1x128xf32> to vector<8x128xf32>
    %400 = arith.mulf %362, %399 : vector<8x128xf32>
    %401 = vector.broadcast %388 : vector<1x128xf32> to vector<8x128xf32>
    %402 = arith.addf %400, %401 : vector<8x128xf32>
    %cst_194 = arith.constant 0.000000e+00 : f32
    %403 = vector.broadcast %cst_194 : f32 to vector<8x128xf32>
    %404 = arith.maximumf %402, %403 : vector<8x128xf32>
    %c8 = arith.constant 8 : index
    %c0_195 = arith.constant 0 : index
    %405 = vector.load %arg50[%c8, %c0_195] : memref<16x128xf32, #tpu.memory_space<vmem>>, vector<8x128xf32>
    tpu.vector_store %arg50[%c8, %c0_195], %404 {strides = array<i32>} : memref<16x128xf32, #tpu.memory_space<vmem>>, vector<8x128xf32>,
    %c1_196 = arith.constant 1 : index
    %c1_197 = arith.constant 1 : index
    %c0_198 = arith.constant 0 : index
    %406 = vector.load %arg55[%c1_196, %c1_197, %c0_198] : memref<2x10x128xf32, #tpu.memory_space<vmem>>, vector<1x8x128xf32>
    %407 = vector.shape_cast %406 : vector<1x8x128xf32> to vector<8x128xf32>
    %408 = vector.shape_cast %404 : vector<8x128xf32> to vector<1x8x128xf32>
    tpu.vector_store %arg55[%c1_196, %c1_197, %c0_198], %408 {strides = array<i32>} : memref<2x10x128xf32, #tpu.memory_space<vmem>>, vector<1x8x128xf32>,
    %c0_199 = arith.constant 0 : index
    %c0_200 = arith.constant 0 : index
    %409 = vector.load %arg24[%c0_199, %c0_200] : memref<9x128xf32, #tpu.memory_space<vmem>>, vector<9x128xf32>
    %410 = vector.extract_strided_slice %409 {offsets = [0, 0], sizes = [1, 128], strides = [1, 1]} : vector<9x128xf32> to vector<1x128xf32>
    %411 = vector.extract_strided_slice %409 {offsets = [1, 0], sizes = [1, 128], strides = [1, 1]} : vector<9x128xf32> to vector<1x128xf32>
    %412 = vector.extract_strided_slice %409 {offsets = [2, 0], sizes = [1, 128], strides = [1, 1]} : vector<9x128xf32> to vector<1x128xf32>
    %413 = vector.extract_strided_slice %409 {offsets = [3, 0], sizes = [1, 128], strides = [1, 1]} : vector<9x128xf32> to vector<1x128xf32>
    %414 = vector.extract_strided_slice %409 {offsets = [4, 0], sizes = [1, 128], strides = [1, 1]} : vector<9x128xf32> to vector<1x128xf32>
    %415 = vector.extract_strided_slice %409 {offsets = [5, 0], sizes = [1, 128], strides = [1, 1]} : vector<9x128xf32> to vector<1x128xf32>
    %416 = vector.extract_strided_slice %409 {offsets = [6, 0], sizes = [1, 128], strides = [1, 1]} : vector<9x128xf32> to vector<1x128xf32>
    %417 = vector.extract_strided_slice %409 {offsets = [7, 0], sizes = [1, 128], strides = [1, 1]} : vector<9x128xf32> to vector<1x128xf32>
    %418 = vector.extract_strided_slice %409 {offsets = [8, 0], sizes = [1, 128], strides = [1, 1]} : vector<9x128xf32> to vector<1x128xf32>
    %c0_201 = arith.constant 0 : index
    %c0_202 = arith.constant 0 : index
    %c0_203 = arith.constant 0 : index
    %419 = vector.load %arg55[%c0_201, %c0_202, %c0_203] : memref<2x10x128xf32, #tpu.memory_space<vmem>>, vector<1x8x128xf32>
    %420 = vector.shape_cast %419 : vector<1x8x128xf32> to vector<8x128xf32>
    %c16_i32 = arith.constant 16 : i32
    %421 = tpu.dynamic_rotate %420 by %c16_i32 dim 1 : vector<8x128xf32>, i32 -> vector<8x128xf32>
    %422 = vector.broadcast %410 : vector<1x128xf32> to vector<8x128xf32>
    %423 = arith.mulf %421, %422 : vector<8x128xf32>
    %424 = vector.broadcast %411 : vector<1x128xf32> to vector<8x128xf32>
    %425 = arith.mulf %420, %424 : vector<8x128xf32>
    %c112_i32 = arith.constant 112 : i32
    %426 = tpu.dynamic_rotate %420 by %c112_i32 dim 1 : vector<8x128xf32>, i32 -> vector<8x128xf32>
    %427 = vector.broadcast %412 : vector<1x128xf32> to vector<8x128xf32>
    %428 = arith.mulf %426, %427 : vector<8x128xf32>
    %429 = arith.addf %423, %425 : vector<8x128xf32>
    %430 = arith.addf %429, %428 : vector<8x128xf32>
    %c0_204 = arith.constant 0 : index
    %c1_205 = arith.constant 1 : index
    %c0_206 = arith.constant 0 : index
    %431 = vector.load %arg55[%c0_204, %c1_205, %c0_206] : memref<2x10x128xf32, #tpu.memory_space<vmem>>, vector<1x8x128xf32>
    %432 = vector.shape_cast %431 : vector<1x8x128xf32> to vector<8x128xf32>
    %c16_i32_207 = arith.constant 16 : i32
    %433 = tpu.dynamic_rotate %432 by %c16_i32_207 dim 1 : vector<8x128xf32>, i32 -> vector<8x128xf32>
    %434 = vector.broadcast %413 : vector<1x128xf32> to vector<8x128xf32>
    %435 = arith.mulf %433, %434 : vector<8x128xf32>
    %436 = vector.broadcast %414 : vector<1x128xf32> to vector<8x128xf32>
    %437 = arith.mulf %432, %436 : vector<8x128xf32>
    %c112_i32_208 = arith.constant 112 : i32
    %438 = tpu.dynamic_rotate %432 by %c112_i32_208 dim 1 : vector<8x128xf32>, i32 -> vector<8x128xf32>
    %439 = vector.broadcast %415 : vector<1x128xf32> to vector<8x128xf32>
    %440 = arith.mulf %438, %439 : vector<8x128xf32>
    %441 = arith.addf %435, %437 : vector<8x128xf32>
    %442 = arith.addf %441, %440 : vector<8x128xf32>
    %443 = arith.addf %430, %442 : vector<8x128xf32>
    %c0_209 = arith.constant 0 : index
    %c2_210 = arith.constant 2 : index
    %c0_211 = arith.constant 0 : index
    %444 = vector.load %arg55[%c0_209, %c2_210, %c0_211] : memref<2x10x128xf32, #tpu.memory_space<vmem>>, vector<1x8x128xf32>
    %445 = vector.shape_cast %444 : vector<1x8x128xf32> to vector<8x128xf32>
    %c16_i32_212 = arith.constant 16 : i32
    %446 = tpu.dynamic_rotate %445 by %c16_i32_212 dim 1 : vector<8x128xf32>, i32 -> vector<8x128xf32>
    %447 = vector.broadcast %416 : vector<1x128xf32> to vector<8x128xf32>
    %448 = arith.mulf %446, %447 : vector<8x128xf32>
    %449 = vector.broadcast %417 : vector<1x128xf32> to vector<8x128xf32>
    %450 = arith.mulf %445, %449 : vector<8x128xf32>
    %c112_i32_213 = arith.constant 112 : i32
    %451 = tpu.dynamic_rotate %445 by %c112_i32_213 dim 1 : vector<8x128xf32>, i32 -> vector<8x128xf32>
    %452 = vector.broadcast %418 : vector<1x128xf32> to vector<8x128xf32>
    %453 = arith.mulf %451, %452 : vector<8x128xf32>
    %454 = arith.addf %448, %450 : vector<8x128xf32>
    %455 = arith.addf %454, %453 : vector<8x128xf32>
    %456 = arith.addf %443, %455 : vector<8x128xf32>
    %457 = arith.mulf %456, %456 : vector<8x128xf32>
    %c1_214 = arith.constant 1 : index
    %c0_215 = arith.constant 0 : index
    %c0_216 = arith.constant 0 : index
    %458 = vector.load %arg55[%c1_214, %c0_215, %c0_216] : memref<2x10x128xf32, #tpu.memory_space<vmem>>, vector<1x8x128xf32>
    %459 = vector.shape_cast %458 : vector<1x8x128xf32> to vector<8x128xf32>
    %c16_i32_217 = arith.constant 16 : i32
    %460 = tpu.dynamic_rotate %459 by %c16_i32_217 dim 1 : vector<8x128xf32>, i32 -> vector<8x128xf32>
    %461 = vector.broadcast %410 : vector<1x128xf32> to vector<8x128xf32>
    %462 = arith.mulf %460, %461 : vector<8x128xf32>
    %463 = vector.broadcast %411 : vector<1x128xf32> to vector<8x128xf32>
    %464 = arith.mulf %459, %463 : vector<8x128xf32>
    %c112_i32_218 = arith.constant 112 : i32
    %465 = tpu.dynamic_rotate %459 by %c112_i32_218 dim 1 : vector<8x128xf32>, i32 -> vector<8x128xf32>
    %466 = vector.broadcast %412 : vector<1x128xf32> to vector<8x128xf32>
    %467 = arith.mulf %465, %466 : vector<8x128xf32>
    %468 = arith.addf %462, %464 : vector<8x128xf32>
    %469 = arith.addf %468, %467 : vector<8x128xf32>
    %c1_219 = arith.constant 1 : index
    %c1_220 = arith.constant 1 : index
    %c0_221 = arith.constant 0 : index
    %470 = vector.load %arg55[%c1_219, %c1_220, %c0_221] : memref<2x10x128xf32, #tpu.memory_space<vmem>>, vector<1x8x128xf32>
    %471 = vector.shape_cast %470 : vector<1x8x128xf32> to vector<8x128xf32>
    %c16_i32_222 = arith.constant 16 : i32
    %472 = tpu.dynamic_rotate %471 by %c16_i32_222 dim 1 : vector<8x128xf32>, i32 -> vector<8x128xf32>
    %473 = vector.broadcast %413 : vector<1x128xf32> to vector<8x128xf32>
    %474 = arith.mulf %472, %473 : vector<8x128xf32>
    %475 = vector.broadcast %414 : vector<1x128xf32> to vector<8x128xf32>
    %476 = arith.mulf %471, %475 : vector<8x128xf32>
    %c112_i32_223 = arith.constant 112 : i32
    %477 = tpu.dynamic_rotate %471 by %c112_i32_223 dim 1 : vector<8x128xf32>, i32 -> vector<8x128xf32>
    %478 = vector.broadcast %415 : vector<1x128xf32> to vector<8x128xf32>
    %479 = arith.mulf %477, %478 : vector<8x128xf32>
    %480 = arith.addf %474, %476 : vector<8x128xf32>
    %481 = arith.addf %480, %479 : vector<8x128xf32>
    %482 = arith.addf %469, %481 : vector<8x128xf32>
    %c1_224 = arith.constant 1 : index
    %c2_225 = arith.constant 2 : index
    %c0_226 = arith.constant 0 : index
    %483 = vector.load %arg55[%c1_224, %c2_225, %c0_226] : memref<2x10x128xf32, #tpu.memory_space<vmem>>, vector<1x8x128xf32>
    %484 = vector.shape_cast %483 : vector<1x8x128xf32> to vector<8x128xf32>
    %c16_i32_227 = arith.constant 16 : i32
    %485 = tpu.dynamic_rotate %484 by %c16_i32_227 dim 1 : vector<8x128xf32>, i32 -> vector<8x128xf32>
    %486 = vector.broadcast %416 : vector<1x128xf32> to vector<8x128xf32>
    %487 = arith.mulf %485, %486 : vector<8x128xf32>
    %488 = vector.broadcast %417 : vector<1x128xf32> to vector<8x128xf32>
    %489 = arith.mulf %484, %488 : vector<8x128xf32>
    %c112_i32_228 = arith.constant 112 : i32
    %490 = tpu.dynamic_rotate %484 by %c112_i32_228 dim 1 : vector<8x128xf32>, i32 -> vector<8x128xf32>
    %491 = vector.broadcast %418 : vector<1x128xf32> to vector<8x128xf32>
    %492 = arith.mulf %490, %491 : vector<8x128xf32>
    %493 = arith.addf %487, %489 : vector<8x128xf32>
    %494 = arith.addf %493, %492 : vector<8x128xf32>
    %495 = arith.addf %482, %494 : vector<8x128xf32>
    %496 = arith.addf %456, %495 : vector<8x128xf32>
    %497 = arith.mulf %495, %495 : vector<8x128xf32>
    %498 = arith.addf %457, %497 : vector<8x128xf32>
    %c0_229 = arith.constant 0 : index
    %c0_230 = arith.constant 0 : index
    %499 = vector.load %arg25[%c0_229, %c0_230] : memref<128x128xf32, #tpu.memory_space<vmem>>, vector<128x128xf32>
    %cst_231 = arith.constant dense<0.000000e+00> : vector<8x128xf32>
    %500 = tpu.matmul %496, %499, %cst_231 {dimension_numbers = #tpu.dot_dimension_numbers<[1], [0], [0], [1], [0, 0, 1, 1], [], []>} : vector<8x128xf32>, vector<128x128xf32>, vector<8x128xf32> -> vector<8x128xf32>
    %cst_232 = arith.constant dense<0.000000e+00> : vector<128xf32>
    %501 = vector.multi_reduction <add>, %500, %cst_232 [0] : vector<8x128xf32> to vector<128xf32>
    %502 = vector.shape_cast %501 : vector<128xf32> to vector<1x128xf32>
    %cst_233 = arith.constant 7.812500e-03 : f32
    %503 = vector.broadcast %cst_233 : f32 to vector<1x128xf32>
    %504 = arith.mulf %502, %503 : vector<1x128xf32>
    %cst_234 = arith.constant dense<0.000000e+00> : vector<8x128xf32>
    %505 = tpu.matmul %498, %499, %cst_234 {dimension_numbers = #tpu.dot_dimension_numbers<[1], [0], [0], [1], [0, 0, 1, 1], [], []>} : vector<8x128xf32>, vector<128x128xf32>, vector<8x128xf32> -> vector<8x128xf32>
    %cst_235 = arith.constant dense<0.000000e+00> : vector<128xf32>
    %506 = vector.multi_reduction <add>, %505, %cst_235 [0] : vector<8x128xf32> to vector<128xf32>
    %507 = vector.shape_cast %506 : vector<128xf32> to vector<1x128xf32>
    %cst_236 = arith.constant 7.812500e-03 : f32
    %508 = vector.broadcast %cst_236 : f32 to vector<1x128xf32>
    %509 = arith.mulf %507, %508 : vector<1x128xf32>
    %510 = arith.mulf %504, %504 : vector<1x128xf32>
    %511 = arith.subf %509, %510 : vector<1x128xf32>
    %cst_237 = arith.constant 0.000000e+00 : f32
    %512 = vector.broadcast %cst_237 : f32 to vector<1x128xf32>
    %513 = arith.maximumf %511, %512 : vector<1x128xf32>
    %c0_238 = arith.constant 0 : index
    %c0_239 = arith.constant 0 : index
    %514 = vector.load %arg26[%c0_238, %c0_239] : memref<1x128xf32, #tpu.memory_space<vmem>>, vector<1x128xf32>
    %cst_240 = arith.constant 9.99999974E-6 : f32
    %515 = vector.broadcast %cst_240 : f32 to vector<1x128xf32>
    %516 = arith.addf %513, %515 : vector<1x128xf32>
    %517 = math.rsqrt %516 : vector<1x128xf32>
    %518 = arith.mulf %514, %517 : vector<1x128xf32>
    %c0_241 = arith.constant 0 : index
    %c0_242 = arith.constant 0 : index
    %519 = vector.load %arg27[%c0_241, %c0_242] : memref<1x128xf32, #tpu.memory_space<vmem>>, vector<1x128xf32>
    %520 = arith.mulf %504, %518 : vector<1x128xf32>
    %521 = arith.subf %519, %520 : vector<1x128xf32>
    %c0_243 = arith.constant 0 : index
    %c0_244 = arith.constant 0 : index
    %522 = vector.load %arg28[%c0_243, %c0_244] : memref<128x128xbf16, #tpu.memory_space<vmem>>, vector<128x128xbf16>
    %523 = vector.broadcast %518 : vector<1x128xf32> to vector<8x128xf32>
    %524 = arith.mulf %456, %523 : vector<8x128xf32>
    %525 = vector.broadcast %521 : vector<1x128xf32> to vector<8x128xf32>
    %526 = arith.addf %524, %525 : vector<8x128xf32>
    %cst_245 = arith.constant 0.000000e+00 : f32
    %527 = vector.broadcast %cst_245 : f32 to vector<8x128xf32>
    %528 = arith.maximumf %526, %527 : vector<8x128xf32>
    %529 = arith.truncf %528 : vector<8x128xf32> to vector<8x128xbf16>
    %cst_246 = arith.constant dense<0.000000e+00> : vector<8x128xf32>
    %530 = tpu.matmul %529, %522, %cst_246 {dimension_numbers = #tpu.dot_dimension_numbers<[1], [0], [0], [1], [0, 0, 1, 1], [], []>} : vector<8x128xbf16>, vector<128x128xbf16>, vector<8x128xf32> -> vector<8x128xf32>
    %531 = arith.mulf %530, %530 : vector<8x128xf32>
    %532 = vector.broadcast %518 : vector<1x128xf32> to vector<8x128xf32>
    %533 = arith.mulf %495, %532 : vector<8x128xf32>
    %534 = vector.broadcast %521 : vector<1x128xf32> to vector<8x128xf32>
    %535 = arith.addf %533, %534 : vector<8x128xf32>
    %cst_247 = arith.constant 0.000000e+00 : f32
    %536 = vector.broadcast %cst_247 : f32 to vector<8x128xf32>
    %537 = arith.maximumf %535, %536 : vector<8x128xf32>
    %538 = arith.truncf %537 : vector<8x128xf32> to vector<8x128xbf16>
    %cst_248 = arith.constant dense<0.000000e+00> : vector<8x128xf32>
    %539 = tpu.matmul %538, %522, %cst_248 {dimension_numbers = #tpu.dot_dimension_numbers<[1], [0], [0], [1], [0, 0, 1, 1], [], []>} : vector<8x128xbf16>, vector<128x128xbf16>, vector<8x128xf32> -> vector<8x128xf32>
    %540 = arith.addf %530, %539 : vector<8x128xf32>
    %541 = arith.mulf %539, %539 : vector<8x128xf32>
    %542 = arith.addf %531, %541 : vector<8x128xf32>
    %c0_249 = arith.constant 0 : index
    %c0_250 = arith.constant 0 : index
    %543 = vector.load %arg29[%c0_249, %c0_250] : memref<128x128xf32, #tpu.memory_space<vmem>>, vector<128x128xf32>
    %cst_251 = arith.constant dense<0.000000e+00> : vector<8x128xf32>
    %544 = tpu.matmul %540, %543, %cst_251 {dimension_numbers = #tpu.dot_dimension_numbers<[1], [0], [0], [1], [0, 0, 1, 1], [], []>} : vector<8x128xf32>, vector<128x128xf32>, vector<8x128xf32> -> vector<8x128xf32>
    %cst_252 = arith.constant dense<0.000000e+00> : vector<128xf32>
    %545 = vector.multi_reduction <add>, %544, %cst_252 [0] : vector<8x128xf32> to vector<128xf32>
    %546 = vector.shape_cast %545 : vector<128xf32> to vector<1x128xf32>
    %cst_253 = arith.constant 7.812500e-03 : f32
    %547 = vector.broadcast %cst_253 : f32 to vector<1x128xf32>
    %548 = arith.mulf %546, %547 : vector<1x128xf32>
    %cst_254 = arith.constant dense<0.000000e+00> : vector<8x128xf32>
    %549 = tpu.matmul %542, %543, %cst_254 {dimension_numbers = #tpu.dot_dimension_numbers<[1], [0], [0], [1], [0, 0, 1, 1], [], []>} : vector<8x128xf32>, vector<128x128xf32>, vector<8x128xf32> -> vector<8x128xf32>
    %cst_255 = arith.constant dense<0.000000e+00> : vector<128xf32>
    %550 = vector.multi_reduction <add>, %549, %cst_255 [0] : vector<8x128xf32> to vector<128xf32>
    %551 = vector.shape_cast %550 : vector<128xf32> to vector<1x128xf32>
    %cst_256 = arith.constant 7.812500e-03 : f32
    %552 = vector.broadcast %cst_256 : f32 to vector<1x128xf32>
    %553 = arith.mulf %551, %552 : vector<1x128xf32>
    %554 = arith.mulf %548, %548 : vector<1x128xf32>
    %555 = arith.subf %553, %554 : vector<1x128xf32>
    %cst_257 = arith.constant 0.000000e+00 : f32
    %556 = vector.broadcast %cst_257 : f32 to vector<1x128xf32>
    %557 = arith.maximumf %555, %556 : vector<1x128xf32>
    %c0_258 = arith.constant 0 : index
    %c0_259 = arith.constant 0 : index
    %558 = vector.load %arg30[%c0_258, %c0_259] : memref<1x128xf32, #tpu.memory_space<vmem>>, vector<1x128xf32>
    %cst_260 = arith.constant 9.99999974E-6 : f32
    %559 = vector.broadcast %cst_260 : f32 to vector<1x128xf32>
    %560 = arith.addf %557, %559 : vector<1x128xf32>
    %561 = math.rsqrt %560 : vector<1x128xf32>
    %562 = arith.mulf %558, %561 : vector<1x128xf32>
    %c0_261 = arith.constant 0 : index
    %c0_262 = arith.constant 0 : index
    %563 = vector.load %arg31[%c0_261, %c0_262] : memref<1x128xf32, #tpu.memory_space<vmem>>, vector<1x128xf32>
    %564 = arith.mulf %548, %562 : vector<1x128xf32>
    %565 = arith.subf %563, %564 : vector<1x128xf32>
    %566 = vector.broadcast %562 : vector<1x128xf32> to vector<8x128xf32>
    %567 = arith.mulf %530, %566 : vector<8x128xf32>
    %568 = vector.broadcast %565 : vector<1x128xf32> to vector<8x128xf32>
    %569 = arith.addf %567, %568 : vector<8x128xf32>
    %cst_263 = arith.constant 0.000000e+00 : f32
    %570 = vector.broadcast %cst_263 : f32 to vector<8x128xf32>
    %571 = arith.maximumf %569, %570 : vector<8x128xf32>
    %c0_264 = arith.constant 0 : index
    %c1_265 = arith.constant 1 : index
    %c0_266 = arith.constant 0 : index
    %572 = vector.load %arg56[%c0_264, %c1_265, %c0_266] : memref<2x10x128xf32, #tpu.memory_space<vmem>>, vector<1x8x128xf32>
    %573 = vector.shape_cast %572 : vector<1x8x128xf32> to vector<8x128xf32>
    %574 = vector.shape_cast %571 : vector<8x128xf32> to vector<1x8x128xf32>
    tpu.vector_store %arg56[%c0_264, %c1_265, %c0_266], %574 {strides = array<i32>} : memref<2x10x128xf32, #tpu.memory_space<vmem>>, vector<1x8x128xf32>,
    %575 = vector.broadcast %562 : vector<1x128xf32> to vector<8x128xf32>
    %576 = arith.mulf %539, %575 : vector<8x128xf32>
    %577 = vector.broadcast %565 : vector<1x128xf32> to vector<8x128xf32>
    %578 = arith.addf %576, %577 : vector<8x128xf32>
    %cst_267 = arith.constant 0.000000e+00 : f32
    %579 = vector.broadcast %cst_267 : f32 to vector<8x128xf32>
    %580 = arith.maximumf %578, %579 : vector<8x128xf32>
    %c1_268 = arith.constant 1 : index
    %c1_269 = arith.constant 1 : index
    %c0_270 = arith.constant 0 : index
    %581 = vector.load %arg56[%c1_268, %c1_269, %c0_270] : memref<2x10x128xf32, #tpu.memory_space<vmem>>, vector<1x8x128xf32>
    %582 = vector.shape_cast %581 : vector<1x8x128xf32> to vector<8x128xf32>
    %583 = vector.shape_cast %580 : vector<8x128xf32> to vector<1x8x128xf32>
    tpu.vector_store %arg56[%c1_268, %c1_269, %c0_270], %583 {strides = array<i32>} : memref<2x10x128xf32, #tpu.memory_space<vmem>>, vector<1x8x128xf32>,
    %c0_271 = arith.constant 0 : index
    %c0_272 = arith.constant 0 : index
    %584 = vector.load %arg32[%c0_271, %c0_272] : memref<9x128xf32, #tpu.memory_space<vmem>>, vector<9x128xf32>
    %585 = vector.extract_strided_slice %584 {offsets = [0, 0], sizes = [1, 128], strides = [1, 1]} : vector<9x128xf32> to vector<1x128xf32>
    %586 = vector.extract_strided_slice %584 {offsets = [1, 0], sizes = [1, 128], strides = [1, 1]} : vector<9x128xf32> to vector<1x128xf32>
    %587 = vector.extract_strided_slice %584 {offsets = [2, 0], sizes = [1, 128], strides = [1, 1]} : vector<9x128xf32> to vector<1x128xf32>
    %588 = vector.extract_strided_slice %584 {offsets = [3, 0], sizes = [1, 128], strides = [1, 1]} : vector<9x128xf32> to vector<1x128xf32>
    %589 = vector.extract_strided_slice %584 {offsets = [4, 0], sizes = [1, 128], strides = [1, 1]} : vector<9x128xf32> to vector<1x128xf32>
    %590 = vector.extract_strided_slice %584 {offsets = [5, 0], sizes = [1, 128], strides = [1, 1]} : vector<9x128xf32> to vector<1x128xf32>
    %591 = vector.extract_strided_slice %584 {offsets = [6, 0], sizes = [1, 128], strides = [1, 1]} : vector<9x128xf32> to vector<1x128xf32>
    %592 = vector.extract_strided_slice %584 {offsets = [7, 0], sizes = [1, 128], strides = [1, 1]} : vector<9x128xf32> to vector<1x128xf32>
    %593 = vector.extract_strided_slice %584 {offsets = [8, 0], sizes = [1, 128], strides = [1, 1]} : vector<9x128xf32> to vector<1x128xf32>
    %c0_273 = arith.constant 0 : index
    %c0_274 = arith.constant 0 : index
    %594 = vector.load %arg33[%c0_273, %c0_274] : memref<4x8xf32, #tpu.memory_space<vmem>>, vector<4x8xf32>
    %c0_275 = arith.constant 0 : index
    %c0_276 = arith.constant 0 : index
    %595 = vector.load %arg34[%c0_275, %c0_276] : memref<128x64xf32, #tpu.memory_space<vmem>>, vector<128x64xf32>
    %c0_277 = arith.constant 0 : index
    %c0_278 = arith.constant 0 : index
    %c0_279 = arith.constant 0 : index
    %596 = vector.load %arg56[%c0_277, %c0_278, %c0_279] : memref<2x10x128xf32, #tpu.memory_space<vmem>>, vector<1x8x128xf32>
    %597 = vector.shape_cast %596 : vector<1x8x128xf32> to vector<8x128xf32>
    %c16_i32_280 = arith.constant 16 : i32
    %598 = tpu.dynamic_rotate %597 by %c16_i32_280 dim 1 : vector<8x128xf32>, i32 -> vector<8x128xf32>
    %599 = vector.broadcast %585 : vector<1x128xf32> to vector<8x128xf32>
    %600 = arith.mulf %598, %599 : vector<8x128xf32>
    %601 = vector.broadcast %586 : vector<1x128xf32> to vector<8x128xf32>
    %602 = arith.mulf %597, %601 : vector<8x128xf32>
    %c112_i32_281 = arith.constant 112 : i32
    %603 = tpu.dynamic_rotate %597 by %c112_i32_281 dim 1 : vector<8x128xf32>, i32 -> vector<8x128xf32>
    %604 = vector.broadcast %587 : vector<1x128xf32> to vector<8x128xf32>
    %605 = arith.mulf %603, %604 : vector<8x128xf32>
    %606 = arith.addf %600, %602 : vector<8x128xf32>
    %607 = arith.addf %606, %605 : vector<8x128xf32>
    %c0_282 = arith.constant 0 : index
    %c1_283 = arith.constant 1 : index
    %c0_284 = arith.constant 0 : index
    %608 = vector.load %arg56[%c0_282, %c1_283, %c0_284] : memref<2x10x128xf32, #tpu.memory_space<vmem>>, vector<1x8x128xf32>
    %609 = vector.shape_cast %608 : vector<1x8x128xf32> to vector<8x128xf32>
    %c16_i32_285 = arith.constant 16 : i32
    %610 = tpu.dynamic_rotate %609 by %c16_i32_285 dim 1 : vector<8x128xf32>, i32 -> vector<8x128xf32>
    %611 = vector.broadcast %588 : vector<1x128xf32> to vector<8x128xf32>
    %612 = arith.mulf %610, %611 : vector<8x128xf32>
    %613 = vector.broadcast %589 : vector<1x128xf32> to vector<8x128xf32>
    %614 = arith.mulf %609, %613 : vector<8x128xf32>
    %c112_i32_286 = arith.constant 112 : i32
    %615 = tpu.dynamic_rotate %609 by %c112_i32_286 dim 1 : vector<8x128xf32>, i32 -> vector<8x128xf32>
    %616 = vector.broadcast %590 : vector<1x128xf32> to vector<8x128xf32>
    %617 = arith.mulf %615, %616 : vector<8x128xf32>
    %618 = arith.addf %612, %614 : vector<8x128xf32>
    %619 = arith.addf %618, %617 : vector<8x128xf32>
    %620 = arith.addf %607, %619 : vector<8x128xf32>
    %c0_287 = arith.constant 0 : index
    %c2_288 = arith.constant 2 : index
    %c0_289 = arith.constant 0 : index
    %621 = vector.load %arg56[%c0_287, %c2_288, %c0_289] : memref<2x10x128xf32, #tpu.memory_space<vmem>>, vector<1x8x128xf32>
    %622 = vector.shape_cast %621 : vector<1x8x128xf32> to vector<8x128xf32>
    %c16_i32_290 = arith.constant 16 : i32
    %623 = tpu.dynamic_rotate %622 by %c16_i32_290 dim 1 : vector<8x128xf32>, i32 -> vector<8x128xf32>
    %624 = vector.broadcast %591 : vector<1x128xf32> to vector<8x128xf32>
    %625 = arith.mulf %623, %624 : vector<8x128xf32>
    %626 = vector.broadcast %592 : vector<1x128xf32> to vector<8x128xf32>
    %627 = arith.mulf %622, %626 : vector<8x128xf32>
    %c112_i32_291 = arith.constant 112 : i32
    %628 = tpu.dynamic_rotate %622 by %c112_i32_291 dim 1 : vector<8x128xf32>, i32 -> vector<8x128xf32>
    %629 = vector.broadcast %593 : vector<1x128xf32> to vector<8x128xf32>
    %630 = arith.mulf %628, %629 : vector<8x128xf32>
    %631 = arith.addf %625, %627 : vector<8x128xf32>
    %632 = arith.addf %631, %630 : vector<8x128xf32>
    %633 = arith.addf %620, %632 : vector<8x128xf32>
    %cst_292 = arith.constant dense<0.000000e+00> : vector<8x64xf32>
    %634 = tpu.matmul %633, %595, %cst_292 {dimension_numbers = #tpu.dot_dimension_numbers<[1], [0], [0], [1], [0, 0, 1, 1], [], []>} : vector<8x128xf32>, vector<128x64xf32>, vector<8x64xf32> -> vector<8x64xf32>
    %cst_293 = arith.constant dense<0.000000e+00> : vector<4x64xf32>
    %635 = tpu.matmul %594, %634, %cst_293 {dimension_numbers = #tpu.dot_dimension_numbers<[1], [0], [0], [1], [0, 0, 1, 1], [], []>} : vector<4x8xf32>, vector<8x64xf32>, vector<4x64xf32> -> vector<4x64xf32>
    %636 = arith.mulf %635, %635 : vector<4x64xf32>
    %c1_294 = arith.constant 1 : index
    %c0_295 = arith.constant 0 : index
    %c0_296 = arith.constant 0 : index
    %637 = vector.load %arg56[%c1_294, %c0_295, %c0_296] : memref<2x10x128xf32, #tpu.memory_space<vmem>>, vector<1x8x128xf32>
    %638 = vector.shape_cast %637 : vector<1x8x128xf32> to vector<8x128xf32>
    %c16_i32_297 = arith.constant 16 : i32
    %639 = tpu.dynamic_rotate %638 by %c16_i32_297 dim 1 : vector<8x128xf32>, i32 -> vector<8x128xf32>
    %640 = vector.broadcast %585 : vector<1x128xf32> to vector<8x128xf32>
    %641 = arith.mulf %639, %640 : vector<8x128xf32>
    %642 = vector.broadcast %586 : vector<1x128xf32> to vector<8x128xf32>
    %643 = arith.mulf %638, %642 : vector<8x128xf32>
    %c112_i32_298 = arith.constant 112 : i32
    %644 = tpu.dynamic_rotate %638 by %c112_i32_298 dim 1 : vector<8x128xf32>, i32 -> vector<8x128xf32>
    %645 = vector.broadcast %587 : vector<1x128xf32> to vector<8x128xf32>
    %646 = arith.mulf %644, %645 : vector<8x128xf32>
    %647 = arith.addf %641, %643 : vector<8x128xf32>
    %648 = arith.addf %647, %646 : vector<8x128xf32>
    %c1_299 = arith.constant 1 : index
    %c1_300 = arith.constant 1 : index
    %c0_301 = arith.constant 0 : index
    %649 = vector.load %arg56[%c1_299, %c1_300, %c0_301] : memref<2x10x128xf32, #tpu.memory_space<vmem>>, vector<1x8x128xf32>
    %650 = vector.shape_cast %649 : vector<1x8x128xf32> to vector<8x128xf32>
    %c16_i32_302 = arith.constant 16 : i32
    %651 = tpu.dynamic_rotate %650 by %c16_i32_302 dim 1 : vector<8x128xf32>, i32 -> vector<8x128xf32>
    %652 = vector.broadcast %588 : vector<1x128xf32> to vector<8x128xf32>
    %653 = arith.mulf %651, %652 : vector<8x128xf32>
    %654 = vector.broadcast %589 : vector<1x128xf32> to vector<8x128xf32>
    %655 = arith.mulf %650, %654 : vector<8x128xf32>
    %c112_i32_303 = arith.constant 112 : i32
    %656 = tpu.dynamic_rotate %650 by %c112_i32_303 dim 1 : vector<8x128xf32>, i32 -> vector<8x128xf32>
    %657 = vector.broadcast %590 : vector<1x128xf32> to vector<8x128xf32>
    %658 = arith.mulf %656, %657 : vector<8x128xf32>
    %659 = arith.addf %653, %655 : vector<8x128xf32>
    %660 = arith.addf %659, %658 : vector<8x128xf32>
    %661 = arith.addf %648, %660 : vector<8x128xf32>
    %c1_304 = arith.constant 1 : index
    %c2_305 = arith.constant 2 : index
    %c0_306 = arith.constant 0 : index
    %662 = vector.load %arg56[%c1_304, %c2_305, %c0_306] : memref<2x10x128xf32, #tpu.memory_space<vmem>>, vector<1x8x128xf32>
    %663 = vector.shape_cast %662 : vector<1x8x128xf32> to vector<8x128xf32>
    %c16_i32_307 = arith.constant 16 : i32
    %664 = tpu.dynamic_rotate %663 by %c16_i32_307 dim 1 : vector<8x128xf32>, i32 -> vector<8x128xf32>
    %665 = vector.broadcast %591 : vector<1x128xf32> to vector<8x128xf32>
    %666 = arith.mulf %664, %665 : vector<8x128xf32>
    %667 = vector.broadcast %592 : vector<1x128xf32> to vector<8x128xf32>
    %668 = arith.mulf %663, %667 : vector<8x128xf32>
    %c112_i32_308 = arith.constant 112 : i32
    %669 = tpu.dynamic_rotate %663 by %c112_i32_308 dim 1 : vector<8x128xf32>, i32 -> vector<8x128xf32>
    %670 = vector.broadcast %593 : vector<1x128xf32> to vector<8x128xf32>
    %671 = arith.mulf %669, %670 : vector<8x128xf32>
    %672 = arith.addf %666, %668 : vector<8x128xf32>
    %673 = arith.addf %672, %671 : vector<8x128xf32>
    %674 = arith.addf %661, %673 : vector<8x128xf32>
    %cst_309 = arith.constant dense<0.000000e+00> : vector<8x64xf32>
    %675 = tpu.matmul %674, %595, %cst_309 {dimension_numbers = #tpu.dot_dimension_numbers<[1], [0], [0], [1], [0, 0, 1, 1], [], []>} : vector<8x128xf32>, vector<128x64xf32>, vector<8x64xf32> -> vector<8x64xf32>
    %cst_310 = arith.constant dense<0.000000e+00> : vector<4x64xf32>
    %676 = tpu.matmul %594, %675, %cst_310 {dimension_numbers = #tpu.dot_dimension_numbers<[1], [0], [0], [1], [0, 0, 1, 1], [], []>} : vector<4x8xf32>, vector<8x64xf32>, vector<4x64xf32> -> vector<4x64xf32>
    %677 = arith.addf %635, %676 : vector<4x64xf32>
    %678 = arith.mulf %676, %676 : vector<4x64xf32>
    %679 = arith.addf %636, %678 : vector<4x64xf32>
    %c0_311 = arith.constant 0 : index
    %c0_312 = arith.constant 0 : index
    %680 = vector.load %arg35[%c0_311, %c0_312] : memref<64x64xf32, #tpu.memory_space<vmem>>, vector<64x64xf32>
    %cst_313 = arith.constant dense<0.000000e+00> : vector<4x64xf32>
    %681 = tpu.matmul %677, %680, %cst_313 {dimension_numbers = #tpu.dot_dimension_numbers<[1], [0], [0], [1], [0, 0, 1, 1], [], []>} : vector<4x64xf32>, vector<64x64xf32>, vector<4x64xf32> -> vector<4x64xf32>
    %cst_314 = arith.constant dense<0.000000e+00> : vector<64xf32>
    %682 = vector.multi_reduction <add>, %681, %cst_314 [0] : vector<4x64xf32> to vector<64xf32>
    %683 = vector.shape_cast %682 : vector<64xf32> to vector<1x64xf32>
    %cst_315 = arith.constant 3.125000e-02 : f32
    %684 = vector.broadcast %cst_315 : f32 to vector<1x64xf32>
    %685 = arith.mulf %683, %684 : vector<1x64xf32>
    %cst_316 = arith.constant dense<0.000000e+00> : vector<4x64xf32>
    %686 = tpu.matmul %679, %680, %cst_316 {dimension_numbers = #tpu.dot_dimension_numbers<[1], [0], [0], [1], [0, 0, 1, 1], [], []>} : vector<4x64xf32>, vector<64x64xf32>, vector<4x64xf32> -> vector<4x64xf32>
    %cst_317 = arith.constant dense<0.000000e+00> : vector<64xf32>
    %687 = vector.multi_reduction <add>, %686, %cst_317 [0] : vector<4x64xf32> to vector<64xf32>
    %688 = vector.shape_cast %687 : vector<64xf32> to vector<1x64xf32>
    %cst_318 = arith.constant 3.125000e-02 : f32
    %689 = vector.broadcast %cst_318 : f32 to vector<1x64xf32>
    %690 = arith.mulf %688, %689 : vector<1x64xf32>
    %691 = arith.mulf %685, %685 : vector<1x64xf32>
    %692 = arith.subf %690, %691 : vector<1x64xf32>
    %cst_319 = arith.constant 0.000000e+00 : f32
    %693 = vector.broadcast %cst_319 : f32 to vector<1x64xf32>
    %694 = arith.maximumf %692, %693 : vector<1x64xf32>
    %c0_320 = arith.constant 0 : index
    %c0_321 = arith.constant 0 : index
    %695 = vector.load %arg36[%c0_320, %c0_321] : memref<1x64xf32, #tpu.memory_space<vmem>>, vector<1x64xf32>
    %cst_322 = arith.constant 9.99999974E-6 : f32
    %696 = vector.broadcast %cst_322 : f32 to vector<1x64xf32>
    %697 = arith.addf %694, %696 : vector<1x64xf32>
    %698 = math.rsqrt %697 : vector<1x64xf32>
    %699 = arith.mulf %695, %698 : vector<1x64xf32>
    %c0_323 = arith.constant 0 : index
    %c0_324 = arith.constant 0 : index
    %700 = vector.load %arg37[%c0_323, %c0_324] : memref<1x64xf32, #tpu.memory_space<vmem>>, vector<1x64xf32>
    %701 = arith.mulf %685, %699 : vector<1x64xf32>
    %702 = arith.subf %700, %701 : vector<1x64xf32>
    %c0_325 = arith.constant 0 : index
    %c0_326 = arith.constant 0 : index
    %703 = vector.load %arg38[%c0_325, %c0_326] : memref<64x128xbf16, #tpu.memory_space<vmem>>, vector<64x128xbf16>
    %704 = vector.broadcast %699 : vector<1x64xf32> to vector<4x64xf32>
    %705 = arith.mulf %635, %704 : vector<4x64xf32>
    %706 = vector.broadcast %702 : vector<1x64xf32> to vector<4x64xf32>
    %707 = arith.addf %705, %706 : vector<4x64xf32>
    %cst_327 = arith.constant 0.000000e+00 : f32
    %708 = vector.broadcast %cst_327 : f32 to vector<4x64xf32>
    %709 = arith.maximumf %707, %708 : vector<4x64xf32>
    %710 = arith.truncf %709 : vector<4x64xf32> to vector<4x64xbf16>
    %cst_328 = arith.constant dense<0.000000e+00> : vector<4x128xf32>
    %711 = tpu.matmul %710, %703, %cst_328 {dimension_numbers = #tpu.dot_dimension_numbers<[1], [0], [0], [1], [0, 0, 1, 1], [], []>} : vector<4x64xbf16>, vector<64x128xbf16>, vector<4x128xf32> -> vector<4x128xf32>
    %712 = arith.mulf %711, %711 : vector<4x128xf32>
    %713 = vector.broadcast %699 : vector<1x64xf32> to vector<4x64xf32>
    %714 = arith.mulf %676, %713 : vector<4x64xf32>
    %715 = vector.broadcast %702 : vector<1x64xf32> to vector<4x64xf32>
    %716 = arith.addf %714, %715 : vector<4x64xf32>
    %cst_329 = arith.constant 0.000000e+00 : f32
    %717 = vector.broadcast %cst_329 : f32 to vector<4x64xf32>
    %718 = arith.maximumf %716, %717 : vector<4x64xf32>
    %719 = arith.truncf %718 : vector<4x64xf32> to vector<4x64xbf16>
    %cst_330 = arith.constant dense<0.000000e+00> : vector<4x128xf32>
    %720 = tpu.matmul %719, %703, %cst_330 {dimension_numbers = #tpu.dot_dimension_numbers<[1], [0], [0], [1], [0, 0, 1, 1], [], []>} : vector<4x64xbf16>, vector<64x128xbf16>, vector<4x128xf32> -> vector<4x128xf32>
    %721 = arith.addf %711, %720 : vector<4x128xf32>
    %722 = arith.mulf %720, %720 : vector<4x128xf32>
    %723 = arith.addf %712, %722 : vector<4x128xf32>
    %c0_331 = arith.constant 0 : index
    %c0_332 = arith.constant 0 : index
    %724 = vector.load %arg39[%c0_331, %c0_332] : memref<128x128xf32, #tpu.memory_space<vmem>>, vector<128x128xf32>
    %cst_333 = arith.constant dense<0.000000e+00> : vector<4x128xf32>
    %725 = tpu.matmul %721, %724, %cst_333 {dimension_numbers = #tpu.dot_dimension_numbers<[1], [0], [0], [1], [0, 0, 1, 1], [], []>} : vector<4x128xf32>, vector<128x128xf32>, vector<4x128xf32> -> vector<4x128xf32>
    %cst_334 = arith.constant dense<0.000000e+00> : vector<128xf32>
    %726 = vector.multi_reduction <add>, %725, %cst_334 [0] : vector<4x128xf32> to vector<128xf32>
    %727 = vector.shape_cast %726 : vector<128xf32> to vector<1x128xf32>
    %cst_335 = arith.constant 3.125000e-02 : f32
    %728 = vector.broadcast %cst_335 : f32 to vector<1x128xf32>
    %729 = arith.mulf %727, %728 : vector<1x128xf32>
    %cst_336 = arith.constant dense<0.000000e+00> : vector<4x128xf32>
    %730 = tpu.matmul %723, %724, %cst_336 {dimension_numbers = #tpu.dot_dimension_numbers<[1], [0], [0], [1], [0, 0, 1, 1], [], []>} : vector<4x128xf32>, vector<128x128xf32>, vector<4x128xf32> -> vector<4x128xf32>
    %cst_337 = arith.constant dense<0.000000e+00> : vector<128xf32>
    %731 = vector.multi_reduction <add>, %730, %cst_337 [0] : vector<4x128xf32> to vector<128xf32>
    %732 = vector.shape_cast %731 : vector<128xf32> to vector<1x128xf32>
    %cst_338 = arith.constant 3.125000e-02 : f32
    %733 = vector.broadcast %cst_338 : f32 to vector<1x128xf32>
    %734 = arith.mulf %732, %733 : vector<1x128xf32>
    %735 = arith.mulf %729, %729 : vector<1x128xf32>
    %736 = arith.subf %734, %735 : vector<1x128xf32>
    %cst_339 = arith.constant 0.000000e+00 : f32
    %737 = vector.broadcast %cst_339 : f32 to vector<1x128xf32>
    %738 = arith.maximumf %736, %737 : vector<1x128xf32>
    %c0_340 = arith.constant 0 : index
    %c0_341 = arith.constant 0 : index
    %739 = vector.load %arg40[%c0_340, %c0_341] : memref<1x128xf32, #tpu.memory_space<vmem>>, vector<1x128xf32>
    %cst_342 = arith.constant 9.99999974E-6 : f32
    %740 = vector.broadcast %cst_342 : f32 to vector<1x128xf32>
    %741 = arith.addf %738, %740 : vector<1x128xf32>
    %742 = math.rsqrt %741 : vector<1x128xf32>
    %743 = arith.mulf %739, %742 : vector<1x128xf32>
    %c0_343 = arith.constant 0 : index
    %c0_344 = arith.constant 0 : index
    %744 = vector.load %arg41[%c0_343, %c0_344] : memref<1x128xf32, #tpu.memory_space<vmem>>, vector<1x128xf32>
    %745 = arith.mulf %729, %743 : vector<1x128xf32>
    %746 = arith.subf %744, %745 : vector<1x128xf32>
    %747 = vector.broadcast %743 : vector<1x128xf32> to vector<4x128xf32>
    %748 = arith.mulf %711, %747 : vector<4x128xf32>
    %749 = vector.broadcast %746 : vector<1x128xf32> to vector<4x128xf32>
    %750 = arith.addf %748, %749 : vector<4x128xf32>
    %cst_345 = arith.constant 0.000000e+00 : f32
    %751 = vector.broadcast %cst_345 : f32 to vector<4x128xf32>
    %752 = arith.maximumf %750, %751 : vector<4x128xf32>
    %c0_346 = arith.constant 0 : index
    %c0_347 = arith.constant 0 : index
    %753 = vector.load %arg51[%c0_346, %c0_347] : memref<8x128xf32, #tpu.memory_space<vmem>>, vector<4x128xf32>
    tpu.vector_store %arg51[%c0_346, %c0_347], %752 {strides = array<i32>} : memref<8x128xf32, #tpu.memory_space<vmem>>, vector<4x128xf32>,
    %c0_348 = arith.constant 0 : index
    %c1_349 = arith.constant 1 : index
    %c0_350 = arith.constant 0 : index
    %754 = vector.load %arg57[%c0_348, %c1_349, %c0_350] : memref<2x6x128xf32, #tpu.memory_space<vmem>>, vector<1x4x128xf32>
    %755 = vector.shape_cast %754 : vector<1x4x128xf32> to vector<4x128xf32>
    %756 = vector.shape_cast %752 : vector<4x128xf32> to vector<1x4x128xf32>
    tpu.vector_store %arg57[%c0_348, %c1_349, %c0_350], %756 {strides = array<i32>} : memref<2x6x128xf32, #tpu.memory_space<vmem>>, vector<1x4x128xf32>,
    %757 = vector.broadcast %743 : vector<1x128xf32> to vector<4x128xf32>
    %758 = arith.mulf %720, %757 : vector<4x128xf32>
    %759 = vector.broadcast %746 : vector<1x128xf32> to vector<4x128xf32>
    %760 = arith.addf %758, %759 : vector<4x128xf32>
    %cst_351 = arith.constant 0.000000e+00 : f32
    %761 = vector.broadcast %cst_351 : f32 to vector<4x128xf32>
    %762 = arith.maximumf %760, %761 : vector<4x128xf32>
    %c4 = arith.constant 4 : index
    %c0_352 = arith.constant 0 : index
    %763 = vector.load %arg51[%c4, %c0_352] : memref<8x128xf32, #tpu.memory_space<vmem>>, vector<4x128xf32>
    tpu.vector_store %arg51[%c4, %c0_352], %762 {strides = array<i32>} : memref<8x128xf32, #tpu.memory_space<vmem>>, vector<4x128xf32>,
    %c1_353 = arith.constant 1 : index
    %c1_354 = arith.constant 1 : index
    %c0_355 = arith.constant 0 : index
    %764 = vector.load %arg57[%c1_353, %c1_354, %c0_355] : memref<2x6x128xf32, #tpu.memory_space<vmem>>, vector<1x4x128xf32>
    %765 = vector.shape_cast %764 : vector<1x4x128xf32> to vector<4x128xf32>
    %766 = vector.shape_cast %762 : vector<4x128xf32> to vector<1x4x128xf32>
    tpu.vector_store %arg57[%c1_353, %c1_354, %c0_355], %766 {strides = array<i32>} : memref<2x6x128xf32, #tpu.memory_space<vmem>>, vector<1x4x128xf32>,
    %c0_356 = arith.constant 0 : index
    %c0_357 = arith.constant 0 : index
    %767 = vector.load %arg42[%c0_356, %c0_357] : memref<9x128xf32, #tpu.memory_space<vmem>>, vector<9x128xf32>
    %768 = vector.extract_strided_slice %767 {offsets = [0, 0], sizes = [1, 128], strides = [1, 1]} : vector<9x128xf32> to vector<1x128xf32>
    %769 = vector.extract_strided_slice %767 {offsets = [1, 0], sizes = [1, 128], strides = [1, 1]} : vector<9x128xf32> to vector<1x128xf32>
    %770 = vector.extract_strided_slice %767 {offsets = [2, 0], sizes = [1, 128], strides = [1, 1]} : vector<9x128xf32> to vector<1x128xf32>
    %771 = vector.extract_strided_slice %767 {offsets = [3, 0], sizes = [1, 128], strides = [1, 1]} : vector<9x128xf32> to vector<1x128xf32>
    %772 = vector.extract_strided_slice %767 {offsets = [4, 0], sizes = [1, 128], strides = [1, 1]} : vector<9x128xf32> to vector<1x128xf32>
    %773 = vector.extract_strided_slice %767 {offsets = [5, 0], sizes = [1, 128], strides = [1, 1]} : vector<9x128xf32> to vector<1x128xf32>
    %774 = vector.extract_strided_slice %767 {offsets = [6, 0], sizes = [1, 128], strides = [1, 1]} : vector<9x128xf32> to vector<1x128xf32>
    %775 = vector.extract_strided_slice %767 {offsets = [7, 0], sizes = [1, 128], strides = [1, 1]} : vector<9x128xf32> to vector<1x128xf32>
    %776 = vector.extract_strided_slice %767 {offsets = [8, 0], sizes = [1, 128], strides = [1, 1]} : vector<9x128xf32> to vector<1x128xf32>
    %c0_358 = arith.constant 0 : index
    %c0_359 = arith.constant 0 : index
    %c0_360 = arith.constant 0 : index
    %777 = vector.load %arg57[%c0_358, %c0_359, %c0_360] : memref<2x6x128xf32, #tpu.memory_space<vmem>>, vector<1x4x128xf32>
    %778 = vector.shape_cast %777 : vector<1x4x128xf32> to vector<4x128xf32>
    %c32_i32 = arith.constant 32 : i32
    %779 = tpu.dynamic_rotate %778 by %c32_i32 dim 1 : vector<4x128xf32>, i32 -> vector<4x128xf32>
    %780 = vector.broadcast %768 : vector<1x128xf32> to vector<4x128xf32>
    %781 = arith.mulf %779, %780 : vector<4x128xf32>
    %782 = vector.broadcast %769 : vector<1x128xf32> to vector<4x128xf32>
    %783 = arith.mulf %778, %782 : vector<4x128xf32>
    %c96_i32 = arith.constant 96 : i32
    %784 = tpu.dynamic_rotate %778 by %c96_i32 dim 1 : vector<4x128xf32>, i32 -> vector<4x128xf32>
    %785 = vector.broadcast %770 : vector<1x128xf32> to vector<4x128xf32>
    %786 = arith.mulf %784, %785 : vector<4x128xf32>
    %787 = arith.addf %781, %783 : vector<4x128xf32>
    %788 = arith.addf %787, %786 : vector<4x128xf32>
    %c0_361 = arith.constant 0 : index
    %c1_362 = arith.constant 1 : index
    %c0_363 = arith.constant 0 : index
    %789 = vector.load %arg57[%c0_361, %c1_362, %c0_363] : memref<2x6x128xf32, #tpu.memory_space<vmem>>, vector<1x4x128xf32>
    %790 = vector.shape_cast %789 : vector<1x4x128xf32> to vector<4x128xf32>
    %c32_i32_364 = arith.constant 32 : i32
    %791 = tpu.dynamic_rotate %790 by %c32_i32_364 dim 1 : vector<4x128xf32>, i32 -> vector<4x128xf32>
    %792 = vector.broadcast %771 : vector<1x128xf32> to vector<4x128xf32>
    %793 = arith.mulf %791, %792 : vector<4x128xf32>
    %794 = vector.broadcast %772 : vector<1x128xf32> to vector<4x128xf32>
    %795 = arith.mulf %790, %794 : vector<4x128xf32>
    %c96_i32_365 = arith.constant 96 : i32
    %796 = tpu.dynamic_rotate %790 by %c96_i32_365 dim 1 : vector<4x128xf32>, i32 -> vector<4x128xf32>
    %797 = vector.broadcast %773 : vector<1x128xf32> to vector<4x128xf32>
    %798 = arith.mulf %796, %797 : vector<4x128xf32>
    %799 = arith.addf %793, %795 : vector<4x128xf32>
    %800 = arith.addf %799, %798 : vector<4x128xf32>
    %801 = arith.addf %788, %800 : vector<4x128xf32>
    %c0_366 = arith.constant 0 : index
    %c2_367 = arith.constant 2 : index
    %c0_368 = arith.constant 0 : index
    %802 = vector.load %arg57[%c0_366, %c2_367, %c0_368] : memref<2x6x128xf32, #tpu.memory_space<vmem>>, vector<1x4x128xf32>
    %803 = vector.shape_cast %802 : vector<1x4x128xf32> to vector<4x128xf32>
    %c32_i32_369 = arith.constant 32 : i32
    %804 = tpu.dynamic_rotate %803 by %c32_i32_369 dim 1 : vector<4x128xf32>, i32 -> vector<4x128xf32>
    %805 = vector.broadcast %774 : vector<1x128xf32> to vector<4x128xf32>
    %806 = arith.mulf %804, %805 : vector<4x128xf32>
    %807 = vector.broadcast %775 : vector<1x128xf32> to vector<4x128xf32>
    %808 = arith.mulf %803, %807 : vector<4x128xf32>
    %c96_i32_370 = arith.constant 96 : i32
    %809 = tpu.dynamic_rotate %803 by %c96_i32_370 dim 1 : vector<4x128xf32>, i32 -> vector<4x128xf32>
    %810 = vector.broadcast %776 : vector<1x128xf32> to vector<4x128xf32>
    %811 = arith.mulf %809, %810 : vector<4x128xf32>
    %812 = arith.addf %806, %808 : vector<4x128xf32>
    %813 = arith.addf %812, %811 : vector<4x128xf32>
    %814 = arith.addf %801, %813 : vector<4x128xf32>
    %815 = arith.mulf %814, %814 : vector<4x128xf32>
    %c1_371 = arith.constant 1 : index
    %c0_372 = arith.constant 0 : index
    %c0_373 = arith.constant 0 : index
    %816 = vector.load %arg57[%c1_371, %c0_372, %c0_373] : memref<2x6x128xf32, #tpu.memory_space<vmem>>, vector<1x4x128xf32>
    %817 = vector.shape_cast %816 : vector<1x4x128xf32> to vector<4x128xf32>
    %c32_i32_374 = arith.constant 32 : i32
    %818 = tpu.dynamic_rotate %817 by %c32_i32_374 dim 1 : vector<4x128xf32>, i32 -> vector<4x128xf32>
    %819 = vector.broadcast %768 : vector<1x128xf32> to vector<4x128xf32>
    %820 = arith.mulf %818, %819 : vector<4x128xf32>
    %821 = vector.broadcast %769 : vector<1x128xf32> to vector<4x128xf32>
    %822 = arith.mulf %817, %821 : vector<4x128xf32>
    %c96_i32_375 = arith.constant 96 : i32
    %823 = tpu.dynamic_rotate %817 by %c96_i32_375 dim 1 : vector<4x128xf32>, i32 -> vector<4x128xf32>
    %824 = vector.broadcast %770 : vector<1x128xf32> to vector<4x128xf32>
    %825 = arith.mulf %823, %824 : vector<4x128xf32>
    %826 = arith.addf %820, %822 : vector<4x128xf32>
    %827 = arith.addf %826, %825 : vector<4x128xf32>
    %c1_376 = arith.constant 1 : index
    %c1_377 = arith.constant 1 : index
    %c0_378 = arith.constant 0 : index
    %828 = vector.load %arg57[%c1_376, %c1_377, %c0_378] : memref<2x6x128xf32, #tpu.memory_space<vmem>>, vector<1x4x128xf32>
    %829 = vector.shape_cast %828 : vector<1x4x128xf32> to vector<4x128xf32>
    %c32_i32_379 = arith.constant 32 : i32
    %830 = tpu.dynamic_rotate %829 by %c32_i32_379 dim 1 : vector<4x128xf32>, i32 -> vector<4x128xf32>
    %831 = vector.broadcast %771 : vector<1x128xf32> to vector<4x128xf32>
    %832 = arith.mulf %830, %831 : vector<4x128xf32>
    %833 = vector.broadcast %772 : vector<1x128xf32> to vector<4x128xf32>
    %834 = arith.mulf %829, %833 : vector<4x128xf32>
    %c96_i32_380 = arith.constant 96 : i32
    %835 = tpu.dynamic_rotate %829 by %c96_i32_380 dim 1 : vector<4x128xf32>, i32 -> vector<4x128xf32>
    %836 = vector.broadcast %773 : vector<1x128xf32> to vector<4x128xf32>
    %837 = arith.mulf %835, %836 : vector<4x128xf32>
    %838 = arith.addf %832, %834 : vector<4x128xf32>
    %839 = arith.addf %838, %837 : vector<4x128xf32>
    %840 = arith.addf %827, %839 : vector<4x128xf32>
    %c1_381 = arith.constant 1 : index
    %c2_382 = arith.constant 2 : index
    %c0_383 = arith.constant 0 : index
    %841 = vector.load %arg57[%c1_381, %c2_382, %c0_383] : memref<2x6x128xf32, #tpu.memory_space<vmem>>, vector<1x4x128xf32>
    %842 = vector.shape_cast %841 : vector<1x4x128xf32> to vector<4x128xf32>
    %c32_i32_384 = arith.constant 32 : i32
    %843 = tpu.dynamic_rotate %842 by %c32_i32_384 dim 1 : vector<4x128xf32>, i32 -> vector<4x128xf32>
    %844 = vector.broadcast %774 : vector<1x128xf32> to vector<4x128xf32>
    %845 = arith.mulf %843, %844 : vector<4x128xf32>
    %846 = vector.broadcast %775 : vector<1x128xf32> to vector<4x128xf32>
    %847 = arith.mulf %842, %846 : vector<4x128xf32>
    %c96_i32_385 = arith.constant 96 : i32
    %848 = tpu.dynamic_rotate %842 by %c96_i32_385 dim 1 : vector<4x128xf32>, i32 -> vector<4x128xf32>
    %849 = vector.broadcast %776 : vector<1x128xf32> to vector<4x128xf32>
    %850 = arith.mulf %848, %849 : vector<4x128xf32>
    %851 = arith.addf %845, %847 : vector<4x128xf32>
    %852 = arith.addf %851, %850 : vector<4x128xf32>
    %853 = arith.addf %840, %852 : vector<4x128xf32>
    %854 = arith.addf %814, %853 : vector<4x128xf32>
    %855 = arith.mulf %853, %853 : vector<4x128xf32>
    %856 = arith.addf %815, %855 : vector<4x128xf32>
    %c0_386 = arith.constant 0 : index
    %c0_387 = arith.constant 0 : index
    %857 = vector.load %arg43[%c0_386, %c0_387] : memref<128x128xf32, #tpu.memory_space<vmem>>, vector<128x128xf32>
    %cst_388 = arith.constant dense<0.000000e+00> : vector<4x128xf32>
    %858 = tpu.matmul %854, %857, %cst_388 {dimension_numbers = #tpu.dot_dimension_numbers<[1], [0], [0], [1], [0, 0, 1, 1], [], []>} : vector<4x128xf32>, vector<128x128xf32>, vector<4x128xf32> -> vector<4x128xf32>
    %cst_389 = arith.constant dense<0.000000e+00> : vector<128xf32>
    %859 = vector.multi_reduction <add>, %858, %cst_389 [0] : vector<4x128xf32> to vector<128xf32>
    %860 = vector.shape_cast %859 : vector<128xf32> to vector<1x128xf32>
    %cst_390 = arith.constant 3.125000e-02 : f32
    %861 = vector.broadcast %cst_390 : f32 to vector<1x128xf32>
    %862 = arith.mulf %860, %861 : vector<1x128xf32>
    %cst_391 = arith.constant dense<0.000000e+00> : vector<4x128xf32>
    %863 = tpu.matmul %856, %857, %cst_391 {dimension_numbers = #tpu.dot_dimension_numbers<[1], [0], [0], [1], [0, 0, 1, 1], [], []>} : vector<4x128xf32>, vector<128x128xf32>, vector<4x128xf32> -> vector<4x128xf32>
    %cst_392 = arith.constant dense<0.000000e+00> : vector<128xf32>
    %864 = vector.multi_reduction <add>, %863, %cst_392 [0] : vector<4x128xf32> to vector<128xf32>
    %865 = vector.shape_cast %864 : vector<128xf32> to vector<1x128xf32>
    %cst_393 = arith.constant 3.125000e-02 : f32
    %866 = vector.broadcast %cst_393 : f32 to vector<1x128xf32>
    %867 = arith.mulf %865, %866 : vector<1x128xf32>
    %868 = arith.mulf %862, %862 : vector<1x128xf32>
    %869 = arith.subf %867, %868 : vector<1x128xf32>
    %cst_394 = arith.constant 0.000000e+00 : f32
    %870 = vector.broadcast %cst_394 : f32 to vector<1x128xf32>
    %871 = arith.maximumf %869, %870 : vector<1x128xf32>
    %c0_395 = arith.constant 0 : index
    %c0_396 = arith.constant 0 : index
    %872 = vector.load %arg44[%c0_395, %c0_396] : memref<1x128xf32, #tpu.memory_space<vmem>>, vector<1x128xf32>
    %cst_397 = arith.constant 9.99999974E-6 : f32
    %873 = vector.broadcast %cst_397 : f32 to vector<1x128xf32>
    %874 = arith.addf %871, %873 : vector<1x128xf32>
    %875 = math.rsqrt %874 : vector<1x128xf32>
    %876 = arith.mulf %872, %875 : vector<1x128xf32>
    %c0_398 = arith.constant 0 : index
    %c0_399 = arith.constant 0 : index
    %877 = vector.load %arg45[%c0_398, %c0_399] : memref<1x128xf32, #tpu.memory_space<vmem>>, vector<1x128xf32>
    %878 = arith.mulf %862, %876 : vector<1x128xf32>
    %879 = arith.subf %877, %878 : vector<1x128xf32>
    %c0_400 = arith.constant 0 : index
    %c0_401 = arith.constant 0 : index
    %880 = vector.load %arg46[%c0_400, %c0_401] : memref<128x256xbf16, #tpu.memory_space<vmem>>, vector<128x256xbf16>
    %881 = vector.broadcast %876 : vector<1x128xf32> to vector<4x128xf32>
    %882 = arith.mulf %814, %881 : vector<4x128xf32>
    %883 = vector.broadcast %879 : vector<1x128xf32> to vector<4x128xf32>
    %884 = arith.addf %882, %883 : vector<4x128xf32>
    %cst_402 = arith.constant 0.000000e+00 : f32
    %885 = vector.broadcast %cst_402 : f32 to vector<4x128xf32>
    %886 = arith.maximumf %884, %885 : vector<4x128xf32>
    %887 = arith.truncf %886 : vector<4x128xf32> to vector<4x128xbf16>
    %cst_403 = arith.constant dense<0.000000e+00> : vector<4x256xf32>
    %888 = tpu.matmul %887, %880, %cst_403 {dimension_numbers = #tpu.dot_dimension_numbers<[1], [0], [0], [1], [0, 0, 1, 1], [], []>} : vector<4x128xbf16>, vector<128x256xbf16>, vector<4x256xf32> -> vector<4x256xf32>
    %889 = arith.mulf %888, %888 : vector<4x256xf32>
    %890 = vector.broadcast %876 : vector<1x128xf32> to vector<4x128xf32>
    %891 = arith.mulf %853, %890 : vector<4x128xf32>
    %892 = vector.broadcast %879 : vector<1x128xf32> to vector<4x128xf32>
    %893 = arith.addf %891, %892 : vector<4x128xf32>
    %cst_404 = arith.constant 0.000000e+00 : f32
    %894 = vector.broadcast %cst_404 : f32 to vector<4x128xf32>
    %895 = arith.maximumf %893, %894 : vector<4x128xf32>
    %896 = arith.truncf %895 : vector<4x128xf32> to vector<4x128xbf16>
    %cst_405 = arith.constant dense<0.000000e+00> : vector<4x256xf32>
    %897 = tpu.matmul %896, %880, %cst_405 {dimension_numbers = #tpu.dot_dimension_numbers<[1], [0], [0], [1], [0, 0, 1, 1], [], []>} : vector<4x128xbf16>, vector<128x256xbf16>, vector<4x256xf32> -> vector<4x256xf32>
    %898 = arith.addf %888, %897 : vector<4x256xf32>
    %899 = arith.mulf %897, %897 : vector<4x256xf32>
    %900 = arith.addf %889, %899 : vector<4x256xf32>
    %c0_406 = arith.constant 0 : index
    %c0_407 = arith.constant 0 : index
    %901 = vector.load %arg47[%c0_406, %c0_407] : memref<256x256xf32, #tpu.memory_space<vmem>>, vector<256x256xf32>
    %cst_408 = arith.constant dense<0.000000e+00> : vector<4x256xf32>
    %902 = tpu.matmul %898, %901, %cst_408 {dimension_numbers = #tpu.dot_dimension_numbers<[1], [0], [0], [1], [0, 0, 1, 1], [], []>} : vector<4x256xf32>, vector<256x256xf32>, vector<4x256xf32> -> vector<4x256xf32>
    %cst_409 = arith.constant dense<0.000000e+00> : vector<256xf32>
    %903 = vector.multi_reduction <add>, %902, %cst_409 [0] : vector<4x256xf32> to vector<256xf32>
    %904 = vector.shape_cast %903 : vector<256xf32> to vector<1x256xf32>
    %cst_410 = arith.constant 3.125000e-02 : f32
    %905 = vector.broadcast %cst_410 : f32 to vector<1x256xf32>
    %906 = arith.mulf %904, %905 : vector<1x256xf32>
    %cst_411 = arith.constant dense<0.000000e+00> : vector<4x256xf32>
    %907 = tpu.matmul %900, %901, %cst_411 {dimension_numbers = #tpu.dot_dimension_numbers<[1], [0], [0], [1], [0, 0, 1, 1], [], []>} : vector<4x256xf32>, vector<256x256xf32>, vector<4x256xf32> -> vector<4x256xf32>
    %cst_412 = arith.constant dense<0.000000e+00> : vector<256xf32>
    %908 = vector.multi_reduction <add>, %907, %cst_412 [0] : vector<4x256xf32> to vector<256xf32>
    %909 = vector.shape_cast %908 : vector<256xf32> to vector<1x256xf32>
    %cst_413 = arith.constant 3.125000e-02 : f32
    %910 = vector.broadcast %cst_413 : f32 to vector<1x256xf32>
    %911 = arith.mulf %909, %910 : vector<1x256xf32>
    %912 = arith.mulf %906, %906 : vector<1x256xf32>
    %913 = arith.subf %911, %912 : vector<1x256xf32>
    %cst_414 = arith.constant 0.000000e+00 : f32
    %914 = vector.broadcast %cst_414 : f32 to vector<1x256xf32>
    %915 = arith.maximumf %913, %914 : vector<1x256xf32>
    %c0_415 = arith.constant 0 : index
    %c0_416 = arith.constant 0 : index
    %916 = vector.load %arg48[%c0_415, %c0_416] : memref<1x256xf32, #tpu.memory_space<vmem>>, vector<1x256xf32>
    %cst_417 = arith.constant 9.99999974E-6 : f32
    %917 = vector.broadcast %cst_417 : f32 to vector<1x256xf32>
    %918 = arith.addf %915, %917 : vector<1x256xf32>
    %919 = math.rsqrt %918 : vector<1x256xf32>
    %920 = arith.mulf %916, %919 : vector<1x256xf32>
    %c0_418 = arith.constant 0 : index
    %c0_419 = arith.constant 0 : index
    %921 = vector.load %arg49[%c0_418, %c0_419] : memref<1x256xf32, #tpu.memory_space<vmem>>, vector<1x256xf32>
    %922 = arith.mulf %906, %920 : vector<1x256xf32>
    %923 = arith.subf %921, %922 : vector<1x256xf32>
    %924 = vector.broadcast %920 : vector<1x256xf32> to vector<4x256xf32>
    %925 = arith.mulf %888, %924 : vector<4x256xf32>
    %926 = vector.broadcast %923 : vector<1x256xf32> to vector<4x256xf32>
    %927 = arith.addf %925, %926 : vector<4x256xf32>
    %cst_420 = arith.constant 0.000000e+00 : f32
    %928 = vector.broadcast %cst_420 : f32 to vector<4x256xf32>
    %929 = arith.maximumf %927, %928 : vector<4x256xf32>
    %c0_421 = arith.constant 0 : index
    %c0_422 = arith.constant 0 : index
    %930 = vector.load %arg52[%c0_421, %c0_422] : memref<8x256xf32, #tpu.memory_space<vmem>>, vector<4x256xf32>
    tpu.vector_store %arg52[%c0_421, %c0_422], %929 {strides = array<i32>} : memref<8x256xf32, #tpu.memory_space<vmem>>, vector<4x256xf32>,
    %931 = vector.broadcast %920 : vector<1x256xf32> to vector<4x256xf32>
    %932 = arith.mulf %897, %931 : vector<4x256xf32>
    %933 = vector.broadcast %923 : vector<1x256xf32> to vector<4x256xf32>
    %934 = arith.addf %932, %933 : vector<4x256xf32>
    %cst_423 = arith.constant 0.000000e+00 : f32
    %935 = vector.broadcast %cst_423 : f32 to vector<4x256xf32>
    %936 = arith.maximumf %934, %935 : vector<4x256xf32>
    %c4_424 = arith.constant 4 : index
    %c0_425 = arith.constant 0 : index
    %937 = vector.load %arg52[%c4_424, %c0_425] : memref<8x256xf32, #tpu.memory_space<vmem>>, vector<4x256xf32>
    tpu.vector_store %arg52[%c4_424, %c0_425], %936 {strides = array<i32>} : memref<8x256xf32, #tpu.memory_space<vmem>>, vector<4x256xf32>,
    return
  }
  func.func @transform_0(%arg0: i32) -> (i32, i32) {
    %c0_i32 = arith.constant 0 : i32
    %c0_i32_0 = arith.constant 0 : i32
    %c0_i32_1 = arith.constant 0 : i32
    return %c0_i32, %c0_i32_0 : i32, i32
  }
  func.func @transform_1(%arg0: i32) -> (i32, i32) {
    %c0_i32 = arith.constant 0 : i32
    %c0_i32_0 = arith.constant 0 : i32
    %c0_i32_1 = arith.constant 0 : i32
    return %c0_i32, %c0_i32_0 : i32, i32
  }
  func.func @transform_2(%arg0: i32) -> (i32, i32) {
    %c0_i32 = arith.constant 0 : i32
    %c0_i32_0 = arith.constant 0 : i32
    %c0_i32_1 = arith.constant 0 : i32
    return %c0_i32, %c0_i32_0 : i32, i32
  }
  func.func @transform_3(%arg0: i32) -> (i32, i32) {
    %c0_i32 = arith.constant 0 : i32
    %c0_i32_0 = arith.constant 0 : i32
    %c0_i32_1 = arith.constant 0 : i32
    return %c0_i32, %c0_i32_0 : i32, i32
  }
  func.func @transform_4(%arg0: i32) -> (i32, i32) {
    %c0_i32 = arith.constant 0 : i32
    %c0_i32_0 = arith.constant 0 : i32
    %c0_i32_1 = arith.constant 0 : i32
    return %c0_i32, %c0_i32_0 : i32, i32
  }
  func.func @transform_5(%arg0: i32) -> (i32, i32) {
    %c0_i32 = arith.constant 0 : i32
    %c0_i32_0 = arith.constant 0 : i32
    %c0_i32_1 = arith.constant 0 : i32
    return %c0_i32, %c0_i32_0 : i32, i32
  }
  func.func @transform_6(%arg0: i32) -> (i32, i32) {
    %c0_i32 = arith.constant 0 : i32
    %c0_i32_0 = arith.constant 0 : i32
    %c0_i32_1 = arith.constant 0 : i32
    return %c0_i32, %c0_i32_0 : i32, i32
  }
  func.func @transform_7(%arg0: i32) -> (i32, i32) {
    %c0_i32 = arith.constant 0 : i32
    %c0_i32_0 = arith.constant 0 : i32
    %c0_i32_1 = arith.constant 0 : i32
    return %c0_i32, %c0_i32_0 : i32, i32
  }
  func.func @transform_8(%arg0: i32) -> (i32, i32) {
    %c0_i32 = arith.constant 0 : i32
    %c0_i32_0 = arith.constant 0 : i32
    %c0_i32_1 = arith.constant 0 : i32
    return %c0_i32, %c0_i32_0 : i32, i32
  }
  func.func @transform_9(%arg0: i32) -> (i32, i32) {
    %c0_i32 = arith.constant 0 : i32
    %c0_i32_0 = arith.constant 0 : i32
    %c0_i32_1 = arith.constant 0 : i32
    return %c0_i32, %c0_i32_0 : i32, i32
  }
  func.func @transform_10(%arg0: i32) -> (i32, i32) {
    %c0_i32 = arith.constant 0 : i32
    %c0_i32_0 = arith.constant 0 : i32
    %c0_i32_1 = arith.constant 0 : i32
    return %c0_i32, %c0_i32_0 : i32, i32
  }
  func.func @transform_11(%arg0: i32) -> (i32, i32) {
    %c0_i32 = arith.constant 0 : i32
    %c0_i32_0 = arith.constant 0 : i32
    %c0_i32_1 = arith.constant 0 : i32
    return %c0_i32, %c0_i32_0 : i32, i32
  }
  func.func @transform_12(%arg0: i32) -> (i32, i32) {
    %c0_i32 = arith.constant 0 : i32
    %c0_i32_0 = arith.constant 0 : i32
    %c0_i32_1 = arith.constant 0 : i32
    return %c0_i32, %c0_i32_0 : i32, i32
  }
  func.func @transform_13(%arg0: i32) -> (i32, i32) {
    %c0_i32 = arith.constant 0 : i32
    %c0_i32_0 = arith.constant 0 : i32
    %c0_i32_1 = arith.constant 0 : i32
    return %c0_i32, %c0_i32_0 : i32, i32
  }
  func.func @transform_14(%arg0: i32) -> (i32, i32) {
    %c0_i32 = arith.constant 0 : i32
    %c0_i32_0 = arith.constant 0 : i32
    %c0_i32_1 = arith.constant 0 : i32
    return %c0_i32, %c0_i32_0 : i32, i32
  }
  func.func @transform_15(%arg0: i32) -> (i32, i32) {
    %c0_i32 = arith.constant 0 : i32
    %c0_i32_0 = arith.constant 0 : i32
    %c0_i32_1 = arith.constant 0 : i32
    return %c0_i32, %c0_i32_0 : i32, i32
  }
  func.func @transform_16(%arg0: i32) -> (i32, i32) {
    %c0_i32 = arith.constant 0 : i32
    %c0_i32_0 = arith.constant 0 : i32
    %c0_i32_1 = arith.constant 0 : i32
    return %c0_i32, %c0_i32_0 : i32, i32
  }
  func.func @transform_17(%arg0: i32) -> (i32, i32) {
    %c0_i32 = arith.constant 0 : i32
    %c0_i32_0 = arith.constant 0 : i32
    %c0_i32_1 = arith.constant 0 : i32
    return %c0_i32, %c0_i32_0 : i32, i32
  }
  func.func @transform_18(%arg0: i32) -> (i32, i32) {
    %c0_i32 = arith.constant 0 : i32
    %c0_i32_0 = arith.constant 0 : i32
    %c0_i32_1 = arith.constant 0 : i32
    return %c0_i32, %c0_i32_0 : i32, i32
  }
  func.func @transform_19(%arg0: i32) -> (i32, i32) {
    %c0_i32 = arith.constant 0 : i32
    %c0_i32_0 = arith.constant 0 : i32
    %c0_i32_1 = arith.constant 0 : i32
    return %c0_i32, %c0_i32_0 : i32, i32
  }
  func.func @transform_20(%arg0: i32) -> (i32, i32) {
    %c0_i32 = arith.constant 0 : i32
    %c0_i32_0 = arith.constant 0 : i32
    %c0_i32_1 = arith.constant 0 : i32
    return %c0_i32, %c0_i32_0 : i32, i32
  }
  func.func @transform_21(%arg0: i32) -> (i32, i32) {
    %c0_i32 = arith.constant 0 : i32
    %c0_i32_0 = arith.constant 0 : i32
    %c0_i32_1 = arith.constant 0 : i32
    return %c0_i32, %c0_i32_0 : i32, i32
  }
  func.func @transform_22(%arg0: i32) -> (i32, i32) {
    %c0_i32 = arith.constant 0 : i32
    %c0_i32_0 = arith.constant 0 : i32
    %c0_i32_1 = arith.constant 0 : i32
    return %c0_i32, %c0_i32_0 : i32, i32
  }
  func.func @transform_23(%arg0: i32) -> (i32, i32) {
    %c0_i32 = arith.constant 0 : i32
    %c0_i32_0 = arith.constant 0 : i32
    %c0_i32_1 = arith.constant 0 : i32
    return %c0_i32, %c0_i32_0 : i32, i32
  }
  func.func @transform_24(%arg0: i32) -> (i32, i32) {
    %c0_i32 = arith.constant 0 : i32
    %c0_i32_0 = arith.constant 0 : i32
    %c0_i32_1 = arith.constant 0 : i32
    return %c0_i32, %c0_i32_0 : i32, i32
  }
  func.func @transform_25(%arg0: i32) -> (i32, i32) {
    %c0_i32 = arith.constant 0 : i32
    %c0_i32_0 = arith.constant 0 : i32
    %c0_i32_1 = arith.constant 0 : i32
    return %c0_i32, %c0_i32_0 : i32, i32
  }
  func.func @transform_26(%arg0: i32) -> (i32, i32) {
    %c0_i32 = arith.constant 0 : i32
    %c0_i32_0 = arith.constant 0 : i32
    %c0_i32_1 = arith.constant 0 : i32
    return %c0_i32, %c0_i32_0 : i32, i32
  }
  func.func @transform_27(%arg0: i32) -> (i32, i32) {
    %c0_i32 = arith.constant 0 : i32
    %c0_i32_0 = arith.constant 0 : i32
    %c0_i32_1 = arith.constant 0 : i32
    return %c0_i32, %c0_i32_0 : i32, i32
  }
  func.func @transform_28(%arg0: i32) -> (i32, i32) {
    %c0_i32 = arith.constant 0 : i32
    %c0_i32_0 = arith.constant 0 : i32
    %c0_i32_1 = arith.constant 0 : i32
    return %c0_i32, %c0_i32_0 : i32, i32
  }
  func.func @transform_29(%arg0: i32) -> (i32, i32) {
    %c0_i32 = arith.constant 0 : i32
    %c0_i32_0 = arith.constant 0 : i32
    %c0_i32_1 = arith.constant 0 : i32
    return %c0_i32, %c0_i32_0 : i32, i32
  }
  func.func @transform_30(%arg0: i32) -> (i32, i32) {
    %c0_i32 = arith.constant 0 : i32
    %c0_i32_0 = arith.constant 0 : i32
    %c0_i32_1 = arith.constant 0 : i32
    return %c0_i32, %c0_i32_0 : i32, i32
  }
  func.func @transform_31(%arg0: i32) -> (i32, i32) {
    %c0_i32 = arith.constant 0 : i32
    %c0_i32_0 = arith.constant 0 : i32
    %c0_i32_1 = arith.constant 0 : i32
    return %c0_i32, %c0_i32_0 : i32, i32
  }
  func.func @transform_32(%arg0: i32) -> (i32, i32) {
    %c0_i32 = arith.constant 0 : i32
    %c0_i32_0 = arith.constant 0 : i32
    %c0_i32_1 = arith.constant 0 : i32
    return %c0_i32, %c0_i32_0 : i32, i32
  }
  func.func @transform_33(%arg0: i32) -> (i32, i32) {
    %c0_i32 = arith.constant 0 : i32
    %c0_i32_0 = arith.constant 0 : i32
    %c0_i32_1 = arith.constant 0 : i32
    return %c0_i32, %c0_i32_0 : i32, i32
  }
  func.func @transform_34(%arg0: i32) -> (i32, i32) {
    %c0_i32 = arith.constant 0 : i32
    %c0_i32_0 = arith.constant 0 : i32
    %c0_i32_1 = arith.constant 0 : i32
    return %c0_i32, %c0_i32_0 : i32, i32
  }
  func.func @transform_35(%arg0: i32) -> (i32, i32) {
    %c0_i32 = arith.constant 0 : i32
    %c0_i32_0 = arith.constant 0 : i32
    %c0_i32_1 = arith.constant 0 : i32
    return %c0_i32, %c0_i32_0 : i32, i32
  }
  func.func @transform_36(%arg0: i32) -> (i32, i32) {
    %c0_i32 = arith.constant 0 : i32
    %c0_i32_0 = arith.constant 0 : i32
    %c0_i32_1 = arith.constant 0 : i32
    return %c0_i32, %c0_i32_0 : i32, i32
  }
  func.func @transform_37(%arg0: i32) -> (i32, i32) {
    %c0_i32 = arith.constant 0 : i32
    %c0_i32_0 = arith.constant 0 : i32
    %c0_i32_1 = arith.constant 0 : i32
    return %c0_i32, %c0_i32_0 : i32, i32
  }
  func.func @transform_38(%arg0: i32) -> (i32, i32) {
    %c0_i32 = arith.constant 0 : i32
    %c0_i32_0 = arith.constant 0 : i32
    %c0_i32_1 = arith.constant 0 : i32
    return %c0_i32, %c0_i32_0 : i32, i32
  }
  func.func @transform_39(%arg0: i32) -> (i32, i32) {
    %c0_i32 = arith.constant 0 : i32
    %c0_i32_0 = arith.constant 0 : i32
    %c0_i32_1 = arith.constant 0 : i32
    return %c0_i32, %c0_i32_0 : i32, i32
  }
  func.func @transform_40(%arg0: i32) -> (i32, i32) {
    %c0_i32 = arith.constant 0 : i32
    %c0_i32_0 = arith.constant 0 : i32
    %c0_i32_1 = arith.constant 0 : i32
    return %c0_i32, %c0_i32_0 : i32, i32
  }
  func.func @transform_41(%arg0: i32) -> (i32, i32) {
    %c0_i32 = arith.constant 0 : i32
    %c0_i32_0 = arith.constant 0 : i32
    %c0_i32_1 = arith.constant 0 : i32
    return %c0_i32, %c0_i32_0 : i32, i32
  }
  func.func @transform_42(%arg0: i32) -> (i32, i32) {
    %c0_i32 = arith.constant 0 : i32
    %c0_i32_0 = arith.constant 0 : i32
    %c0_i32_1 = arith.constant 0 : i32
    return %c0_i32, %c0_i32_0 : i32, i32
  }
  func.func @transform_43(%arg0: i32) -> (i32, i32) {
    %c0_i32 = arith.constant 0 : i32
    %c0_i32_0 = arith.constant 0 : i32
    %c0_i32_1 = arith.constant 0 : i32
    return %c0_i32, %c0_i32_0 : i32, i32
  }
  func.func @transform_44(%arg0: i32) -> (i32, i32) {
    %c0_i32 = arith.constant 0 : i32
    %c0_i32_0 = arith.constant 0 : i32
    %c0_i32_1 = arith.constant 0 : i32
    return %c0_i32, %c0_i32_0 : i32, i32
  }
  func.func @transform_45(%arg0: i32) -> (i32, i32) {
    %c0_i32 = arith.constant 0 : i32
    %c0_i32_0 = arith.constant 0 : i32
    %c0_i32_1 = arith.constant 0 : i32
    return %c0_i32, %c0_i32_0 : i32, i32
  }
  func.func @transform_46(%arg0: i32) -> (i32, i32) {
    %c0_i32 = arith.constant 0 : i32
    %c0_i32_0 = arith.constant 0 : i32
    %c0_i32_1 = arith.constant 0 : i32
    return %c0_i32, %c0_i32_0 : i32, i32
  }
  func.func @transform_47(%arg0: i32) -> (i32, i32) {
    %c0_i32 = arith.constant 0 : i32
    %c0_i32_0 = arith.constant 0 : i32
    %c0_i32_1 = arith.constant 0 : i32
    return %c0_i32, %c0_i32_0 : i32, i32
  }
  func.func @transform_48(%arg0: i32) -> (i32, i32) {
    %c0_i32 = arith.constant 0 : i32
    %c0_i32_0 = arith.constant 0 : i32
    %c0_i32_1 = arith.constant 0 : i32
    return %c0_i32, %c0_i32_0 : i32, i32
  }
  func.func @transform_49(%arg0: i32) -> (i32, i32) {
    %c0_i32 = arith.constant 0 : i32
    %c0_i32_0 = arith.constant 0 : i32
    %c0_i32_1 = arith.constant 0 : i32
    return %c0_i32, %c0_i32_0 : i32, i32
  }
  func.func @transform_50(%arg0: i32) -> (i32, i32) {
    %c0_i32 = arith.constant 0 : i32
    %c0_i32_0 = arith.constant 0 : i32
    %c0_i32_1 = arith.constant 0 : i32
    return %c0_i32, %c0_i32_0 : i32, i32
  }
  func.func @transform_51(%arg0: i32) -> (i32, i32) {
    %c0_i32 = arith.constant 0 : i32
    %c0_i32_0 = arith.constant 0 : i32
    %c0_i32_1 = arith.constant 0 : i32
    return %c0_i32, %c0_i32_0 : i32, i32
  }
}

</mosaic_0001>

<bundles_post_ra>
// kernel: _lambda_.1
= control target key start
LH: loop header
LB: loop body
LE: loop exit
PB: predicated region body
PF: predicated region fallthrough
CT: control target
= control target key end

     0   :  { %s6855_s3 = smov 1   ;;  %s6856_s10 = smov 2   ;;  %vm6865_vm0 = vmmov 0   ;;  %vm1842_vm1 = vcmask 130048   ;;  %vm2137_vm2 = vcmask 523264   ;;  %vm3467_vm3 = vcmask 64512   ;;  %s8598_s0 = inlined_call_operand.smem [shape: u32[52], index: -1, kind: input, shape index: {}] }
   0x1   :  { %s6921_s6 = sld [smem:[%s8598_s0 + %s6855_s3]]   ;;  %s6858_s14 = smov 3   ;;  %vm3798_vm4 = vcmask 519168   ;;  %vm4126_vm5 = vcmask 1043456  }
   0x2   :  { %s6951_s9 = sld [smem:[%s8598_s0]]   ;;  %s6859_s18 = smov 4  }
   0x3   :  { %s6961_s13 = sld [smem:[%s8598_s0 + %s6856_s10]]   ;;  %s6860_s22 = smov 8  }
   0x4   :  { %s5088_s17 = sld [smem:[%s8598_s0 + %s6858_s14]]   ;;  %s6861_s23 = smov 6  }
   0x5   :  { %s5089_s21 = sld [smem:[%s8598_s0 + %s6859_s18]]   ;;  %s6862_s27 = smov 120  }
   0x6   :  { %s7071_s26 = sld [smem:[%s8598_s0 + %s6861_s23]]   ;;  %s6863_s28 = smov 5  }
   0x7   :  { %v6736_v0 = vld [vmem:[%s6921_s6 + $0x78] sm:$0xff]   ;;  %v6740_v4 = vld [vmem:[%s6921_s6 + $0x70] sm:$0xff]   ;;  %v6744_v8 = vld [vmem:[%s6921_s6 + $0x68] sm:$0xff]   ;;  %s7150_s1 = sld [smem:[%s8598_s0 + %s6863_s28]]   ;;  %s6864_s2 = smov 9  }
   0x8   :  { %v6737_v1 = vld [vmem:[%s6921_s6 + $0xf8] sm:$0xff]   ;;  %5234 = vmatprep.subr.bf16.mxu0 %v6736_v0  ;;  %v6741_v5 = vld [vmem:[%s6921_s6 + $0xf0] sm:$0xff]   ;;  %v6745_v9 = vld [vmem:[%s6921_s6 + $0xe8] sm:$0xff]   ;;  %s7221_s5 = sld [smem:[%s8598_s0 + %s6864_s2]]   ;;  %s6867_s10 = smov 7  }
   0x9   :  { %v6738_v2 = vld [vmem:[%s6921_s6 + $0x38] sm:$0xff]   ;;  %5262 = vmatprep.subr.bf16.mxu1 %v6737_v1  ;;  %v6742_v6 = vld [vmem:[%s6921_s6 + $0x30] sm:$0xff]   ;;  %v6746_v10 = vld [vmem:[%s6921_s6 + $0x28] sm:$0xff]   ;;  %s5093_s16 = sld [smem:[%s8598_s0 + %s6860_s22]]   ;;  %s6873_s7 = smov 16  }
   0xa   :  { %v6739_v3 = vld [vmem:[%s6921_s6 + $0xb8] sm:$0xff]   ;;  %5235 = vmatpush3.bf16.msra.mxu0 %v6738_v2  ;;  %v6743_v7 = vld [vmem:[%s6921_s6 + $0xb0] sm:$0xff]   ;;  %v6747_v11 = vld [vmem:[%s6921_s6 + $0xa8] sm:$0xff]   ;;  %s6874_s11 = smov 19   ;;  %s6875_s15 = smov 17  }
   0xb   :  { %5263 = vmatpush3.bf16.msra.mxu1 %v6739_v3  ;;  %5236 = vmatprep.subr.bf16.mxu0 %v6740_v4  ;;  %v6748_v12 = vld [vmem:[%s6921_s6 + $0x60] sm:$0xff]   ;;  %v6752_v16 = vld [vmem:[%s6921_s6 + $0x58] sm:$0xff]   ;;  %v6756_v20 = vld [vmem:[%s6921_s6 + $0x50] sm:$0xff]   ;;  %s5104_s14 = sld [smem:[%s8598_s0 + %s6874_s11]]   ;;  %s6876_s19 = smov 18  }
   0xc   :  { %5264 = vmatprep.subr.bf16.mxu1 %v6741_v5  ;;  %v6749_v13 = vld [vmem:[%s6921_s6 + $0xe0] sm:$0xff]   ;;  %v6753_v17 = vld [vmem:[%s6921_s6 + $0xd8] sm:$0xff]   ;;  %v6757_v21 = vld [vmem:[%s6921_s6 + $0xd0] sm:$0xff]   ;;  %s5102_s18 = sld [smem:[%s8598_s0 + %s6875_s15]]   ;;  %s6877_s24 = smov 20  }
   0xd   :  { %v6750_v14 = vld [vmem:[%s6921_s6 + $0x20] sm:$0xff]   ;;  %v6754_v18 = vld [vmem:[%s6921_s6 + $0x18] sm:$0xff]   ;;  %v6758_v22 = vld [vmem:[%s6921_s6 + $0x10] sm:$0xff]   ;;  %s5103_s23 = sld [smem:[%s8598_s0 + %s6876_s19]]   ;;  %s6878_s29 = smov 24  }
   0xe   :  { %5237 = vmatpush3.bf16.msra.mxu0 %v6742_v6  ;;  %v6751_v15 = vld [vmem:[%s6921_s6 + $0xa0] sm:$0xff]   ;;  %v6755_v19 = vld [vmem:[%s6921_s6 + $0x98] sm:$0xff]   ;;  %v6759_v23 = vld [vmem:[%s6921_s6 + $0x90] sm:$0xff]   ;;  %s7667_s28 = sld [smem:[%s8598_s0 + %s6877_s24]]   ;;  %s6879_s3 = smov 21  }
   0xf   :  { %5265 = vmatpush3.bf16.msra.mxu1 %v6743_v7  ;;  %5238 = vmatprep.subr.bf16.mxu0 %v6744_v8  ;;  %v6760_v24 = vld [vmem:[%s6921_s6 + $0x48] sm:$0xff]   ;;  %v6764_v28 = vld [vmem:[%s6921_s6 + $0x40] sm:$0xff]   ;;  %v651_v38 = vld [vmem:[%s6961_s13 + $0x78] sm:$0xff]  ;;  %s7745_s2 = sld [smem:[%s8598_s0 + %s6878_s29]]   ;;  %s6883_s15 = smov 23  }
  0x10   :  { %5266 = vmatprep.subr.bf16.mxu1 %v6745_v9  ;;  %v6761_v25 = vld [vmem:[%s6921_s6 + $0xc8] sm:$0xff]   ;;  %v6765_v29 = vld [vmem:[%s6921_s6 + $0xc0] sm:$0xff]   ;;  %v650_v39 = vld [vmem:[%s6961_s13 + $0x70] sm:$0xff]  ;;  %s6884_s19 = smov 27   ;;  %s6885_s24 = smov 25  }
  0x11   :  { %v6762_v26 = vld [vmem:[%s6921_s6 + $0x8] sm:$0xff]   ;;  %v6766_v30 = vld [vmem:[%s6921_s6] sm:$0xff]   ;;  %v647_v44 = vld [vmem:[%s6961_s13 + $0x58] sm:$0xff]  ;;  %s6886_s29 = smov 26   ;;  %s6896_s8 = smov 36  }
  0x12   :  { %5239 = vmatpush3.bf16.msra.mxu0 %v6746_v10  ;;  %v6763_v27 = vld [vmem:[%s6921_s6 + $0x88] sm:$0xff]   ;;  %v6767_v31 = vld [vmem:[%s6921_s6 + $0x80] sm:$0xff]   ;;  %v646_v45 = vld [vmem:[%s6961_s13 + $0x50] sm:$0xff]  ;;  %s6866_s6 = smov 10   ;;  %s5121_s11 = sld [smem:[%s8598_s0 + %s6896_s8]]  }
  0x13   :  { %5267 = vmatpush3.bf16.msra.mxu1 %v6747_v11  ;;  %5240 = vmatprep.subr.bf16.mxu0 %v6748_v12  ;;  %v6768_v32 = vld [vmem:[%s6951_s9] ss:$16 sps:$4 sm:$0xff]   ;;  %v6770_v33 = vld [vmem:[%s6951_s9 + $0x4] ss:$16 sps:$4 sm:$0xff]   ;;  %v6771_v34 = vld [vmem:[%s6951_s9 + $0x8] ss:$16 sps:$4 sm:$0xff]  }
  0x14   :  { %5268 = vmatprep.subr.bf16.mxu1 %v6749_v13  ;;  %v6773_v35 = vld [vmem:[%s6951_s9 + $0xc] ss:$16 sps:$4 sm:$0xff]   ;;  %566 = vmatprep.mubr.bf16.mxu0 %v6770_v33  ;;  %v6774_v36 = vld [vmem:[%s6951_s9 + $0x24] ss:$16 sps:$4 sm:$0xff]   ;;  %v6778_v41 = vld [vmem:[%s6951_s9 + $0x20] ss:$16 sps:$4 sm:$0xff]  }
  0x15   :  { %615 = vmatprep.mubr.bf16.mxu1 %v6773_v35  ;;  %v6776_v37 = vld [vmem:[%s6951_s9 + $0x2c] ss:$16 sps:$4 sm:$0xff]   ;;  %v6779_v42 = vld [vmem:[%s6951_s9 + $0x28] ss:$16 sps:$4 sm:$0xff]   ;;  %v648_v43 = vld [vmem:[%s6961_s13 + $0x60] sm:$0xff]  ;;  %s7252_s9 = sld [smem:[%s8598_s0 + %s6866_s6]]   ;;  %s6897_s12 = smov 38  }
  0x16   :  { %5241 = vmatpush3.bf16.msra.mxu0 %v6750_v14  ;;  %v649_v40 = vld [vmem:[%s6961_s13 + $0x68] sm:$0xff]  ;;  %v644_v47 = vld [vmem:[%s6961_s13 + $0x40] sm:$0xff]  ;;  %v643_v48 = vld [vmem:[%s6961_s13 + $0x38] sm:$0xff] }
  0x17   :  { %5269 = vmatpush3.bf16.msra.mxu1 %v6751_v15  ;;  %5242 = vmatprep.subr.bf16.mxu0 %v6752_v16  ;;  %v645_v46 = vld [vmem:[%s6961_s13 + $0x48] sm:$0xff]  ;;  %v642_v49 = vld [vmem:[%s6961_s13 + $0x30] sm:$0xff]  ;;  %v640_v51 = vld [vmem:[%s6961_s13 + $0x20] sm:$0xff] }
  0x18   :  { %5270 = vmatprep.subr.bf16.mxu1 %v6753_v17  ;;  %v641_v50 = vld [vmem:[%s6961_s13 + $0x28] sm:$0xff]  ;;  %v639_v52 = vld [vmem:[%s6961_s13 + $0x18] sm:$0xff]  ;;  %v638_v53 = vld [vmem:[%s6961_s13 + $0x10] sm:$0xff] }
  0x19   :  { %v637_v54 = vld [vmem:[%s6961_s13 + $0x8] sm:$0xff]  ;;  %v636_v55 = vld [vmem:[%s6961_s13] sm:$0xff]  ;;  %s5092_s13 = sld [smem:[%s8598_s0 + %s6867_s10]]  }
  0x1a   :  { %5243 = vmatpush3.bf16.msra.mxu0 %v6754_v18  ;;  %s7596_s10 = sld [smem:[%s8598_s0 + %s6873_s7]]  }
  0x1b   :  { %5271 = vmatpush3.bf16.msra.mxu1 %v6755_v19  ;;  %5244 = vmatprep.subr.bf16.mxu0 %v6756_v20 }
  0x1c   :  { %5272 = vmatprep.subr.bf16.mxu1 %v6757_v21 }
  0x1e   :  { %5245 = vmatpush3.bf16.msra.mxu0 %v6758_v22 }
  0x1f   :  { %5273 = vmatpush3.bf16.msra.mxu1 %v6759_v23  ;;  %5246 = vmatprep.subr.bf16.mxu0 %v6760_v24  ;;  %v6857_v24 = vmov 0.0  }
  0x20   :  { %5274 = vmatprep.subr.bf16.mxu1 %v6761_v25  ;;  %211 = vst [vmem:[#allocation2 + $0x18] sm:$0xff] %v6857_v24  ;;  %212 = vst [vmem:[#allocation2 + $0x20] sm:$0xff] %v6857_v24 }
  0x21   :  { %208 = vst [vmem:[#allocation2] sm:$0xff] %v6857_v24  ;;  %209 = vst [vmem:[#allocation2 + $0x8] sm:$0xff] %v6857_v24 }
  0x22   :  { %5247 = vmatpush3.bf16.msra.mxu0 %v6762_v26  ;;  %210 = vst [vmem:[#allocation2 + $0x10] sm:$0x3] %v6857_v24  ;;  %213 = vst [vmem:[#allocation2 + $0x28] sm:$0x3] %v6857_v24 }
  0x23   :  { %5275 = vmatpush3.bf16.msra.mxu1 %v6763_v27  ;;  %5248 = vmatprep.subr.bf16.mxu0 %v6764_v28  ;;  %214 = vst [vmem:[#allocation3] sm:$0xff] %v6857_v24  ;;  %215 = vst [vmem:[#allocation3 + $0x8] sm:$0xff] %v6857_v24 }
  0x24   :  { %5276 = vmatprep.subr.bf16.mxu1 %v6765_v29  ;;  %216 = vst [vmem:[#allocation3 + $0x10] sm:$0x3] %v6857_v24  ;;  %217 = vst [vmem:[#allocation3 + $0x18] sm:$0xff] %v6857_v24 }
  0x25   :  { %218 = vst [vmem:[#allocation3 + $0x20] sm:$0xff] %v6857_v24  ;;  %219 = vst [vmem:[#allocation3 + $0x28] sm:$0x3] %v6857_v24 }
  0x26   :  { %5249 = vmatpush3.bf16.msra.mxu0 %v6766_v30  ;;  %220 = vst [vmem:[#allocation4] sm:$0xff] %v6857_v24  ;;  %221 = vst [vmem:[#allocation4 + $0x8] sm:$0x3] %v6857_v24 }
  0x27   :  { %5277 = vmatpush3.bf16.msra.mxu1 %v6767_v31  ;;  %5744 = vmatprep.subr.mxu0 %v651_v38  ;;  %222 = vst [vmem:[#allocation4 + $0x10] sm:$0xff] %v6857_v24  ;;  %223 = vst [vmem:[#allocation4 + $0x18] sm:$0x3] %v6857_v24 }
  0x28   :  { %5782 = vmatprep.subr.mxu1 %v651_v38  ;;  %224 = vst [vmem:[#allocation5] sm:$0xff] %v6857_v24  ;;  %225 = vst [vmem:[#allocation5 + $0x8] sm:$0x3] %v6857_v24 }
  0x29   :  { %567 = vmatmul.mubr.bf16.vlgmr.msra.gmra.mxu0 %v6768_v32  ;;  %226 = vst [vmem:[#allocation5 + $0x10] sm:$0xff] %v6857_v24  ;;  %227 = vst [vmem:[#allocation5 + $0x18] sm:$0x3] %v6857_v24 }
  0x2a   :  { %616 = vmatmul.mubr.bf16.vlgmr.msra.gmra.mxu1 %v6771_v34  ;;  %574 = vmatprep.mubr.bf16.mxu0 %v6774_v36  ;;  %228 = vst [vmem:[#allocation6] sm:$0x3f] %v6857_v24  ;;  %229 = vst [vmem:[#allocation6 + $0x8] sm:$0x3f] %v6857_v24 }
  0x2b   :  { %623 = vmatprep.mubr.bf16.mxu1 %v6776_v37  ;;  %5745 = vmatpush3.msra.mxu0 %v651_v38 }
  0x2c   :  { %5746 = vmatprep.subr.mxu0 %v650_v39  ;;  %5783 = vmatpush3.msra.mxu1 %v651_v38 }
  0x2d   :  { %5747 = vmatpush3.msra.mxu0 %v650_v39  ;;  %5784 = vmatprep.subr.mxu1 %v650_v39 }
  0x2e   :  { %5748 = vmatprep.subr.mxu0 %v649_v40  ;;  %5785 = vmatpush3.msra.mxu1 %v650_v39 }
  0x2f   :  { %5749 = vmatpush3.msra.mxu0 %v649_v40  ;;  %5786 = vmatprep.subr.mxu1 %v649_v40 }
  0x30   :  { %5750 = vmatprep.subr.mxu0 %v648_v43  ;;  %5787 = vmatpush3.msra.mxu1 %v649_v40 }
  0x31   :  { %575 = vmatmul.mubr.bf16.gmra.mxu0 %v6778_v41  ;;  %5788 = vmatprep.subr.mxu1 %v648_v43 }
  0x32   :  { %624 = vmatmul.mubr.bf16.gmra.mxu1 %v6779_v42  ;;  %5751 = vmatpush3.msra.mxu0 %v648_v43 }
  0x33   :  { %5752 = vmatprep.subr.mxu0 %v647_v44  ;;  %5789 = vmatpush3.msra.mxu1 %v648_v43 }
  0x34   :  { %5753 = vmatpush3.msra.mxu0 %v647_v44  ;;  %5790 = vmatprep.subr.mxu1 %v647_v44 }
  0x35   :  { %5754 = vmatprep.subr.mxu0 %v646_v45  ;;  %5791 = vmatpush3.msra.mxu1 %v647_v44 }
  0x36   :  { %5755 = vmatpush3.msra.mxu0 %v646_v45  ;;  %5792 = vmatprep.subr.mxu1 %v646_v45 }
  0x37   :  { %5756 = vmatprep.subr.mxu0 %v645_v46  ;;  %5793 = vmatpush3.msra.mxu1 %v646_v45 }
  0x38   :  { %5757 = vmatpush3.msra.mxu0 %v645_v46  ;;  %5794 = vmatprep.subr.mxu1 %v645_v46 }
  0x39   :  { %5758 = vmatprep.subr.mxu0 %v644_v47  ;;  %5795 = vmatpush3.msra.mxu1 %v645_v46 }
  0x3a   :  { %5759 = vmatpush3.msra.mxu0 %v644_v47  ;;  %5796 = vmatprep.subr.mxu1 %v644_v47 }
  0x3b   :  { %5760 = vmatprep.subr.mxu0 %v643_v48  ;;  %5797 = vmatpush3.msra.mxu1 %v644_v47 }
  0x3c   :  { %5761 = vmatpush3.msra.mxu0 %v643_v48  ;;  %5798 = vmatprep.subr.mxu1 %v643_v48 }
  0x3d   :  { %5762 = vmatprep.subr.mxu0 %v642_v49  ;;  %5799 = vmatpush3.msra.mxu1 %v643_v48 }
  0x3e   :  { %5763 = vmatpush3.msra.mxu0 %v642_v49  ;;  %5800 = vmatprep.subr.mxu1 %v642_v49 }
  0x3f   :  { %5764 = vmatprep.subr.mxu0 %v641_v50  ;;  %5801 = vmatpush3.msra.mxu1 %v642_v49 }
  0x40   :  { %5765 = vmatpush3.msra.mxu0 %v641_v50  ;;  %5802 = vmatprep.subr.mxu1 %v641_v50 }
  0x41   :  { %5803 = vmatpush3.msra.mxu1 %v641_v50  ;;  %5766 = vmatprep.subr.mxu0 %v640_v51 }
  0x42   :  { %5804 = vmatprep.subr.mxu1 %v640_v51  ;;  %5767 = vmatpush3.msra.mxu0 %v640_v51 }
  0x43   :  { %5805 = vmatpush3.msra.mxu1 %v640_v51  ;;  %5768 = vmatprep.subr.mxu0 %v639_v52 }
  0x44   :  { %5806 = vmatprep.subr.mxu1 %v639_v52  ;;  %5769 = vmatpush3.msra.mxu0 %v639_v52 }
  0x45   :  { %5807 = vmatpush3.msra.mxu1 %v639_v52  ;;  %5770 = vmatprep.subr.mxu0 %v638_v53 }
  0x46   :  { %5808 = vmatprep.subr.mxu1 %v638_v53  ;;  %5771 = vmatpush3.msra.mxu0 %v638_v53 }
  0x47   :  { %5809 = vmatpush3.msra.mxu1 %v638_v53  ;;  %5772 = vmatprep.subr.mxu0 %v637_v54 }
  0x48   :  { %5810 = vmatprep.subr.mxu1 %v637_v54  ;;  %5773 = vmatpush3.msra.mxu0 %v637_v54 }
  0x49   :  { %5811 = vmatpush3.msra.mxu1 %v637_v54  ;;  %5774 = vmatprep.subr.mxu0 %v636_v55 }
  0x4a   :  { %5812 = vmatprep.subr.mxu1 %v636_v55  ;;  %5775 = vmatpush3.msra.mxu0 %v636_v55 }
  0x4b   :  { %5813 = vmatpush3.msra.mxu1 %v636_v55 }
  0xe9   :  { %v5250_v56 = vpop.f32.mrf.mxu0 }
  0xea   :  { %v5278_v57 = vpop.f32.mrf.mxu1 }
  0xeb   :  { %v5251_v58 = vpop.f32.mrf.mxu0 }
  0xec   :  { %v5252_v59 = vadd.f32 %v5251_v58, %v5250_v56  ;;  %v5279_v60 = vpop.f32.mrf.mxu1 }
  0xed   :  { %v5280_v61 = vadd.f32 %v5279_v60, %v5278_v57  ;;  %v5253_v62 = vpop.f32.mrf.mxu0  ;;  %v853_v57 = vlaneseq }
  0xee   :  { %v5281_v63 = vpop.f32.mrf.mxu1 }
  0xef   :  { %v6989_v0 = vadd.f32 %v5280_v61, %v5252_v59  ;;  %v5254_v1 = vpop.f32.mrf.mxu0  ;;  %v7037_v58 = vshrl.u32 %v853_v57, 7  ;;  %v845_v59 = vld [vmem:[%s5088_s17] sm:$0x1]  ;;  %s6868_s17 = smov 15  }
  0xf0   :  { %v5255_v2 = vadd.f32 %v5254_v1, %v5253_v62  ;;  %v5282_v3 = vpop.f32.mrf.mxu1  ;;  %s7311_s20 = sld [smem:[%s8598_s0 + %s6868_s17]]   ;;  %s6898_s17 = smov 42  }
  0xf1   :  { %v5283_v4 = vadd.f32 %v5282_v3, %v5281_v63  ;;  %5776 = vmatprep.mubr.f32.mxu0 %v6989_v0  ;;  %v5256_v5 = vpop.f32.mrf.mxu0  ;;  %v632_v6 = vmul.f32 %v6989_v0, %v6989_v0  ;;  %8604 = vst [vmem:[#allocation7_spill] sm:$0xff] %v7037_v58  ;;  %v7040_v60 = vsub.s32 0, %v7037_v58  ;;  %v849_v63 = vld [vmem:[%s5089_s21] sm:$0x1]  ;;  %s6869_s21 = smov 11  }
  0xf2   :  { %v5284_v7 = vpop.f32.mrf.mxu1  ;;  %s5096_s25 = sld [smem:[%s8598_s0 + %s6869_s21]]   ;;  %s6899_s21 = smov 39  }
  0xf3   :  { %v6994_v8 = vadd.f32 %v5283_v4, %v5255_v2  ;;  %5814 = vmatprep.mubr.f32.mxu1 %v632_v6  ;;  %v5257_v9 = vpop.f32.mrf.mxu0 }
  0xf4   :  { %v5258_v10 = vadd.f32 %v5257_v9, %v5256_v5  ;;  %v5285_v11 = vpop.f32.mrf.mxu1 }
  0xf5   :  { %v633_v12 = vmul.f32 %v6994_v8, %v6994_v8  ;;  %v5286_v13 = vadd.f32 %v5285_v11, %v5284_v7  ;;  %5777 = vmatmul.mubr.f32.vlgmr.msra.gmra.mxu0 %v6994_v8  ;;  %v5259_v14 = vpop.f32.mrf.mxu0 }
  0xf6   :  { %v5287_v15 = vpop.f32.mrf.mxu1 }
  0xf7   :  { %v6999_v16 = vadd.f32 %v5286_v13, %v5258_v10  ;;  %5815 = vmatmul.mubr.f32.vlgmr.msra.gmra.mxu1 %v633_v12  ;;  %v5260_v17 = vpop.f32.mrf.mxu0 }
  0xf8   :  { %v5261_v18 = vadd.f32 %v5260_v17, %v5259_v14  ;;  %v5288_v19 = vpop.f32.mrf.mxu1 }
  0xf9   :  { %v5289_v20 = vadd.f32 %v5288_v19, %v5287_v15  ;;  %5779 = vmatprep.mubr.f32.mxu0 %v6999_v16  ;;  %v634_v21 = vmul.f32 %v6999_v16, %v6999_v16  ;;  %v1070_v19 = vld [vmem:[%s7071_s26 + $0x78] sm:$0xff] }
  0xfa   :  { %5820 = vmatprep.subr.mxu0 %v1070_v19  ;;  %5855 = vmatprep.subr.mxu1 %v1070_v19 }
  0xfb   :  { %v7004_v22 = vadd.f32 %v5289_v20, %v5261_v18  ;;  %5817 = vmatprep.mubr.f32.mxu1 %v634_v21  ;;  %v1069_v20 = vld [vmem:[%s7071_s26 + $0x70] sm:$0xff]  ;;  %5821 = vmatpush3.msra.mxu0 %v1070_v19 }
  0xfc   :  { %5856 = vmatpush3.msra.mxu1 %v1070_v19  ;;  %5822 = vmatprep.subr.mxu0 %v1069_v20 }
  0xfd   :  { %5780 = vmatmul.mubr.f32.gmra.mxu0 %v7004_v22  ;;  %v635_v23 = vmul.f32 %v7004_v22, %v7004_v22  ;;  %5857 = vmatprep.subr.mxu1 %v1069_v20 }
  0xfe   :  { %5823 = vmatpush3.msra.mxu0 %v1069_v20  ;;  %5858 = vmatpush3.msra.mxu1 %v1069_v20 }
  0xff   :  { %5818 = vmatmul.mubr.f32.gmra.mxu1 %v635_v23  ;;  %v1067_v23 = vld [vmem:[%s7071_s26 + $0x60] sm:$0xff] }
 0x1b5   :  { %v5778_v25 = vpop.f32.mrf.mxu0 }
 0x1b7   :  { %v5816_v26 = vpop.f32.mrf.mxu1  ;;  %v718_v27 = vpop.f32.mrf.mxu0 }
 0x1b8   :  { %v737_v30 = vadd.f32 %v5778_v25, %v718_v27  ;;  %v1066_v25 = vld [vmem:[%s7071_s26 + $0x58] sm:$0xff]  ;;  %v1065_v27 = vld [vmem:[%s7071_s26 + $0x50] sm:$0xff] }
 0x1b9   :  { %v813_v28 = vpop.f32.mrf.mxu1 }
 0x1ba   :  { %v832_v33 = vadd.f32 %v5816_v26, %v813_v28  ;;  %v1064_v28 = vld [vmem:[%s7071_s26 + $0x48] sm:$0xff] }
 0x1bd   :  { %v5781_v29 = vpop.f32.mrf.mxu0 }
 0x1bf   :  { %v728_v31 = vpop.f32.mrf.mxu0  ;;  %v5819_v32 = vpop.f32.mrf.mxu1 }
 0x1c0   :  { %v738_v34 = vadd.f32 %v737_v30, %v728_v31  ;;  %v1063_v30 = vld [vmem:[%s7071_s26 + $0x40] sm:$0xff]  ;;  %v1062_v31 = vld [vmem:[%s7071_s26 + $0x38] sm:$0xff] }
 0x1c1   :  { %v823_v35 = vpop.f32.mrf.mxu1 }
 0x1c2   :  { %v739_v36 = vadd.f32 %v5781_v29, %v738_v34  ;;  %v833_v37 = vadd.f32 %v832_v33, %v823_v35  ;;  %v1060_v34 = vld [vmem:[%s7071_s26 + $0x28] sm:$0xff] }
 0x1c4   :  { %v740_v38 = vrot.slane %v739_v36, 4  ;;  %v834_v39 = vadd.f32 %v5819_v32, %v833_v37  ;;  %v1061_v32 = vld [vmem:[%s7071_s26 + $0x30] sm:$0xff]  ;;  %v1058_v37 = vld [vmem:[%s7071_s26 + $0x18] sm:$0xff] }
 0x1c6   :  { %v741_v40 = vadd.f32 %v740_v38, %v739_v36  ;;  %v835_v41 = vrot.slane %v834_v39, 4  ;;  %v1059_v36 = vld [vmem:[%s7071_s26 + $0x20] sm:$0xff]  ;;  %v1057_v38 = vld [vmem:[%s7071_s26 + $0x10] sm:$0xff] }
 0x1c8   :  { %v742_v42 = vrot.slane %v741_v40, 2  ;;  %v836_v43 = vadd.f32 %v835_v41, %v834_v39  ;;  %v1056_v39 = vld [vmem:[%s7071_s26 + $0x8] sm:$0xff] }
 0x1ca   :  { %v743_v44 = vadd.f32 %v742_v42, %v741_v40  ;;  %v837_v45 = vrot.slane %v836_v43, 2  ;;  %v1055_v40 = vld [vmem:[%s7071_s26] sm:$0xff] }
 0x1cc   :  { %v744_v46 = vrot.slane %v743_v44, 1  ;;  %v838_v47 = vadd.f32 %v837_v45, %v836_v43  ;;  %v7153_v45 = vsub.s32 3, %v7037_v58 }
 0x1ce   :  { %v745_v48 = vadd.f32 %v744_v46, %v743_v44  ;;  %v839_v49 = vrot.slane %v838_v47, 1  ;;  %v7156_v46 = vsub.s32 1, %v7037_v58 }
 0x1d0   :  { %v746_v50 = vmul.f32 0.001953125, %v745_v48  ;;  %v840_v51 = vadd.f32 %v839_v49, %v838_v47  ;;  %v7159_v47 = vsub.s32 4, %v7037_v58  ;;  %v881_v48 = vld [vmem:[%s7150_s1] sm:$0xff] }
 0x1d2   :  { %v842_v52 = vmul.f32 %v746_v50, %v746_v50  ;;  %v841_v53 = vmul.f32 0.001953125, %v840_v51  ;;  %v892_v51 = vrot.slane %v881_v48, %v7040_v60 }
 0x1d4   :  { %v843_v54 = vsub.f32 %v841_v53, %v842_v52  ;;  %v924_v52 = vrot.slane %v881_v48, %v7153_v45  ;;  %v7165_v53 = vsub.s32 5, %v7037_v58 }
 0x1d6   :  { %v844_v55 = vmax.f32 %v843_v54, 0.0  ;;  %v7168_v54 = vsub.s32 2, %v7037_v58 }
 0x1d8   :  { %v846_v56 = vadd.f32 1e-05, %v844_v55  ;;  %8605 = vst [vmem:[#allocation8_spill] sm:$0xff] %v7168_v54  ;;  %v898_v55 = vrot.slane %v881_v48, %v7156_v46 }
 0x1da   :  { %6828 = vrsqrt.f32 %v846_v56  ;;  %v930_v56 = vrot.slane %v881_v48, %v7159_v47 }
 0x1e7   :  { %v6829_v61 = vpop.eup %6828 }
 0x1e8   :  { %v848_v62 = vmul.f32 %v6829_v61, %v845_v59 }
 0x1ea   :  { %v850_v1 = vmul.f32 %v848_v62, %v746_v50  ;;  %v856_v2 = vrot.slane %v848_v62, %v7040_v60 }
 0x1ec   :  { %v851_v3 = vsub.f32 %v849_v63, %v850_v1  ;;  %v858_v4 = vmul.f32 %v856_v2, %v6989_v0  ;;  %v859_v5 = vmul.f32 %v856_v2, %v6994_v8  ;;  %v860_v6 = vmul.f32 %v856_v2, %v6999_v16 }
 0x1ed   :  { %v861_v7 = vmul.f32 %v856_v2, %v7004_v22  ;;  %v1068_v22 = vld [vmem:[%s7071_s26 + $0x68] sm:$0xff]  ;;  %v940_v63 = vrot.slane %v881_v48, %v7165_v53  ;;  %v908_v1 = vrot.slane %v881_v48, %v7168_v54  ;;  %s6870_s26 = smov 12  }
 0x1ee   :  { %v866_v9 = vrot.slane %v851_v3, %v7040_v60  ;;  %5824 = vmatprep.subr.mxu0 %v1068_v22  ;;  %5859 = vmatprep.subr.mxu1 %v1068_v22  ;;  %s5097_s30 = sld [smem:[%s8598_s0 + %s6870_s26]]   ;;  %s6893_s26 = smov 34  }
 0x1ef   :  { %5825 = vmatpush3.msra.mxu0 %v1068_v22  ;;  %5860 = vmatpush3.msra.mxu1 %v1068_v22 }
 0x1f0   :  { %v868_v10 = vadd.f32 %v866_v9, %v858_v4  ;;  %v869_v11 = vadd.f32 %v866_v9, %v859_v5  ;;  %v870_v12 = vadd.f32 %v866_v9, %v860_v6  ;;  %v871_v13 = vadd.f32 %v866_v9, %v861_v7  ;;  %5826 = vmatprep.subr.mxu0 %v1067_v23 }
 0x1f1   :  { %5861 = vmatprep.subr.mxu1 %v1067_v23  ;;  %5827 = vmatpush3.msra.mxu0 %v1067_v23 }
 0x1f2   :  { %v7048_v14 = vmax.f32 %v870_v12, 0.0  ;;  %v7050_v15 = vmax.f32 %v868_v10, 0.0  ;;  %v7052_v17 = vmax.f32 %v869_v11, 0.0  ;;  %v7054_v18 = vmax.f32 %v871_v13, 0.0  ;;  %5862 = vmatpush3.msra.mxu1 %v1067_v23  ;;  %5828 = vmatprep.subr.mxu0 %v1066_v25 }
 0x1f3   :  { %5863 = vmatprep.subr.mxu1 %v1066_v25  ;;  %5829 = vmatpush3.msra.mxu0 %v1066_v25 }
 0x1f4   :  { %879 = vst [vmem:[#allocation2 + $0x19] sm:$0xff] %v7048_v14  ;;  %876 = vst [vmem:[#allocation2 + $0x1] sm:$0xff] %v7050_v15  ;;  %5864 = vmatpush3.msra.mxu1 %v1066_v25  ;;  %5830 = vmatprep.subr.mxu0 %v1065_v27  ;;  %v931_v3 = vmul.f32 %v930_v56, %v7050_v15 }
 0x1f5   :  { %877 = vst [vmem:[#allocation2 + $0x9] sm:$0xff] %v7052_v17  ;;  %880 = vst [vmem:[#allocation2 + $0x21] sm:$0xff] %v7054_v18  ;;  %5865 = vmatprep.subr.mxu1 %v1065_v27  ;;  %5831 = vmatpush3.msra.mxu0 %v1065_v27 }
 0x1f6   :  { %5866 = vmatpush3.msra.mxu1 %v1065_v27  ;;  %5832 = vmatprep.subr.mxu0 %v1064_v28 }
 0x1f7   :  { %5867 = vmatprep.subr.mxu1 %v1064_v28  ;;  %5833 = vmatpush3.msra.mxu0 %v1064_v28 }
 0x1f8   :  { %5868 = vmatpush3.msra.mxu1 %v1064_v28  ;;  %5834 = vmatprep.subr.mxu0 %v1063_v30 }
 0x1f9   :  { %5869 = vmatprep.subr.mxu1 %v1063_v30  ;;  %5835 = vmatpush3.msra.mxu0 %v1063_v30 }
 0x1fa   :  { %5870 = vmatpush3.msra.mxu1 %v1063_v30  ;;  %5836 = vmatprep.subr.mxu0 %v1062_v31 }
 0x1fb   :  { %v7060_v0 = vld [vmem:[#allocation2 + $0x18] sm:$0xff]  ;;  %v7062_v8 = vld [vmem:[#allocation2] sm:$0xff]  ;;  %5871 = vmatprep.subr.mxu1 %v1062_v31  ;;  %5837 = vmatpush3.msra.mxu0 %v1062_v31 }
 0x1fc   :  { %987 = vrot.lane.b32.xlu1 %v7060_v0, %s6860_s22  ;;  %885 = vrot.lane.b32.xlu0 %v7062_v8, %s6860_s22  ;;  %v7077_v16 = vld [vmem:[#allocation2 + $0x8] sm:$0xff]  ;;  %v7085_v21 = vld [vmem:[#allocation2 + $0x20] sm:$0xff]  ;;  %v899_v2 = vmul.f32 %v898_v55, %v7062_v8  ;;  %v993_v25 = vmul.f32 %v7060_v0, %v898_v55 }
 0x1fd   :  { %v7098_v26 = vld [vmem:[#allocation2 + $0x2] sm:$0xff]  ;;  %v7106_v29 = vld [vmem:[#allocation2 + $0x1a] sm:$0xff]  ;;  %v7119_v33 = vld [vmem:[#allocation2 + $0xa] sm:$0xff]  ;;  %5872 = vmatpush3.msra.mxu1 %v1062_v31  ;;  %5838 = vmatprep.subr.mxu0 %v1061_v32 }
 0x1fe   :  { %5873 = vmatprep.subr.mxu1 %v1061_v32  ;;  %5839 = vmatpush3.msra.mxu0 %v1061_v32  ;;  %v7126_v35 = vld [vmem:[#allocation2 + $0x22] sm:$0xff] }
 0x1ff   :  { %5874 = vmatpush3.msra.mxu1 %v1061_v32  ;;  %5840 = vmatprep.subr.mxu0 %v1060_v34 }
 0x200   :  { %1007 = vrot.lane.b32.xlu1 %v7048_v14, %s6860_s22  ;;  %917 = vrot.lane.b32.xlu0 %v7050_v15, %s6860_s22 }
 0x201   :  { %5875 = vmatprep.subr.mxu1 %v1060_v34  ;;  %5841 = vmatpush3.msra.mxu0 %v1060_v34 }
 0x202   :  { %5876 = vmatpush3.msra.mxu1 %v1060_v34  ;;  %5842 = vmatprep.subr.mxu0 %v1059_v36 }
 0x203   :  { %5877 = vmatprep.subr.mxu1 %v1059_v36  ;;  %5843 = vmatpush3.msra.mxu0 %v1059_v36 }
 0x204   :  { %919 = vrot.lane.b32.xlu1 %v7052_v17, %s6860_s22  ;;  %887 = vrot.lane.b32.xlu0 %v7077_v16, %s6860_s22 }
 0x205   :  { %5878 = vmatpush3.msra.mxu1 %v1059_v36  ;;  %5844 = vmatprep.subr.mxu0 %v1058_v37 }
 0x206   :  { %5879 = vmatprep.subr.mxu1 %v1058_v37  ;;  %5845 = vmatpush3.msra.mxu0 %v1058_v37 }
 0x207   :  { %5880 = vmatpush3.msra.mxu1 %v1058_v37  ;;  %5846 = vmatprep.subr.mxu0 %v1057_v38  ;;  %v932_v37 = vmul.f32 %v930_v56, %v7052_v17 }
 0x208   :  { %1009 = vrot.lane.b32.xlu1 %v7054_v18, %s6860_s22  ;;  %989 = vrot.lane.b32.xlu0 %v7085_v21, %s6860_s22 }
 0x209   :  { %5881 = vmatprep.subr.mxu1 %v1057_v38  ;;  %5847 = vmatpush3.msra.mxu0 %v1057_v38 }
 0x20a   :  { %5882 = vmatpush3.msra.mxu1 %v1057_v38  ;;  %5848 = vmatprep.subr.mxu0 %v1056_v39  ;;  %v900_v38 = vmul.f32 %v898_v55, %v7077_v16 }
 0x20b   :  { %5883 = vmatprep.subr.mxu1 %v1056_v39  ;;  %5849 = vmatpush3.msra.mxu0 %v1056_v39 }
 0x20c   :  { %933 = vrot.lane.b32.xlu1 %v7050_v15, %s6862_s27  ;;  %901 = vrot.lane.b32.xlu0 %v7062_v8, %s6862_s27  ;;  %v1013_v8 = vmul.f32 %v930_v56, %v7048_v14 }
 0x20d   :  { %5884 = vmatpush3.msra.mxu1 %v1056_v39  ;;  %5850 = vmatprep.subr.mxu0 %v1055_v40 }
 0x20e   :  { %5885 = vmatprep.subr.mxu1 %v1055_v40  ;;  %5851 = vmatpush3.msra.mxu0 %v1055_v40 }
 0x20f   :  { %5886 = vmatpush3.msra.mxu1 %v1055_v40  ;;  %5890 = vmatprep.subr.bf16.mxu0 %v6857_v24 }
 0x210   :  { %995 = vrot.lane.b32.xlu1 %v7060_v0, %s6862_s27  ;;  %951 = vrot.lane.b32.xlu0 %v7098_v26, %s6860_s22 }
 0x211   :  { %5910 = vmatprep.subr.bf16.mxu1 %v6857_v24 }
 0x214   :  { %1029 = vrot.lane.b32.xlu1 %v7106_v29, %s6860_s22  ;;  %1015 = vrot.lane.b32.xlu0 %v7048_v14, %s6862_s27 }
 0x218   :  { %935 = vrot.lane.b32.xlu1 %v7052_v17, %s6862_s27  ;;  %903 = vrot.lane.b32.xlu0 %v7077_v16, %s6862_s27 }
 0x21c   :  { %997 = vrot.lane.b32.xlu1 %v7085_v21, %s6862_s27  ;;  %953 = vrot.lane.b32.xlu0 %v7119_v33, %s6860_s22 }
 0x220   :  { %1031 = vrot.lane.b32.xlu1 %v7126_v35, %s6860_s22  ;;  %1017 = vrot.lane.b32.xlu0 %v7054_v18, %s6862_s27 }
 0x224   :  { %1037 = vrot.lane.b32.xlu1 %v7106_v29, %s6862_s27  ;;  %967 = vrot.lane.b32.xlu0 %v7098_v26, %s6862_s27 }
 0x228   :  { %1039 = vrot.lane.b32.xlu1 %v7126_v35, %s6862_s27  ;;  %969 = vrot.lane.b32.xlu0 %v7119_v33, %s6862_s27 }
 0x26e   :  { %v988_v41 = vpop.permute.xlu1 %987  ;;  %v886_v42 = vpop.permute.xlu0 %885 }
 0x26f   :  { %v893_v61 = vmul.f32 %v892_v51, %v886_v42  ;;  %v991_v20 = vmul.f32 %v988_v41, %v892_v51  ;;  %v7183_v42 = vsub.s32 6, %v7037_v58 }
 0x271   :  { %v911_v6 = vadd.f32 %v899_v2, %v893_v61  ;;  %v1001_v31 = vadd.f32 %v993_v25, %v991_v20  ;;  %v958_v17 = vrot.slane %v881_v48, %v7183_v42 }
 0x272   :  { %v1008_v43 = vpop.permute.xlu1 %1007  ;;  %v918_v44 = vpop.permute.xlu0 %917 }
 0x273   :  { %v925_v62 = vmul.f32 %v924_v52, %v918_v44  ;;  %v1011_v22 = vmul.f32 %v1008_v43, %v924_v52 }
 0x275   :  { %v943_v7 = vadd.f32 %v931_v3, %v925_v62  ;;  %v1021_v32 = vadd.f32 %v1013_v8, %v1011_v22  ;;  %v7186_v62 = vsub.s32 7, %v7037_v58 }
 0x276   :  { %v920_v49 = vpop.permute.xlu1 %919  ;;  %v888_v50 = vpop.permute.xlu0 %887 }
 0x277   :  { %v926_v15 = vmul.f32 %v924_v52, %v920_v49  ;;  %v894_v34 = vmul.f32 %v892_v51, %v888_v50  ;;  %8606 = vst [vmem:[#allocation9_spill] sm:$0xff] %v7186_v62 }
 0x279   :  { %v944_v41 = vadd.f32 %v932_v37, %v926_v15  ;;  %v912_v43 = vadd.f32 %v900_v38, %v894_v34 }
 0x27a   :  { %v1010_v57 = vpop.permute.xlu1 %1009  ;;  %v990_v59 = vpop.permute.xlu0 %989 }
 0x27e   :  { %v934_v4 = vpop.permute.xlu1 %933  ;;  %v902_v5 = vpop.permute.xlu0 %901 }
 0x27f   :  { %v941_v9 = vmul.f32 %v940_v63, %v934_v4  ;;  %v909_v10 = vmul.f32 %v908_v1, %v902_v5  ;;  %v1012_v4 = vmul.f32 %v1010_v57, %v924_v52  ;;  %v992_v5 = vmul.f32 %v990_v59, %v892_v51 }
 0x281   :  { %v945_v11 = vadd.f32 %v943_v7, %v941_v9  ;;  %v913_v12 = vadd.f32 %v911_v6, %v909_v10  ;;  %v964_v7 = vrot.slane %v881_v48, %v7186_v62  ;;  %v1014_v9 = vmul.f32 %v930_v56, %v7054_v18 }
 0x282   :  { %v996_v13 = vpop.permute.xlu1 %995  ;;  %v952_v19 = vpop.permute.xlu0 %951  ;;  %v994_v10 = vmul.f32 %v7085_v21, %v898_v55 }
 0x283   :  { %v7176_v23 = vadd.f32 %v945_v11, %v913_v12  ;;  %v999_v27 = vmul.f32 %v996_v13, %v908_v1  ;;  %v959_v12 = vmul.f32 %v958_v17, %v952_v19  ;;  %v1022_v22 = vadd.f32 %v1014_v9, %v1012_v4  ;;  %v6782_v4 = vld [vmem:[%s7221_s5 + $0x28] sm:$0xff]  }
 0x284   :  { %v1002_v25 = vadd.f32 %v994_v10, %v992_v5  ;;  %v965_v15 = vmul.f32 %v964_v7, %v7098_v26  ;;  %v1035_v51 = vmul.f32 %v7106_v29, %v964_v7  ;;  %v6783_v5 = vld [vmem:[%s7221_s5 + $0x20] sm:$0xff]   ;;  %v6786_v9 = vld [vmem:[%s7221_s5 + $0x8] sm:$0xff]  }
 0x285   :  { %v1003_v39 = vadd.f32 %v1001_v31, %v999_v27  ;;  %v6787_v10 = vld [vmem:[%s7221_s5] sm:$0xff]  }
 0x286   :  { %v1030_v28 = vpop.permute.xlu1 %1029  ;;  %v1016_v30 = vpop.permute.xlu0 %1015  ;;  %v977_v48 = vadd.f32 %v965_v15, %v959_v12 }
 0x287   :  { %v1019_v36 = vmul.f32 %v1016_v30, %v940_v63  ;;  %v1033_v8 = vmul.f32 %v1030_v28, %v958_v17  ;;  %v5177_v30 = vld [vmem:[%s7150_s1 + $0x8] ss:$0 sm:$0xff]  ;;  %s6871_s1 = smov 13  }
 0x288   :  { %s7337_s4 = sld [smem:[%s8598_s0 + %s6871_s1]]   ;;  %s6894_s1 = smov 37  }
 0x289   :  { %v1023_v40 = vadd.f32 %v1021_v32, %v1019_v36  ;;  %v1043_v55 = vadd.f32 %v1035_v51, %v1033_v8  ;;  %v966_v32 = vmul.f32 %v964_v7, %v7119_v33 }
 0x28a   :  { %v936_v0 = vpop.permute.xlu1 %935  ;;  %v904_v14 = vpop.permute.xlu0 %903 }
 0x28b   :  { %v1025_v44 = vadd.f32 %v1023_v40, %v1003_v39  ;;  %v942_v49 = vmul.f32 %v940_v63, %v936_v0  ;;  %v910_v61 = vmul.f32 %v908_v1, %v904_v14 }
 0x28d   :  { %v946_v50 = vadd.f32 %v944_v41, %v942_v49  ;;  %v914_v2 = vadd.f32 %v912_v43, %v910_v61 }
 0x28e   :  { %v998_v16 = vpop.permute.xlu1 %997  ;;  %v954_v3 = vpop.permute.xlu0 %953 }
 0x28f   :  { %v948_v6 = vadd.f32 %v946_v50, %v914_v2  ;;  %v1000_v11 = vmul.f32 %v998_v16, %v908_v1  ;;  %v960_v59 = vmul.f32 %v958_v17, %v954_v3  ;;  %v6780_v16 = vld [vmem:[%s7221_s5 + $0x38] sm:$0xff]   ;;  %v6781_v3 = vld [vmem:[%s7221_s5 + $0x30] sm:$0xff]  }
 0x291   :  { %v1004_v52 = vadd.f32 %v1002_v25, %v1000_v11  ;;  %v978_v34 = vadd.f32 %v966_v32, %v960_v59  ;;  %v1442_v11 = vld [vmem:[%s7252_s9 + $0x78] sm:$0xff] }
 0x292   :  { %v1032_v13 = vpop.permute.xlu1 %1031  ;;  %v1018_v20 = vpop.permute.xlu0 %1017 }
 0x293   :  { %v1020_v27 = vmul.f32 %v1018_v20, %v940_v63  ;;  %v1034_v18 = vmul.f32 %v1032_v13, %v958_v17  ;;  %v1036_v63 = vmul.f32 %v7126_v35, %v964_v7  ;;  %v6785_v7 = vld [vmem:[%s7221_s5 + $0x10] sm:$0xff]  }
 0x295   :  { %v1024_v57 = vadd.f32 %v1022_v22, %v1020_v27  ;;  %v1044_v36 = vadd.f32 %v1036_v63, %v1034_v18 }
 0x296   :  { %v1038_v56 = vpop.permute.xlu1 %1037  ;;  %v968_v21 = vpop.permute.xlu0 %967 }
 0x297   :  { %v1026_v1 = vadd.f32 %v1024_v57, %v1004_v52  ;;  %v1041_v19 = vmul.f32 %v5177_v30, %v1038_v56  ;;  %v975_v31 = vmul.f32 %v5177_v30, %v968_v21 }
 0x299   :  { %v1045_v28 = vadd.f32 %v1043_v55, %v1041_v19  ;;  %v979_v26 = vadd.f32 %v977_v48, %v975_v31 }
 0x29a   :  { %v1040_v29 = vpop.permute.xlu1 %1039  ;;  %v970_v37 = vpop.permute.xlu0 %969 }
 0x29b   :  { %v7197_v38 = vadd.f32 %v1045_v28, %v1025_v44  ;;  %v7200_v39 = vadd.f32 %v979_v26, %v7176_v23  ;;  %v1042_v40 = vmul.f32 %v5177_v30, %v1040_v29  ;;  %v976_v41 = vmul.f32 %v5177_v30, %v970_v37  ;;  %v1240_v28 = vld [vmem:[%s5092_s13] sm:$0x1] }
 0x29d   :  { %v1046_v0 = vadd.f32 %v1044_v36, %v1042_v40  ;;  %v980_v14 = vadd.f32 %v978_v34, %v976_v41  ;;  %v1049_v33 = vadd.f32 %v7197_v38, %v7200_v39  ;;  %v983_v35 = vmul.f32 %v7200_v39, %v7200_v39  ;;  %v1244_v36 = vld [vmem:[%s5093_s16] sm:$0x1]  ;;  %s8248_s16 = sld [smem:[%s8598_s0 + %s6897_s12]]  }
 0x29e   :  { %v1051_v43 = vmul.f32 %v7197_v38, %v7197_v38 }
 0x29f   :  { %v7208_v49 = vadd.f32 %v1046_v0, %v1026_v1  ;;  %v7210_v44 = vadd.f32 %v980_v14, %v948_v6  ;;  %5852 = vmatprep.mubr.f32.mxu0 %v1049_v33  ;;  %v6784_v6 = vld [vmem:[%s7221_s5 + $0x18] sm:$0xff]   ;;  %s6880_s5 = smov 22  }
 0x2a0   :  { %v1053_v23 = vadd.f32 %v1051_v43, %v983_v35 }
 0x2a1   :  { %v1052_v61 = vmul.f32 %v7208_v49, %v7208_v49  ;;  %v984_v50 = vmul.f32 %v7210_v44, %v7210_v44  ;;  %v1050_v2 = vadd.f32 %v7208_v49, %v7210_v44 }
 0x2a2   :  { %5887 = vmatprep.mubr.f32.mxu1 %v1053_v23 }
 0x2a3   :  { %v1054_v17 = vadd.f32 %v1052_v61, %v984_v50  ;;  %5853 = vmatmul.mubr.f32.vlgmr.msra.gmra.mxu0 %v1050_v2 }
 0x2a4   :  { %5891 = vmatpush3.bf16.msra.mxu0 %v6780_v16  ;;  %5906 = vmatprep.mubr.msk.bf16.mxu0 %vm6865_vm0, %v6857_v24 }
 0x2a5   :  { %5888 = vmatmul.mubr.f32.vlgmr.msra.gmra.mxu1 %v1054_v17  ;;  %5892 = vmatprep.subr.bf16.mxu0 %v6857_v24 }
 0x2a6   :  { %5911 = vmatpush3.bf16.msra.mxu1 %v6780_v16  ;;  %5926 = vmatprep.mubr.msk.bf16.mxu1 %vm6865_vm0, %v6857_v24 }
 0x2a7   :  { %5912 = vmatprep.subr.bf16.mxu1 %v6857_v24 }
 0x2a8   :  { %5893 = vmatpush3.bf16.msra.mxu0 %v6781_v3 }
 0x2a9   :  { %5894 = vmatprep.subr.bf16.mxu0 %v6857_v24 }
 0x2aa   :  { %5913 = vmatpush3.bf16.msra.mxu1 %v6781_v3 }
 0x2ab   :  { %5914 = vmatprep.subr.bf16.mxu1 %v6857_v24 }
 0x2ac   :  { %5895 = vmatpush3.bf16.msra.mxu0 %v6782_v4 }
 0x2ad   :  { %5896 = vmatprep.subr.bf16.mxu0 %v6857_v24 }
 0x2ae   :  { %5915 = vmatpush3.bf16.msra.mxu1 %v6782_v4 }
 0x2af   :  { %5916 = vmatprep.subr.bf16.mxu1 %v6857_v24 }
 0x2b0   :  { %5897 = vmatpush3.bf16.msra.mxu0 %v6783_v5 }
 0x2b1   :  { %5898 = vmatprep.subr.bf16.mxu0 %v6857_v24 }
 0x2b2   :  { %5917 = vmatpush3.bf16.msra.mxu1 %v6783_v5  ;;  %v1438_v5 = vld [vmem:[%s7252_s9 + $0x58] sm:$0xff] }
 0x2b3   :  { %5918 = vmatprep.subr.bf16.mxu1 %v6857_v24 }
 0x2b4   :  { %5899 = vmatpush3.bf16.msra.mxu0 %v6784_v6 }
 0x2b5   :  { %5900 = vmatprep.subr.bf16.mxu0 %v6857_v24 }
 0x2b6   :  { %5919 = vmatpush3.bf16.msra.mxu1 %v6784_v6  ;;  %v1437_v6 = vld [vmem:[%s7252_s9 + $0x50] sm:$0xff] }
 0x2b7   :  { %5920 = vmatprep.subr.bf16.mxu1 %v6857_v24 }
 0x2b8   :  { %5901 = vmatpush3.bf16.msra.mxu0 %v6785_v7 }
 0x2b9   :  { %5902 = vmatprep.subr.bf16.mxu0 %v6857_v24 }
 0x2ba   :  { %5921 = vmatpush3.bf16.msra.mxu1 %v6785_v7  ;;  %v1436_v7 = vld [vmem:[%s7252_s9 + $0x48] sm:$0xff] }
 0x2bb   :  { %5922 = vmatprep.subr.bf16.mxu1 %v6857_v24 }
 0x2bc   :  { %5903 = vmatpush3.bf16.msra.mxu0 %v6786_v9 }
 0x2bd   :  { %5904 = vmatprep.subr.bf16.mxu0 %v6857_v24 }
 0x2be   :  { %5923 = vmatpush3.bf16.msra.mxu1 %v6786_v9  ;;  %v1435_v9 = vld [vmem:[%s7252_s9 + $0x40] sm:$0xff] }
 0x2bf   :  { %5924 = vmatprep.subr.bf16.mxu1 %v6857_v24 }
 0x2c0   :  { %5905 = vmatpush3.bf16.msra.mxu0 %v6787_v10 }
 0x2c1   :  { %5930 = vmatprep.subr.mxu0 %v1442_v11 }
 0x2c2   :  { %5925 = vmatpush3.bf16.msra.mxu1 %v6787_v10  ;;  %v1434_v10 = vld [vmem:[%s7252_s9 + $0x38] sm:$0xff] }
 0x2c3   :  { %5965 = vmatprep.subr.mxu1 %v1442_v11 }
 0x363   :  { %v5854_v12 = vpop.f32.mrf.mxu0 }
 0x365   :  { %v1137_v13 = vpop.f32.mrf.mxu0  ;;  %v5889_v20 = vpop.f32.mrf.mxu1 }
 0x366   :  { %v1146_v22 = vadd.f32 %v5854_v12, %v1137_v13  ;;  %v1432_v12 = vld [vmem:[%s7252_s9 + $0x28] sm:$0xff]  ;;  %v1431_v13 = vld [vmem:[%s7252_s9 + $0x20] sm:$0xff] }
 0x367   :  { %v1220_v25 = vpop.f32.mrf.mxu1 }
 0x368   :  { %v1147_v8 = vrot.slane %v1146_v22, 4  ;;  %v1229_v27 = vadd.f32 %v5889_v20, %v1220_v25  ;;  %v1430_v20 = vld [vmem:[%s7252_s9 + $0x18] sm:$0xff]  ;;  %v1428_v25 = vld [vmem:[%s7252_s9 + $0x8] sm:$0xff] }
 0x36a   :  { %v1148_v24 = vadd.f32 %v1147_v8, %v1146_v22  ;;  %v1230_v15 = vrot.slane %v1229_v27, 4  ;;  %v1429_v22 = vld [vmem:[%s7252_s9 + $0x10] sm:$0xff]  ;;  %v1427_v8 = vld [vmem:[%s7252_s9] sm:$0xff] }
 0x36c   :  { %v1149_v30 = vrot.slane %v1148_v24, 2  ;;  %v1231_v51 = vadd.f32 %v1230_v15, %v1229_v27  ;;  %v7283_v27 = vld [vmem:[#allocation3] sm:$0xff] }
 0x36e   :  { %v1150_v52 = vadd.f32 %v1149_v30, %v1148_v24  ;;  %v1232_v57 = vrot.slane %v1231_v51, 2 }
 0x370   :  { %v1151_v48 = vrot.slane %v1150_v52, 1  ;;  %v1233_v59 = vadd.f32 %v1232_v57, %v1231_v51 }
 0x372   :  { %v1152_v18 = vadd.f32 %v1151_v48, %v1150_v52  ;;  %v1234_v56 = vrot.slane %v1233_v59, 1 }
 0x374   :  { %v1153_v21 = vmul.f32 0.001953125, %v1152_v18  ;;  %v1235_v55 = vadd.f32 %v1234_v56, %v1233_v59 }
 0x376   :  { %v1237_v1 = vmul.f32 %v1153_v21, %v1153_v21  ;;  %v1236_v19 = vmul.f32 0.001953125, %v1235_v55 }
 0x378   :  { %v1238_v31 = vsub.f32 %v1236_v19, %v1237_v1 }
 0x37a   :  { %v1239_v32 = vmax.f32 %v1238_v31, 0.0 }
 0x37c   :  { %v1241_v63 = vadd.f32 1e-05, %v1239_v32 }
 0x37e   :  { %6830 = vrsqrt.f32 %v1241_v63  ;;  %v7314_v63 = vld [vmem:[%s7311_s20 + $0x78] sm:$0xff] }
 0x38b   :  { %v6831_v26 = vpop.eup %6830 }
 0x38c   :  { %v1243_v34 = vmul.f32 %v6831_v26, %v1240_v28  ;;  %v7317_v28 = vld [vmem:[%s7311_s20 + $0x70] sm:$0xff]  ;;  %v7322_v26 = vld [vmem:[%s7311_s20 + $0x68] sm:$0xff] }
 0x38e   :  { %v1245_v29 = vmul.f32 %v1243_v34, %v1153_v21  ;;  %v1267_v37 = vrot.slane %v1243_v34, %v7040_v60 }
 0x390   :  { %v1246_v40 = vsub.f32 %v1244_v36, %v1245_v29  ;;  %v1269_v41 = vmul.f32 %v1267_v37, %v7200_v39  ;;  %v1270_v0 = vmul.f32 %v1267_v37, %v7210_v44  ;;  %v1373_v33 = vmul.f32 %v1267_v37, %v7197_v38  ;;  %v1441_v44 = vld [vmem:[%s7252_s9 + $0x70] sm:$0xff]  ;;  %v1440_v38 = vld [vmem:[%s7252_s9 + $0x68] sm:$0xff] }
 0x391   :  { %v1374_v35 = vmul.f32 %v1267_v37, %v7208_v49  ;;  %v1439_v49 = vld [vmem:[%s7252_s9 + $0x60] sm:$0xff] }
 0x392   :  { %v1275_v14 = vrot.slane %v1246_v40, %v7040_v60 }
 0x394   :  { %v1277_v43 = vadd.f32 %v1275_v14, %v1269_v41  ;;  %v1278_v23 = vadd.f32 %v1275_v14, %v1270_v0  ;;  %v1375_v61 = vadd.f32 %v1373_v33, %v1275_v14  ;;  %v1376_v50 = vadd.f32 %v1374_v35, %v1275_v14 }
 0x396   :  { %v1279_v2 = vmax.f32 %v1277_v43, 0.0  ;;  %v1280_v17 = vmax.f32 %v1278_v23, 0.0  ;;  %v1377_v16 = vmax.f32 %v1375_v61, 0.0  ;;  %v1378_v3 = vmax.f32 %v1376_v50, 0.0 }
 0x398   :  { %v1281_v4 = vpack.c.bf16 %v1280_v17, %v1279_v2  ;;  %v1379_v39 = vpack.c.bf16 %v1378_v3, %v1377_v16 }
 0x39a   :  { %5907 = vmatmul.mubr.bf16.vlgmr.msra.gmra.mxu0 %v1281_v4  ;;  %5927 = vmatmul.mubr.bf16.vlgmr.msra.gmra.mxu1 %v1379_v39 }
 0x39b   :  { %5931 = vmatpush3.msra.mxu0 %v1442_v11  ;;  %5966 = vmatpush3.msra.mxu1 %v1442_v11  ;;  %v1433_v11 = vld [vmem:[%s7252_s9 + $0x30] sm:$0xff]  ;;  %s5107_s9 = sld [smem:[%s8598_s0 + %s6880_s5]]   ;;  %s6888_s5 = smov 33  }
 0x39c   :  { %5932 = vmatprep.subr.mxu0 %v1441_v44  ;;  %5967 = vmatprep.subr.mxu1 %v1441_v44 }
 0x39d   :  { %5933 = vmatpush3.msra.mxu0 %v1441_v44  ;;  %5968 = vmatpush3.msra.mxu1 %v1441_v44 }
 0x39e   :  { %5934 = vmatprep.subr.mxu0 %v1440_v38  ;;  %5969 = vmatprep.subr.mxu1 %v1440_v38 }
 0x39f   :  { %5935 = vmatpush3.msra.mxu0 %v1440_v38  ;;  %5970 = vmatpush3.msra.mxu1 %v1440_v38 }
 0x3a0   :  { %5936 = vmatprep.subr.mxu0 %v1439_v49  ;;  %5971 = vmatprep.subr.mxu1 %v1439_v49 }
 0x3a1   :  { %5937 = vmatpush3.msra.mxu0 %v1439_v49  ;;  %5972 = vmatpush3.msra.mxu1 %v1439_v49 }
 0x3a2   :  { %5938 = vmatprep.subr.mxu0 %v1438_v5  ;;  %5973 = vmatprep.subr.mxu1 %v1438_v5 }
 0x3a3   :  { %5939 = vmatpush3.msra.mxu0 %v1438_v5  ;;  %5974 = vmatpush3.msra.mxu1 %v1438_v5 }
 0x3a4   :  { %5940 = vmatprep.subr.mxu0 %v1437_v6  ;;  %5975 = vmatprep.subr.mxu1 %v1437_v6 }
 0x3a5   :  { %5941 = vmatpush3.msra.mxu0 %v1437_v6  ;;  %5976 = vmatpush3.msra.mxu1 %v1437_v6  ;;  %v1612_v6 = vld [vmem:[%s5096_s25] sm:$0x1] }
 0x3a6   :  { %5942 = vmatprep.subr.mxu0 %v1436_v7  ;;  %5977 = vmatprep.subr.mxu1 %v1436_v7 }
 0x3a7   :  { %5943 = vmatpush3.msra.mxu0 %v1436_v7  ;;  %5978 = vmatpush3.msra.mxu1 %v1436_v7 }
 0x3a8   :  { %5944 = vmatprep.subr.mxu0 %v1435_v9  ;;  %5979 = vmatprep.subr.mxu1 %v1435_v9 }
 0x3a9   :  { %5945 = vmatpush3.msra.mxu0 %v1435_v9  ;;  %5980 = vmatpush3.msra.mxu1 %v1435_v9 }
 0x3aa   :  { %5946 = vmatprep.subr.mxu0 %v1434_v10  ;;  %5981 = vmatprep.subr.mxu1 %v1434_v10 }
 0x3ab   :  { %5947 = vmatpush3.msra.mxu0 %v1434_v10  ;;  %5982 = vmatpush3.msra.mxu1 %v1434_v10  ;;  %v1616_v10 = vld [vmem:[%s5097_s30] sm:$0x1]  ;;  %s8180_s30 = sld [smem:[%s8598_s0 + %s6893_s26]]  }
 0x3ac   :  { %5948 = vmatprep.subr.mxu0 %v1433_v11  ;;  %5983 = vmatprep.subr.mxu1 %v1433_v11 }
 0x3ad   :  { %5949 = vmatpush3.msra.mxu0 %v1433_v11  ;;  %5984 = vmatpush3.msra.mxu1 %v1433_v11 }
 0x3ae   :  { %5950 = vmatprep.subr.mxu0 %v1432_v12  ;;  %5985 = vmatprep.subr.mxu1 %v1432_v12 }
 0x3af   :  { %5951 = vmatpush3.msra.mxu0 %v1432_v12  ;;  %5986 = vmatpush3.msra.mxu1 %v1432_v12 }
 0x3b0   :  { %5952 = vmatprep.subr.mxu0 %v1431_v13  ;;  %5987 = vmatprep.subr.mxu1 %v1431_v13 }
 0x3b1   :  { %5953 = vmatpush3.msra.mxu0 %v1431_v13  ;;  %5988 = vmatpush3.msra.mxu1 %v1431_v13 }
 0x3b2   :  { %5954 = vmatprep.subr.mxu0 %v1430_v20  ;;  %5989 = vmatprep.subr.mxu1 %v1430_v20 }
 0x3b3   :  { %5955 = vmatpush3.msra.mxu0 %v1430_v20  ;;  %5990 = vmatpush3.msra.mxu1 %v1430_v20  ;;  %v7341_v20 = vld [vmem:[%s7337_s4] sm:$0xff] }
 0x3b4   :  { %5956 = vmatprep.subr.mxu0 %v1429_v22  ;;  %5991 = vmatprep.subr.mxu1 %v1429_v22 }
 0x3b5   :  { %5957 = vmatpush3.msra.mxu0 %v1429_v22  ;;  %5992 = vmatpush3.msra.mxu1 %v1429_v22 }
 0x3b6   :  { %5958 = vmatprep.subr.mxu0 %v1428_v25  ;;  %5993 = vmatprep.subr.mxu1 %v1428_v25 }
 0x3b7   :  { %5959 = vmatpush3.msra.mxu0 %v1428_v25  ;;  %5994 = vmatpush3.msra.mxu1 %v1428_v25 }
 0x3b8   :  { %5960 = vmatprep.subr.mxu0 %v1427_v8  ;;  %5995 = vmatprep.subr.mxu1 %v1427_v8 }
 0x3b9   :  { %5961 = vmatpush3.msra.mxu0 %v1427_v8  ;;  %5996 = vmatpush3.msra.mxu1 %v1427_v8 }
 0x3ba   :  { %6035 = vmatprep.subr.mxu1 %v7283_v27  ;;  %6000 = vmatprep.subr.mxu0 %v7314_v63 }
 0x45a   :  { %v7286_v24 = vpop.f32.mrf.mxu0  ;;  %v7288_v15 = vpop.f32.mrf.mxu1 }
 0x45b   :  { %v1371_v30 = vmul.f32 %v7286_v24, %v7286_v24  ;;  %v1421_v51 = vadd.f32 %v7288_v15, %v7286_v24  ;;  %v1423_v52 = vmul.f32 %v7288_v15, %v7288_v15 }
 0x45c   :  { %v5908_v57 = vpop.f32.mrf.mxu0  ;;  %v5928_v48 = vpop.f32.mrf.mxu1 }
 0x45d   :  { %5962 = vmatprep.mubr.f32.mxu0 %v1421_v51  ;;  %v1425_v59 = vadd.f32 %v1423_v52, %v1371_v30  ;;  %v7350_v52 = vrot.slane %v7341_v20, %v7159_v47 }
 0x45e   :  { %v7296_v18 = vpop.f32.mrf.mxu0  ;;  %v7298_v56 = vpop.f32.mrf.mxu1 }
 0x45f   :  { %v1372_v21 = vmul.f32 %v7296_v18, %v7296_v18  ;;  %v1422_v55 = vadd.f32 %v7298_v56, %v7296_v18  ;;  %v1424_v1 = vmul.f32 %v7298_v56, %v7298_v56  ;;  %5997 = vmatprep.mubr.f32.mxu1 %v1425_v59 }
 0x460   :  { %v5909_v19 = vpop.f32.mrf.mxu0  ;;  %v5929_v31 = vpop.f32.mrf.mxu1 }
 0x461   :  { %v1426_v32 = vadd.f32 %v1424_v1, %v1372_v21  ;;  %5963 = vmatmul.mubr.f32.vlgmr.msra.gmra.mxu0 %v1422_v55  ;;  %v7353_v55 = vld [vmem:[%s7311_s20 + $0x60] sm:$0xff] }
 0x462   :  { %6001 = vmatpush3.msra.mxu0 %v7314_v63 }
 0x463   :  { %5998 = vmatmul.mubr.f32.vlgmr.msra.gmra.mxu1 %v1426_v32  ;;  %6002 = vmatprep.subr.mxu0 %v7317_v28  ;;  %v7384_v32 = vld [vmem:[%s7311_s20 + $0x50] sm:$0xff] }
 0x464   :  { %6039 = vmatprep.mubr.msk.f32.mxu1 %vm6865_vm0, %v7283_v27  ;;  %6003 = vmatpush3.msra.mxu0 %v7317_v28 }
 0x465   :  { %6004 = vmatprep.subr.mxu0 %v7322_v26 }
 0x466   :  { %6005 = vmatpush3.msra.mxu0 %v7322_v26 }
 0x467   :  { %6006 = vmatprep.subr.mxu0 %v7353_v55 }
 0x468   :  { %6007 = vmatpush3.msra.mxu0 %v7353_v55 }
 0x521   :  { %v5964_v34 = vpop.f32.mrf.mxu0 }
 0x523   :  { %v1509_v36 = vpop.f32.mrf.mxu0  ;;  %v5999_v29 = vpop.f32.mrf.mxu1 }
 0x524   :  { %v1518_v37 = vadd.f32 %v5964_v34, %v1509_v36  ;;  %v7388_v34 = vld [vmem:[%s7311_s20 + $0x48] sm:$0xff]  ;;  %v7396_v36 = vrot.slane %v7341_v20, %v7156_v46 }
 0x525   :  { %v1592_v40 = vpop.f32.mrf.mxu1 }
 0x526   :  { %v1519_v41 = vrot.slane %v1518_v37, 4  ;;  %v1601_v0 = vadd.f32 %v5999_v29, %v1592_v40  ;;  %v7400_v29 = vld [vmem:[%s7311_s20 + $0x40] sm:$0xff] }
 0x528   :  { %v1520_v14 = vadd.f32 %v1519_v41, %v1518_v37  ;;  %v1602_v33 = vrot.slane %v1601_v0, 4  ;;  %v7404_v37 = vrot.slane %v7341_v20, %v7186_v62 }
 0x52a   :  { %v1521_v35 = vrot.slane %v1520_v14, 2  ;;  %v1603_v43 = vadd.f32 %v1602_v33, %v1601_v0 }
 0x52c   :  { %v1522_v23 = vadd.f32 %v1521_v35, %v1520_v14  ;;  %v1604_v61 = vrot.slane %v1603_v43, 2 }
 0x52e   :  { %v1523_v50 = vrot.slane %v1522_v23, 1  ;;  %v1605_v2 = vadd.f32 %v1604_v61, %v1603_v43 }
 0x530   :  { %v1524_v17 = vadd.f32 %v1523_v50, %v1522_v23  ;;  %v1606_v16 = vrot.slane %v1605_v2, 1  ;;  %v7422_v23 = vld [vmem:[%s7311_s20 + $0x38] sm:$0xff] }
 0x532   :  { %v1525_v3 = vmul.f32 0.001953125, %v1524_v17  ;;  %v1607_v4 = vadd.f32 %v1606_v16, %v1605_v2  ;;  %v7432_v2 = vld [vmem:[%s7311_s20 + $0x30] sm:$0xff]  ;;  %v7442_v16 = vld [vmem:[%s7311_s20 + $0x28] sm:$0xff] }
 0x534   :  { %v1609_v39 = vmul.f32 %v1525_v3, %v1525_v3  ;;  %v1608_v44 = vmul.f32 0.001953125, %v1607_v4  ;;  %v7450_v4 = vld [vmem:[%s7311_s20 + $0x20] sm:$0xff] }
 0x536   :  { %v1610_v38 = vsub.f32 %v1608_v44, %v1609_v39  ;;  %v7459_v39 = vld [vmem:[%s7311_s20 + $0x18] sm:$0xff] }
 0x538   :  { %v1611_v49 = vmax.f32 %v1610_v38, 0.0  ;;  %v7469_v38 = vld [vmem:[%s7311_s20 + $0x10] sm:$0xff] }
 0x53a   :  { %v1613_v5 = vadd.f32 1e-05, %v1611_v49  ;;  %v7475_v49 = vld [vmem:[%s7311_s20 + $0x8] sm:$0xff] }
 0x53c   :  { %6832 = vrsqrt.f32 %v1613_v5  ;;  %v7484_v5 = vld [vmem:[%s7311_s20] sm:$0xff] }
 0x549   :  { %v6833_v7 = vpop.eup %6832 }
 0x54a   :  { %v1615_v9 = vmul.f32 %v6833_v7, %v1612_v6 }
 0x54c   :  { %v1617_v11 = vmul.f32 %v1615_v9, %v1525_v3  ;;  %v1623_v12 = vrot.slane %v1615_v9, %v7040_v60 }
 0x54e   :  { %v1618_v13 = vsub.f32 %v1616_v10, %v1617_v11  ;;  %v1625_v22 = vmul.f32 %v1623_v12, %v7286_v24  ;;  %v1626_v25 = vmul.f32 %v1623_v12, %v7296_v18  ;;  %v1639_v30 = vmul.f32 %v1623_v12, %v7288_v15 }
 0x54f   :  { %v1640_v51 = vmul.f32 %v1623_v12, %v7298_v56  ;;  %v7365_v56 = vld [vmem:[%s7311_s20 + $0x58] sm:$0xff]  ;;  %v1708_v11 = vrot.slane %v7341_v20, %v7153_v45  ;;  %v7510_v12 = vrot.slane %v7341_v20, %v7040_v60  ;;  %s8324_s20 = sld [smem:[%s8598_s0 + %s6898_s17]]  }
 0x550   :  { %v1631_v8 = vrot.slane %v1618_v13, %v7040_v60  ;;  %6008 = vmatprep.subr.mxu0 %v7365_v56  ;;  %v7514_v13 = vrot.slane %v7341_v20, %v7165_v53 }
 0x551   :  { %6009 = vmatpush3.msra.mxu0 %v7365_v56 }
 0x552   :  { %v1633_v57 = vadd.f32 %v1631_v8, %v1625_v22  ;;  %v1634_v48 = vadd.f32 %v1631_v8, %v1626_v25  ;;  %v1641_v59 = vadd.f32 %v1639_v30, %v1631_v8  ;;  %v1642_v21 = vadd.f32 %v1640_v51, %v1631_v8  ;;  %6010 = vmatprep.subr.mxu0 %v7384_v32 }
 0x553   :  { %6011 = vmatpush3.msra.mxu0 %v7384_v32 }
 0x554   :  { %v7355_v24 = vmax.f32 %v1633_v57, 0.0  ;;  %v7357_v18 = vmax.f32 %v1634_v48, 0.0  ;;  %v7359_v1 = vmax.f32 %v1641_v59, 0.0  ;;  %v7361_v15 = vmax.f32 %v1642_v21, 0.0  ;;  %6012 = vmatprep.subr.mxu0 %v7388_v34 }
 0x555   :  { %6013 = vmatpush3.msra.mxu0 %v7388_v34  ;;  %v1692_v59 = vrot.slane %v7341_v20, %v7168_v54 }
 0x556   :  { %1637 = vst [vmem:[#allocation3 + $0x1] sm:$0xff] %v7355_v24  ;;  %1638 = vst [vmem:[#allocation3 + $0x9] sm:$0xff] %v7357_v18  ;;  %1701 = vrot.lane.b32.xlu1 %v7355_v24, %s6860_s22  ;;  %v7376_v19 = vmul.f32 %v7350_v52, %v7359_v1  ;;  %v7380_v31 = vmul.f32 %v7350_v52, %v7361_v15  ;;  %6014 = vmatprep.subr.mxu0 %v7400_v29 }
 0x557   :  { %1646 = vst [vmem:[#allocation3 + $0x19] sm:$0xff] %v7359_v1  ;;  %1647 = vst [vmem:[#allocation3 + $0x21] sm:$0xff] %v7361_v15  ;;  %6015 = vmatpush3.msra.mxu0 %v7400_v29  ;;  %v1715_v51 = vmul.f32 %v7350_v52, %v7355_v24  ;;  %v1716_v54 = vmul.f32 %v7350_v52, %v7357_v18 }
 0x558   :  { %6016 = vmatprep.subr.mxu0 %v7422_v23 }
 0x559   :  { %6017 = vmatpush3.msra.mxu0 %v7422_v23 }
 0x55a   :  { %1703 = vrot.lane.b32.xlu1 %v7357_v18, %s6860_s22  ;;  %6018 = vmatprep.subr.mxu0 %v7432_v2 }
 0x55b   :  { %6019 = vmatpush3.msra.mxu0 %v7432_v2 }
 0x55c   :  { %6020 = vmatprep.subr.mxu0 %v7442_v16 }
 0x55d   :  { %v7407_v40 = vld [vmem:[#allocation3] sm:$0xff]  ;;  %v7434_v17 = vld [vmem:[#allocation3 + $0x8] sm:$0xff]  ;;  %6021 = vmatpush3.msra.mxu0 %v7442_v16 }
 0x55e   :  { %1669 = vrot.lane.b32.xlu0 %v7407_v40, %s6860_s22  ;;  %1717 = vrot.lane.b32.xlu1 %v7355_v24, %s6862_s27  ;;  %v1917_v41 = vld [vmem:[#allocation3 + $0x18] sm:$0xff]  ;;  %v1918_v0 = vld [vmem:[#allocation3 + $0x20] sm:$0xff]  ;;  %v7446_v3 = vld [vmem:[#allocation3 + $0xa] sm:$0xff]  ;;  %v1683_v57 = vmul.f32 %v7396_v36, %v7407_v40  ;;  %v1742_v24 = vrot.slane %v7341_v20, %v7183_v42 }
 0x55f   :  { %v7415_v14 = vmul.f32 %v1917_v41, %v7396_v36  ;;  %v7418_v33 = vmul.f32 %v1918_v0, %v7396_v36  ;;  %v1959_v35 = vld [vmem:[#allocation3 + $0x1a] sm:$0xff]  ;;  %v1960_v43 = vld [vmem:[#allocation3 + $0x22] sm:$0xff]  ;;  %6022 = vmatprep.subr.mxu0 %v7450_v4 }
 0x560   :  { %v7425_v61 = vmul.f32 %v1959_v35, %v7404_v37  ;;  %v7428_v50 = vmul.f32 %v1960_v43, %v7404_v37  ;;  %v7461_v44 = vld [vmem:[#allocation3 + $0x2] sm:$0xff]  ;;  %6023 = vmatpush3.msra.mxu0 %v7450_v4 }
 0x561   :  { %6024 = vmatprep.subr.mxu0 %v7459_v39 }
 0x562   :  { %1671 = vrot.lane.b32.xlu0 %v7434_v17, %s6860_s22  ;;  %1687 = vrot.lane.b32.xlu1 %v7434_v17, %s6862_s27 }
 0x563   :  { %6025 = vmatpush3.msra.mxu0 %v7459_v39 }
 0x564   :  { %6026 = vmatprep.subr.mxu0 %v7469_v38 }
 0x565   :  { %6027 = vmatpush3.msra.mxu0 %v7469_v38 }
 0x566   :  { %1685 = vrot.lane.b32.xlu0 %v7407_v40, %s6862_s27  ;;  %1737 = vrot.lane.b32.xlu1 %v7446_v3, %s6860_s22 }
 0x567   :  { %6028 = vmatprep.subr.mxu0 %v7475_v49 }
 0x568   :  { %6029 = vmatpush3.msra.mxu0 %v7475_v49 }
 0x569   :  { %6030 = vmatprep.subr.mxu0 %v7484_v5 }
 0x56a   :  { %1735 = vrot.lane.b32.xlu0 %v7461_v44, %s6860_s22  ;;  %1753 = vrot.lane.b32.xlu1 %v7446_v3, %s6862_s27 }
 0x56b   :  { %6031 = vmatpush3.msra.mxu0 %v7484_v5 }
 0x56c   :  { %6077 = vmatprep.subr.mxu0 %v7283_v27 }
 0x56e   :  { %1719 = vrot.lane.b32.xlu0 %v7357_v18, %s6862_s27  ;;  %1939 = vrot.lane.b32.xlu1 %v7359_v1, %s6860_s22 }
 0x572   :  { %1751 = vrot.lane.b32.xlu0 %v7461_v44, %s6862_s27  ;;  %1941 = vrot.lane.b32.xlu1 %v7361_v15, %s6860_s22 }
 0x576   :  { %1919 = vrot.lane.b32.xlu0 %v1917_v41, %s6860_s22  ;;  %1947 = vrot.lane.b32.xlu1 %v7359_v1, %s6862_s27 }
 0x57a   :  { %1921 = vrot.lane.b32.xlu0 %v1918_v0, %s6860_s22  ;;  %1929 = vrot.lane.b32.xlu1 %v1918_v0, %s6862_s27 }
 0x57e   :  { %1927 = vrot.lane.b32.xlu0 %v1917_v41, %s6862_s27  ;;  %1963 = vrot.lane.b32.xlu1 %v1960_v43, %s6860_s22 }
 0x582   :  { %1961 = vrot.lane.b32.xlu0 %v1959_v35, %s6860_s22  ;;  %1971 = vrot.lane.b32.xlu1 %v1960_v43, %s6862_s27  ;;  %s6872_s22 = smov 14  }
 0x583   :  { %s5099_s6 = sld [smem:[%s8598_s0 + %s6872_s22]]   ;;  %s6895_s22 = smov 35  }
 0x586   :  { %1949 = vrot.lane.b32.xlu0 %v7361_v15, %s6862_s27 }
 0x58a   :  { %1969 = vrot.lane.b32.xlu0 %v1959_v35, %s6862_s27  ;;  %s5106_s27 = sld [smem:[%s8598_s0 + %s6879_s3]]   ;;  %s6887_s3 = smov 28  }
 0x5c8   :  { %v1702_v6 = vpop.permute.xlu1 %1701 }
 0x5c9   :  { %v1709_v8 = vmul.f32 %v1708_v11, %v1702_v6 }
 0x5cb   :  { %v1727_v15 = vadd.f32 %v1715_v51, %v1709_v8  ;;  %v5186_v8 = vld [vmem:[%s7337_s4 + $0x8] ss:$0 sm:$0xff]  ;;  %s5122_s4 = sld [smem:[%s8598_s0 + %s6894_s1]]  }
 0x5cc   :  { %v1704_v7 = vpop.permute.xlu1 %1703 }
 0x5d0   :  { %v1670_v9 = vpop.permute.xlu0 %1669  ;;  %v1718_v10 = vpop.permute.xlu1 %1717 }
 0x5d1   :  { %v1677_v30 = vmul.f32 %v7510_v12, %v1670_v9  ;;  %v1725_v48 = vmul.f32 %v7514_v13, %v1718_v10  ;;  %v1710_v9 = vmul.f32 %v1708_v11, %v1704_v7  ;;  %v1684_v10 = vmul.f32 %v7396_v36, %v7434_v17 }
 0x5d2   :  { %v1749_v36 = vmul.f32 %v7404_v37, %v7461_v44 }
 0x5d3   :  { %v1695_v41 = vadd.f32 %v1683_v57, %v1677_v30  ;;  %v1729_v43 = vadd.f32 %v1727_v15, %v1725_v48  ;;  %v1728_v57 = vadd.f32 %v1716_v54, %v1710_v9 }
 0x5d4   :  { %v1672_v22 = vpop.permute.xlu0 %1671  ;;  %v1688_v25 = vpop.permute.xlu1 %1687 }
 0x5d5   :  { %v1678_v35 = vmul.f32 %v7510_v12, %v1672_v22  ;;  %v1750_v22 = vmul.f32 %v7404_v37, %v7446_v3  ;;  %v1694_v7 = vmul.f32 %v1692_v59, %v1688_v25 }
 0x5d7   :  { %v1696_v30 = vadd.f32 %v1684_v10, %v1678_v35 }
 0x5d8   :  { %v1686_v21 = vpop.permute.xlu0 %1685  ;;  %v1738_v1 = vpop.permute.xlu1 %1737 }
 0x5d9   :  { %v1693_v0 = vmul.f32 %v1692_v59, %v1686_v21  ;;  %v1744_v51 = vmul.f32 %v1742_v24, %v1738_v1  ;;  %v1698_v17 = vadd.f32 %v1696_v30, %v1694_v7 }
 0x5db   :  { %v1697_v6 = vadd.f32 %v1695_v41, %v1693_v0  ;;  %v1762_v52 = vadd.f32 %v1750_v22, %v1744_v51 }
 0x5dc   :  { %v1736_v40 = vpop.permute.xlu0 %1735  ;;  %v1754_v58 = vpop.permute.xlu1 %1753 }
 0x5dd   :  { %v1731_v62 = vadd.f32 %v1729_v43, %v1697_v6  ;;  %v1743_v48 = vmul.f32 %v1742_v24, %v1736_v40  ;;  %v1760_v41 = vmul.f32 %v5186_v8, %v1754_v58 }
 0x5df   :  { %v1761_v35 = vadd.f32 %v1749_v36, %v1743_v48  ;;  %v1764_v6 = vadd.f32 %v1762_v52, %v1760_v41 }
 0x5e0   :  { %v1720_v21 = vpop.permute.xlu0 %1719  ;;  %v1940_v20 = vpop.permute.xlu1 %1939 }
 0x5e1   :  { %v1726_v15 = vmul.f32 %v7514_v13, %v1720_v21  ;;  %v1943_v0 = vmul.f32 %v1940_v20, %v1708_v11 }
 0x5e3   :  { %v1730_v18 = vadd.f32 %v1728_v57, %v1726_v15  ;;  %v1953_v1 = vadd.f32 %v7376_v19, %v1943_v0 }
 0x5e4   :  { %v1752_v43 = vpop.permute.xlu0 %1751  ;;  %v1942_v3 = vpop.permute.xlu1 %1941 }
 0x5e5   :  { %v1732_v54 = vadd.f32 %v1730_v18, %v1698_v17  ;;  %v1759_v9 = vmul.f32 %v5186_v8, %v1752_v43  ;;  %v1944_v40 = vmul.f32 %v1942_v3, %v1708_v11 }
 0x5e7   :  { %v1766_v25 = vadd.f32 %v1764_v6, %v1732_v54  ;;  %v1763_v10 = vadd.f32 %v1761_v35, %v1759_v9  ;;  %v1954_v58 = vadd.f32 %v7380_v31, %v1944_v40 }
 0x5e8   :  { %v1920_v21 = vpop.permute.xlu0 %1919  ;;  %v1948_v20 = vpop.permute.xlu1 %1947 }
 0x5e9   :  { %v1923_v37 = vmul.f32 %v1920_v21, %v7510_v12  ;;  %v1765_v44 = vadd.f32 %v1763_v10, %v1731_v62  ;;  %v1951_v30 = vmul.f32 %v1948_v20, %v7514_v13  ;;  %v6789_v21 = vld [vmem:[%s5104_s14 + $0x10] sm:$0xff]   ;;  %v6790_v20 = vld [vmem:[%s5104_s14 + $0x8] sm:$0xff]  }
 0x5eb   :  { %v1933_v19 = vadd.f32 %v7415_v14, %v1923_v37  ;;  %6032 = vmatprep.mubr.f32.mxu0 %v1765_v44  ;;  %v1955_v51 = vadd.f32 %v1953_v1, %v1951_v30  ;;  %v6791_v37 = vld [vmem:[%s5104_s14] sm:$0xff]  }
 0x5ec   :  { %v1922_v22 = vpop.permute.xlu0 %1921  ;;  %6033 = vmatmul.mubr.f32.vlgmr.msra.gmra.mxu0 %v1766_v25  ;;  %v1930_v57 = vpop.permute.xlu1 %1929 }
 0x5ed   :  { %v1924_v11 = vmul.f32 %v1922_v22, %v7510_v12  ;;  %6081 = vmatprep.mubr.msk.f32.mxu0 %vm6865_vm0, %v7283_v27  ;;  %v1932_v48 = vmul.f32 %v1930_v57, %v1692_v59 }
 0x5ef   :  { %v1934_v31 = vadd.f32 %v7418_v33, %v1924_v11 }
 0x5f0   :  { %v1928_v7 = vpop.permute.xlu0 %1927  ;;  %v1964_v15 = vpop.permute.xlu1 %1963 }
 0x5f1   :  { %v1931_v62 = vmul.f32 %v1928_v7, %v1692_v59  ;;  %v1936_v41 = vadd.f32 %v1934_v31, %v1932_v48  ;;  %v1966_v0 = vmul.f32 %v1964_v15, %v1742_v24 }
 0x5f3   :  { %v1935_v36 = vadd.f32 %v1933_v19, %v1931_v62  ;;  %v1976_v14 = vadd.f32 %v7428_v50, %v1966_v0 }
 0x5f4   :  { %v1962_v17 = vpop.permute.xlu0 %1961  ;;  %v1972_v52 = vpop.permute.xlu1 %1971 }
 0x5f5   :  { %v1957_v18 = vadd.f32 %v1955_v51, %v1935_v36  ;;  %v1965_v1 = vmul.f32 %v1962_v17, %v1742_v24  ;;  %v1974_v35 = vmul.f32 %v5186_v8, %v1972_v52  ;;  %v7552_v24 = vld [vmem:[%s5099_s6] sm:$0xff]  ;;  %s5120_s6 = sld [smem:[%s8598_s0 + %s6895_s22]]  }
 0x5f7   :  { %v1975_v12 = vadd.f32 %v7425_v61, %v1965_v1  ;;  %v1978_v43 = vadd.f32 %v1976_v14, %v1974_v35 }
 0x5f8   :  { %v1950_v3 = vpop.permute.xlu0 %1949 }
 0x5f9   :  { %v1952_v33 = vmul.f32 %v1950_v3, %v7514_v13 }
 0x5fb   :  { %v1956_v54 = vadd.f32 %v1954_v58, %v1952_v33  ;;  %v6788_v58 = vld [vmem:[%s5104_s14 + $0x18] sm:$0xff]   ;;  %v2303_v33 = vld [vmem:[%s5102_s18] sm:$0x1]  ;;  %s6882_s14 = smov 112   ;;  %s7851_s18 = sld [smem:[%s8598_s0 + %s6883_s15]]  }
 0x5fc   :  { %v1970_v6 = vpop.permute.xlu0 %1969  ;;  %s6890_s15 = smov 30  }
 0x5fd   :  { %v1958_v9 = vadd.f32 %v1956_v54, %v1936_v41  ;;  %v1973_v59 = vmul.f32 %v5186_v8, %v1970_v6 }
 0x5ff   :  { %v1980_v40 = vadd.f32 %v1978_v43, %v1958_v9  ;;  %v1977_v25 = vadd.f32 %v1975_v12, %v1973_v59  ;;  %v2307_v9 = vld [vmem:[%s5103_s23] sm:$0x1]  ;;  %s7886_s23 = sld [smem:[%s8598_s0 + %s6884_s19]]   ;;  %s6891_s19 = smov 31  }
 0x601   :  { %v1979_v10 = vadd.f32 %v1977_v25, %v1957_v18 }
 0x6ac   :  { %v6034_v50 = vpop.f32.mrf.mxu0 }
 0x6ad   :  { %6036 = vmatpush3.msra.mxu1 %v6034_v50 }
 0x6ae   :  { %v1833_v61 = vpop.f32.mrf.mxu0  ;;  %6037 = vmatprep.subr.mxu1 %v7283_v27 }
 0x6af   :  { %6038 = vmatpush3.msra.mxu1 %v1833_v61 }
 0x6b0   :  { %6040 = vmatmul.mubr.msk.f32.vlgmr.msra.gmra.mxu1 %vm1842_vm1, %v7552_v24  ;;  %6042 = vmatprep.subr.mxu1 %v7314_v63 }
 0x6b1   :  { %6043 = vmatpush3.msra.mxu1 %v7314_v63  ;;  %6074 = vmatprep.mubr.f32.mxu1 %v1979_v10  ;;  %v2136_v63 = vld [vmem:[%s7596_s10 + $0x38] sm:$0xff] }
 0x6b2   :  { %6044 = vmatprep.subr.mxu1 %v7317_v28 }
 0x6b3   :  { %6045 = vmatpush3.msra.mxu1 %v7317_v28  ;;  %v2135_v28 = vld [vmem:[%s7596_s10 + $0x30] sm:$0xff] }
 0x6b4   :  { %6046 = vmatprep.subr.mxu1 %v7322_v26 }
 0x6b5   :  { %6047 = vmatpush3.msra.mxu1 %v7322_v26  ;;  %v2134_v26 = vld [vmem:[%s7596_s10 + $0x28] sm:$0xff] }
 0x6b6   :  { %6048 = vmatprep.subr.mxu1 %v7353_v55 }
 0x6b7   :  { %6049 = vmatpush3.msra.mxu1 %v7353_v55  ;;  %v2133_v55 = vld [vmem:[%s7596_s10 + $0x20] sm:$0xff] }
 0x6b8   :  { %6050 = vmatprep.subr.mxu1 %v7365_v56 }
 0x6b9   :  { %6051 = vmatpush3.msra.mxu1 %v7365_v56  ;;  %v2132_v56 = vld [vmem:[%s7596_s10 + $0x18] sm:$0xff] }
 0x6ba   :  { %6052 = vmatprep.subr.mxu1 %v7384_v32 }
 0x6bb   :  { %6053 = vmatpush3.msra.mxu1 %v7384_v32  ;;  %v2131_v32 = vld [vmem:[%s7596_s10 + $0x10] sm:$0xff] }
 0x6bc   :  { %6054 = vmatprep.subr.mxu1 %v7388_v34 }
 0x6bd   :  { %6055 = vmatpush3.msra.mxu1 %v7388_v34 }
 0x6be   :  { %6056 = vmatprep.subr.mxu1 %v7400_v29 }
 0x6bf   :  { %6057 = vmatpush3.msra.mxu1 %v7400_v29 }
 0x6c0   :  { %6058 = vmatprep.subr.mxu1 %v7422_v23 }
 0x6c1   :  { %6059 = vmatpush3.msra.mxu1 %v7422_v23 }
 0x6c2   :  { %6060 = vmatprep.subr.mxu1 %v7432_v2 }
 0x6c3   :  { %6061 = vmatpush3.msra.mxu1 %v7432_v2 }
 0x6c4   :  { %6062 = vmatprep.subr.mxu1 %v7442_v16 }
 0x6c5   :  { %6063 = vmatpush3.msra.mxu1 %v7442_v16  ;;  %v2130_v16 = vld [vmem:[%s7596_s10 + $0x8] sm:$0xff] }
 0x6c6   :  { %6064 = vmatprep.subr.mxu1 %v7450_v4 }
 0x6c7   :  { %6065 = vmatpush3.msra.mxu1 %v7450_v4  ;;  %v2129_v4 = vld [vmem:[%s7596_s10] sm:$0xff]  ;;  %s6881_s10 = smov 49  }
 0x6c8   :  { %6066 = vmatprep.subr.mxu1 %v7459_v39  ;;  %s5134_s13 = sld [smem:[%s8598_s0 + %s6881_s10]]   ;;  %s6889_s10 = smov 29  }
 0x6c9   :  { %6067 = vmatpush3.msra.mxu1 %v7459_v39 }
 0x6ca   :  { %6068 = vmatprep.subr.mxu1 %v7469_v38 }
 0x6cb   :  { %6069 = vmatpush3.msra.mxu1 %v7469_v38 }
 0x6cc   :  { %6070 = vmatprep.subr.mxu1 %v7475_v49 }
 0x6cd   :  { %6071 = vmatpush3.msra.mxu1 %v7475_v49 }
 0x6ce   :  { %6072 = vmatprep.subr.mxu1 %v7484_v5 }
 0x6cf   :  { %6073 = vmatpush3.msra.mxu1 %v7484_v5 }
 0x6d0   :  { %6075 = vmatmul.mubr.f32.vlgmr.msra.gmra.mxu1 %v1980_v40  ;;  %6103 = vmatprep.subr.mxu1 %v7283_v27 }
 0x6d1   :  { %6119 = vmatprep.mubr.msk.f32.mxu1 %vm6865_vm0, %v7283_v27  ;;  %6104 = vmatpush3.msra.mxu1 %v2136_v63 }
 0x6d2   :  { %6105 = vmatprep.subr.mxu1 %v7283_v27 }
 0x6d3   :  { %6106 = vmatpush3.msra.mxu1 %v2135_v28 }
 0x6d4   :  { %6107 = vmatprep.subr.mxu1 %v7283_v27 }
 0x6d5   :  { %6108 = vmatpush3.msra.mxu1 %v2134_v26 }
 0x6d6   :  { %6109 = vmatprep.subr.mxu1 %v7283_v27 }
 0x6d7   :  { %6110 = vmatpush3.msra.mxu1 %v2133_v55 }
 0x6d8   :  { %6111 = vmatprep.subr.mxu1 %v7283_v27 }
 0x6d9   :  { %6112 = vmatpush3.msra.mxu1 %v2132_v56 }
 0x6da   :  { %6113 = vmatprep.subr.mxu1 %v7283_v27 }
 0x6db   :  { %6114 = vmatpush3.msra.mxu1 %v2131_v32 }
 0x6dc   :  { %6115 = vmatprep.subr.mxu1 %v7283_v27 }
 0x6dd   :  { %6116 = vmatpush3.msra.mxu1 %v2130_v16 }
 0x6de   :  { %6117 = vmatprep.subr.mxu1 %v7283_v27 }
 0x6df   :  { %6118 = vmatpush3.msra.mxu1 %v2129_v4 }
 0x6e0   :  { %6134 = vmatprep.subr.bf16.mxu1 %v7283_v27 }
 0x770   :  { %v7610_v34 = vpop.f32.mrf.mxu1 }
 0x771   :  { %v1916_v38 = vmul.f32 %v7610_v34, %v7610_v34 }
 0x772   :  { %v6041_v29 = vpop.f32.mrf.mxu1 }
 0x773   :  { %v2466_v29 = vld [vmem:[%s7667_s28 + $0x70] sm:$0xff] }
 0x790   :  { %v6076_v23 = vpop.f32.mrf.mxu1 }
 0x791   :  { %6078 = vmatpush3.msra.mxu0 %v6076_v23  ;;  %v2464_v23 = vld [vmem:[%s7667_s28 + $0x60] sm:$0xff] }
 0x792   :  { %v2047_v2 = vpop.f32.mrf.mxu1  ;;  %6079 = vmatprep.subr.mxu0 %v7283_v27 }
 0x793   :  { %6080 = vmatpush3.msra.mxu0 %v2047_v2  ;;  %v2463_v2 = vld [vmem:[%s7667_s28 + $0x58] sm:$0xff] }
 0x794   :  { %6082 = vmatmul.mubr.msk.f32.vlgmr.msra.gmra.mxu0 %vm1842_vm1, %v7552_v24  ;;  %6084 = vmatprep.subr.mxu0 %v7283_v27 }
 0x795   :  { %6085 = vmatpush3.msra.mxu0 %v2136_v63  ;;  %6100 = vmatprep.mubr.msk.f32.mxu0 %vm6865_vm0, %v7283_v27 }
 0x796   :  { %6086 = vmatprep.subr.mxu0 %v7283_v27 }
 0x797   :  { %6087 = vmatpush3.msra.mxu0 %v2135_v28 }
 0x798   :  { %6088 = vmatprep.subr.mxu0 %v7283_v27 }
 0x799   :  { %6089 = vmatpush3.msra.mxu0 %v2134_v26 }
 0x79a   :  { %6090 = vmatprep.subr.mxu0 %v7283_v27 }
 0x79b   :  { %6091 = vmatpush3.msra.mxu0 %v2133_v55 }
 0x79c   :  { %6092 = vmatprep.subr.mxu0 %v7283_v27 }
 0x79d   :  { %6093 = vmatpush3.msra.mxu0 %v2132_v56 }
 0x79e   :  { %6094 = vmatprep.subr.mxu0 %v7283_v27 }
 0x79f   :  { %6095 = vmatpush3.msra.mxu0 %v2131_v32  ;;  %v2467_v32 = vld [vmem:[%s7667_s28 + $0x78] sm:$0xff] }
 0x7a0   :  { %6096 = vmatprep.subr.mxu0 %v7283_v27 }
 0x7a1   :  { %6097 = vmatpush3.msra.mxu0 %v2130_v16  ;;  %v2462_v16 = vld [vmem:[%s7667_s28 + $0x50] sm:$0xff] }
 0x7a2   :  { %6098 = vmatprep.subr.mxu0 %v7283_v27 }
 0x7a3   :  { %6099 = vmatpush3.msra.mxu0 %v2129_v4  ;;  %v2461_v4 = vld [vmem:[%s7667_s28 + $0x48] sm:$0xff] }
 0x7a4   :  { %6122 = vmatprep.subr.bf16.mxu0 %v7283_v27 }
 0x854   :  { %v7630_v39 = vpop.f32.mrf.mxu0 }
 0x855   :  { %v2126_v49 = vadd.f32 %v7630_v39, %v7610_v34  ;;  %v2127_v5 = vmul.f32 %v7630_v39, %v7630_v39 }
 0x856   :  { %v6083_v13 = vpop.f32.mrf.mxu0 }
 0x857   :  { %v2128_v8 = vadd.f32 %v2127_v5, %v1916_v38  ;;  %6101 = vmatmul.mubr.msk.f32.vlgmr.msra.gmra.mxu0 %vm2137_vm2, %v2126_v49  ;;  %v2459_v38 = vld [vmem:[%s7667_s28 + $0x38] sm:$0xff]  ;;  %v2458_v49 = vld [vmem:[%s7667_s28 + $0x30] sm:$0xff]  ;;  %v2457_v5 = vld [vmem:[%s7667_s28 + $0x28] sm:$0xff] }
 0x858   :  { %6130 = vmatprep.mubr.msk.bf16.mxu0 %vm6865_vm0, %v7283_v27  ;;  %6123 = vmatpush3.bf16.msra.mxu0 %v6788_v58  ;;  %v2456_v13 = vld [vmem:[%s7667_s28 + $0x20] sm:$0xff] }
 0x859   :  { %6120 = vmatmul.mubr.msk.f32.vlgmr.msra.gmra.mxu1 %vm2137_vm2, %v2128_v8  ;;  %6124 = vmatprep.subr.bf16.mxu0 %v7283_v27  ;;  %v2455_v8 = vld [vmem:[%s7667_s28 + $0x18] sm:$0xff] }
 0x85a   :  { %6142 = vmatprep.mubr.msk.bf16.mxu1 %vm6865_vm0, %v7283_v27  ;;  %6135 = vmatpush3.bf16.msra.mxu1 %v6788_v58  ;;  %v7709_v58 = vld [vmem:[#allocation4] sm:$0xff] }
 0x85b   :  { %6136 = vmatprep.subr.bf16.mxu1 %v7283_v27 }
 0x85c   :  { %6125 = vmatpush3.bf16.msra.mxu0 %v6789_v21 }
 0x85d   :  { %6126 = vmatprep.subr.bf16.mxu0 %v7283_v27 }
 0x85e   :  { %6137 = vmatpush3.bf16.msra.mxu1 %v6789_v21  ;;  %v2454_v21 = vld [vmem:[%s7667_s28 + $0x10] sm:$0xff] }
 0x85f   :  { %6138 = vmatprep.subr.bf16.mxu1 %v7283_v27 }
 0x860   :  { %6127 = vmatpush3.bf16.msra.mxu0 %v6790_v20 }
 0x861   :  { %6128 = vmatprep.subr.bf16.mxu0 %v7283_v27 }
 0x862   :  { %6139 = vmatpush3.bf16.msra.mxu1 %v6790_v20  ;;  %v2452_v20 = vld [vmem:[%s7667_s28] sm:$0xff] }
 0x863   :  { %6140 = vmatprep.subr.bf16.mxu1 %v7283_v27 }
 0x864   :  { %6129 = vmatpush3.bf16.msra.mxu0 %v6791_v37 }
 0x865   :  { %6146 = vmatprep.subr.mxu0 %v7283_v27 }
 0x866   :  { %6141 = vmatpush3.bf16.msra.mxu1 %v6791_v37 }
 0x867   :  { %6181 = vmatprep.subr.mxu1 %v7283_v27 }
 0x917   :  { %v2207_v44 = vpop.f32.mrf.mxu0 }
 0x918   :  { %v2211_v30 = vsel %vm2137_vm2, %v2207_v44, 0.0 }
 0x919   :  { %v2212_v19 = vrot.slane %v2211_v30, 4  ;;  %v6102_v51 = vpop.f32.mrf.mxu0  ;;  %v2288_v22 = vpop.f32.mrf.mxu1 }
 0x91a   :  { %v2292_v57 = vsel %vm2137_vm2, %v2288_v22, 0.0 }
 0x91b   :  { %v2213_v11 = vadd.f32 %v2212_v19, %v2211_v30  ;;  %v2293_v31 = vrot.slane %v2292_v57, 4  ;;  %v6121_v48 = vpop.f32.mrf.mxu1 }
 0x91d   :  { %v2214_v7 = vrot.slane %v2213_v11, 2  ;;  %v2294_v15 = vadd.f32 %v2293_v31, %v2292_v57 }
 0x91f   :  { %v2215_v62 = vadd.f32 %v2214_v7, %v2213_v11  ;;  %v2295_v41 = vrot.slane %v2294_v15, 2 }
 0x921   :  { %v2216_v0 = vrot.slane %v2215_v62, 1  ;;  %v2296_v36 = vadd.f32 %v2295_v41, %v2294_v15  ;;  %v2775_v41 = vld [vmem:[%s7745_s2 + $0x70] sm:$0xff] }
 0x923   :  { %v2217_v14 = vadd.f32 %v2216_v0, %v2215_v62  ;;  %v2297_v17 = vrot.slane %v2296_v36, 1  ;;  %v2776_v62 = vld [vmem:[%s7745_s2 + $0x78] sm:$0xff] }
 0x925   :  { %v2218_v52 = vmul.f32 0.0078125, %v2217_v14  ;;  %v2298_v18 = vadd.f32 %v2297_v17, %v2296_v36 }
 0x927   :  { %v2300_v1 = vmul.f32 %v2218_v52, %v2218_v52  ;;  %v2299_v35 = vmul.f32 0.0078125, %v2298_v18 }
 0x929   :  { %v2301_v12 = vsub.f32 %v2299_v35, %v2300_v1 }
 0x92b   :  { %v2302_v43 = vmax.f32 %v2301_v12, 0.0 }
 0x92d   :  { %v2304_v3 = vadd.f32 1e-05, %v2302_v43 }
 0x92f   :  { %6834 = vrsqrt.f32 %v2304_v3 }
 0x93c   :  { %v6835_v54 = vpop.eup %6834 }
 0x93d   :  { %v2306_v6 = vmul.f32 %v6835_v54, %v2303_v33 }
 0x93f   :  { %v2308_v59 = vmul.f32 %v2306_v6, %v2218_v52  ;;  %v2322_v40 = vrot.slane %v2306_v6, %v7040_v60 }
 0x941   :  { %v2309_v25 = vsub.f32 %v2307_v9, %v2308_v59  ;;  %v2324_v10 = vmul.f32 %v2322_v40, %v7610_v34  ;;  %v2402_v24 = vmul.f32 %v2322_v40, %v7630_v39  ;;  %v2465_v34 = vld [vmem:[%s7667_s28 + $0x68] sm:$0xff]  ;;  %v2460_v39 = vld [vmem:[%s7667_s28 + $0x40] sm:$0xff] }
 0x943   :  { %v2329_v50 = vrot.slane %v2309_v25, %v7040_v60 }
 0x945   :  { %v2331_v61 = vadd.f32 %v2329_v50, %v2324_v10  ;;  %v2403_v63 = vadd.f32 %v2402_v24, %v2329_v50 }
 0x947   :  { %v2332_v28 = vmax.f32 %v2331_v61, 0.0  ;;  %v2404_v26 = vmax.f32 %v2403_v63, 0.0  ;;  %v2625_v63 = vld [vmem:[%s5106_s27] sm:$0x1]  ;;  %s7922_s27 = sld [smem:[%s8598_s0 + %s6887_s3]]  }
 0x949   :  { %v2333_v55 = vpack.c.bf16 %v2332_v28, %v2332_v28  ;;  %v2405_v56 = vpack.c.bf16 %v2404_v26, %v2404_v26 }
 0x94b   :  { %6131 = vmatmul.mubr.msk.bf16.vlgmr.msra.gmra.mxu0 %vm2137_vm2, %v2333_v55  ;;  %6143 = vmatmul.mubr.msk.bf16.vlgmr.msra.gmra.mxu1 %vm2137_vm2, %v2405_v56  ;;  %v2629_v55 = vld [vmem:[%s5107_s9] sm:$0x1]  ;;  %s7996_s9 = sld [smem:[%s8598_s0 + %s6888_s5]]  }
 0x94c   :  { %6147 = vmatpush3.msra.mxu0 %v2467_v32  ;;  %6182 = vmatpush3.msra.mxu1 %v2467_v32 }
 0x94d   :  { %6148 = vmatprep.subr.mxu0 %v7283_v27  ;;  %6183 = vmatprep.subr.mxu1 %v7283_v27 }
 0x94e   :  { %6149 = vmatpush3.msra.mxu0 %v2466_v29  ;;  %6184 = vmatpush3.msra.mxu1 %v2466_v29 }
 0x94f   :  { %6150 = vmatprep.subr.mxu0 %v7283_v27  ;;  %6185 = vmatprep.subr.mxu1 %v7283_v27 }
 0x950   :  { %6151 = vmatpush3.msra.mxu0 %v2465_v34  ;;  %6186 = vmatpush3.msra.mxu1 %v2465_v34 }
 0x951   :  { %6152 = vmatprep.subr.mxu0 %v7283_v27  ;;  %6187 = vmatprep.subr.mxu1 %v7283_v27 }
 0x952   :  { %6153 = vmatpush3.msra.mxu0 %v2464_v23  ;;  %6188 = vmatpush3.msra.mxu1 %v2464_v23 }
 0x953   :  { %6154 = vmatprep.subr.mxu0 %v7283_v27  ;;  %6189 = vmatprep.subr.mxu1 %v7283_v27 }
 0x954   :  { %6155 = vmatpush3.msra.mxu0 %v2463_v2  ;;  %6190 = vmatpush3.msra.mxu1 %v2463_v2 }
 0x955   :  { %6156 = vmatprep.subr.mxu0 %v7283_v27  ;;  %6191 = vmatprep.subr.mxu1 %v7283_v27 }
 0x956   :  { %6157 = vmatpush3.msra.mxu0 %v2462_v16  ;;  %6192 = vmatpush3.msra.mxu1 %v2462_v16 }
 0x957   :  { %6158 = vmatprep.subr.mxu0 %v7283_v27  ;;  %6193 = vmatprep.subr.mxu1 %v7283_v27 }
 0x958   :  { %6159 = vmatpush3.msra.mxu0 %v2461_v4  ;;  %6194 = vmatpush3.msra.mxu1 %v2461_v4 }
 0x959   :  { %6160 = vmatprep.subr.mxu0 %v7283_v27  ;;  %6195 = vmatprep.subr.mxu1 %v7283_v27 }
 0x95a   :  { %6161 = vmatpush3.msra.mxu0 %v2460_v39  ;;  %6196 = vmatpush3.msra.mxu1 %v2460_v39  ;;  %v2774_v39 = vld [vmem:[%s7745_s2 + $0x68] sm:$0xff] }
 0x95b   :  { %6162 = vmatprep.subr.mxu0 %v7283_v27  ;;  %6197 = vmatprep.subr.mxu1 %v7283_v27 }
 0x95c   :  { %6163 = vmatpush3.msra.mxu0 %v2459_v38  ;;  %6198 = vmatpush3.msra.mxu1 %v2459_v38  ;;  %v2773_v38 = vld [vmem:[%s7745_s2 + $0x60] sm:$0xff] }
 0x95d   :  { %6164 = vmatprep.subr.mxu0 %v7283_v27  ;;  %6199 = vmatprep.subr.mxu1 %v7283_v27 }
 0x95e   :  { %6165 = vmatpush3.msra.mxu0 %v2458_v49  ;;  %6200 = vmatpush3.msra.mxu1 %v2458_v49 }
 0x95f   :  { %6166 = vmatprep.subr.mxu0 %v7283_v27  ;;  %6201 = vmatprep.subr.mxu1 %v7283_v27 }
 0x960   :  { %6167 = vmatpush3.msra.mxu0 %v2457_v5  ;;  %6202 = vmatpush3.msra.mxu1 %v2457_v5 }
 0x961   :  { %6168 = vmatprep.subr.mxu0 %v7283_v27  ;;  %6203 = vmatprep.subr.mxu1 %v7283_v27  ;;  %v2453_v27 = vld [vmem:[%s7667_s28 + $0x8] sm:$0xff]  ;;  %s5110_s28 = sld [smem:[%s8598_s0 + %s6885_s24]]  }
 0x962   :  { %6169 = vmatpush3.msra.mxu0 %v2456_v13  ;;  %6204 = vmatpush3.msra.mxu1 %v2456_v13  ;;  %v2772_v13 = vld [vmem:[%s7745_s2 + $0x58] sm:$0xff]  ;;  %s5124_s24 = sld [smem:[%s8598_s0 + %s6899_s21]]  }
 0x963   :  { %6170 = vmatprep.subr.mxu0 %v7709_v58  ;;  %6205 = vmatprep.subr.mxu1 %v7709_v58 }
 0x964   :  { %6171 = vmatpush3.msra.mxu0 %v2455_v8  ;;  %6206 = vmatpush3.msra.mxu1 %v2455_v8  ;;  %v2771_v8 = vld [vmem:[%s7745_s2 + $0x50] sm:$0xff] }
 0x965   :  { %6172 = vmatprep.subr.mxu0 %v7709_v58  ;;  %6207 = vmatprep.subr.mxu1 %v7709_v58 }
 0x966   :  { %6173 = vmatpush3.msra.mxu0 %v2454_v21  ;;  %6208 = vmatpush3.msra.mxu1 %v2454_v21  ;;  %v2770_v21 = vld [vmem:[%s7745_s2 + $0x48] sm:$0xff] }
 0x967   :  { %6174 = vmatprep.subr.mxu0 %v7709_v58  ;;  %6209 = vmatprep.subr.mxu1 %v7709_v58 }
 0x968   :  { %6178 = vmatprep.mubr.msk.f32.mxu0 %vm6865_vm0, %v7709_v58  ;;  %6213 = vmatprep.mubr.msk.f32.mxu1 %vm6865_vm0, %v7709_v58 }
 0x969   :  { %6175 = vmatpush3.msra.mxu0 %v2453_v27  ;;  %6210 = vmatpush3.msra.mxu1 %v2453_v27 }
 0x96a   :  { %6176 = vmatprep.subr.mxu0 %v7709_v58  ;;  %6211 = vmatprep.subr.mxu1 %v7709_v58 }
 0x96b   :  { %6177 = vmatpush3.msra.mxu0 %v2452_v20  ;;  %6212 = vmatpush3.msra.mxu1 %v2452_v20  ;;  %v2769_v20 = vld [vmem:[%s7745_s2 + $0x40] sm:$0xff] }
 0x96c   :  { %6216 = vmatprep.subr.mxu0 %v7709_v58  ;;  %6251 = vmatprep.subr.mxu1 %v7709_v58 }
 0xa0b   :  { %v7728_v37 = vpop.f32.mrf.mxu0  ;;  %v7730_v44 = vpop.f32.mrf.mxu1 }
 0xa0c   :  { %v2401_v30 = vmul.f32 %v7728_v37, %v7728_v37  ;;  %v2449_v19 = vadd.f32 %v7730_v44, %v7728_v37  ;;  %v2450_v51 = vmul.f32 %v7730_v44, %v7730_v44 }
 0xa0d   :  { %v6132_v22 = vpop.f32.mrf.mxu0  ;;  %v6144_v57 = vpop.f32.mrf.mxu1 }
 0xa0e   :  { %v2451_v11 = vadd.f32 %v2450_v51, %v2401_v30  ;;  %6179 = vmatmul.mubr.f32.vlgmr.msra.gmra.mxu0 %v2449_v19  ;;  %v2767_v30 = vld [vmem:[%s7745_s2 + $0x30] sm:$0xff]  ;;  %v2766_v19 = vld [vmem:[%s7745_s2 + $0x28] sm:$0xff]  ;;  %v2765_v22 = vld [vmem:[%s7745_s2 + $0x20] sm:$0xff] }
 0xa0f   :  { %v2398_v31 = vpop.f32.mrf.mxu0  ;;  %v2446_v48 = vpop.f32.mrf.mxu1  ;;  %6248 = vmatprep.mubr.msk.f32.mxu0 %vm6865_vm0, %v7709_v58  ;;  %6217 = vmatpush3.msra.mxu0 %v2776_v62 }
 0xa10   :  { %6214 = vmatmul.mubr.f32.vlgmr.msra.gmra.mxu1 %v2451_v11  ;;  %6218 = vmatprep.subr.mxu0 %v7709_v58  ;;  %v2764_v11 = vld [vmem:[%s7745_s2 + $0x18] sm:$0xff]  ;;  %v2763_v31 = vld [vmem:[%s7745_s2 + $0x10] sm:$0xff]  ;;  %v2762_v48 = vld [vmem:[%s7745_s2 + $0x8] sm:$0xff] }
 0xa11   :  { %v6133_v7 = vpop.f32.mrf.mxu0  ;;  %v6145_v15 = vpop.f32.mrf.mxu1  ;;  %6283 = vmatprep.mubr.msk.f32.mxu1 %vm6865_vm0, %v7709_v58  ;;  %6252 = vmatpush3.msra.mxu1 %v2776_v62 }
 0xa12   :  { %6253 = vmatprep.subr.mxu1 %v7709_v58  ;;  %6219 = vmatpush3.msra.mxu0 %v2775_v41  ;;  %v2761_v7 = vld [vmem:[%s7745_s2] sm:$0xff] }
 0xa13   :  { %6254 = vmatpush3.msra.mxu1 %v2775_v41  ;;  %6220 = vmatprep.subr.mxu0 %v7709_v58  ;;  %v2655_v41 = vld [vmem:[%s7851_s18] sm:$0xff] }
 0xa14   :  { %6255 = vmatprep.subr.mxu1 %v7709_v58  ;;  %6221 = vmatpush3.msra.mxu0 %v2774_v39 }
 0xa15   :  { %6256 = vmatpush3.msra.mxu1 %v2774_v39  ;;  %6222 = vmatprep.subr.mxu0 %v7709_v58 }
 0xa16   :  { %6257 = vmatprep.subr.mxu1 %v7709_v58  ;;  %6223 = vmatpush3.msra.mxu0 %v2773_v38 }
 0xa17   :  { %6224 = vmatprep.subr.mxu0 %v7709_v58  ;;  %6258 = vmatpush3.msra.mxu1 %v2773_v38 }
 0xa18   :  { %6225 = vmatpush3.msra.mxu0 %v2772_v13  ;;  %6259 = vmatprep.subr.mxu1 %v7709_v58 }
 0xa19   :  { %6226 = vmatprep.subr.mxu0 %v7709_v58  ;;  %6260 = vmatpush3.msra.mxu1 %v2772_v13 }
 0xa1a   :  { %6227 = vmatpush3.msra.mxu0 %v2771_v8  ;;  %6261 = vmatprep.subr.mxu1 %v7709_v58 }
 0xa1b   :  { %6228 = vmatprep.subr.mxu0 %v7709_v58  ;;  %6262 = vmatpush3.msra.mxu1 %v2771_v8 }
 0xa1c   :  { %6229 = vmatpush3.msra.mxu0 %v2770_v21  ;;  %6263 = vmatprep.subr.mxu1 %v7709_v58 }
 0xa1d   :  { %6230 = vmatprep.subr.mxu0 %v7709_v58  ;;  %6264 = vmatpush3.msra.mxu1 %v2770_v21 }
 0xa1e   :  { %6231 = vmatpush3.msra.mxu0 %v2769_v20  ;;  %6265 = vmatprep.subr.mxu1 %v7709_v58 }
 0xa1f   :  { %6232 = vmatprep.subr.mxu0 %v7709_v58  ;;  %6266 = vmatpush3.msra.mxu1 %v2769_v20 }
 0xa20   :  { %6267 = vmatprep.subr.mxu1 %v7709_v58 }
 0xace   :  { %v2534_v0 = vpop.f32.mrf.mxu0 }
 0xacf   :  { %v2538_v36 = vrot.slane %v2534_v0, 4 }
 0xad0   :  { %v6180_v14 = vpop.f32.mrf.mxu0  ;;  %v2611_v17 = vpop.f32.mrf.mxu1 }
 0xad1   :  { %v2539_v52 = vadd.f32 %v2538_v36, %v2534_v0  ;;  %v2615_v18 = vrot.slane %v2611_v17, 4  ;;  %v2685_v14 = vrot.slane %v2655_v41, %v7153_v45 }
 0xad2   :  { %v6215_v1 = vpop.f32.mrf.mxu1 }
 0xad3   :  { %v2540_v35 = vrot.slane %v2539_v52, 2  ;;  %v2616_v12 = vadd.f32 %v2615_v18, %v2611_v17  ;;  %v2663_v17 = vrot.slane %v2655_v41, %v7040_v60  ;;  %v2668_v18 = vrot.slane %v2655_v41, %v7156_v46 }
 0xad4   :  { %v2697_v1 = vrot.slane %v2655_v41, %v7165_v53 }
 0xad5   :  { %v2541_v43 = vadd.f32 %v2540_v35, %v2539_v52  ;;  %v2617_v3 = vrot.slane %v2616_v12, 2  ;;  %v2690_v52 = vrot.slane %v2655_v41, %v7159_v47 }
 0xad7   :  { %v2542_v33 = vrot.slane %v2541_v43, 1  ;;  %v2618_v54 = vadd.f32 %v2617_v3, %v2616_v12 }
 0xad9   :  { %v2543_v6 = vadd.f32 %v2542_v33, %v2541_v43  ;;  %v2619_v9 = vrot.slane %v2618_v54, 1 }
 0xadb   :  { %v2544_v59 = vmul.f32 0.0078125, %v2543_v6  ;;  %v2620_v40 = vadd.f32 %v2619_v9, %v2618_v54  ;;  %v8607_v9 = vld [vmem:[#allocation8_spill] sm:$0xff] }
 0xadd   :  { %v2622_v25 = vmul.f32 %v2544_v59, %v2544_v59  ;;  %v2621_v10 = vmul.f32 0.0078125, %v2620_v40 }
 0xadf   :  { %v2623_v50 = vsub.f32 %v2621_v10, %v2622_v25 }
 0xae1   :  { %v2624_v24 = vmax.f32 %v2623_v50, 0.0 }
 0xae3   :  { %v2626_v61 = vadd.f32 1e-05, %v2624_v24 }
 0xae5   :  { %6836 = vrsqrt.f32 %v2626_v61 }
 0xaf2   :  { %v6837_v28 = vpop.eup %6836 }
 0xaf3   :  { %v2628_v26 = vmul.f32 %v6837_v28, %v2625_v63 }
 0xaf5   :  { %v2630_v56 = vmul.f32 %v2628_v26, %v2544_v59  ;;  %v2636_v32 = vrot.slane %v2628_v26, %v7040_v60  ;;  %v2675_v59 = vrot.slane %v2655_v41, %v8607_v9  ;;  %v2708_v26 = vrot.slane %v2655_v41, %v7183_v42 }
 0xaf7   :  { %v2631_v29 = vsub.f32 %v2629_v55, %v2630_v56  ;;  %v2638_v34 = vmul.f32 %v2636_v32, %v7728_v37  ;;  %v2649_v2 = vmul.f32 %v2636_v32, %v7730_v44  ;;  %v2768_v37 = vld [vmem:[%s7745_s2 + $0x38] sm:$0xff]  ;;  %v8608_v55 = vld [vmem:[#allocation9_spill] sm:$0xff]  ;;  %s5111_s2 = sld [smem:[%s8598_s0 + %s6886_s29]]  }
 0xaf8   :  { %6233 = vmatpush3.msra.mxu0 %v2768_v37  ;;  %6268 = vmatpush3.msra.mxu1 %v2768_v37  ;;  %v2713_v56 = vrot.slane %v2655_v41, %v8608_v55 }
 0xaf9   :  { %v2643_v23 = vrot.slane %v2631_v29, %v7040_v60  ;;  %6234 = vmatprep.subr.mxu0 %v7709_v58  ;;  %6269 = vmatprep.subr.mxu1 %v7709_v58 }
 0xafa   :  { %6235 = vmatpush3.msra.mxu0 %v2767_v30  ;;  %6270 = vmatpush3.msra.mxu1 %v2767_v30 }
 0xafb   :  { %v2645_v16 = vadd.f32 %v2643_v23, %v2638_v34  ;;  %v2650_v4 = vadd.f32 %v2649_v2, %v2643_v23  ;;  %6236 = vmatprep.subr.mxu0 %v7709_v58  ;;  %6271 = vmatprep.subr.mxu1 %v7709_v58 }
 0xafc   :  { %6237 = vmatpush3.msra.mxu0 %v2766_v19  ;;  %6272 = vmatpush3.msra.mxu1 %v2766_v19 }
 0xafd   :  { %v7768_v49 = vmax.f32 %v2645_v16, 0.0  ;;  %v7770_v5 = vmax.f32 %v2650_v4, 0.0  ;;  %6238 = vmatprep.subr.mxu0 %v7709_v58  ;;  %6273 = vmatprep.subr.mxu1 %v7709_v58  ;;  %v5197_v16 = vld [vmem:[%s7851_s18 + $0x8] ss:$0 sm:$0xff]  ;;  %s5115_s18 = sld [smem:[%s8598_s0 + %s6890_s15]]  }
 0xafe   :  { %6239 = vmatpush3.msra.mxu0 %v2765_v22  ;;  %6274 = vmatpush3.msra.mxu1 %v2765_v22 }
 0xaff   :  { %2647 = vst [vmem:[%s5134_s13] sm:$0xff] %v7768_v49  ;;  %2652 = vst [vmem:[%s5134_s13 + $0x8] sm:$0xff] %v7770_v5  ;;  %2680 = vrot.lane.b32.xlu1 %v7768_v49, %s6873_s7  ;;  %6240 = vmatprep.subr.mxu0 %v7709_v58  ;;  %v2691_v33 = vmul.f32 %v2690_v52, %v7768_v49  ;;  %v2740_v2 = vmul.f32 %v2690_v52, %v7770_v5  ;;  %v6794_v52 = vld [vmem:[%s7886_s23 + $0x28] sm:$0xff]   ;;  %s5114_s13 = sld [smem:[%s8598_s0 + %s6889_s10]]  }
 0xb00   :  { %2648 = vst [vmem:[#allocation4 + $0x1] sm:$0xff] %v7768_v49  ;;  %2654 = vst [vmem:[#allocation4 + $0x11] sm:$0xff] %v7770_v5  ;;  %6241 = vmatpush3.msra.mxu0 %v2764_v11  ;;  %6275 = vmatprep.subr.mxu1 %v7709_v58 }
 0xb01   :  { %6242 = vmatprep.subr.mxu0 %v7709_v58  ;;  %6276 = vmatpush3.msra.mxu1 %v2764_v11 }
 0xb02   :  { %6243 = vmatpush3.msra.mxu0 %v2763_v31  ;;  %6277 = vmatprep.subr.mxu1 %v7709_v58 }
 0xb03   :  { %2737 = vrot.lane.b32.xlu1 %v7770_v5, %s6873_s7  ;;  %6244 = vmatprep.subr.mxu0 %v7709_v58 }
 0xb04   :  { %6245 = vmatpush3.msra.mxu0 %v2762_v48  ;;  %6278 = vmatpush3.msra.mxu1 %v2763_v31 }
 0xb05   :  { %6246 = vmatprep.subr.mxu0 %v7709_v58  ;;  %6279 = vmatprep.subr.mxu1 %v7709_v58 }
 0xb06   :  { %6247 = vmatpush3.msra.mxu0 %v2761_v7  ;;  %6280 = vmatpush3.msra.mxu1 %v2762_v48 }
 0xb07   :  { %v7790_v27 = vld [vmem:[#allocation4] sm:$0xff]  ;;  %2692 = vrot.lane.b32.xlu1 %v7768_v49, %s6882_s14  ;;  %v7802_v44 = vld [vmem:[#allocation4 + $0x10] sm:$0xff]  ;;  %6281 = vmatprep.subr.mxu1 %v7709_v58 }
 0xb08   :  { %2658 = vrot.lane.b32.xlu0 %v7790_v27, %s6873_s7  ;;  %v7812_v51 = vld [vmem:[#allocation4 + $0x12] sm:$0xff]  ;;  %v7823_v57 = vld [vmem:[#allocation4 + $0x2] sm:$0xff]  ;;  %6286 = vmatprep.subr.bf16.mxu0 %v7709_v58  ;;  %v2669_v54 = vmul.f32 %v2668_v18, %v7790_v27  ;;  %v2730_v34 = vmul.f32 %v7802_v44, %v2668_v18 }
 0xb09   :  { %6282 = vmatpush3.msra.mxu1 %v2761_v7  ;;  %v2751_v49 = vmul.f32 %v7812_v51, %v2713_v56  ;;  %v2714_v30 = vmul.f32 %v2713_v56, %v7823_v57  ;;  %v6795_v18 = vld [vmem:[%s7886_s23 + $0x20] sm:$0xff]  }
 0xb0a   :  { %6306 = vmatprep.subr.bf16.mxu1 %v7709_v58 }
 0xb0b   :  { %2731 = vrot.lane.b32.xlu1 %v7802_v44, %s6882_s14 }
 0xb0c   :  { %2727 = vrot.lane.b32.xlu0 %v7802_v44, %s6873_s7 }
 0xb0f   :  { %2748 = vrot.lane.b32.xlu1 %v7812_v51, %s6873_s7 }
 0xb10   :  { %2670 = vrot.lane.b32.xlu0 %v7790_v27, %s6882_s14 }
 0xb13   :  { %2752 = vrot.lane.b32.xlu1 %v7812_v51, %s6882_s14 }
 0xb14   :  { %2703 = vrot.lane.b32.xlu0 %v7823_v57, %s6873_s7 }
 0xb18   :  { %2741 = vrot.lane.b32.xlu0 %v7770_v5, %s6882_s14 }
 0xb1c   :  { %2715 = vrot.lane.b32.xlu0 %v7823_v57, %s6882_s14 }
 0xb71   :  { %v2681_v15 = vpop.permute.xlu1 %2680 }
 0xb72   :  { %v2686_v43 = vmul.f32 %v2685_v14, %v2681_v15 }
 0xb74   :  { %v2699_v10 = vadd.f32 %v2691_v33, %v2686_v43  ;;  %v6799_v43 = vld [vmem:[%s7886_s23] sm:$0xff]  }
 0xb75   :  { %v2738_v62 = vpop.permute.xlu1 %2737 }
 0xb76   :  { %v2739_v32 = vmul.f32 %v2738_v62, %v2685_v14  ;;  %v6792_v14 = vld [vmem:[%s7886_s23 + $0x38] sm:$0xff]  }
 0xb78   :  { %v2744_v13 = vadd.f32 %v2740_v2, %v2739_v32 }
 0xb79   :  { %v2693_v36 = vpop.permute.xlu1 %2692 }
 0xb7a   :  { %v2659_v0 = vpop.permute.xlu0 %2658  ;;  %v2698_v6 = vmul.f32 %v2697_v1, %v2693_v36 }
 0xb7b   :  { %v2664_v3 = vmul.f32 %v2663_v17, %v2659_v0 }
 0xb7c   :  { %v2700_v63 = vadd.f32 %v2699_v10, %v2698_v6 }
 0xb7d   :  { %v2732_v12 = vpop.permute.xlu1 %2731  ;;  %v2677_v50 = vadd.f32 %v2669_v54, %v2664_v3 }
 0xb7e   :  { %v2728_v35 = vpop.permute.xlu0 %2727  ;;  %v2733_v21 = vmul.f32 %v2732_v12, %v2675_v59  ;;  %v6798_v12 = vld [vmem:[%s7886_s23 + $0x8] sm:$0xff]  }
 0xb7f   :  { %v2729_v61 = vmul.f32 %v2728_v35, %v2663_v17  ;;  %v6793_v17 = vld [vmem:[%s7886_s23 + $0x30] sm:$0xff]  }
 0xb80   :  { %v6797_v35 = vld [vmem:[%s7886_s23 + $0x10] sm:$0xff]  }
 0xb81   :  { %v2749_v25 = vpop.permute.xlu1 %2748  ;;  %v2734_v39 = vadd.f32 %v2730_v34, %v2729_v61 }
 0xb82   :  { %v2671_v40 = vpop.permute.xlu0 %2670  ;;  %v2750_v38 = vmul.f32 %v2749_v25, %v2708_v26 }
 0xb83   :  { %v2676_v24 = vmul.f32 %v2675_v59, %v2671_v40  ;;  %v2735_v19 = vadd.f32 %v2734_v39, %v2733_v21  ;;  %v2934_v39 = vld [vmem:[%s5110_s28] sm:$0x1] }
 0xb84   :  { %v2755_v22 = vadd.f32 %v2751_v49, %v2750_v38 }
 0xb85   :  { %v2678_v28 = vadd.f32 %v2677_v50, %v2676_v24  ;;  %v2753_v4 = vpop.permute.xlu1 %2752 }
 0xb86   :  { %v2704_v29 = vpop.permute.xlu0 %2703  ;;  %v2754_v37 = vmul.f32 %v5197_v16, %v2753_v4 }
 0xb87   :  { %v2701_v23 = vadd.f32 %v2700_v63, %v2678_v28  ;;  %v2709_v27 = vmul.f32 %v2708_v26, %v2704_v29 }
 0xb88   :  { %v2756_v48 = vadd.f32 %v2755_v22, %v2754_v37 }
 0xb89   :  { %v2722_v31 = vadd.f32 %v2714_v30, %v2709_v27 }
 0xb8a   :  { %v2742_v8 = vpop.permute.xlu0 %2741 }
 0xb8b   :  { %v2743_v20 = vmul.f32 %v2742_v8, %v2697_v1  ;;  %v6796_v1 = vld [vmem:[%s7886_s23 + $0x18] sm:$0xff]   ;;  %s8047_s23 = sld [smem:[%s8598_s0 + %s6891_s19]]  }
 0xb8d   :  { %v2745_v44 = vadd.f32 %v2744_v13, %v2743_v20  ;;  %v2938_v13 = vld [vmem:[%s5111_s2] sm:$0x1] }
 0xb8e   :  { %v2716_v11 = vpop.permute.xlu0 %2715 }
 0xb8f   :  { %v2746_v5 = vadd.f32 %v2745_v44, %v2735_v19  ;;  %v2721_v7 = vmul.f32 %v5197_v16, %v2716_v11 }
 0xb91   :  { %v7869_v15 = vadd.f32 %v2756_v48, %v2746_v5  ;;  %v2723_v62 = vadd.f32 %v2722_v31, %v2721_v7  ;;  %v3124_v48 = vld [vmem:[%s7922_s27 + $0x78] sm:$0xff]  ;;  %v3123_v7 = vld [vmem:[%s7922_s27 + $0x70] sm:$0xff] }
 0xb93   :  { %v7871_v51 = vadd.f32 %v2723_v62, %v2701_v23  ;;  %v2759_v41 = vmul.f32 %v7869_v15, %v7869_v15  ;;  %v3121_v62 = vld [vmem:[%s7922_s27 + $0x60] sm:$0xff] }
 0xb95   :  { %v2725_v0 = vmul.f32 %v7871_v51, %v7871_v51  ;;  %v2758_v57 = vadd.f32 %v7869_v15, %v7871_v51 }
 0xb97   :  { %6249 = vmatmul.mubr.f32.vlgmr.msra.gmra.mxu0 %v2758_v57  ;;  %v2760_v36 = vadd.f32 %v2759_v41, %v2725_v0  ;;  %v3119_v41 = vld [vmem:[%s7922_s27 + $0x50] sm:$0xff]  ;;  %v3118_v0 = vld [vmem:[%s7922_s27 + $0x48] sm:$0xff]  ;;  %v3117_v57 = vld [vmem:[%s7922_s27 + $0x40] sm:$0xff] }
 0xb98   :  { %6302 = vmatprep.mubr.msk.bf16.mxu0 %vm6865_vm0, %v7709_v58  ;;  %6287 = vmatpush3.bf16.msra.mxu0 %v6792_v14 }
 0xb99   :  { %6284 = vmatmul.mubr.f32.vlgmr.msra.gmra.mxu1 %v2760_v36  ;;  %6288 = vmatprep.subr.bf16.mxu0 %v7709_v58  ;;  %v3116_v36 = vld [vmem:[%s7922_s27 + $0x38] sm:$0xff] }
 0xb9a   :  { %6322 = vmatprep.mubr.msk.bf16.mxu1 %vm6865_vm0, %v7709_v58  ;;  %6307 = vmatpush3.bf16.msra.mxu1 %v6792_v14  ;;  %v3115_v14 = vld [vmem:[%s7922_s27 + $0x30] sm:$0xff] }
 0xb9b   :  { %6308 = vmatprep.subr.bf16.mxu1 %v7709_v58 }
 0xb9c   :  { %6289 = vmatpush3.bf16.msra.mxu0 %v6793_v17 }
 0xb9d   :  { %6290 = vmatprep.subr.bf16.mxu0 %v7709_v58 }
 0xb9e   :  { %6309 = vmatpush3.bf16.msra.mxu1 %v6793_v17  ;;  %v3114_v17 = vld [vmem:[%s7922_s27 + $0x28] sm:$0xff] }
 0xb9f   :  { %6310 = vmatprep.subr.bf16.mxu1 %v7709_v58 }
 0xba0   :  { %6291 = vmatpush3.bf16.msra.mxu0 %v6794_v52 }
 0xba1   :  { %6292 = vmatprep.subr.bf16.mxu0 %v7709_v58 }
 0xba2   :  { %6311 = vmatpush3.bf16.msra.mxu1 %v6794_v52  ;;  %v3113_v52 = vld [vmem:[%s7922_s27 + $0x20] sm:$0xff] }
 0xba3   :  { %6312 = vmatprep.subr.bf16.mxu1 %v7709_v58 }
 0xba4   :  { %6293 = vmatpush3.bf16.msra.mxu0 %v6795_v18 }
 0xba5   :  { %6294 = vmatprep.subr.bf16.mxu0 %v7709_v58 }
 0xba6   :  { %6313 = vmatpush3.bf16.msra.mxu1 %v6795_v18  ;;  %v3112_v18 = vld [vmem:[%s7922_s27 + $0x18] sm:$0xff] }
 0xba7   :  { %6314 = vmatprep.subr.bf16.mxu1 %v7709_v58 }
 0xba8   :  { %6295 = vmatpush3.bf16.msra.mxu0 %v6796_v1 }
 0xba9   :  { %6296 = vmatprep.subr.bf16.mxu0 %v7709_v58 }
 0xbaa   :  { %6315 = vmatpush3.bf16.msra.mxu1 %v6796_v1  ;;  %v3111_v1 = vld [vmem:[%s7922_s27 + $0x10] sm:$0xff] }
 0xbab   :  { %6316 = vmatprep.subr.bf16.mxu1 %v7709_v58 }
 0xbac   :  { %6297 = vmatpush3.bf16.msra.mxu0 %v6797_v35 }
 0xbad   :  { %6298 = vmatprep.subr.bf16.mxu0 %v7709_v58 }
 0xbae   :  { %6317 = vmatpush3.bf16.msra.mxu1 %v6797_v35  ;;  %v3110_v35 = vld [vmem:[%s7922_s27 + $0x8] sm:$0xff] }
 0xbaf   :  { %6318 = vmatprep.subr.bf16.mxu1 %v7709_v58 }
 0xbb0   :  { %6299 = vmatpush3.bf16.msra.mxu0 %v6798_v12 }
 0xbb1   :  { %6300 = vmatprep.subr.bf16.mxu0 %v7709_v58 }
 0xbb2   :  { %6319 = vmatpush3.bf16.msra.mxu1 %v6798_v12  ;;  %v3109_v12 = vld [vmem:[%s7922_s27] sm:$0xff] }
 0xbb3   :  { %6320 = vmatprep.subr.bf16.mxu1 %v7709_v58 }
 0xbb4   :  { %6301 = vmatpush3.bf16.msra.mxu0 %v6799_v43 }
 0xbb5   :  { %6326 = vmatprep.subr.mxu0 %v7709_v58 }
 0xbb6   :  { %6321 = vmatpush3.bf16.msra.mxu1 %v6799_v43 }
 0xbb7   :  { %6361 = vmatprep.subr.mxu1 %v7709_v58 }
 0xc57   :  { %v2843_v3 = vpop.f32.mrf.mxu0 }
 0xc58   :  { %v2847_v33 = vrot.slane %v2843_v3, 4 }
 0xc59   :  { %v6250_v54 = vpop.f32.mrf.mxu0  ;;  %v2920_v6 = vpop.f32.mrf.mxu1 }
 0xc5a   :  { %v2848_v59 = vadd.f32 %v2847_v33, %v2843_v3  ;;  %v2924_v40 = vrot.slane %v2920_v6, 4 }
 0xc5b   :  { %v6285_v25 = vpop.f32.mrf.mxu1 }
 0xc5c   :  { %v2849_v10 = vrot.slane %v2848_v59, 2  ;;  %v2925_v50 = vadd.f32 %v2924_v40, %v2920_v6 }
 0xc5e   :  { %v2850_v24 = vadd.f32 %v2849_v10, %v2848_v59  ;;  %v2926_v61 = vrot.slane %v2925_v50, 2 }
 0xc60   :  { %v2851_v63 = vrot.slane %v2850_v24, 1  ;;  %v2927_v28 = vadd.f32 %v2926_v61, %v2925_v50 }
 0xc62   :  { %v2852_v26 = vadd.f32 %v2851_v63, %v2850_v24  ;;  %v2928_v56 = vrot.slane %v2927_v28, 1  ;;  %v7999_v63 = vld [vmem:[%s7996_s9 + $0x78] sm:$0xff] }
 0xc64   :  { %v2853_v32 = vmul.f32 0.0078125, %v2852_v26  ;;  %v2929_v29 = vadd.f32 %v2928_v56, %v2927_v28  ;;  %v8002_v28 = vld [vmem:[%s7996_s9 + $0x70] sm:$0xff]  ;;  %v8007_v26 = vld [vmem:[%s7996_s9 + $0x68] sm:$0xff]  ;;  %v8012_v56 = vld [vmem:[%s7996_s9 + $0x60] sm:$0xff] }
 0xc66   :  { %v2931_v34 = vmul.f32 %v2853_v32, %v2853_v32  ;;  %v2930_v23 = vmul.f32 0.0078125, %v2929_v29  ;;  %v8022_v29 = vld [vmem:[%s7996_s9 + $0x50] sm:$0xff] }
 0xc68   :  { %v2932_v2 = vsub.f32 %v2930_v23, %v2931_v34  ;;  %v8027_v34 = vld [vmem:[%s7996_s9 + $0x48] sm:$0xff]  ;;  %v8032_v23 = vld [vmem:[%s7996_s9 + $0x40] sm:$0xff] }
 0xc6a   :  { %v2933_v16 = vmax.f32 %v2932_v2, 0.0 }
 0xc6c   :  { %v2935_v4 = vadd.f32 1e-05, %v2933_v16 }
 0xc6e   :  { %6838 = vrsqrt.f32 %v2935_v4 }
 0xc7b   :  { %v6839_v38 = vpop.eup %6838 }
 0xc7c   :  { %v2937_v49 = vmul.f32 %v6839_v38, %v2934_v39 }
 0xc7e   :  { %v2939_v8 = vmul.f32 %v2937_v49, %v2853_v32  ;;  %v2961_v21 = vrot.slane %v2937_v49, %v7040_v60  ;;  %v8017_v32 = vld [vmem:[%s7996_s9 + $0x58] sm:$0xff] }
 0xc80   :  { %v2940_v27 = vsub.f32 %v2938_v13, %v2939_v8  ;;  %v2963_v20 = vmul.f32 %v2961_v21, %v7871_v51  ;;  %v3062_v30 = vmul.f32 %v2961_v21, %v7869_v15  ;;  %v3122_v15 = vld [vmem:[%s7922_s27 + $0x68] sm:$0xff]  ;;  %v3120_v51 = vld [vmem:[%s7922_s27 + $0x58] sm:$0xff] }
 0xc82   :  { %v2968_v37 = vrot.slane %v2940_v27, %v7040_v60 }
 0xc84   :  { %v2970_v19 = vadd.f32 %v2968_v37, %v2963_v20  ;;  %v3063_v22 = vadd.f32 %v3062_v30, %v2968_v37 }
 0xc86   :  { %v2971_v44 = vmax.f32 %v2970_v19, 0.0  ;;  %v3064_v11 = vmax.f32 %v3063_v22, 0.0 }
 0xc88   :  { %v2972_v31 = vpack.c.bf16 %v2971_v44, %v2971_v44  ;;  %v3065_v5 = vpack.c.bf16 %v3064_v11, %v3064_v11 }
 0xc8a   :  { %6303 = vmatmul.mubr.bf16.vlgmr.msra.gmra.mxu0 %v2972_v31  ;;  %6323 = vmatmul.mubr.bf16.vlgmr.msra.gmra.mxu1 %v3065_v5 }
 0xc8b   :  { %6327 = vmatpush3.msra.mxu0 %v3124_v48  ;;  %6362 = vmatpush3.msra.mxu1 %v3124_v48 }
 0xc8c   :  { %6328 = vmatprep.subr.mxu0 %v7709_v58  ;;  %6363 = vmatprep.subr.mxu1 %v7709_v58 }
 0xc8d   :  { %6329 = vmatpush3.msra.mxu0 %v3123_v7  ;;  %6364 = vmatpush3.msra.mxu1 %v3123_v7 }
 0xc8e   :  { %6330 = vmatprep.subr.mxu0 %v7709_v58  ;;  %6365 = vmatprep.subr.mxu1 %v7709_v58 }
 0xc8f   :  { %6331 = vmatpush3.msra.mxu0 %v3122_v15  ;;  %6366 = vmatpush3.msra.mxu1 %v3122_v15  ;;  %v3282_v15 = vld [vmem:[%s5114_s13] sm:$0x1] }
 0xc90   :  { %6332 = vmatprep.subr.mxu0 %v7709_v58  ;;  %6367 = vmatprep.subr.mxu1 %v7709_v58 }
 0xc91   :  { %6333 = vmatpush3.msra.mxu0 %v3121_v62  ;;  %6368 = vmatpush3.msra.mxu1 %v3121_v62 }
 0xc92   :  { %6334 = vmatprep.subr.mxu0 %v7709_v58  ;;  %6369 = vmatprep.subr.mxu1 %v7709_v58 }
 0xc93   :  { %6335 = vmatpush3.msra.mxu0 %v3120_v51  ;;  %6370 = vmatpush3.msra.mxu1 %v3120_v51 }
 0xc94   :  { %6336 = vmatprep.subr.mxu0 %v7709_v58  ;;  %6371 = vmatprep.subr.mxu1 %v7709_v58 }
 0xc95   :  { %6337 = vmatpush3.msra.mxu0 %v3119_v41  ;;  %6372 = vmatpush3.msra.mxu1 %v3119_v41  ;;  %v3286_v41 = vld [vmem:[%s5115_s18] sm:$0x1] }
 0xc96   :  { %6338 = vmatprep.subr.mxu0 %v7709_v58  ;;  %6373 = vmatprep.subr.mxu1 %v7709_v58 }
 0xc97   :  { %6339 = vmatpush3.msra.mxu0 %v3118_v0  ;;  %6374 = vmatpush3.msra.mxu1 %v3118_v0 }
 0xc98   :  { %6340 = vmatprep.subr.mxu0 %v7709_v58  ;;  %6375 = vmatprep.subr.mxu1 %v7709_v58 }
 0xc99   :  { %6341 = vmatpush3.msra.mxu0 %v3117_v57  ;;  %6376 = vmatpush3.msra.mxu1 %v3117_v57 }
 0xc9a   :  { %6342 = vmatprep.subr.mxu0 %v7709_v58  ;;  %6377 = vmatprep.subr.mxu1 %v7709_v58 }
 0xc9b   :  { %6343 = vmatpush3.msra.mxu0 %v3116_v36  ;;  %6378 = vmatpush3.msra.mxu1 %v3116_v36 }
 0xc9c   :  { %6344 = vmatprep.subr.mxu0 %v7709_v58  ;;  %6379 = vmatprep.subr.mxu1 %v7709_v58 }
 0xc9d   :  { %6345 = vmatpush3.msra.mxu0 %v3115_v14  ;;  %6380 = vmatpush3.msra.mxu1 %v3115_v14  ;;  %v8051_v14 = vld [vmem:[%s8047_s23] sm:$0xff] }
 0xc9e   :  { %6346 = vmatprep.subr.mxu0 %v7709_v58  ;;  %6381 = vmatprep.subr.mxu1 %v7709_v58 }
 0xc9f   :  { %6347 = vmatpush3.msra.mxu0 %v3114_v17  ;;  %6382 = vmatpush3.msra.mxu1 %v3114_v17 }
 0xca0   :  { %6348 = vmatprep.subr.mxu0 %v7709_v58  ;;  %6383 = vmatprep.subr.mxu1 %v7709_v58 }
 0xca1   :  { %6349 = vmatpush3.msra.mxu0 %v3113_v52  ;;  %6384 = vmatpush3.msra.mxu1 %v3113_v52 }
 0xca2   :  { %6350 = vmatprep.subr.mxu0 %v7709_v58  ;;  %6385 = vmatprep.subr.mxu1 %v7709_v58 }
 0xca3   :  { %6351 = vmatpush3.msra.mxu0 %v3112_v18  ;;  %6386 = vmatpush3.msra.mxu1 %v3112_v18 }
 0xca4   :  { %6352 = vmatprep.subr.mxu0 %v7709_v58  ;;  %6387 = vmatprep.subr.mxu1 %v7709_v58 }
 0xca5   :  { %6353 = vmatpush3.msra.mxu0 %v3111_v1  ;;  %6388 = vmatpush3.msra.mxu1 %v3111_v1 }
 0xca6   :  { %6354 = vmatprep.subr.mxu0 %v7709_v58  ;;  %6389 = vmatprep.subr.mxu1 %v7709_v58 }
 0xca7   :  { %6358 = vmatprep.mubr.msk.f32.mxu0 %vm6865_vm0, %v7709_v58  ;;  %6393 = vmatprep.mubr.msk.f32.mxu1 %vm6865_vm0, %v7709_v58 }
 0xca8   :  { %6355 = vmatpush3.msra.mxu0 %v3110_v35  ;;  %6390 = vmatpush3.msra.mxu1 %v3110_v35 }
 0xca9   :  { %6356 = vmatprep.subr.mxu0 %v7709_v58  ;;  %6391 = vmatprep.subr.mxu1 %v7709_v58 }
 0xcaa   :  { %6357 = vmatpush3.msra.mxu0 %v3109_v12  ;;  %6392 = vmatpush3.msra.mxu1 %v3109_v12  ;;  %v3362_v12 = vrot.slane %v8051_v14, %v7159_v47 }
 0xcab   :  { %6396 = vmatprep.subr.mxu0 %v7709_v58  ;;  %6431 = vmatprep.subr.mxu1 %v7709_v58 }
 0xd4a   :  { %v7979_v43 = vpop.f32.mrf.mxu0  ;;  %v7981_v3 = vpop.f32.mrf.mxu1 }
 0xd4b   :  { %v3061_v33 = vmul.f32 %v7979_v43, %v7979_v43  ;;  %v3106_v54 = vadd.f32 %v7981_v3, %v7979_v43  ;;  %v3107_v6 = vmul.f32 %v7981_v3, %v7981_v3 }
 0xd4c   :  { %v6304_v59 = vpop.f32.mrf.mxu0  ;;  %v6324_v40 = vpop.f32.mrf.mxu1 }
 0xd4d   :  { %v3108_v25 = vadd.f32 %v3107_v6, %v3061_v33  ;;  %6359 = vmatmul.mubr.f32.vlgmr.msra.gmra.mxu0 %v3106_v54  ;;  %v8059_v33 = vld [vmem:[%s7996_s9 + $0x38] sm:$0xff]  ;;  %v8062_v54 = vld [vmem:[%s7996_s9 + $0x30] sm:$0xff]  ;;  %v8072_v40 = vld [vmem:[%s7996_s9 + $0x28] sm:$0xff] }
 0xd4e   :  { %v3058_v10 = vpop.f32.mrf.mxu0  ;;  %v3103_v50 = vpop.f32.mrf.mxu1  ;;  %6428 = vmatprep.mubr.msk.f32.mxu0 %vm6865_vm0, %v7709_v58  ;;  %6397 = vmatpush3.msra.mxu0 %v7999_v63 }
 0xd4f   :  { %6394 = vmatmul.mubr.f32.vlgmr.msra.gmra.mxu1 %v3108_v25  ;;  %6398 = vmatprep.subr.mxu0 %v7709_v58  ;;  %v8077_v25 = vld [vmem:[%s7996_s9 + $0x20] sm:$0xff]  ;;  %v3340_v10 = vrot.slane %v8051_v14, %v7156_v46  ;;  %v3385_v50 = vrot.slane %v8051_v14, %v8608_v55 }
 0xd50   :  { %v6305_v24 = vpop.f32.mrf.mxu0  ;;  %v6325_v61 = vpop.f32.mrf.mxu1  ;;  %6433 = vmatprep.mubr.msk.f32.mxu1 %vm6865_vm0, %v7709_v58  ;;  %6399 = vmatpush3.msra.mxu0 %v8002_v28 }
 0xd51   :  { %6400 = vmatprep.subr.mxu0 %v7709_v58  ;;  %v8087_v24 = vld [vmem:[%s7996_s9 + $0x18] sm:$0xff] }
 0xd52   :  { %6401 = vmatpush3.msra.mxu0 %v8007_v26 }
 0xd53   :  { %6402 = vmatprep.subr.mxu0 %v7709_v58 }
 0xd54   :  { %6403 = vmatpush3.msra.mxu0 %v8012_v56 }
 0xd55   :  { %6404 = vmatprep.subr.mxu0 %v7709_v58 }
 0xd56   :  { %6405 = vmatpush3.msra.mxu0 %v8017_v32 }
 0xd57   :  { %6406 = vmatprep.subr.mxu0 %v7709_v58 }
 0xd58   :  { %6407 = vmatpush3.msra.mxu0 %v8022_v29 }
 0xd59   :  { %6408 = vmatprep.subr.mxu0 %v7709_v58 }
 0xd5a   :  { %6409 = vmatpush3.msra.mxu0 %v8027_v34 }
 0xd5b   :  { %6410 = vmatprep.subr.mxu0 %v7709_v58 }
 0xd5c   :  { %6411 = vmatpush3.msra.mxu0 %v8032_v23 }
 0xd5d   :  { %6412 = vmatprep.subr.mxu0 %v7709_v58 }
 0xd5e   :  { %6413 = vmatpush3.msra.mxu0 %v8059_v33 }
 0xe0d   :  { %v3191_v2 = vpop.f32.mrf.mxu0 }
 0xe0e   :  { %v3195_v16 = vrot.slane %v3191_v2, 4 }
 0xe0f   :  { %v6360_v4 = vpop.f32.mrf.mxu0  ;;  %v3268_v39 = vpop.f32.mrf.mxu1 }
 0xe10   :  { %v3196_v38 = vadd.f32 %v3195_v16, %v3191_v2  ;;  %v3272_v49 = vrot.slane %v3268_v39, 4 }
 0xe11   :  { %v6395_v13 = vpop.f32.mrf.mxu1 }
 0xe12   :  { %v3197_v8 = vrot.slane %v3196_v38, 2  ;;  %v3273_v21 = vadd.f32 %v3272_v49, %v3268_v39  ;;  %v8100_v13 = vld [vmem:[%s7996_s9 + $0x8] sm:$0xff] }
 0xe14   :  { %v3198_v27 = vadd.f32 %v3197_v8, %v3196_v38  ;;  %v3274_v20 = vrot.slane %v3273_v21, 2  ;;  %v8094_v38 = vld [vmem:[%s7996_s9 + $0x10] sm:$0xff]  ;;  %v8105_v8 = vld [vmem:[%s7996_s9] sm:$0xff] }
 0xe16   :  { %v3199_v37 = vrot.slane %v3198_v27, 1  ;;  %v3275_v30 = vadd.f32 %v3274_v20, %v3273_v21  ;;  %v3357_v20 = vrot.slane %v8051_v14, %v7153_v45 }
 0xe18   :  { %v3200_v19 = vadd.f32 %v3199_v37, %v3198_v27  ;;  %v3276_v22 = vrot.slane %v3275_v30, 1  ;;  %v3335_v37 = vrot.slane %v8051_v14, %v7040_v60 }
 0xe1a   :  { %v3201_v44 = vmul.f32 0.0078125, %v3200_v19  ;;  %v3277_v11 = vadd.f32 %v3276_v22, %v3275_v30  ;;  %v3369_v30 = vrot.slane %v8051_v14, %v7165_v53 }
 0xe1c   :  { %v3279_v31 = vmul.f32 %v3201_v44, %v3201_v44  ;;  %v3278_v5 = vmul.f32 0.0078125, %v3277_v11 }
 0xe1e   :  { %v3280_v58 = vsub.f32 %v3278_v5, %v3279_v31  ;;  %v3347_v31 = vrot.slane %v8051_v14, %v8607_v9 }
 0xe20   :  { %v3281_v48 = vmax.f32 %v3280_v58, 0.0 }
 0xe22   :  { %v3283_v7 = vadd.f32 1e-05, %v3281_v48 }
 0xe24   :  { %6840 = vrsqrt.f32 %v3283_v7 }
 0xe31   :  { %v6841_v62 = vpop.eup %6840 }
 0xe32   :  { %v3285_v51 = vmul.f32 %v6841_v62, %v3282_v15  ;;  %v3380_v15 = vrot.slane %v8051_v14, %v7183_v42 }
 0xe34   :  { %v3287_v0 = vmul.f32 %v3285_v51, %v3201_v44  ;;  %v3293_v57 = vrot.slane %v3285_v51, %v7040_v60 }
 0xe36   :  { %v3288_v36 = vsub.f32 %v3286_v41, %v3287_v0  ;;  %v3295_v17 = vmul.f32 %v3293_v57, %v7979_v43  ;;  %v3305_v18 = vmul.f32 %v3293_v57, %v7981_v3  ;;  %v8065_v43 = vld [vmem:[#allocation5] sm:$0xff] }
 0xe37   :  { %6414 = vmatprep.subr.mxu0 %v8065_v43 }
 0xe38   :  { %v3300_v52 = vrot.slane %v3288_v36, %v7040_v60  ;;  %6415 = vmatpush3.msra.mxu0 %v8062_v54 }
 0xe39   :  { %6416 = vmatprep.subr.mxu0 %v8065_v43 }
 0xe3a   :  { %v3302_v1 = vadd.f32 %v3300_v52, %v3295_v17  ;;  %v3306_v35 = vadd.f32 %v3305_v18, %v3300_v52  ;;  %6417 = vmatpush3.msra.mxu0 %v8072_v40  ;;  %v5206_v18 = vld [vmem:[%s8047_s23 + $0x8] ss:$0 sm:$0xff] }
 0xe3b   :  { %6418 = vmatprep.subr.mxu0 %v8065_v43 }
 0xe3c   :  { %v3303_v6 = vmax.f32 %v3302_v1, 0.0  ;;  %v3307_v59 = vmax.f32 %v3306_v35, 0.0  ;;  %6419 = vmatpush3.msra.mxu0 %v8077_v25 }
 0xe3d   :  { %6420 = vmatprep.subr.mxu0 %v8065_v43 }
 0xe3e   :  { %3304 = vst [vmem:[#allocation5 + $0x1] sm:$0xff] %v3303_v6  ;;  %3309 = vst [vmem:[#allocation5 + $0x11] sm:$0xff] %v3307_v59  ;;  %3352 = vrot.lane.b32.xlu1 %v3303_v6, %s6873_s7  ;;  %v3556_v3 = vmul.f32 %v3362_v12, %v3307_v59  ;;  %6421 = vmatpush3.msra.mxu0 %v8087_v24  ;;  %v3363_v5 = vmul.f32 %v3362_v12, %v3303_v6 }
 0xe3f   :  { %6422 = vmatprep.subr.mxu0 %v8065_v43 }
 0xe40   :  { %6423 = vmatpush3.msra.mxu0 %v8094_v38 }
 0xe41   :  { %6424 = vmatprep.subr.mxu0 %v8065_v43 }
 0xe42   :  { %3364 = vrot.lane.b32.xlu1 %v3303_v6, %s6882_s14  ;;  %6425 = vmatpush3.msra.mxu0 %v8100_v13 }
 0xe43   :  { %6426 = vmatprep.subr.mxu0 %v8065_v43 }
 0xe44   :  { %6427 = vmatpush3.msra.mxu0 %v8105_v8 }
 0xe45   :  { %v3329_v61 = vld [vmem:[#allocation5] sm:$0xff]  ;;  %v3542_v16 = vld [vmem:[#allocation5 + $0x10] sm:$0xff]  ;;  %6471 = vmatprep.subr.mxu0 %v8065_v43 }
 0xe46   :  { %v3374_v2 = vld [vmem:[#allocation5 + $0x2] sm:$0xff]  ;;  %3330 = vrot.lane.b32.xlu0 %v3329_v61, %s6873_s7  ;;  %v3546_v4 = vmul.f32 %v3542_v16, %v3340_v10  ;;  %v3563_v39 = vld [vmem:[#allocation5 + $0x12] sm:$0xff]  ;;  %v3341_v58 = vmul.f32 %v3340_v10, %v3329_v61 }
 0xe47   :  { %3387 = vrot.lane.b32.xlu1 %v3374_v2, %s6882_s14  ;;  %v8096_v49 = vmul.f32 %v3563_v39, %v3385_v50 }
 0xe4a   :  { %3342 = vrot.lane.b32.xlu0 %v3329_v61, %s6882_s14 }
 0xe4b   :  { %3553 = vrot.lane.b32.xlu1 %v3307_v59, %s6873_s7 }
 0xe4e   :  { %3375 = vrot.lane.b32.xlu0 %v3374_v2, %s6873_s7 }
 0xe4f   :  { %3557 = vrot.lane.b32.xlu1 %v3307_v59, %s6882_s14  ;;  %v3386_v59 = vmul.f32 %v3385_v50, %v3374_v2 }
 0xe52   :  { %3543 = vrot.lane.b32.xlu0 %v3542_v16, %s6873_s7 }
 0xe53   :  { %3568 = vrot.lane.b32.xlu1 %v3563_v39, %s6882_s14 }
 0xe56   :  { %3547 = vrot.lane.b32.xlu0 %v3542_v16, %s6882_s14 }
 0xe5a   :  { %3564 = vrot.lane.b32.xlu0 %v3563_v39, %s6873_s7  ;;  %s6892_s7 = smov 32  }
 0xe5b   :  { %s5117_s25 = sld [smem:[%s8598_s0 + %s6892_s7]]  }
 0xeb0   :  { %v3353_v21 = vpop.permute.xlu1 %3352 }
 0xeb1   :  { %v3358_v44 = vmul.f32 %v3357_v20, %v3353_v21 }
 0xeb3   :  { %v3371_v51 = vadd.f32 %v3363_v5, %v3358_v44 }
 0xeb4   :  { %v3365_v27 = vpop.permute.xlu1 %3364 }
 0xeb5   :  { %v3370_v48 = vmul.f32 %v3369_v30, %v3365_v27 }
 0xeb7   :  { %v3372_v36 = vadd.f32 %v3371_v51, %v3370_v48  ;;  %v6801_v51 = vld [vmem:[%s5122_s4 + $0x10] sm:$0xff]  }
 0xeb8   :  { %v3331_v19 = vpop.permute.xlu0 %3330 }
 0xeb9   :  { %v3388_v22 = vpop.permute.xlu1 %3387  ;;  %v3336_v11 = vmul.f32 %v3335_v37, %v3331_v19 }
 0xeba   :  { %v3393_v10 = vmul.f32 %v5206_v18, %v3388_v22 }
 0xebb   :  { %v3349_v41 = vadd.f32 %v3341_v58, %v3336_v11 }
 0xebc   :  { %v3343_v7 = vpop.permute.xlu0 %3342 }
 0xebd   :  { %v3554_v62 = vpop.permute.xlu1 %3553  ;;  %v3348_v0 = vmul.f32 %v3347_v31, %v3343_v7 }
 0xebe   :  { %v3555_v57 = vmul.f32 %v3554_v62, %v3357_v20  ;;  %v6800_v62 = vld [vmem:[%s5122_s4 + $0x18] sm:$0xff]  }
 0xebf   :  { %v3350_v17 = vadd.f32 %v3349_v41, %v3348_v0  ;;  %v6802_v41 = vld [vmem:[%s5122_s4 + $0x8] sm:$0xff]   ;;  %v6803_v0 = vld [vmem:[%s5122_s4] sm:$0xff]   ;;  %s6902_s4 = smov 96  }
 0xec0   :  { %v3560_v52 = vadd.f32 %v3556_v3, %v3555_v57  ;;  %v3376_v1 = vpop.permute.xlu0 %3375 }
 0xec1   :  { %v3558_v35 = vpop.permute.xlu1 %3557  ;;  %v3373_v16 = vadd.f32 %v3372_v36, %v3350_v17  ;;  %v3381_v12 = vmul.f32 %v3380_v15, %v3376_v1 }
 0xec2   :  { %v3559_v6 = vmul.f32 %v3558_v35, %v3369_v30 }
 0xec3   :  { %v3394_v61 = vadd.f32 %v3386_v59, %v3381_v12 }
 0xec4   :  { %v3561_v39 = vadd.f32 %v3560_v52, %v3559_v6  ;;  %v3544_v21 = vpop.permute.xlu0 %3543 }
 0xec5   :  { %v3395_v14 = vadd.f32 %v3394_v61, %v3393_v10  ;;  %v3545_v27 = vmul.f32 %v3544_v21, %v3335_v37  ;;  %v3569_v5 = vpop.permute.xlu1 %3568 }
 0xec6   :  { %v3570_v30 = vmul.f32 %v5206_v18, %v3569_v5 }
 0xec7   :  { %v3396_v19 = vadd.f32 %v3395_v14, %v3373_v16  ;;  %v3550_v44 = vadd.f32 %v3546_v4, %v3545_v27  ;;  %v8136_v4 = vld [vmem:[%s5117_s25] sm:$0xf]  ;;  %s6900_s25 = smov 40  }
 0xec8   :  { %v3548_v11 = vpop.permute.xlu0 %3547  ;;  %s5125_s29 = sld [smem:[%s8598_s0 + %s6900_s25]]  }
 0xec9   :  { %v3549_v20 = vmul.f32 %v3548_v11, %v3347_v31  ;;  %6429 = vmatmul.mubr.f32.vlgmr.msra.gmra.mxu0 %v3396_v19 }
 0xeca   :  { %6473 = vmatprep.mubr.msk.f32.mxu0 %vm6865_vm0, %v8065_v43 }
 0xecb   :  { %v3551_v3 = vadd.f32 %v3550_v44, %v3549_v20 }
 0xecc   :  { %v3565_v50 = vpop.permute.xlu0 %3564 }
 0xecd   :  { %v3562_v2 = vadd.f32 %v3561_v39, %v3551_v3  ;;  %v3566_v58 = vmul.f32 %v3565_v50, %v3380_v15 }
 0xecf   :  { %v3571_v22 = vadd.f32 %v8096_v49, %v3566_v58 }
 0xed1   :  { %v3572_v48 = vadd.f32 %v3571_v22, %v3570_v30  ;;  %v3895_v22 = vld [vmem:[%s5121_s11] sm:$0x1]  ;;  %s6906_s11 = smov 46  }
 0xed2   :  { %s8478_s15 = sld [smem:[%s8598_s0 + %s6906_s11]]  }
 0xed3   :  { %v3573_v7 = vadd.f32 %v3572_v48, %v3562_v2  ;;  %v3891_v2 = vld [vmem:[%s5120_s6] sm:$0x1]  ;;  %s6904_s6 = smov 45  }
 0xed4   :  { %s8457_s10 = sld [smem:[%s8598_s0 + %s6904_s6]]  }
 0xf89   :  { %v3463_v37 = vpop.f32.mrf.mxu0 }
 0xf8a   :  { %6432 = vmatpush3.msra.mxu1 %v3463_v37 }
 0xf8b   :  { %v6430_v31 = vpop.f32.mrf.mxu0  ;;  %6434 = vmatmul.mubr.msk.f32.vlgmr.msra.gmra.mxu1 %vm3467_vm3, %v8136_v4  ;;  %6436 = vmatprep.subr.mxu1 %v8065_v43 }
 0xf8c   :  { %6437 = vmatpush3.msra.mxu1 %v7999_v63  ;;  %6468 = vmatprep.mubr.msk.f32.mxu1 %vm6865_vm0, %v8065_v43  ;;  %v3724_v63 = vld [vmem:[%s8180_s30 + $0x38] sm:$0xff] }
 0xf8d   :  { %6438 = vmatprep.subr.mxu1 %v8065_v43 }
 0xf8e   :  { %6439 = vmatpush3.msra.mxu1 %v8002_v28  ;;  %v3723_v28 = vld [vmem:[%s8180_s30 + $0x30] sm:$0xff] }
 0xf8f   :  { %6440 = vmatprep.subr.mxu1 %v8065_v43 }
 0xf90   :  { %6441 = vmatpush3.msra.mxu1 %v8007_v26  ;;  %v3722_v26 = vld [vmem:[%s8180_s30 + $0x28] sm:$0xff] }
 0xf91   :  { %6442 = vmatprep.subr.mxu1 %v8065_v43 }
 0xf92   :  { %6443 = vmatpush3.msra.mxu1 %v8012_v56  ;;  %v3721_v56 = vld [vmem:[%s8180_s30 + $0x20] sm:$0xff] }
 0xf93   :  { %6444 = vmatprep.subr.mxu1 %v8065_v43 }
 0xf94   :  { %6445 = vmatpush3.msra.mxu1 %v8017_v32  ;;  %v3720_v32 = vld [vmem:[%s8180_s30 + $0x18] sm:$0xff] }
 0xf95   :  { %6446 = vmatprep.subr.mxu1 %v8065_v43 }
 0xf96   :  { %6447 = vmatpush3.msra.mxu1 %v8022_v29  ;;  %v3719_v29 = vld [vmem:[%s8180_s30 + $0x10] sm:$0xff] }
 0xf97   :  { %6448 = vmatprep.subr.mxu1 %v8065_v43 }
 0xf98   :  { %6449 = vmatpush3.msra.mxu1 %v8027_v34 }
 0xf99   :  { %6450 = vmatprep.subr.mxu1 %v8065_v43 }
 0xf9a   :  { %6451 = vmatpush3.msra.mxu1 %v8032_v23 }
 0xf9b   :  { %6452 = vmatprep.subr.mxu1 %v8065_v43 }
 0xf9c   :  { %6453 = vmatpush3.msra.mxu1 %v8059_v33 }
 0xf9d   :  { %6454 = vmatprep.subr.mxu1 %v8065_v43 }
 0xf9e   :  { %6455 = vmatpush3.msra.mxu1 %v8062_v54 }
 0xf9f   :  { %6456 = vmatprep.subr.mxu1 %v8065_v43 }
 0xfa0   :  { %6457 = vmatpush3.msra.mxu1 %v8072_v40  ;;  %v3718_v40 = vld [vmem:[%s8180_s30 + $0x8] sm:$0xff] }
 0xfa1   :  { %6458 = vmatprep.subr.mxu1 %v8065_v43 }
 0xfa2   :  { %6459 = vmatpush3.msra.mxu1 %v8077_v25  ;;  %v3717_v25 = vld [vmem:[%s8180_s30] sm:$0xff]  ;;  %s6901_s30 = smov 50  }
 0xfa3   :  { %6460 = vmatprep.subr.mxu1 %v8065_v43  ;;  %s5135_s3 = sld [smem:[%s8598_s0 + %s6901_s30]]  }
 0xfa4   :  { %6461 = vmatpush3.msra.mxu1 %v8087_v24 }
 0xfa5   :  { %6462 = vmatprep.subr.mxu1 %v8065_v43 }
 0xfa6   :  { %6463 = vmatpush3.msra.mxu1 %v8094_v38 }
 0xfa7   :  { %6464 = vmatprep.subr.mxu1 %v8065_v43 }
 0xfa8   :  { %6465 = vmatpush3.msra.mxu1 %v8100_v13 }
 0xfa9   :  { %6466 = vmatprep.subr.mxu1 %v8065_v43 }
 0xfaa   :  { %6467 = vmatpush3.msra.mxu1 %v8105_v8 }
 0xfab   :  { %6469 = vmatmul.mubr.f32.vlgmr.msra.gmra.mxu1 %v3573_v7  ;;  %6495 = vmatprep.subr.mxu1 %v8065_v43 }
 0xfac   :  { %6511 = vmatprep.mubr.msk.f32.mxu1 %vm6865_vm0, %v8065_v43  ;;  %6496 = vmatpush3.msra.mxu1 %v3724_v63 }
 0xfad   :  { %6497 = vmatprep.subr.mxu1 %v8065_v43 }
 0xfae   :  { %6498 = vmatpush3.msra.mxu1 %v3723_v28 }
 0xfaf   :  { %6499 = vmatprep.subr.mxu1 %v8065_v43 }
 0xfb0   :  { %6500 = vmatpush3.msra.mxu1 %v3722_v26 }
 0xfb1   :  { %6501 = vmatprep.subr.mxu1 %v8065_v43 }
 0xfb2   :  { %6502 = vmatpush3.msra.mxu1 %v3721_v56 }
 0xfb3   :  { %6503 = vmatprep.subr.mxu1 %v8065_v43 }
 0xfb4   :  { %6504 = vmatpush3.msra.mxu1 %v3720_v32 }
 0xfb5   :  { %6505 = vmatprep.subr.mxu1 %v8065_v43 }
 0xfb6   :  { %6506 = vmatpush3.msra.mxu1 %v3719_v29 }
 0xfb7   :  { %6507 = vmatprep.subr.mxu1 %v8065_v43 }
 0xfb8   :  { %6508 = vmatpush3.msra.mxu1 %v3718_v40 }
 0xfb9   :  { %6509 = vmatprep.subr.mxu1 %v8065_v43 }
 0xfba   :  { %6510 = vmatpush3.msra.mxu1 %v3717_v25 }
 0xfbb   :  { %6526 = vmatprep.subr.bf16.mxu1 %v8065_v43 }
0x104b   :  { %v8194_v34 = vpop.f32.mrf.mxu1 }
0x104c   :  { %v3541_v38 = vmul.f32 %v8194_v34, %v8194_v34 }
0x104d   :  { %v6435_v23 = vpop.f32.mrf.mxu1 }
0x106b   :  { %v3640_v33 = vpop.f32.mrf.mxu1 }
0x106c   :  { %6472 = vmatpush3.msra.mxu0 %v3640_v33  ;;  %v4055_v33 = vld [vmem:[%s8248_s16 + $0x78] sm:$0xff] }
0x106d   :  { %v6470_v54 = vpop.f32.mrf.mxu1  ;;  %6474 = vmatmul.mubr.msk.f32.vlgmr.msra.gmra.mxu0 %vm3467_vm3, %v8136_v4  ;;  %6476 = vmatprep.subr.mxu0 %v8065_v43 }
0x106e   :  { %6477 = vmatpush3.msra.mxu0 %v3724_v63  ;;  %6492 = vmatprep.mubr.msk.f32.mxu0 %vm6865_vm0, %v8065_v43  ;;  %v4054_v54 = vld [vmem:[%s8248_s16 + $0x70] sm:$0xff] }
0x106f   :  { %6478 = vmatprep.subr.mxu0 %v8065_v43 }
0x1070   :  { %6479 = vmatpush3.msra.mxu0 %v3723_v28 }
0x1071   :  { %6480 = vmatprep.subr.mxu0 %v8065_v43 }
0x1072   :  { %6481 = vmatpush3.msra.mxu0 %v3722_v26 }
0x1073   :  { %6482 = vmatprep.subr.mxu0 %v8065_v43 }
0x1074   :  { %6483 = vmatpush3.msra.mxu0 %v3721_v56 }
0x1075   :  { %6484 = vmatprep.subr.mxu0 %v8065_v43 }
0x1076   :  { %6485 = vmatpush3.msra.mxu0 %v3720_v32 }
0x1077   :  { %6486 = vmatprep.subr.mxu0 %v8065_v43 }
0x1078   :  { %6487 = vmatpush3.msra.mxu0 %v3719_v29 }
0x1079   :  { %6488 = vmatprep.subr.mxu0 %v8065_v43 }
0x107a   :  { %6489 = vmatpush3.msra.mxu0 %v3718_v40  ;;  %v4052_v40 = vld [vmem:[%s8248_s16 + $0x60] sm:$0xff] }
0x107b   :  { %6490 = vmatprep.subr.mxu0 %v8065_v43 }
0x107c   :  { %6491 = vmatpush3.msra.mxu0 %v3717_v25  ;;  %v4051_v25 = vld [vmem:[%s8248_s16 + $0x58] sm:$0xff] }
0x107d   :  { %6514 = vmatprep.subr.bf16.mxu0 %v8065_v43 }
0x112d   :  { %v8213_v24 = vpop.f32.mrf.mxu0 }
0x112e   :  { %v3714_v49 = vadd.f32 %v8213_v24, %v8194_v34  ;;  %v3715_v13 = vmul.f32 %v8213_v24, %v8213_v24 }
0x112f   :  { %v6475_v8 = vpop.f32.mrf.mxu0 }
0x1130   :  { %v3716_v15 = vadd.f32 %v3715_v13, %v3541_v38  ;;  %6493 = vmatmul.mubr.msk.f32.vlgmr.msra.gmra.mxu0 %vm2137_vm2, %v3714_v49  ;;  %v4049_v38 = vld [vmem:[%s8248_s16 + $0x48] sm:$0xff]  ;;  %v4048_v49 = vld [vmem:[%s8248_s16 + $0x40] sm:$0xff]  ;;  %v4047_v13 = vld [vmem:[%s8248_s16 + $0x38] sm:$0xff] }
0x1131   :  { %6522 = vmatprep.mubr.msk.bf16.mxu0 %vm6865_vm0, %v8065_v43  ;;  %6515 = vmatpush3.bf16.msra.mxu0 %v6800_v62  ;;  %v4046_v8 = vld [vmem:[%s8248_s16 + $0x30] sm:$0xff] }
0x1132   :  { %6512 = vmatmul.mubr.msk.f32.vlgmr.msra.gmra.mxu1 %vm2137_vm2, %v3716_v15  ;;  %6516 = vmatprep.subr.bf16.mxu0 %v8065_v43  ;;  %v4045_v15 = vld [vmem:[%s8248_s16 + $0x28] sm:$0xff] }
0x1133   :  { %6534 = vmatprep.mubr.msk.bf16.mxu1 %vm6865_vm0, %v8065_v43  ;;  %6527 = vmatpush3.bf16.msra.mxu1 %v6800_v62  ;;  %v4044_v62 = vld [vmem:[%s8248_s16 + $0x20] sm:$0xff] }
0x1134   :  { %6528 = vmatprep.subr.bf16.mxu1 %v8065_v43 }
0x1135   :  { %6517 = vmatpush3.bf16.msra.mxu0 %v6801_v51 }
0x1136   :  { %6518 = vmatprep.subr.bf16.mxu0 %v8065_v43 }
0x1137   :  { %6529 = vmatpush3.bf16.msra.mxu1 %v6801_v51  ;;  %v4043_v51 = vld [vmem:[%s8248_s16 + $0x18] sm:$0xff] }
0x1138   :  { %6530 = vmatprep.subr.bf16.mxu1 %v8065_v43 }
0x1139   :  { %6519 = vmatpush3.bf16.msra.mxu0 %v6802_v41 }
0x113a   :  { %6520 = vmatprep.subr.bf16.mxu0 %v8065_v43 }
0x113b   :  { %6531 = vmatpush3.bf16.msra.mxu1 %v6802_v41  ;;  %v4042_v41 = vld [vmem:[%s8248_s16 + $0x10] sm:$0xff] }
0x113c   :  { %6532 = vmatprep.subr.bf16.mxu1 %v8065_v43 }
0x113d   :  { %6521 = vmatpush3.bf16.msra.mxu0 %v6803_v0 }
0x113e   :  { %6538 = vmatprep.subr.mxu0 %v8065_v43 }
0x113f   :  { %6533 = vmatpush3.bf16.msra.mxu1 %v6803_v0  ;;  %v4041_v0 = vld [vmem:[%s8248_s16 + $0x8] sm:$0xff] }
0x1140   :  { %6573 = vmatprep.subr.mxu1 %v8065_v43 }
0x11f0   :  { %v3794_v57 = vpop.f32.mrf.mxu0 }
0x11f1   :  { %v3799_v36 = vsel %vm3798_vm4, %v3794_v57, 0.0  ;;  %v4040_v57 = vld [vmem:[%s8248_s16] sm:$0xff] }
0x11f2   :  { %v3800_v17 = vrot.slane %v3799_v36, 4  ;;  %v6494_v52 = vpop.f32.mrf.mxu0  ;;  %v3876_v18 = vpop.f32.mrf.mxu1 }
0x11f3   :  { %v3880_v1 = vsel %vm3798_vm4, %v3876_v18, 0.0 }
0x11f4   :  { %v3801_v35 = vadd.f32 %v3800_v17, %v3799_v36  ;;  %v3881_v59 = vrot.slane %v3880_v1, 4  ;;  %v6513_v16 = vpop.f32.mrf.mxu1 }
0x11f6   :  { %v3802_v12 = vrot.slane %v3801_v35, 2  ;;  %v3882_v6 = vadd.f32 %v3881_v59, %v3880_v1 }
0x11f8   :  { %v3803_v10 = vadd.f32 %v3802_v12, %v3801_v35  ;;  %v3883_v61 = vrot.slane %v3882_v6, 2 }
0x11fa   :  { %v3804_v39 = vrot.slane %v3803_v10, 1  ;;  %v3884_v21 = vadd.f32 %v3883_v61, %v3882_v6 }
0x11fc   :  { %v3805_v14 = vadd.f32 %v3804_v39, %v3803_v10  ;;  %v3885_v27 = vrot.slane %v3884_v21, 1  ;;  %v4367_v39 = vld [vmem:[%s8324_s20 + $0x78] sm:$0xff] }
0x11fe   :  { %v3806_v19 = vmul.f32 0.03125, %v3805_v14  ;;  %v3886_v44 = vadd.f32 %v3885_v27, %v3884_v21  ;;  %v4366_v21 = vld [vmem:[%s8324_s20 + $0x70] sm:$0xff] }
0x1200   :  { %v3888_v11 = vmul.f32 %v3806_v19, %v3806_v19  ;;  %v3887_v20 = vmul.f32 0.03125, %v3886_v44 }
0x1202   :  { %v3889_v3 = vsub.f32 %v3887_v20, %v3888_v11 }
0x1204   :  { %v3890_v5 = vmax.f32 %v3889_v3, 0.0 }
0x1206   :  { %v3892_v50 = vadd.f32 1e-05, %v3890_v5 }
0x1208   :  { %6842 = vrsqrt.f32 %v3892_v50 }
0x1215   :  { %v6843_v58 = vpop.eup %6842 }
0x1216   :  { %v3894_v30 = vmul.f32 %v6843_v58, %v3891_v2 }
0x1218   :  { %v3896_v48 = vmul.f32 %v3894_v30, %v3806_v19  ;;  %v3910_v7 = vrot.slane %v3894_v30, %v7040_v60 }
0x121a   :  { %v3897_v4 = vsub.f32 %v3895_v22, %v3896_v48  ;;  %v3912_v37 = vmul.f32 %v3910_v7, %v8194_v34  ;;  %v3990_v63 = vmul.f32 %v3910_v7, %v8213_v24  ;;  %v4053_v34 = vld [vmem:[%s8248_s16 + $0x68] sm:$0xff]  ;;  %v4050_v24 = vld [vmem:[%s8248_s16 + $0x50] sm:$0xff]  ;;  %s6907_s16 = smov 43  }
0x121b   :  { %s5128_s19 = sld [smem:[%s8598_s0 + %s6907_s16]]  }
0x121c   :  { %v3917_v31 = vrot.slane %v3897_v4, %v7040_v60 }
0x121e   :  { %v3919_v28 = vadd.f32 %v3917_v31, %v3912_v37  ;;  %v3991_v26 = vadd.f32 %v3990_v63, %v3917_v31 }
0x1220   :  { %v3920_v56 = vmax.f32 %v3919_v28, 0.0  ;;  %v3992_v32 = vmax.f32 %v3991_v26, 0.0 }
0x1222   :  { %v3921_v29 = vpack.c.bf16 %v3920_v56, %v3920_v56  ;;  %v3993_v23 = vpack.c.bf16 %v3992_v32, %v3992_v32 }
0x1224   :  { %6523 = vmatmul.mubr.msk.bf16.vlgmr.msra.gmra.mxu0 %vm2137_vm2, %v3921_v29  ;;  %6535 = vmatmul.mubr.msk.bf16.vlgmr.msra.gmra.mxu1 %vm2137_vm2, %v3993_v23  ;;  %v4216_v23 = vld [vmem:[%s5124_s24] sm:$0x1]  ;;  %s6910_s24 = smov 47  }
0x1225   :  { %6539 = vmatpush3.msra.mxu0 %v4055_v33  ;;  %6574 = vmatpush3.msra.mxu1 %v4055_v33  ;;  %s5132_s28 = sld [smem:[%s8598_s0 + %s6910_s24]]  }
0x1226   :  { %6540 = vmatprep.subr.mxu0 %v8065_v43  ;;  %6575 = vmatprep.subr.mxu1 %v8065_v43 }
0x1227   :  { %6541 = vmatpush3.msra.mxu0 %v4054_v54  ;;  %6576 = vmatpush3.msra.mxu1 %v4054_v54 }
0x1228   :  { %6542 = vmatprep.subr.mxu0 %v8065_v43  ;;  %6577 = vmatprep.subr.mxu1 %v8065_v43 }
0x1229   :  { %6543 = vmatpush3.msra.mxu0 %v4053_v34  ;;  %6578 = vmatpush3.msra.mxu1 %v4053_v34  ;;  %v4220_v34 = vld [vmem:[%s5125_s29] sm:$0x1]  ;;  %s6911_s29 = smov 48  }
0x122a   :  { %6544 = vmatprep.subr.mxu0 %v8065_v43  ;;  %6579 = vmatprep.subr.mxu1 %v8065_v43  ;;  %s5133_s2 = sld [smem:[%s8598_s0 + %s6911_s29]]  }
0x122b   :  { %6545 = vmatpush3.msra.mxu0 %v4052_v40  ;;  %6580 = vmatpush3.msra.mxu1 %v4052_v40 }
0x122c   :  { %6546 = vmatprep.subr.mxu0 %v8065_v43  ;;  %6581 = vmatprep.subr.mxu1 %v8065_v43 }
0x122d   :  { %6547 = vmatpush3.msra.mxu0 %v4051_v25  ;;  %6582 = vmatpush3.msra.mxu1 %v4051_v25 }
0x122e   :  { %6548 = vmatprep.subr.mxu0 %v8065_v43  ;;  %6583 = vmatprep.subr.mxu1 %v8065_v43 }
0x122f   :  { %6549 = vmatpush3.msra.mxu0 %v4050_v24  ;;  %6584 = vmatpush3.msra.mxu1 %v4050_v24 }
0x1230   :  { %6550 = vmatprep.subr.mxu0 %v8065_v43  ;;  %6585 = vmatprep.subr.mxu1 %v8065_v43 }
0x1231   :  { %6551 = vmatpush3.msra.mxu0 %v4049_v38  ;;  %6586 = vmatpush3.msra.mxu1 %v4049_v38 }
0x1232   :  { %6552 = vmatprep.subr.mxu0 %v8065_v43  ;;  %6587 = vmatprep.subr.mxu1 %v8065_v43 }
0x1233   :  { %6553 = vmatpush3.msra.mxu0 %v4048_v49  ;;  %6588 = vmatpush3.msra.mxu1 %v4048_v49 }
0x1234   :  { %6554 = vmatprep.subr.mxu0 %v8065_v43  ;;  %6589 = vmatprep.subr.mxu1 %v8065_v43 }
0x1235   :  { %6555 = vmatpush3.msra.mxu0 %v4047_v13  ;;  %6590 = vmatpush3.msra.mxu1 %v4047_v13 }
0x1236   :  { %6556 = vmatprep.subr.mxu0 %v8065_v43  ;;  %6591 = vmatprep.subr.mxu1 %v8065_v43 }
0x1237   :  { %6557 = vmatpush3.msra.mxu0 %v4046_v8  ;;  %6592 = vmatpush3.msra.mxu1 %v4046_v8 }
0x1238   :  { %6558 = vmatprep.subr.mxu0 %v8065_v43  ;;  %6593 = vmatprep.subr.mxu1 %v8065_v43 }
0x1239   :  { %6559 = vmatpush3.msra.mxu0 %v4045_v15  ;;  %6594 = vmatpush3.msra.mxu1 %v4045_v15 }
0x123a   :  { %6560 = vmatprep.subr.mxu0 %v8065_v43  ;;  %6595 = vmatprep.subr.mxu1 %v8065_v43 }
0x123b   :  { %6561 = vmatpush3.msra.mxu0 %v4044_v62  ;;  %6596 = vmatpush3.msra.mxu1 %v4044_v62  ;;  %v4365_v62 = vld [vmem:[%s8324_s20 + $0x68] sm:$0xff] }
0x123c   :  { %6562 = vmatprep.subr.mxu0 %v8065_v43  ;;  %6597 = vmatprep.subr.mxu1 %v8065_v43 }
0x123d   :  { %6563 = vmatpush3.msra.mxu0 %v4043_v51  ;;  %6598 = vmatpush3.msra.mxu1 %v4043_v51  ;;  %v4364_v51 = vld [vmem:[%s8324_s20 + $0x60] sm:$0xff] }
0x123e   :  { %6564 = vmatprep.subr.mxu0 %v8065_v43  ;;  %6599 = vmatprep.subr.mxu1 %v8065_v43 }
0x123f   :  { %6565 = vmatpush3.msra.mxu0 %v4042_v41  ;;  %6600 = vmatpush3.msra.mxu1 %v4042_v41 }
0x1240   :  { %6566 = vmatprep.subr.mxu0 %v8065_v43  ;;  %6601 = vmatprep.subr.mxu1 %v8065_v43 }
0x1241   :  { %6570 = vmatprep.mubr.msk.f32.mxu0 %vm6865_vm0, %v8065_v43  ;;  %6605 = vmatprep.mubr.msk.f32.mxu1 %vm6865_vm0, %v8065_v43 }
0x1242   :  { %6567 = vmatpush3.msra.mxu0 %v4041_v0  ;;  %6602 = vmatpush3.msra.mxu1 %v4041_v0 }
0x1243   :  { %6568 = vmatprep.subr.mxu0 %v8065_v43  ;;  %6603 = vmatprep.subr.mxu1 %v8065_v43 }
0x1244   :  { %6569 = vmatpush3.msra.mxu0 %v4040_v57  ;;  %6604 = vmatpush3.msra.mxu1 %v4040_v57  ;;  %v4363_v57 = vld [vmem:[%s8324_s20 + $0x58] sm:$0xff] }
0x1245   :  { %6608 = vmatprep.subr.mxu0 %v8065_v43  ;;  %6643 = vmatprep.subr.mxu1 %v8065_v43 }
0x12e4   :  { %v8307_v36 = vpop.f32.mrf.mxu0  ;;  %v8309_v17 = vpop.f32.mrf.mxu1 }
0x12e5   :  { %v3989_v52 = vmul.f32 %v8307_v36, %v8307_v36  ;;  %v4037_v18 = vadd.f32 %v8309_v17, %v8307_v36  ;;  %v4038_v1 = vmul.f32 %v8309_v17, %v8309_v17 }
0x12e6   :  { %v6524_v35 = vpop.f32.mrf.mxu0  ;;  %v6536_v59 = vpop.f32.mrf.mxu1 }
0x12e7   :  { %v4039_v16 = vadd.f32 %v4038_v1, %v3989_v52  ;;  %6571 = vmatmul.mubr.f32.vlgmr.msra.gmra.mxu0 %v4037_v18  ;;  %v4360_v1 = vld [vmem:[%s8324_s20 + $0x40] sm:$0xff]  ;;  %v4359_v35 = vld [vmem:[%s8324_s20 + $0x38] sm:$0xff] }
0x12e8   :  { %v3986_v12 = vpop.f32.mrf.mxu0  ;;  %v4034_v6 = vpop.f32.mrf.mxu1  ;;  %6640 = vmatprep.mubr.msk.f32.mxu0 %vm6865_vm0, %v8065_v43  ;;  %6609 = vmatpush3.msra.mxu0 %v4367_v39 }
0x12e9   :  { %6606 = vmatmul.mubr.f32.vlgmr.msra.gmra.mxu1 %v4039_v16  ;;  %6610 = vmatprep.subr.mxu0 %v8065_v43  ;;  %v4358_v12 = vld [vmem:[%s8324_s20 + $0x30] sm:$0xff]  ;;  %v4357_v6 = vld [vmem:[%s8324_s20 + $0x28] sm:$0xff] }
0x12ea   :  { %v6525_v10 = vpop.f32.mrf.mxu0  ;;  %v6537_v61 = vpop.f32.mrf.mxu1  ;;  %6675 = vmatprep.mubr.msk.f32.mxu1 %vm6865_vm0, %v8065_v43  ;;  %6644 = vmatpush3.msra.mxu1 %v4367_v39  ;;  %v4355_v39 = vld [vmem:[%s8324_s20 + $0x18] sm:$0xff] }
0x12eb   :  { %6645 = vmatprep.subr.mxu1 %v8065_v43  ;;  %6611 = vmatpush3.msra.mxu0 %v4366_v21  ;;  %v4356_v10 = vld [vmem:[%s8324_s20 + $0x20] sm:$0xff] }
0x12ec   :  { %6646 = vmatpush3.msra.mxu1 %v4366_v21  ;;  %6612 = vmatprep.subr.mxu0 %v8065_v43 }
0x12ed   :  { %6647 = vmatprep.subr.mxu1 %v8065_v43  ;;  %6613 = vmatpush3.msra.mxu0 %v4365_v62 }
0x12ee   :  { %6648 = vmatpush3.msra.mxu1 %v4365_v62  ;;  %6614 = vmatprep.subr.mxu0 %v8065_v43 }
0x12ef   :  { %6649 = vmatprep.subr.mxu1 %v8065_v43  ;;  %6615 = vmatpush3.msra.mxu0 %v4364_v51 }
0x12f0   :  { %6650 = vmatpush3.msra.mxu1 %v4364_v51  ;;  %6616 = vmatprep.subr.mxu0 %v8065_v43 }
0x12f1   :  { %6651 = vmatprep.subr.mxu1 %v8065_v43  ;;  %6617 = vmatpush3.msra.mxu0 %v4363_v57 }
0x12f2   :  { %6652 = vmatpush3.msra.mxu1 %v4363_v57  ;;  %6618 = vmatprep.subr.mxu0 %v8065_v43 }
0x12f3   :  { %6653 = vmatprep.subr.mxu1 %v8065_v43 }
0x13a7   :  { %v4122_v14 = vpop.f32.mrf.mxu0 }
0x13a8   :  { %v4127_v27 = vsel %vm4126_vm5, %v4122_v14, 0.0  ;;  %v4354_v14 = vld [vmem:[%s8324_s20 + $0x10] sm:$0xff] }
0x13a9   :  { %v4128_v19 = vrot.slane %v4127_v27, 4  ;;  %v6572_v44 = vpop.f32.mrf.mxu0  ;;  %v4201_v11 = vpop.f32.mrf.mxu1 }
0x13aa   :  { %v4205_v20 = vsel %vm4126_vm5, %v4201_v11, 0.0 }
0x13ab   :  { %v4129_v3 = vadd.f32 %v4128_v19, %v4127_v27  ;;  %v4206_v5 = vrot.slane %v4205_v20, 4  ;;  %v6607_v50 = vpop.f32.mrf.mxu1  ;;  %v4353_v27 = vld [vmem:[%s8324_s20 + $0x8] sm:$0xff]  ;;  %v4352_v19 = vld [vmem:[%s8324_s20] sm:$0xff] }
0x13ad   :  { %v4130_v2 = vrot.slane %v4129_v3, 2  ;;  %v4207_v58 = vadd.f32 %v4206_v5, %v4205_v20 }
0x13af   :  { %v4131_v30 = vadd.f32 %v4130_v2, %v4129_v3  ;;  %v4208_v22 = vrot.slane %v4207_v58, 2 }
0x13b1   :  { %v4132_v48 = vrot.slane %v4131_v30, 1  ;;  %v4209_v7 = vadd.f32 %v4208_v22, %v4207_v58 }
0x13b3   :  { %v4133_v4 = vadd.f32 %v4132_v48, %v4131_v30  ;;  %v4210_v37 = vrot.slane %v4209_v7, 1 }
0x13b5   :  { %v4134_v31 = vmul.f32 0.03125, %v4133_v4  ;;  %v4211_v63 = vadd.f32 %v4210_v37, %v4209_v7 }
0x13b7   :  { %v4213_v28 = vmul.f32 %v4134_v31, %v4134_v31  ;;  %v4212_v26 = vmul.f32 0.03125, %v4211_v63 }
0x13b9   :  { %v4214_v56 = vsub.f32 %v4212_v26, %v4213_v28 }
0x13bb   :  { %v4215_v32 = vmax.f32 %v4214_v56, 0.0 }
0x13bd   :  { %v4217_v29 = vadd.f32 1e-05, %v4215_v32 }
0x13bf   :  { %6844 = vrsqrt.f32 %v4217_v29 }
0x13cc   :  { %v6845_v33 = vpop.eup %6844 }
0x13cd   :  { %v4219_v54 = vmul.f32 %v6845_v33, %v4216_v23 }
0x13cf   :  { %v4221_v40 = vmul.f32 %v4219_v54, %v4134_v31  ;;  %v4227_v25 = vrot.slane %v4219_v54, %v7040_v60 }
0x13d1   :  { %v4222_v24 = vsub.f32 %v4220_v34, %v4221_v40  ;;  %v4229_v38 = vmul.f32 %v4227_v25, %v8307_v36  ;;  %v4240_v13 = vmul.f32 %v4227_v25, %v8309_v17  ;;  %v4362_v36 = vld [vmem:[%s8324_s20 + $0x50] sm:$0xff]  ;;  %v4361_v17 = vld [vmem:[%s8324_s20 + $0x48] sm:$0xff]  ;;  %s6908_s20 = smov 44  }
0x13d2   :  { %6619 = vmatpush3.msra.mxu0 %v4362_v36  ;;  %6654 = vmatpush3.msra.mxu1 %v4362_v36  ;;  %s5129_s14 = sld [smem:[%s8598_s0 + %s6908_s20]]  }
0x13d3   :  { %v4234_v49 = vrot.slane %v4222_v24, %v7040_v60  ;;  %6620 = vmatprep.subr.mxu0 %v8065_v43  ;;  %6655 = vmatprep.subr.mxu1 %v8065_v43 }
0x13d4   :  { %6621 = vmatpush3.msra.mxu0 %v4361_v17  ;;  %6656 = vmatpush3.msra.mxu1 %v4361_v17 }
0x13d5   :  { %v4236_v8 = vadd.f32 %v4234_v49, %v4229_v38  ;;  %v4241_v15 = vadd.f32 %v4240_v13, %v4234_v49  ;;  %6622 = vmatprep.subr.mxu0 %v8065_v43  ;;  %6657 = vmatprep.subr.mxu1 %v8065_v43 }
0x13d6   :  { %6623 = vmatpush3.msra.mxu0 %v4360_v1  ;;  %6658 = vmatpush3.msra.mxu1 %v4360_v1 }
0x13d7   :  { %v4237_v41 = vmax.f32 %v4236_v8, 0.0  ;;  %v4242_v0 = vmax.f32 %v4241_v15, 0.0  ;;  %6624 = vmatprep.subr.mxu0 %v8065_v43  ;;  %6659 = vmatprep.subr.mxu1 %v8065_v43 }
0x13d8   :  { %6625 = vmatpush3.msra.mxu0 %v4359_v35  ;;  %6660 = vmatpush3.msra.mxu1 %v4359_v35 }
0x13d9   :  { %4238 = vst [vmem:[%s5135_s3] sm:$0xf] %v4237_v41  ;;  %4239 = vst [vmem:[#allocation6 + $0x1] sm:$0xf] %v4237_v41  ;;  %6626 = vmatprep.subr.mxu0 %v8065_v43  ;;  %6661 = vmatprep.subr.mxu1 %v8065_v43 }
0x13da   :  { %4243 = vst [vmem:[%s5135_s3 + $0x4] sm:$0xf] %v4242_v0  ;;  %4245 = vst [vmem:[#allocation6 + $0x9] sm:$0xf] %v4242_v0  ;;  %6627 = vmatpush3.msra.mxu0 %v4358_v12  ;;  %6662 = vmatpush3.msra.mxu1 %v4358_v12  ;;  %s6912_s3 = smov 51  }
0x13db   :  { %6628 = vmatprep.subr.mxu0 %v8065_v43  ;;  %6663 = vmatprep.subr.mxu1 %v8065_v43  ;;  %s5136_s22 = sld [smem:[%s8598_s0 + %s6912_s3]]  }
0x13dc   :  { %6629 = vmatpush3.msra.mxu0 %v4357_v6  ;;  %6664 = vmatpush3.msra.mxu1 %v4357_v6 }
0x13dd   :  { %6630 = vmatprep.subr.mxu0 %v8065_v43  ;;  %6665 = vmatprep.subr.mxu1 %v8065_v43 }
0x13de   :  { %6631 = vmatpush3.msra.mxu0 %v4356_v10  ;;  %6666 = vmatpush3.msra.mxu1 %v4356_v10 }
0x13df   :  { %6632 = vmatprep.subr.mxu0 %v8065_v43  ;;  %6667 = vmatprep.subr.mxu1 %v8065_v43 }
0x13e0   :  { %v8360_v52 = vld [vmem:[#allocation6 + $0x1] sm:$0xf]  ;;  %6633 = vmatpush3.msra.mxu0 %v4355_v39  ;;  %6668 = vmatpush3.msra.mxu1 %v4355_v39 }
0x13e1   :  { %v8362_v18 = vld [vmem:[#allocation6] sm:$0xf]  ;;  %4271 = vrot.lane.b32.xlu1 %v8360_v52, %s6892_s7  ;;  %v8372_v59 = vld [vmem:[#allocation6 + $0x9] sm:$0xf]  ;;  %6634 = vmatprep.subr.mxu0 %v8065_v43 }
0x13e2   :  { %4249 = vrot.lane.b32.xlu0 %v8362_v18, %s6892_s7  ;;  %v8374_v16 = vld [vmem:[#allocation6 + $0x8] sm:$0xf]  ;;  %v8393_v61 = vld [vmem:[#allocation6 + $0x2] sm:$0xf]  ;;  %6669 = vmatprep.subr.mxu1 %v8065_v43 }
0x13e3   :  { %v8404_v21 = vld [vmem:[#allocation6 + $0xa] sm:$0xf]  ;;  %6635 = vmatpush3.msra.mxu0 %v4354_v14  ;;  %6670 = vmatpush3.msra.mxu1 %v4354_v14 }
0x13e4   :  { %6636 = vmatprep.subr.mxu0 %v8065_v43  ;;  %6671 = vmatprep.subr.mxu1 %v8065_v43 }
0x13e5   :  { %4328 = vrot.lane.b32.xlu1 %v8372_v59, %s6892_s7  ;;  %6637 = vmatpush3.msra.mxu0 %v4353_v27 }
0x13e6   :  { %4318 = vrot.lane.b32.xlu0 %v8374_v16, %s6892_s7  ;;  %6672 = vmatpush3.msra.mxu1 %v4353_v27  ;;  %v6806_v27 = vld [vmem:[%s8457_s10 + $0x74] ss:$8 sps:$4 sm:$0xff]  }
0x13e7   :  { %6638 = vmatprep.subr.mxu0 %v8065_v43  ;;  %6673 = vmatprep.subr.mxu1 %v8065_v43 }
0x13e8   :  { %6639 = vmatpush3.msra.mxu0 %v4352_v19  ;;  %6674 = vmatpush3.msra.mxu1 %v4352_v19  ;;  %v6804_v19 = vld [vmem:[%s8457_s10 + $0x70] ss:$8 sps:$4 sm:$0xff]  }
0x13e9   :  { %4283 = vrot.lane.b32.xlu1 %v8360_v52, %s6902_s4  ;;  %4646 = vmatprep.subr.bf16.mxu0 %v6806_v27 }
0x13ea   :  { %4261 = vrot.lane.b32.xlu0 %v8362_v18, %s6902_s4  ;;  %4693 = vmatprep.subr.bf16.mxu1 %v6806_v27  ;;  %v4767_v27 = vld [vmem:[%s8478_s15 + $0xd8] sm:$0xff] }
0x13ed   :  { %4322 = vrot.lane.b32.xlu1 %v8374_v16, %s6902_s4 }
0x13ee   :  { %4294 = vrot.lane.b32.xlu0 %v8393_v61, %s6892_s7 }
0x13f1   :  { %4339 = vrot.lane.b32.xlu1 %v8404_v21, %s6892_s7  ;;  %s6903_s7 = smov 41  }
0x13f2   :  { %4332 = vrot.lane.b32.xlu0 %v8372_v59, %s6902_s4  ;;  %s8426_s5 = sld [smem:[%s8598_s0 + %s6903_s7]]  }
0x13f5   :  { %4343 = vrot.lane.b32.xlu1 %v8404_v21, %s6902_s4 }
0x13f6   :  { %4306 = vrot.lane.b32.xlu0 %v8393_v61, %s6902_s4 }
0x13f8   :  { %v4246_v44 = vld [vmem:[%s8426_s5] sm:$0xff]  ;;  %v5217_v41 = vld [vmem:[%s8426_s5 + $0x8] ss:$0 sm:$0xff] }
0x13f9   :  { %v4276_v3 = vrot.slane %v4246_v44, %v7153_v45  ;;  %v4254_v5 = vrot.slane %v4246_v44, %v7040_v60  ;;  %v4281_v50 = vrot.slane %v4246_v44, %v7159_v47  ;;  %v4259_v43 = vrot.slane %v4246_v44, %v7156_v46 }
0x13fa   :  { %v4288_v48 = vrot.slane %v4246_v44, %v7165_v53  ;;  %v4266_v7 = vrot.slane %v4246_v44, %v8607_v9  ;;  %v4299_v23 = vrot.slane %v4246_v44, %v7183_v42  ;;  %v4304_v34 = vrot.slane %v4246_v44, %v8608_v55  ;;  %v6807_v44 = vld [vmem:[%s8457_s10 + $0x60] ss:$8 sps:$4 sm:$0xff]  }
0x13fb   :  { %v4282_v4 = vmul.f32 %v4281_v50, %v8360_v52  ;;  %v4260_v37 = vmul.f32 %v4259_v43, %v8362_v18  ;;  %v4331_v40 = vmul.f32 %v8372_v59, %v4281_v50  ;;  %v4321_v25 = vmul.f32 %v8374_v16, %v4259_v43  ;;  %v6813_v43 = vld [vmem:[%s8457_s10 + $0x40] ss:$8 sps:$4 sm:$0xff]  }
0x13fc   :  { %v4305_v42 = vmul.f32 %v4304_v34, %v8393_v61  ;;  %v4342_v0 = vmul.f32 %v8404_v21, %v4304_v34  ;;  %v6905_v50 = vmov 0  }
0x1453   :  { %v4272_v11 = vpop.permute.xlu1 %4271 }
0x1454   :  { %v4250_v20 = vpop.permute.xlu0 %4249  ;;  %v4277_v30 = vmul.f32 %v4276_v3, %v4272_v11  ;;  %v6809_v11 = vld [vmem:[%s8457_s10 + $0x64] ss:$8 sps:$4 sm:$0xff]  }
0x1455   :  { %v4255_v22 = vmul.f32 %v4254_v5, %v4250_v20  ;;  %v6812_v20 = vld [vmem:[%s8457_s10 + $0x54] ss:$8 sps:$4 sm:$0xff]  }
0x1456   :  { %v4290_v63 = vadd.f32 %v4282_v4, %v4277_v30  ;;  %v6821_v30 = vld [vmem:[%s8457_s10 + $0x24] ss:$8 sps:$4 sm:$0xff]  }
0x1457   :  { %v4329_v2 = vpop.permute.xlu1 %4328  ;;  %v4268_v28 = vadd.f32 %v4260_v37, %v4255_v22  ;;  %v6819_v22 = vld [vmem:[%s8457_s10 + $0x20] ss:$8 sps:$4 sm:$0xff]   ;;  %v6827_v4 = vld [vmem:[%s8457_s10 + $0x4] ss:$8 sps:$4 sm:$0xff]  }
0x1458   :  { %v4319_v58 = vpop.permute.xlu0 %4318  ;;  %v4330_v53 = vmul.f32 %v4329_v2, %v4276_v3  ;;  %v6810_v3 = vld [vmem:[%s8457_s10 + $0x50] ss:$8 sps:$4 sm:$0xff]   ;;  %v6818_v2 = vld [vmem:[%s8457_s10 + $0x34] ss:$8 sps:$4 sm:$0xff]   ;;  %v6825_v37 = vld [vmem:[%s8457_s10] ss:$8 sps:$4 sm:$0xff]  }
0x1459   :  { %v4320_v54 = vmul.f32 %v4319_v58, %v4254_v5  ;;  %v6815_v5 = vld [vmem:[%s8457_s10 + $0x44] ss:$8 sps:$4 sm:$0xff]   ;;  %v6816_v58 = vld [vmem:[%s8457_s10 + $0x30] ss:$8 sps:$4 sm:$0xff]  }
0x145a   :  { %v4335_v8 = vadd.f32 %v4331_v40, %v4330_v53 }
0x145b   :  { %v4284_v31 = vpop.permute.xlu1 %4283  ;;  %v4325_v15 = vadd.f32 %v4321_v25, %v4320_v54 }
0x145c   :  { %v4262_v45 = vpop.permute.xlu0 %4261  ;;  %v4289_v26 = vmul.f32 %v4288_v48, %v4284_v31  ;;  %v4771_v31 = vld [vmem:[%s8478_s15 + $0xf8] sm:$0xff] }
0x145d   :  { %v4267_v47 = vmul.f32 %v4266_v7, %v4262_v45 }
0x145e   :  { %v4291_v56 = vadd.f32 %v4290_v63, %v4289_v26 }
0x145f   :  { %v4269_v32 = vadd.f32 %v4268_v28, %v4267_v47  ;;  %v4323_v29 = vpop.permute.xlu1 %4322 }
0x1460   :  { %v4295_v33 = vpop.permute.xlu0 %4294  ;;  %v4324_v24 = vmul.f32 %v4323_v29, %v4266_v7  ;;  %v6822_v7 = vld [vmem:[%s8457_s10 + $0x10] ss:$8 sps:$4 sm:$0xff]  }
0x1461   :  { %v4292_v9 = vadd.f32 %v4291_v56, %v4269_v32  ;;  %v4300_v38 = vmul.f32 %v4299_v23, %v4295_v33 }
0x1462   :  { %v4326_v57 = vadd.f32 %v4325_v15, %v4324_v24 }
0x1463   :  { %v4340_v49 = vpop.permute.xlu1 %4339  ;;  %v4313_v55 = vadd.f32 %v4305_v42, %v4300_v38  ;;  %v4527_v42 = vld [vmem:[%s5128_s19] sm:$0x1] }
0x1464   :  { %v4333_v13 = vpop.permute.xlu0 %4332  ;;  %v4341_v62 = vmul.f32 %v4340_v49, %v4299_v23 }
0x1465   :  { %v4334_v51 = vmul.f32 %v4333_v13, %v4288_v48  ;;  %v6824_v48 = vld [vmem:[%s8457_s10 + $0x14] ss:$8 sps:$4 sm:$0xff]  }
0x1466   :  { %v4346_v18 = vadd.f32 %v4342_v0, %v4341_v62 }
0x1467   :  { %v4336_v36 = vadd.f32 %v4335_v8, %v4334_v51  ;;  %v4344_v17 = vpop.permute.xlu1 %4343 }
0x1468   :  { %v4307_v52 = vpop.permute.xlu0 %4306  ;;  %v4345_v35 = vmul.f32 %v5217_v41, %v4344_v17 }
0x1469   :  { %v4337_v1 = vadd.f32 %v4336_v36, %v4326_v57  ;;  %v4312_v59 = vmul.f32 %v5217_v41, %v4307_v52  ;;  %v4531_v57 = vld [vmem:[%s5129_s14] sm:$0x1] }
0x146a   :  { %v4347_v16 = vadd.f32 %v4346_v18, %v4345_v35 }
0x146b   :  { %v4314_v12 = vadd.f32 %v4313_v55, %v4312_v59 }
0x146c   :  { %v8444_v6 = vadd.f32 %v4347_v16, %v4337_v1 }
0x146d   :  { %v8446_v10 = vadd.f32 %v4314_v12, %v4292_v9 }
0x146e   :  { %v4350_v61 = vmul.f32 %v8444_v6, %v8444_v6 }
0x146f   :  { %v4316_v39 = vmul.f32 %v8446_v10, %v8446_v10  ;;  %v4349_v21 = vadd.f32 %v8444_v6, %v8446_v10 }
0x1471   :  { %6641 = vmatmul.mubr.f32.vlgmr.msra.gmra.mxu0 %v4349_v21  ;;  %v4351_v14 = vadd.f32 %v4350_v61, %v4316_v39  ;;  %v4770_v21 = vld [vmem:[%s8478_s15 + $0xf0] sm:$0xff] }
0x1472   :  { %4647 = vmatpush1.bf16.msra.mxu0 %v6804_v19  ;;  %4678 = vmatprep.mubr.bf16.mxu0 %v6905_v50 }
0x1473   :  { %6676 = vmatmul.mubr.f32.vlgmr.msra.gmra.mxu1 %v4351_v14  ;;  %4648 = vmatprep.subr.bf16.mxu0 %v6809_v11  ;;  %v4769_v14 = vld [vmem:[%s8478_s15 + $0xe8] sm:$0xff] }
0x1474   :  { %4694 = vmatpush1.bf16.msra.mxu1 %v6804_v19  ;;  %4725 = vmatprep.mubr.bf16.mxu1 %v6905_v50  ;;  %v4765_v19 = vld [vmem:[%s8478_s15 + $0xc8] sm:$0xff]  ;;  %v4759_v50 = vld [vmem:[%s8478_s15 + $0x98] sm:$0xff] }
0x1475   :  { %4695 = vmatprep.subr.bf16.mxu1 %v6809_v11  ;;  %v4763_v11 = vld [vmem:[%s8478_s15 + $0xb8] sm:$0xff] }
0x1476   :  { %4649 = vmatpush1.bf16.msra.mxu0 %v6807_v44 }
0x1477   :  { %4650 = vmatprep.subr.bf16.mxu0 %v6812_v20 }
0x1478   :  { %4696 = vmatpush1.bf16.msra.mxu1 %v6807_v44  ;;  %v4764_v44 = vld [vmem:[%s8478_s15 + $0xc0] sm:$0xff] }
0x1479   :  { %4697 = vmatprep.subr.bf16.mxu1 %v6812_v20  ;;  %v4762_v20 = vld [vmem:[%s8478_s15 + $0xb0] sm:$0xff] }
0x147a   :  { %4651 = vmatpush1.bf16.msra.mxu0 %v6810_v3 }
0x147b   :  { %4652 = vmatprep.subr.bf16.mxu0 %v6815_v5 }
0x147c   :  { %4698 = vmatpush1.bf16.msra.mxu1 %v6810_v3  ;;  %v4761_v3 = vld [vmem:[%s8478_s15 + $0xa8] sm:$0xff] }
0x147d   :  { %4699 = vmatprep.subr.bf16.mxu1 %v6815_v5  ;;  %v4760_v5 = vld [vmem:[%s8478_s15 + $0xa0] sm:$0xff] }
0x147e   :  { %4653 = vmatpush1.bf16.msra.mxu0 %v6813_v43 }
0x147f   :  { %4654 = vmatprep.subr.bf16.mxu0 %v6818_v2 }
0x1480   :  { %4700 = vmatpush1.bf16.msra.mxu1 %v6813_v43  ;;  %v4758_v43 = vld [vmem:[%s8478_s15 + $0x90] sm:$0xff] }
0x1481   :  { %4701 = vmatprep.subr.bf16.mxu1 %v6818_v2  ;;  %v4757_v2 = vld [vmem:[%s8478_s15 + $0x88] sm:$0xff] }
0x1482   :  { %4655 = vmatpush1.bf16.msra.mxu0 %v6816_v58 }
0x1483   :  { %4656 = vmatprep.subr.bf16.mxu0 %v6821_v30 }
0x1484   :  { %4702 = vmatpush1.bf16.msra.mxu1 %v6816_v58  ;;  %v4756_v58 = vld [vmem:[%s8478_s15 + $0x80] sm:$0xff] }
0x1485   :  { %4703 = vmatprep.subr.bf16.mxu1 %v6821_v30  ;;  %v4755_v30 = vld [vmem:[%s8478_s15 + $0x78] sm:$0xff] }
0x1486   :  { %4657 = vmatpush1.bf16.msra.mxu0 %v6819_v22 }
0x1487   :  { %4658 = vmatprep.subr.bf16.mxu0 %v6824_v48 }
0x1488   :  { %4704 = vmatpush1.bf16.msra.mxu1 %v6819_v22  ;;  %v4754_v22 = vld [vmem:[%s8478_s15 + $0x70] sm:$0xff] }
0x1489   :  { %4705 = vmatprep.subr.bf16.mxu1 %v6824_v48  ;;  %v4753_v48 = vld [vmem:[%s8478_s15 + $0x68] sm:$0xff] }
0x148a   :  { %4659 = vmatpush1.bf16.msra.mxu0 %v6822_v7 }
0x148b   :  { %4660 = vmatprep.subr.bf16.mxu0 %v6827_v4 }
0x148c   :  { %4706 = vmatpush1.bf16.msra.mxu1 %v6822_v7  ;;  %v4752_v7 = vld [vmem:[%s8478_s15 + $0x60] sm:$0xff] }
0x148d   :  { %4707 = vmatprep.subr.bf16.mxu1 %v6827_v4  ;;  %v4751_v4 = vld [vmem:[%s8478_s15 + $0x58] sm:$0xff] }
0x148e   :  { %4661 = vmatpush1.bf16.msra.mxu0 %v6825_v37 }
0x148f   :  { %4804 = vmatprep.subr.mxu0 %v4771_v31 }
0x1490   :  { %4708 = vmatpush1.bf16.msra.mxu1 %v6825_v37  ;;  %v4750_v37 = vld [vmem:[%s8478_s15 + $0x50] sm:$0xff] }
0x1491   :  { %4891 = vmatprep.subr.mxu1 %v4771_v31  ;;  %v4749_v31 = vld [vmem:[%s8478_s15 + $0x48] sm:$0xff] }
0x1531   :  { %v4434_v45 = vpop.f32.mrf.mxu0 }
0x1532   :  { %v4438_v63 = vsel %vm4126_vm5, %v4434_v45, 0.0  ;;  %v4748_v45 = vld [vmem:[%s8478_s15 + $0x40] sm:$0xff] }
0x1533   :  { %v4439_v28 = vrot.slane %v4438_v63, 4  ;;  %v6642_v26 = vpop.f32.mrf.mxu0  ;;  %v4512_v47 = vpop.f32.mrf.mxu1 }
0x1534   :  { %v4516_v56 = vsel %vm4126_vm5, %v4512_v47, 0.0  ;;  %v4745_v26 = vld [vmem:[%s8478_s15 + $0x28] sm:$0xff]  ;;  %v4744_v47 = vld [vmem:[%s8478_s15 + $0x20] sm:$0xff] }
0x1535   :  { %v4440_v32 = vadd.f32 %v4439_v28, %v4438_v63  ;;  %v4517_v29 = vrot.slane %v4516_v56, 4  ;;  %v6677_v23 = vpop.f32.mrf.mxu1  ;;  %v4747_v63 = vld [vmem:[%s8478_s15 + $0x38] sm:$0xff]  ;;  %v4746_v28 = vld [vmem:[%s8478_s15 + $0x30] sm:$0xff] }
0x1536   :  { %v4740_v23 = vld [vmem:[%s8478_s15] sm:$0xff] }
0x1537   :  { %v4441_v33 = vrot.slane %v4440_v32, 2  ;;  %v4518_v53 = vadd.f32 %v4517_v29, %v4516_v56  ;;  %v4743_v56 = vld [vmem:[%s8478_s15 + $0x18] sm:$0xff]  ;;  %v4741_v29 = vld [vmem:[%s8478_s15 + $0x8] sm:$0xff] }
0x1539   :  { %v4442_v54 = vadd.f32 %v4441_v33, %v4440_v32  ;;  %v4519_v9 = vrot.slane %v4518_v53, 2  ;;  %v4742_v32 = vld [vmem:[%s8478_s15 + $0x10] sm:$0xff]  ;;  %v4803_v33 = vld [vmem:[%s8478_s15 + $0x1f8] sm:$0xff] }
0x153b   :  { %v4443_v34 = vrot.slane %v4442_v54, 1  ;;  %v4520_v40 = vadd.f32 %v4519_v9, %v4518_v53  ;;  %v4802_v53 = vld [vmem:[%s8478_s15 + $0x1f0] sm:$0xff]  ;;  %v4800_v9 = vld [vmem:[%s8478_s15 + $0x1e0] sm:$0xff] }
0x153d   :  { %v4444_v25 = vadd.f32 %v4443_v34, %v4442_v54  ;;  %v4521_v24 = vrot.slane %v4520_v40, 1  ;;  %v4801_v54 = vld [vmem:[%s8478_s15 + $0x1e8] sm:$0xff]  ;;  %v4799_v34 = vld [vmem:[%s8478_s15 + $0x1d8] sm:$0xff] }
0x153f   :  { %v4445_v38 = vmul.f32 0.03125, %v4444_v25  ;;  %v4522_v49 = vadd.f32 %v4521_v24, %v4520_v40  ;;  %v4798_v40 = vld [vmem:[%s8478_s15 + $0x1d0] sm:$0xff]  ;;  %v4797_v25 = vld [vmem:[%s8478_s15 + $0x1c8] sm:$0xff]  ;;  %v4796_v24 = vld [vmem:[%s8478_s15 + $0x1c0] sm:$0xff] }
0x1541   :  { %v4524_v13 = vmul.f32 %v4445_v38, %v4445_v38  ;;  %v4523_v8 = vmul.f32 0.03125, %v4522_v49  ;;  %v4794_v49 = vld [vmem:[%s8478_s15 + $0x1b0] sm:$0xff] }
0x1543   :  { %v4525_v15 = vsub.f32 %v4523_v8, %v4524_v13  ;;  %v4793_v13 = vld [vmem:[%s8478_s15 + $0x1a8] sm:$0xff]  ;;  %v4792_v8 = vld [vmem:[%s8478_s15 + $0x1a0] sm:$0xff] }
0x1545   :  { %v4526_v62 = vmax.f32 %v4525_v15, 0.0  ;;  %v4791_v15 = vld [vmem:[%s8478_s15 + $0x198] sm:$0xff] }
0x1547   :  { %v4528_v51 = vadd.f32 1e-05, %v4526_v62  ;;  %v4790_v62 = vld [vmem:[%s8478_s15 + $0x190] sm:$0xff] }
0x1549   :  { %6846 = vrsqrt.f32 %v4528_v51  ;;  %v4789_v51 = vld [vmem:[%s8478_s15 + $0x188] sm:$0xff] }
0x1556   :  { %v6847_v41 = vpop.eup %6846 }
0x1557   :  { %v4530_v0 = vmul.f32 %v6847_v41, %v4527_v42  ;;  %v4788_v42 = vld [vmem:[%s8478_s15 + $0x180] sm:$0xff]  ;;  %v4787_v41 = vld [vmem:[%s8478_s15 + $0x178] sm:$0xff] }
0x1559   :  { %v4532_v36 = vmul.f32 %v4530_v0, %v4445_v38  ;;  %v4554_v55 = vrot.slane %v4530_v0, %v7040_v60  ;;  %v4795_v38 = vld [vmem:[%s8478_s15 + $0x1b8] sm:$0xff]  ;;  %v4786_v0 = vld [vmem:[%s8478_s15 + $0x170] sm:$0xff] }
0x155b   :  { %v4533_v17 = vsub.f32 %v4531_v57, %v4532_v36  ;;  %v4556_v52 = vmul.f32 %v4554_v55, %v8446_v10  ;;  %v4689_v1 = vmul.f32 %v4554_v55, %v8444_v6  ;;  %v4768_v10 = vld [vmem:[%s8478_s15 + $0xe0] sm:$0xff]  ;;  %v4766_v6 = vld [vmem:[%s8478_s15 + $0xd0] sm:$0xff]  ;;  %v4785_v57 = vld [vmem:[%s8478_s15 + $0x168] sm:$0xff] }
0x155c   :  { %v4784_v36 = vld [vmem:[%s8478_s15 + $0x160] sm:$0xff]  ;;  %v4783_v55 = vld [vmem:[%s8478_s15 + $0x158] sm:$0xff] }
0x155d   :  { %v4561_v18 = vrot.slane %v4533_v17, %v7040_v60  ;;  %v4782_v17 = vld [vmem:[%s8478_s15 + $0x150] sm:$0xff] }
0x155f   :  { %v4563_v35 = vadd.f32 %v4561_v18, %v4556_v52  ;;  %v4690_v59 = vadd.f32 %v4689_v1, %v4561_v18  ;;  %v4781_v52 = vld [vmem:[%s8478_s15 + $0x148] sm:$0xff]  ;;  %v4780_v18 = vld [vmem:[%s8478_s15 + $0x140] sm:$0xff]  ;;  %v4779_v1 = vld [vmem:[%s8478_s15 + $0x138] sm:$0xff] }
0x1561   :  { %v4564_v16 = vmax.f32 %v4563_v35, 0.0  ;;  %v4691_v12 = vmax.f32 %v4690_v59, 0.0  ;;  %v4778_v35 = vld [vmem:[%s8478_s15 + $0x130] sm:$0xff]  ;;  %v4777_v59 = vld [vmem:[%s8478_s15 + $0x128] sm:$0xff] }
0x1563   :  { %v4565_v61 = vpack.c.bf16 %v4564_v16, %v4564_v16  ;;  %v4692_v39 = vpack.c.bf16 %v4691_v12, %v4691_v12  ;;  %v4776_v16 = vld [vmem:[%s8478_s15 + $0x120] sm:$0xff]  ;;  %v4775_v12 = vld [vmem:[%s8478_s15 + $0x118] sm:$0xff] }
0x1565   :  { %4679 = vmatmul.mubr.bf16.vlgmr.msra.gmra.mxu0 %v4565_v61  ;;  %4726 = vmatmul.mubr.bf16.vlgmr.msra.gmra.mxu1 %v4692_v39  ;;  %v4774_v61 = vld [vmem:[%s8478_s15 + $0x110] sm:$0xff]  ;;  %v4773_v39 = vld [vmem:[%s8478_s15 + $0x108] sm:$0xff] }
0x1566   :  { %4805 = vmatpush1.msra.mxu0 %v4770_v21  ;;  %4892 = vmatpush1.msra.mxu1 %v4770_v21  ;;  %v4772_v21 = vld [vmem:[%s8478_s15 + $0x100] sm:$0xff] }
0x1567   :  { %4806 = vmatprep.subr.mxu0 %v4769_v14  ;;  %4893 = vmatprep.subr.mxu1 %v4769_v14 }
0x1568   :  { %4807 = vmatpush1.msra.mxu0 %v4768_v10  ;;  %4894 = vmatpush1.msra.mxu1 %v4768_v10 }
0x1569   :  { %4808 = vmatprep.subr.mxu0 %v4767_v27  ;;  %4895 = vmatprep.subr.mxu1 %v4767_v27 }
0x156a   :  { %4809 = vmatpush1.msra.mxu0 %v4766_v6  ;;  %4896 = vmatpush1.msra.mxu1 %v4766_v6 }
0x156b   :  { %4810 = vmatprep.subr.mxu0 %v4765_v19  ;;  %4897 = vmatprep.subr.mxu1 %v4765_v19 }
0x156c   :  { %4811 = vmatpush1.msra.mxu0 %v4764_v44  ;;  %4898 = vmatpush1.msra.mxu1 %v4764_v44 }
0x156d   :  { %4812 = vmatprep.subr.mxu0 %v4763_v11  ;;  %4899 = vmatprep.subr.mxu1 %v4763_v11 }
0x156e   :  { %4813 = vmatpush1.msra.mxu0 %v4762_v20  ;;  %4900 = vmatpush1.msra.mxu1 %v4762_v20 }
0x156f   :  { %4814 = vmatprep.subr.mxu0 %v4761_v3  ;;  %4901 = vmatprep.subr.mxu1 %v4761_v3 }
0x1570   :  { %4815 = vmatpush1.msra.mxu0 %v4760_v5  ;;  %4902 = vmatpush1.msra.mxu1 %v4760_v5 }
0x1571   :  { %4816 = vmatprep.subr.mxu0 %v4759_v50  ;;  %4903 = vmatprep.subr.mxu1 %v4759_v50 }
0x1572   :  { %4817 = vmatpush1.msra.mxu0 %v4758_v43  ;;  %4904 = vmatpush1.msra.mxu1 %v4758_v43 }
0x1573   :  { %4818 = vmatprep.subr.mxu0 %v4757_v2  ;;  %4905 = vmatprep.subr.mxu1 %v4757_v2 }
0x1574   :  { %4819 = vmatpush1.msra.mxu0 %v4756_v58  ;;  %4906 = vmatpush1.msra.mxu1 %v4756_v58 }
0x1575   :  { %4820 = vmatprep.subr.mxu0 %v4755_v30  ;;  %4907 = vmatprep.subr.mxu1 %v4755_v30 }
0x1576   :  { %4821 = vmatpush1.msra.mxu0 %v4754_v22  ;;  %4908 = vmatpush1.msra.mxu1 %v4754_v22 }
0x1577   :  { %4822 = vmatprep.subr.mxu0 %v4753_v48  ;;  %4909 = vmatprep.subr.mxu1 %v4753_v48 }
0x1578   :  { %4823 = vmatpush1.msra.mxu0 %v4752_v7  ;;  %4910 = vmatpush1.msra.mxu1 %v4752_v7 }
0x1579   :  { %4824 = vmatprep.subr.mxu0 %v4751_v4  ;;  %4911 = vmatprep.subr.mxu1 %v4751_v4 }
0x157a   :  { %4825 = vmatpush1.msra.mxu0 %v4750_v37  ;;  %4912 = vmatpush1.msra.mxu1 %v4750_v37 }
0x157b   :  { %4826 = vmatprep.subr.mxu0 %v4749_v31  ;;  %4913 = vmatprep.subr.mxu1 %v4749_v31 }
0x157c   :  { %4827 = vmatpush1.msra.mxu0 %v4748_v45  ;;  %4914 = vmatpush1.msra.mxu1 %v4748_v45 }
0x157d   :  { %4828 = vmatprep.subr.mxu0 %v4747_v63  ;;  %4915 = vmatprep.subr.mxu1 %v4747_v63 }
0x157e   :  { %4829 = vmatpush1.msra.mxu0 %v4746_v28  ;;  %4916 = vmatpush1.msra.mxu1 %v4746_v28 }
0x157f   :  { %4830 = vmatprep.subr.mxu0 %v4745_v26  ;;  %4917 = vmatprep.subr.mxu1 %v4745_v26 }
0x1580   :  { %4831 = vmatpush1.msra.mxu0 %v4744_v47  ;;  %4918 = vmatpush1.msra.mxu1 %v4744_v47 }
0x1581   :  { %4832 = vmatprep.subr.mxu0 %v4743_v56  ;;  %4919 = vmatprep.subr.mxu1 %v4743_v56 }
0x1582   :  { %4833 = vmatpush1.msra.mxu0 %v4742_v32  ;;  %4920 = vmatpush1.msra.mxu1 %v4742_v32 }
0x1583   :  { %4834 = vmatprep.subr.mxu0 %v4741_v29  ;;  %4921 = vmatprep.subr.mxu1 %v4741_v29 }
0x1584   :  { %4835 = vmatpush1.msra.mxu0 %v4740_v23  ;;  %4922 = vmatpush1.msra.mxu1 %v4740_v23 }
0x1585   :  { %4836 = vmatprep.subr.mxu0 %v4803_v33  ;;  %4923 = vmatprep.subr.mxu1 %v4803_v33 }
0x1586   :  { %4837 = vmatpush2.msra.mxu0 %v4802_v53  ;;  %4924 = vmatpush2.msra.mxu1 %v4802_v53 }
0x1587   :  { %4838 = vmatprep.subr.mxu0 %v4801_v54  ;;  %4925 = vmatprep.subr.mxu1 %v4801_v54 }
0x1588   :  { %4839 = vmatpush2.msra.mxu0 %v4800_v9  ;;  %4926 = vmatpush2.msra.mxu1 %v4800_v9 }
0x1589   :  { %4840 = vmatprep.subr.mxu0 %v4799_v34  ;;  %4927 = vmatprep.subr.mxu1 %v4799_v34 }
0x158a   :  { %4841 = vmatpush2.msra.mxu0 %v4798_v40  ;;  %4928 = vmatpush2.msra.mxu1 %v4798_v40 }
0x158b   :  { %4842 = vmatprep.subr.mxu0 %v4797_v25  ;;  %4929 = vmatprep.subr.mxu1 %v4797_v25 }
0x158c   :  { %4843 = vmatpush2.msra.mxu0 %v4796_v24  ;;  %4930 = vmatpush2.msra.mxu1 %v4796_v24 }
0x158d   :  { %4844 = vmatprep.subr.mxu0 %v4795_v38  ;;  %4931 = vmatprep.subr.mxu1 %v4795_v38 }
0x158e   :  { %4845 = vmatpush2.msra.mxu0 %v4794_v49  ;;  %4932 = vmatpush2.msra.mxu1 %v4794_v49 }
0x158f   :  { %4846 = vmatprep.subr.mxu0 %v4793_v13  ;;  %4933 = vmatprep.subr.mxu1 %v4793_v13 }
0x1590   :  { %4847 = vmatpush2.msra.mxu0 %v4792_v8  ;;  %4934 = vmatpush2.msra.mxu1 %v4792_v8 }
0x1591   :  { %4848 = vmatprep.subr.mxu0 %v4791_v15  ;;  %4935 = vmatprep.subr.mxu1 %v4791_v15 }
0x1592   :  { %4849 = vmatpush2.msra.mxu0 %v4790_v62  ;;  %4936 = vmatpush2.msra.mxu1 %v4790_v62 }
0x1593   :  { %4850 = vmatprep.subr.mxu0 %v4789_v51  ;;  %4937 = vmatprep.subr.mxu1 %v4789_v51 }
0x1594   :  { %4851 = vmatpush2.msra.mxu0 %v4788_v42  ;;  %4938 = vmatpush2.msra.mxu1 %v4788_v42 }
0x1595   :  { %4852 = vmatprep.subr.mxu0 %v4787_v41  ;;  %4939 = vmatprep.subr.mxu1 %v4787_v41 }
0x1596   :  { %4853 = vmatpush2.msra.mxu0 %v4786_v0  ;;  %4940 = vmatpush2.msra.mxu1 %v4786_v0 }
0x1597   :  { %4854 = vmatprep.subr.mxu0 %v4785_v57  ;;  %4941 = vmatprep.subr.mxu1 %v4785_v57 }
0x1598   :  { %4855 = vmatpush2.msra.mxu0 %v4784_v36  ;;  %4942 = vmatpush2.msra.mxu1 %v4784_v36 }
0x1599   :  { %4856 = vmatprep.subr.mxu0 %v4783_v55  ;;  %4943 = vmatprep.subr.mxu1 %v4783_v55 }
0x159a   :  { %4857 = vmatpush2.msra.mxu0 %v4782_v17  ;;  %4944 = vmatpush2.msra.mxu1 %v4782_v17 }
0x159b   :  { %4858 = vmatprep.subr.mxu0 %v4781_v52  ;;  %4945 = vmatprep.subr.mxu1 %v4781_v52 }
0x159c   :  { %4859 = vmatpush2.msra.mxu0 %v4780_v18  ;;  %4946 = vmatpush2.msra.mxu1 %v4780_v18 }
0x159d   :  { %4860 = vmatprep.subr.mxu0 %v4779_v1  ;;  %4947 = vmatprep.subr.mxu1 %v4779_v1 }
0x159e   :  { %4861 = vmatpush2.msra.mxu0 %v4778_v35  ;;  %4948 = vmatpush2.msra.mxu1 %v4778_v35 }
0x159f   :  { %4862 = vmatprep.subr.mxu0 %v4777_v59  ;;  %4949 = vmatprep.subr.mxu1 %v4777_v59 }
0x15a0   :  { %4863 = vmatpush2.msra.mxu0 %v4776_v16  ;;  %4950 = vmatpush2.msra.mxu1 %v4776_v16 }
0x15a1   :  { %4864 = vmatprep.subr.mxu0 %v4775_v12  ;;  %4951 = vmatprep.subr.mxu1 %v4775_v12 }
0x15a2   :  { %4865 = vmatpush2.msra.mxu0 %v4774_v61  ;;  %4952 = vmatpush2.msra.mxu1 %v4774_v61 }
0x15a3   :  { %4866 = vmatprep.subr.mxu0 %v4773_v39  ;;  %4953 = vmatprep.subr.mxu1 %v4773_v39  ;;  %v6909_v39 = vmov 1966171168  }
0x15a4   :  { %4867 = vmatpush2.msra.mxu0 %v4772_v21  ;;  %4954 = vmatpush2.msra.mxu1 %v4772_v21  ;;  %v4993_v21 = vunpack.c.l.s4 %v6909_v39 }
0x1625   :  { %v8556_v14 = vpop.f32.mrf.mxu0  ;;  %v8558_v10 = vpop.f32.mrf.mxu1 }
0x1626   :  { %v4687_v27 = vmul.f32 %v8556_v14, %v8556_v14  ;;  %v4736_v6 = vmul.f32 %v8558_v10, %v8558_v10  ;;  %v4734_v5 = vadd.f32 %v8558_v10, %v8556_v14 }
0x1627   :  { %v8564_v19 = vpop.f32.mrf.mxu0  ;;  %v8566_v44 = vpop.f32.mrf.mxu1 }
0x1628   :  { %v4688_v11 = vmul.f32 %v8564_v19, %v8564_v19  ;;  %v4735_v20 = vadd.f32 %v8566_v44, %v8564_v19  ;;  %v4737_v3 = vmul.f32 %v8566_v44, %v8566_v44  ;;  %v4738_v58 = vadd.f32 %v4736_v6, %v4687_v27 }
0x1629   :  { %v4684_v50 = vpop.f32.mrf.mxu0  ;;  %v4731_v43 = vpop.f32.mrf.mxu1  ;;  %v4994_v27 = vunpack.c.0.s8 %v4993_v21 }
0x162a   :  { %4868 = vmatprep.mubr.f32.mxu0 %v4735_v20  ;;  %v4739_v2 = vadd.f32 %v4737_v3, %v4688_v11  ;;  %v8609_v11 = vld [vmem:[#allocation7_spill] sm:$0xff]  ;;  %v4984_v43 = vld [vmem:[%s5132_s28] sm:$0x3] }
0x162b   :  { %v4685_v30 = vpop.f32.mrf.mxu0  ;;  %v4732_v22 = vpop.f32.mrf.mxu1  ;;  %4869 = vmatmul.mubr.f32.vlgmr.msra.gmra.mxu0 %v4734_v5  ;;  %v4997_v20 = vsub.s32 %v4994_v27, %v8609_v11 }
0x162c   :  { %4955 = vmatprep.mubr.f32.mxu1 %v4739_v2 }
0x162d   :  { %4956 = vmatmul.mubr.f32.vlgmr.msra.gmra.mxu1 %v4738_v58 }
0x16eb   :  { %v4870_v48 = vpop.f32.mrf.mxu0 }
0x16ec   :  { %v4875_v7 = vsel %vm4126_vm5, %v4870_v48, 0.0 }
0x16ed   :  { %v4876_v4 = vrot.slane %v4875_v7, 4  ;;  %v4872_v37 = vpop.f32.mrf.mxu0  ;;  %v4957_v31 = vpop.f32.mrf.mxu1 }
0x16ee   :  { %v4882_v45 = vsel %vm4126_vm5, %v4872_v37, 0.0  ;;  %v4962_v63 = vsel %vm4126_vm5, %v4957_v31, 0.0  ;;  %v5008_v31 = vld [vmem:[%s5133_s2] sm:$0x3] }
0x16ef   :  { %v4877_v28 = vadd.f32 %v4876_v4, %v4875_v7  ;;  %v4883_v26 = vrot.slane %v4882_v45, 4  ;;  %v4963_v47 = vrot.slane %v4962_v63, 4  ;;  %v4959_v56 = vpop.f32.mrf.mxu1 }
0x16f0   :  { %v4969_v32 = vsel %vm4126_vm5, %v4959_v56, 0.0 }
0x16f1   :  { %v4878_v29 = vrot.slane %v4877_v28, 2  ;;  %v4884_v23 = vadd.f32 %v4883_v26, %v4882_v45  ;;  %v4964_v33 = vadd.f32 %v4963_v47, %v4962_v63  ;;  %v4970_v53 = vrot.slane %v4969_v32, 4 }
0x16f3   :  { %v4879_v54 = vadd.f32 %v4878_v29, %v4877_v28  ;;  %v4885_v9 = vrot.slane %v4884_v23, 2  ;;  %v4965_v34 = vrot.slane %v4964_v33, 2  ;;  %v4971_v40 = vadd.f32 %v4970_v53, %v4969_v32 }
0x16f5   :  { %v4880_v25 = vrot.slane %v4879_v54, 1  ;;  %v4886_v24 = vadd.f32 %v4885_v9, %v4884_v23  ;;  %v4966_v38 = vadd.f32 %v4965_v34, %v4964_v33  ;;  %v4972_v49 = vrot.slane %v4971_v40, 2 }
0x16f7   :  { %v4881_v13 = vadd.f32 %v4880_v25, %v4879_v54  ;;  %v4887_v8 = vrot.slane %v4886_v24, 1  ;;  %v4967_v15 = vrot.slane %v4966_v38, 1  ;;  %v4973_v62 = vadd.f32 %v4972_v49, %v4971_v40 }
0x16f9   :  { %v4889_v51 = vmul.f32 0.03125, %v4881_v13  ;;  %v4888_v42 = vadd.f32 %v4887_v8, %v4886_v24  ;;  %v4968_v41 = vadd.f32 %v4967_v15, %v4966_v38  ;;  %v4974_v0 = vrot.slane %v4973_v62, 1 }
0x16fb   :  { %v4978_v57 = vmul.f32 %v4889_v51, %v4889_v51  ;;  %v4890_v36 = vmul.f32 0.03125, %v4888_v42  ;;  %v4976_v55 = vmul.f32 0.03125, %v4968_v41  ;;  %v4975_v17 = vadd.f32 %v4974_v0, %v4973_v62 }
0x16fd   :  { %v4979_v52 = vmul.f32 %v4890_v36, %v4890_v36  ;;  %v4980_v18 = vsub.f32 %v4976_v55, %v4978_v57  ;;  %v4977_v1 = vmul.f32 0.03125, %v4975_v17 }
0x16ff   :  { %v4982_v35 = vmax.f32 %v4980_v18, 0.0  ;;  %v4981_v59 = vsub.f32 %v4977_v1, %v4979_v52 }
0x1701   :  { %v4985_v16 = vadd.f32 1e-05, %v4982_v35  ;;  %v4983_v12 = vmax.f32 %v4981_v59, 0.0 }
0x1703   :  { %v4986_v61 = vadd.f32 1e-05, %v4983_v12  ;;  %6848 = vrsqrt.f32 %v4985_v16 }
0x1705   :  { %6850 = vrsqrt.f32 %v4986_v61 }
0x1710   :  { %v6849_v6 = vpop.eup %6848 }
0x1712   :  { %v6851_v3 = vpop.eup %6850 }
0x1713   :  { %v4991_v5 = vcombine.low %v6849_v6, %v6851_v3 }
0x1715   :  { %v4998_v50 = vrot.slane %v4991_v5, %v4997_v20 }
0x1717   :  { %v5005_v2 = vrot.slane %v4998_v50, %v4997_v20 }
0x1719   :  { %v5007_v58 = vmul.f32 %v5005_v2, %v4984_v43 }
0x171b   :  { %v5013_v30 = vrot.slane %v5007_v58, %v7040_v60  ;;  %v5017_v22 = vrot.slane %v5007_v58, %v7156_v46 }
0x171d   :  { %v5020_v48 = vmul.f32 %v5013_v30, %v4889_v51  ;;  %v5021_v7 = vmul.f32 %v5017_v22, %v4890_v36  ;;  %v5041_v28 = vmul.f32 %v5013_v30, %v8556_v14  ;;  %v5042_v26 = vmul.f32 %v5017_v22, %v8564_v19 }
0x171e   :  { %v5060_v32 = vmul.f32 %v5013_v30, %v8558_v10  ;;  %v5061_v29 = vmul.f32 %v5017_v22, %v8566_v44 }
0x171f   :  { %v5024_v4 = vcombine.low %v5020_v48, %v5021_v7 }
0x1721   :  { %v5031_v37 = vrot.slane %v5024_v4, %v4997_v20 }
0x1723   :  { %v5038_v45 = vrot.slane %v5031_v37, %v4997_v20 }
0x1725   :  { %v5040_v63 = vsub.f32 %v5008_v31, %v5038_v45 }
0x1727   :  { %v5047_v47 = vrot.slane %v5040_v63, %v7040_v60  ;;  %v5051_v56 = vrot.slane %v5040_v63, %v7156_v46 }
0x1729   :  { %v5054_v23 = vadd.f32 %v5047_v47, %v5041_v28  ;;  %v5055_v33 = vadd.f32 %v5051_v56, %v5042_v26  ;;  %v5062_v53 = vadd.f32 %v5060_v32, %v5047_v47  ;;  %v5063_v54 = vadd.f32 %v5061_v29, %v5051_v56 }
0x172b   :  { %v5056_v9 = vmax.f32 %v5054_v23, 0.0  ;;  %v5057_v34 = vmax.f32 %v5055_v33, 0.0  ;;  %v5064_v40 = vmax.f32 %v5062_v53, 0.0  ;;  %v5065_v25 = vmax.f32 %v5063_v54, 0.0 }
0x172d   :  { %5058 = vst [vmem:[%s5136_s22] sm:$0xf] %v5056_v9  ;;  %5059 = vst [vmem:[%s5136_s22 + $0x8] sm:$0xf] %v5057_v34  ;;  %v5068_v14 = vrot.slane %v5064_v40, 4  ;;  %v5069_v19 = vrot.slane %v5065_v25, 4 }
0x172f   :  { %5072 = vst [vmem:[%s5136_s22] sm:$0xf0] %v5068_v14  ;;  %5073 = vst [vmem:[%s5136_s22 + $0x8] sm:$0xf0] %v5069_v19 }

</bundles_post_ra>
